<compile_context>
chip_gen: v7x
topology: tpu7x:2x2x1
jax: 0.10.0
libtpu: 0.0.40
codegen_flags: <defaults>
</compile_context>

<pallas_src>
import math

import jax
import jax.numpy as jnp
from jax.experimental import pallas as pl
from jax.experimental.pallas import tpu as pltpu

EPS = 1e-5  # nn.BatchNorm2d default eps


# --------------------------------------------------------------------------- #
# Shared helper: one 3x3 conv (stride 1, pad 1) as a single im2col MXU matmul.
# --------------------------------------------------------------------------- #
def _im2col_conv3x3(xp4_f32, w_ref, patch_ref, H, W, Cin):
    """xp4_f32  : (1, H+2, W+2, Cin) f32 zero-padded activation (loaded value)
       w_ref    : (9*Cin, Cout) bf16 weights, row index = (ky*3+kx)*Cin + c
       patch_ref: (H*W, 9*Cin) f32 VMEM scratch for the im2col patch matrix
       returns  : (H*W, Cout) f32 conv output."""
    for t in range(9):                          # 9 static slice-stores
        dy, dx = divmod(t, 3)
        patch_ref[:, t * Cin:(t + 1) * Cin] = (
            xp4_f32[0, dy:dy + H, dx:dx + W, :].reshape(H * W, Cin))
    # Single MXU matmul, K = 9*Cin (144 here) instead of 9 K=16 matmuls.
    return jnp.dot(patch_ref[...].astype(jnp.bfloat16), w_ref[...],
                   preferred_element_type=jnp.float32)


# --------------------------------------------------------------------------- #
# Kernel 1: conv1 + per-image partial BN1 statistics.  Output is UNPADDED bf16.
# --------------------------------------------------------------------------- #
def conv1_stats_kernel(xp_ref, w_ref, y1_ref, psum_ref, psqr_ref, patch_ref):
    # xp_ref : (1, H+2, W+2, Cin) bf16 zero-padded input image
    # w_ref  : (9*Cin, Cout)      bf16 im2col conv1 weights
    # y1_ref : (1, H, W, Cout)    bf16 conv1 output (unpadded)
    # psum_ref, psqr_ref : (1, 1, Cout) f32 per-image sum / sum-of-squares
    H, W, Cout = y1_ref.shape[1], y1_ref.shape[2], y1_ref.shape[3]
    Cin = xp_ref.shape[3]

    xp = xp_ref[...].astype(jnp.float32)        # one upcast per step
    acc = _im2col_conv3x3(xp, w_ref, patch_ref, H, W, Cin)   # (H*W, Cout) f32

    y1_ref[...] = acc.reshape(1, H, W, Cout).astype(y1_ref.dtype)
    psum_ref[...] = jnp.sum(acc, axis=0, keepdims=True).reshape(1, 1, Cout)
    psqr_ref[...] = jnp.sum(acc * acc, axis=0, keepdims=True).reshape(1, 1, Cout)


# --------------------------------------------------------------------------- #
# Kernel 2: BN1 (precomputed scale/shift) + ReLU + conv2 + partial BN2 stats.
# The zero border for conv2 is rebuilt in a VMEM scratch (never touches HBM).
# --------------------------------------------------------------------------- #
def bnrelu_conv2_stats_kernel(y1_ref, sc_ref, sh_ref, w_ref,
                              y2_ref, psum_ref, psqr_ref, pad_ref, patch_ref):
    # y1_ref : (1, H, W, C) bf16 conv1 output
    # sc_ref, sh_ref : (1, C) f32 BN1 scale / shift (stats combined outside)
    # w_ref  : (9*C, C) bf16 im2col conv2 weights
    # y2_ref : (1, H, W, C) bf16 conv2 output
    # psum_ref, psqr_ref : (1, 1, C) f32 per-image partial stats of conv2
    # pad_ref  : (1, H+2, W+2, C) f32 VMEM scratch (zero border re-pad)
    # patch_ref: (H*W, 9*C) f32 VMEM scratch (im2col patch)
    H, W, C = y1_ref.shape[1], y1_ref.shape[2], y1_ref.shape[3]

    # Zeroing the whole pad scratch each step keeps the border zero and is
    # megacore-safe (VMEM-only, ~a few KB — cheap, unlike the old HBM version).
    pad_ref[...] = jnp.zeros_like(pad_ref)

    a = jnp.maximum(y1_ref[...].astype(jnp.float32) * sc_ref[...] + sh_ref[...],
                    0.0)                         # (1, H, W, C) f32
    pad_ref[:, 1:H + 1, 1:W + 1, :] = a          # interior only; border stays 0

    acc = _im2col_conv3x3(pad_ref[...], w_ref, patch_ref, H, W, C)

    y2_ref[...] = acc.reshape(1, H, W, C).astype(y2_ref.dtype)
    psum_ref[...] = jnp.sum(acc, axis=0, keepdims=True).reshape(1, 1, C)
    psqr_ref[...] = jnp.sum(acc * acc, axis=0, keepdims=True).reshape(1, 1, C)


# --------------------------------------------------------------------------- #
# Kernel 3: BN2 + residual add + ReLU, on a lane-dense (N, H*W*C) view.
# scale/shift arrive pre-tiled to (1, H*W*C) so this is pure elementwise.
# --------------------------------------------------------------------------- #
def bn_residual_relu_kernel(y2_ref, sc_ref, sh_ref, res_ref, o_ref):
    o_ref[...] = jnp.maximum(
        y2_ref[...].astype(jnp.float32) * sc_ref[...] + sh_ref[...]
        + res_ref[...], 0.0)


# --------------------------------------------------------------------------- #
# Tiny plain-JAX combine of per-image partial stats -> (1, C) scale / shift.
# --------------------------------------------------------------------------- #
def _bn_scale_shift(psum, psqr, gamma, beta, m_rows):
    mean = jnp.sum(psum, axis=0) / m_rows          # (1, C)
    ex2 = jnp.sum(psqr, axis=0) / m_rows           # (1, C)
    var = ex2 - mean * mean                        # biased var (torch training)
    scale = jax.lax.rsqrt(var + EPS) * gamma       # (1, C)
    shift = beta - mean * scale                    # (1, C)
    return scale, shift


# ------------------------------ forward pass -------------------------------- #
def basic_resnet_block_forward(x_nchw, params):
    x = jnp.transpose(x_nchw, (0, 2, 3, 1)).astype(jnp.float32)   # NCHW -> NHWC
    N, H, W, Cin = x.shape
    KC, C = params["w1"].shape                                    # (9*Cin, Cout)
    assert KC == 9 * Cin and Cin == C, \
        "downsample=None requires inplanes == planes"
    Hp, Wp = H + 2, W + 2
    HWC = H * W * C
    m_rows = float(N * H * W)
    par = pltpu.CompilerParams(dimension_semantics=("parallel",))

    # ---- stage 1: conv1 + partial BN1 stats -------------------------------- #
    x_pad = jnp.pad(x, ((0, 0), (1, 1), (1, 1), (0, 0))).astype(jnp.bfloat16)
    ce1 = pl.CostEstimate(
        flops=2 * N * H * W * 9 * Cin * C, transcendentals=0,
        bytes_accessed=(N * Hp * Wp * Cin * 2 + 9 * Cin * C * 2
                        + N * HWC * 2 + 2 * N * C * 4))
    y1, ps1, pq1 = pl.pallas_call(
        conv1_stats_kernel,
        grid=(N,),
        in_specs=[
            pl.BlockSpec((1, Hp, Wp, Cin), lambda i: (i, 0, 0, 0)),
            pl.BlockSpec((9 * Cin, C), lambda i: (0, 0)),
        ],
        out_specs=[
            pl.BlockSpec((1, H, W, C), lambda i: (i, 0, 0, 0)),
            pl.BlockSpec((1, 1, C), lambda i: (i, 0, 0)),
            pl.BlockSpec((1, 1, C), lambda i: (i, 0, 0)),
        ],
        out_shape=[
            jax.ShapeDtypeStruct((N, H, W, C), jnp.bfloat16),
            jax.ShapeDtypeStruct((N, 1, C), jnp.float32),
            jax.ShapeDtypeStruct((N, 1, C), jnp.float32),
        ],
        scratch_shapes=[pltpu.VMEM((H * W, 9 * Cin), jnp.float32)],
        compiler_params=par,
        cost_estimate=ce1,
    )(x_pad, params["w1"])

    # combine BN1 stats once, outside the grid (O(N*C), trivially cheap)
    scale1, shift1 = _bn_scale_shift(ps1, pq1, params["g1"], params["b1"], m_rows)

    # ---- stage 2: BN1 + ReLU + conv2 + partial BN2 stats -------------------- #
    ce2 = pl.CostEstimate(
        flops=2 * N * H * W * 9 * C * C, transcendentals=0,
        bytes_accessed=(N * HWC * 2 + 9 * C * C * 2 + 2 * C * 4
                        + N * HWC * 2 + 2 * N * C * 4))
    y2, ps2, pq2 = pl.pallas_call(
        bnrelu_conv2_stats_kernel,
        grid=(N,),
        in_specs=[
            pl.BlockSpec((1, H, W, C), lambda i: (i, 0, 0, 0)),
            pl.BlockSpec((1, C), lambda i: (0, 0)),
            pl.BlockSpec((1, C), lambda i: (0, 0)),
            pl.BlockSpec((9 * C, C), lambda i: (0, 0)),
        ],
        out_specs=[
            pl.BlockSpec((1, H, W, C), lambda i: (i, 0, 0, 0)),
            pl.BlockSpec((1, 1, C), lambda i: (i, 0, 0)),
            pl.BlockSpec((1, 1, C), lambda i: (i, 0, 0)),
        ],
        out_shape=[
            jax.ShapeDtypeStruct((N, H, W, C), jnp.bfloat16),
            jax.ShapeDtypeStruct((N, 1, C), jnp.float32),
            jax.ShapeDtypeStruct((N, 1, C), jnp.float32),
        ],
        scratch_shapes=[pltpu.VMEM((1, Hp, Wp, C), jnp.float32),
                        pltpu.VMEM((H * W, 9 * C), jnp.float32)],
        compiler_params=par,
        cost_estimate=ce2,
    )(y1, scale1, shift1, params["w2"])

    # combine BN2 stats, pre-tile scale/shift to the lane-dense flat layout
    scale2, shift2 = _bn_scale_shift(ps2, pq2, params["g2"], params["b2"], m_rows)
    scale2f = jnp.tile(scale2, (1, H * W))          # (1, H*W*C), channel-fastest
    shift2f = jnp.tile(shift2, (1, H * W))

    # ---- stage 3: BN2 + residual + ReLU (lane-dense flat view) -------------- #
    # NB: reshapes below are free metadata changes (contiguous NHWC layout).
    # TODO(synk): for large N, tile this grid over batch blocks instead of one
    #             whole-batch block.
    y2f = y2.reshape(N, HWC)
    xf = x.reshape(N, HWC)
    ce3 = pl.CostEstimate(
        flops=4 * N * HWC, transcendentals=0,
        bytes_accessed=N * HWC * 2 + 2 * N * HWC * 4 + 2 * HWC * 4)
    outf = pl.pallas_call(
        bn_residual_relu_kernel,
        grid=(1,),
        in_specs=[
            pl.BlockSpec((N, HWC), lambda i: (0, 0)),
            pl.BlockSpec((1, HWC), lambda i: (0, 0)),
            pl.BlockSpec((1, HWC), lambda i: (0, 0)),
            pl.BlockSpec((N, HWC), lambda i: (0, 0)),
        ],
        out_specs=pl.BlockSpec((N, HWC), lambda i: (0, 0)),
        out_shape=jax.ShapeDtypeStruct((N, HWC), jnp.float32),
        compiler_params=par,
        cost_estimate=ce3,
    )(y2f, scale2f, shift2f, xf)

    return jnp.transpose(outf.reshape(N, H, W, C), (0, 3, 1, 2))   # -> NCHW


# --------------------------- params & preprocessing -------------------------- #
def init_params(key, inplanes, planes):
    k1, k2, k3, k4, k5, k6 = jax.random.split(key, 6)
    w1 = jax.random.normal(k1, (planes, inplanes, 3, 3), jnp.float32) \
        * math.sqrt(2.0 / (9 * inplanes))
    w2 = jax.random.normal(k2, (planes, planes, 3, 3), jnp.float32) \
        * math.sqrt(2.0 / (9 * planes))
    # BatchNorm affine params (torch init is weight=1, bias=0; perturb slightly
    # so the gamma/beta code path is actually exercised).
    g1 = 1.0 + 0.1 * jax.random.normal(k3, (planes,), jnp.float32)
    b1 = 0.1 * jax.random.normal(k4, (planes,), jnp.float32)
    g2 = 1.0 + 0.1 * jax.random.normal(k5, (planes,), jnp.float32)
    b2 = 0.1 * jax.random.normal(k6, (planes,), jnp.float32)
    return dict(w1=w1, w2=w2, g1=g1, b1=b1, g2=g2, b2=b2)


def prep_params(raw):
    """One-time weight preprocessing, hoisted out of the forward pass."""
    def prep_w(w):   # torch OIHW -> im2col (9*Cin, Cout) bf16 for the MXU
        o, i, kh, kw = w.shape
        return (jnp.transpose(w, (2, 3, 1, 0))        # (kh, kw, i, o)
                .reshape(kh * kw * i, o).astype(jnp.bfloat16))

    def row(v):      # (C,) -> (1, C) f32 for lane-wise broadcast
        return v.reshape(1, -1).astype(jnp.float32)

    return dict(w1=prep_w(raw["w1"]), w2=prep_w(raw["w2"]),
                g1=row(raw["g1"]), b1=row(raw["b1"]),
                g2=row(raw["g2"]), b2=row(raw["b2"]))


# --------------------------- pure-JAX references ----------------------------- #
def ref_forward(x_nchw, raw, use_bf16):
    """use_bf16=True mirrors the kernel's bf16 MXU inputs (f32 accumulation);
    use_bf16=False is the exact f32 torch-module math."""
    cast = (lambda a: a.astype(jnp.bfloat16)) if use_bf16 else (lambda a: a)

    def conv3x3(x, w):
        return jax.lax.conv_general_dilated(
            cast(x), cast(w), window_strides=(1, 1), padding=((1, 1), (1, 1)),
            dimension_numbers=("NCHW", "OIHW", "NCHW"),
            preferred_element_type=jnp.float32)

    def bn(y, g, b):
        mean = jnp.mean(y, axis=(0, 2, 3), keepdims=True)
        var = jnp.mean(jnp.square(y - mean), axis=(0, 2, 3), keepdims=True)
        yn = (y - mean) * jax.lax.rsqrt(var + EPS)
        return yn * g[None, :, None, None] + b[None, :, None, None]

    out = jnp.maximum(bn(conv3x3(x_nchw, raw["w1"]), raw["g1"], raw["b1"]), 0.0)
    out = bn(conv3x3(out, raw["w2"]), raw["g2"], raw["b2"]) + x_nchw
    return jnp.maximum(out, 0.0)


if __name__ == "__main__":
    key = jax.random.PRNGKey(0)
    kp, kx = jax.random.split(key)

    N, C, H, W = 2, 16, 16, 16    # inplanes == planes (downsample is None)

    raw = init_params(kp, C, C)
    params = prep_params(raw)     # hoisted one-time weight prep
    x = jax.random.normal(kx, (N, C, H, W), jnp.float32)

    out = jax.block_until_ready(jax.jit(basic_resnet_block_forward)(x, params))
    assert out.shape == (N, C, H, W), out.shape

    # check vs a reference doing the same bf16-MXU-input / f32-accum math
    # (kernel additionally stores conv outputs as bf16 in HBM, hence 5e-2).
    ref_b = jax.block_until_ready(ref_forward(x, raw, use_bf16=True))
    err_b = float(jnp.max(jnp.abs(out - ref_b)))
    assert err_b < 5e-2, f"mismatch vs bf16-matched reference: {err_b}"

    # sanity check vs exact f32 module semantics (bf16 MXU/storage noise allowed)
    ref_f = jax.block_until_ready(ref_forward(x, raw, use_bf16=False))
    err_f = float(jnp.max(jnp.abs(out - ref_f)))
    assert err_f < 2e-1, f"mismatch vs f32 reference: {err_f}"

    print("KERNEL_OK")
</pallas_src>

<mosaic_0001>
module attributes {stable_mosaic.version = 11 : i64} {
  func.func @conv1_stats_kernel(%arg0: i32, %arg1: memref<1x18x18x16xbf16, #tpu.memory_space<vmem>>, %arg2: memref<144x16xbf16, #tpu.memory_space<vmem>>, %arg3: memref<1x16x16x16xbf16, #tpu.memory_space<vmem>>, %arg4: memref<1x1x16xf32, #tpu.memory_space<vmem>>, %arg5: memref<1x1x16xf32, #tpu.memory_space<vmem>>, %arg6: memref<256x144xf32, #tpu.memory_space<vmem>>) attributes {dimension_semantics = [#tpu.dimension_semantics<parallel>], iteration_bounds = array<i64: 2>, scalar_prefetch = 0 : i64, scratch_operands = 1 : i64, tpu.core_type = #tpu.core_type<tc>, window_params = [{transform_indices = @transform_0, window_bounds = array<i64: 1, 18, 18, 16>}, {pipeline_mode = #tpu.pipeline_mode<synchronous>, transform_indices = @transform_1, window_bounds = array<i64: 144, 16>}, {transform_indices = @transform_2, window_bounds = array<i64: 1, 16, 16, 16>}, {transform_indices = @transform_3, window_bounds = array<i64: 1, 1, 16>}, {transform_indices = @transform_4, window_bounds = array<i64: 1, 1, 16>}]} {
    %c0 = arith.constant 0 : index
    %c0_0 = arith.constant 0 : index
    %c0_1 = arith.constant 0 : index
    %c0_2 = arith.constant 0 : index
    %0 = vector.load %arg1[%c0, %c0_0, %c0_1, %c0_2] : memref<1x18x18x16xbf16, #tpu.memory_space<vmem>>, vector<1x18x18x16xbf16>
    %1 = arith.extf %0 : vector<1x18x18x16xbf16> to vector<1x18x18x16xf32>
    %2 = vector.extract_strided_slice %1 {offsets = [0, 0, 0, 0], sizes = [1, 16, 16, 16], strides = [1, 1, 1, 1]} : vector<1x18x18x16xf32> to vector<1x16x16x16xf32>
    %3 = vector.shape_cast %2 : vector<1x16x16x16xf32> to vector<16x16x16xf32>
    %4 = vector.shape_cast %3 : vector<16x16x16xf32> to vector<256x16xf32>
    %c0_3 = arith.constant 0 : index
    %c0_4 = arith.constant 0 : index
    %5 = vector.load %arg6[%c0_3, %c0_4] : memref<256x144xf32, #tpu.memory_space<vmem>>, vector<256x16xf32>
    tpu.vector_store %arg6[%c0_3, %c0_4], %4 {strides = array<i32>} : memref<256x144xf32, #tpu.memory_space<vmem>>, vector<256x16xf32>,
    %6 = vector.extract_strided_slice %1 {offsets = [0, 0, 1, 0], sizes = [1, 16, 16, 16], strides = [1, 1, 1, 1]} : vector<1x18x18x16xf32> to vector<1x16x16x16xf32>
    %7 = vector.shape_cast %6 : vector<1x16x16x16xf32> to vector<16x16x16xf32>
    %8 = vector.shape_cast %7 : vector<16x16x16xf32> to vector<256x16xf32>
    %c0_5 = arith.constant 0 : index
    %c16 = arith.constant 16 : index
    %9 = vector.load %arg6[%c0_5, %c16] : memref<256x144xf32, #tpu.memory_space<vmem>>, vector<256x16xf32>
    tpu.vector_store %arg6[%c0_5, %c16], %8 {strides = array<i32>} : memref<256x144xf32, #tpu.memory_space<vmem>>, vector<256x16xf32>,
    %10 = vector.extract_strided_slice %1 {offsets = [0, 0, 2, 0], sizes = [1, 16, 16, 16], strides = [1, 1, 1, 1]} : vector<1x18x18x16xf32> to vector<1x16x16x16xf32>
    %11 = vector.shape_cast %10 : vector<1x16x16x16xf32> to vector<16x16x16xf32>
    %12 = vector.shape_cast %11 : vector<16x16x16xf32> to vector<256x16xf32>
    %c0_6 = arith.constant 0 : index
    %c32 = arith.constant 32 : index
    %13 = vector.load %arg6[%c0_6, %c32] : memref<256x144xf32, #tpu.memory_space<vmem>>, vector<256x16xf32>
    tpu.vector_store %arg6[%c0_6, %c32], %12 {strides = array<i32>} : memref<256x144xf32, #tpu.memory_space<vmem>>, vector<256x16xf32>,
    %14 = vector.extract_strided_slice %1 {offsets = [0, 1, 0, 0], sizes = [1, 16, 16, 16], strides = [1, 1, 1, 1]} : vector<1x18x18x16xf32> to vector<1x16x16x16xf32>
    %15 = vector.shape_cast %14 : vector<1x16x16x16xf32> to vector<16x16x16xf32>
    %16 = vector.shape_cast %15 : vector<16x16x16xf32> to vector<256x16xf32>
    %c0_7 = arith.constant 0 : index
    %c48 = arith.constant 48 : index
    %17 = vector.load %arg6[%c0_7, %c48] : memref<256x144xf32, #tpu.memory_space<vmem>>, vector<256x16xf32>
    tpu.vector_store %arg6[%c0_7, %c48], %16 {strides = array<i32>} : memref<256x144xf32, #tpu.memory_space<vmem>>, vector<256x16xf32>,
    %18 = vector.extract_strided_slice %1 {offsets = [0, 1, 1, 0], sizes = [1, 16, 16, 16], strides = [1, 1, 1, 1]} : vector<1x18x18x16xf32> to vector<1x16x16x16xf32>
    %19 = vector.shape_cast %18 : vector<1x16x16x16xf32> to vector<16x16x16xf32>
    %20 = vector.shape_cast %19 : vector<16x16x16xf32> to vector<256x16xf32>
    %c0_8 = arith.constant 0 : index
    %c64 = arith.constant 64 : index
    %21 = vector.load %arg6[%c0_8, %c64] : memref<256x144xf32, #tpu.memory_space<vmem>>, vector<256x16xf32>
    tpu.vector_store %arg6[%c0_8, %c64], %20 {strides = array<i32>} : memref<256x144xf32, #tpu.memory_space<vmem>>, vector<256x16xf32>,
    %22 = vector.extract_strided_slice %1 {offsets = [0, 1, 2, 0], sizes = [1, 16, 16, 16], strides = [1, 1, 1, 1]} : vector<1x18x18x16xf32> to vector<1x16x16x16xf32>
    %23 = vector.shape_cast %22 : vector<1x16x16x16xf32> to vector<16x16x16xf32>
    %24 = vector.shape_cast %23 : vector<16x16x16xf32> to vector<256x16xf32>
    %c0_9 = arith.constant 0 : index
    %c80 = arith.constant 80 : index
    %25 = vector.load %arg6[%c0_9, %c80] : memref<256x144xf32, #tpu.memory_space<vmem>>, vector<256x16xf32>
    tpu.vector_store %arg6[%c0_9, %c80], %24 {strides = array<i32>} : memref<256x144xf32, #tpu.memory_space<vmem>>, vector<256x16xf32>,
    %26 = vector.extract_strided_slice %1 {offsets = [0, 2, 0, 0], sizes = [1, 16, 16, 16], strides = [1, 1, 1, 1]} : vector<1x18x18x16xf32> to vector<1x16x16x16xf32>
    %27 = vector.shape_cast %26 : vector<1x16x16x16xf32> to vector<16x16x16xf32>
    %28 = vector.shape_cast %27 : vector<16x16x16xf32> to vector<256x16xf32>
    %c0_10 = arith.constant 0 : index
    %c96 = arith.constant 96 : index
    %29 = vector.load %arg6[%c0_10, %c96] : memref<256x144xf32, #tpu.memory_space<vmem>>, vector<256x16xf32>
    tpu.vector_store %arg6[%c0_10, %c96], %28 {strides = array<i32>} : memref<256x144xf32, #tpu.memory_space<vmem>>, vector<256x16xf32>,
    %30 = vector.extract_strided_slice %1 {offsets = [0, 2, 1, 0], sizes = [1, 16, 16, 16], strides = [1, 1, 1, 1]} : vector<1x18x18x16xf32> to vector<1x16x16x16xf32>
    %31 = vector.shape_cast %30 : vector<1x16x16x16xf32> to vector<16x16x16xf32>
    %32 = vector.shape_cast %31 : vector<16x16x16xf32> to vector<256x16xf32>
    %c0_11 = arith.constant 0 : index
    %c112 = arith.constant 112 : index
    %33 = vector.load %arg6[%c0_11, %c112] : memref<256x144xf32, #tpu.memory_space<vmem>>, vector<256x16xf32>
    tpu.vector_store %arg6[%c0_11, %c112], %32 {strides = array<i32>} : memref<256x144xf32, #tpu.memory_space<vmem>>, vector<256x16xf32>,
    %34 = vector.extract_strided_slice %1 {offsets = [0, 2, 2, 0], sizes = [1, 16, 16, 16], strides = [1, 1, 1, 1]} : vector<1x18x18x16xf32> to vector<1x16x16x16xf32>
    %35 = vector.shape_cast %34 : vector<1x16x16x16xf32> to vector<16x16x16xf32>
    %36 = vector.shape_cast %35 : vector<16x16x16xf32> to vector<256x16xf32>
    %c0_12 = arith.constant 0 : index
    %c128 = arith.constant 128 : index
    %37 = vector.load %arg6[%c0_12, %c128] : memref<256x144xf32, #tpu.memory_space<vmem>>, vector<256x16xf32>
    tpu.vector_store %arg6[%c0_12, %c128], %36 {strides = array<i32>} : memref<256x144xf32, #tpu.memory_space<vmem>>, vector<256x16xf32>,
    %c0_13 = arith.constant 0 : index
    %c0_14 = arith.constant 0 : index
    %38 = vector.load %arg6[%c0_13, %c0_14] : memref<256x144xf32, #tpu.memory_space<vmem>>, vector<256x144xf32>
    %39 = arith.truncf %38 : vector<256x144xf32> to vector<256x144xbf16>
    %c0_15 = arith.constant 0 : index
    %c0_16 = arith.constant 0 : index
    %40 = vector.load %arg2[%c0_15, %c0_16] : memref<144x16xbf16, #tpu.memory_space<vmem>>, vector<144x16xbf16>
    %cst = arith.constant dense<0.000000e+00> : vector<256x16xf32>
    %41 = tpu.matmul %39, %40, %cst {dimension_numbers = #tpu.dot_dimension_numbers<[1], [0], [0], [1], [0, 0, 1, 1], [], []>} : vector<256x144xbf16>, vector<144x16xbf16>, vector<256x16xf32> -> vector<256x16xf32>
    %42 = vector.shape_cast %41 : vector<256x16xf32> to vector<1x16x16x16xf32>
    %43 = arith.truncf %42 : vector<1x16x16x16xf32> to vector<1x16x16x16xbf16>
    %c0_17 = arith.constant 0 : index
    %c0_18 = arith.constant 0 : index
    %c0_19 = arith.constant 0 : index
    %c0_20 = arith.constant 0 : index
    %44 = vector.load %arg3[%c0_17, %c0_18, %c0_19, %c0_20] : memref<1x16x16x16xbf16, #tpu.memory_space<vmem>>, vector<1x16x16x16xbf16>
    tpu.vector_store %arg3[%c0_17, %c0_18, %c0_19, %c0_20], %43 {strides = array<i32>} : memref<1x16x16x16xbf16, #tpu.memory_space<vmem>>, vector<1x16x16x16xbf16>,
    %cst_21 = arith.constant dense<0.000000e+00> : vector<16xf32>
    %45 = vector.multi_reduction <add>, %41, %cst_21 [0] : vector<256x16xf32> to vector<16xf32>
    %46 = vector.shape_cast %45 : vector<16xf32> to vector<1x16xf32>
    %47 = vector.shape_cast %46 : vector<1x16xf32> to vector<1x1x16xf32>
    %c0_22 = arith.constant 0 : index
    %c0_23 = arith.constant 0 : index
    %c0_24 = arith.constant 0 : index
    %48 = vector.load %arg4[%c0_22, %c0_23, %c0_24] : memref<1x1x16xf32, #tpu.memory_space<vmem>>, vector<1x1x16xf32>
    tpu.vector_store %arg4[%c0_22, %c0_23, %c0_24], %47 {strides = array<i32>} : memref<1x1x16xf32, #tpu.memory_space<vmem>>, vector<1x1x16xf32>,
    %49 = arith.mulf %41, %41 : vector<256x16xf32>
    %cst_25 = arith.constant dense<0.000000e+00> : vector<16xf32>
    %50 = vector.multi_reduction <add>, %49, %cst_25 [0] : vector<256x16xf32> to vector<16xf32>
    %51 = vector.shape_cast %50 : vector<16xf32> to vector<1x16xf32>
    %52 = vector.shape_cast %51 : vector<1x16xf32> to vector<1x1x16xf32>
    %c0_26 = arith.constant 0 : index
    %c0_27 = arith.constant 0 : index
    %c0_28 = arith.constant 0 : index
    %53 = vector.load %arg5[%c0_26, %c0_27, %c0_28] : memref<1x1x16xf32, #tpu.memory_space<vmem>>, vector<1x1x16xf32>
    tpu.vector_store %arg5[%c0_26, %c0_27, %c0_28], %52 {strides = array<i32>} : memref<1x1x16xf32, #tpu.memory_space<vmem>>, vector<1x1x16xf32>,
    return
  }
  func.func @transform_0(%arg0: i32) -> (i32, i32, i32, i32) {
    %c0_i32 = arith.constant 0 : i32
    %c0_i32_0 = arith.constant 0 : i32
    %c0_i32_1 = arith.constant 0 : i32
    %c0_i32_2 = arith.constant 0 : i32
    return %arg0, %c0_i32, %c0_i32_0, %c0_i32_1 : i32, i32, i32, i32
  }
  func.func @transform_1(%arg0: i32) -> (i32, i32) {
    %c0_i32 = arith.constant 0 : i32
    %c0_i32_0 = arith.constant 0 : i32
    %c0_i32_1 = arith.constant 0 : i32
    return %c0_i32, %c0_i32_0 : i32, i32
  }
  func.func @transform_2(%arg0: i32) -> (i32, i32, i32, i32) {
    %c0_i32 = arith.constant 0 : i32
    %c0_i32_0 = arith.constant 0 : i32
    %c0_i32_1 = arith.constant 0 : i32
    %c0_i32_2 = arith.constant 0 : i32
    return %arg0, %c0_i32, %c0_i32_0, %c0_i32_1 : i32, i32, i32, i32
  }
  func.func @transform_3(%arg0: i32) -> (i32, i32, i32) {
    %c0_i32 = arith.constant 0 : i32
    %c0_i32_0 = arith.constant 0 : i32
    %c0_i32_1 = arith.constant 0 : i32
    return %arg0, %c0_i32, %c0_i32_0 : i32, i32, i32
  }
  func.func @transform_4(%arg0: i32) -> (i32, i32, i32) {
    %c0_i32 = arith.constant 0 : i32
    %c0_i32_0 = arith.constant 0 : i32
    %c0_i32_1 = arith.constant 0 : i32
    return %arg0, %c0_i32, %c0_i32_0 : i32, i32, i32
  }
}

module attributes {stable_mosaic.version = 11 : i64} {
  func.func @bnrelu_conv2_stats_kernel(%arg0: i32, %arg1: memref<1x16x16x16xbf16, #tpu.memory_space<vmem>>, %arg2: memref<1x16xf32, #tpu.memory_space<vmem>>, %arg3: memref<1x16xf32, #tpu.memory_space<vmem>>, %arg4: memref<144x16xbf16, #tpu.memory_space<vmem>>, %arg5: memref<1x16x16x16xbf16, #tpu.memory_space<vmem>>, %arg6: memref<1x1x16xf32, #tpu.memory_space<vmem>>, %arg7: memref<1x1x16xf32, #tpu.memory_space<vmem>>, %arg8: memref<1x18x18x16xf32, #tpu.memory_space<vmem>>, %arg9: memref<256x144xf32, #tpu.memory_space<vmem>>) attributes {dimension_semantics = [#tpu.dimension_semantics<parallel>], iteration_bounds = array<i64: 2>, scalar_prefetch = 0 : i64, scratch_operands = 2 : i64, tpu.core_type = #tpu.core_type<tc>, window_params = [{transform_indices = @transform_0, window_bounds = array<i64: 1, 16, 16, 16>}, {pipeline_mode = #tpu.pipeline_mode<synchronous>, transform_indices = @transform_1, window_bounds = array<i64: 1, 16>}, {pipeline_mode = #tpu.pipeline_mode<synchronous>, transform_indices = @transform_2, window_bounds = array<i64: 1, 16>}, {pipeline_mode = #tpu.pipeline_mode<synchronous>, transform_indices = @transform_3, window_bounds = array<i64: 144, 16>}, {transform_indices = @transform_4, window_bounds = array<i64: 1, 16, 16, 16>}, {transform_indices = @transform_5, window_bounds = array<i64: 1, 1, 16>}, {transform_indices = @transform_6, window_bounds = array<i64: 1, 1, 16>}]} {
    %cst = arith.constant 0.000000e+00 : f32
    %0 = vector.broadcast %cst : f32 to vector<1x18x18x16xf32>
    %c0 = arith.constant 0 : index
    %c0_0 = arith.constant 0 : index
    %c0_1 = arith.constant 0 : index
    %c0_2 = arith.constant 0 : index
    %1 = vector.load %arg8[%c0, %c0_0, %c0_1, %c0_2] : memref<1x18x18x16xf32, #tpu.memory_space<vmem>>, vector<1x18x18x16xf32>
    tpu.vector_store %arg8[%c0, %c0_0, %c0_1, %c0_2], %0 {strides = array<i32>} : memref<1x18x18x16xf32, #tpu.memory_space<vmem>>, vector<1x18x18x16xf32>,
    %c0_3 = arith.constant 0 : index
    %c0_4 = arith.constant 0 : index
    %c0_5 = arith.constant 0 : index
    %c0_6 = arith.constant 0 : index
    %2 = vector.load %arg1[%c0_3, %c0_4, %c0_5, %c0_6] : memref<1x16x16x16xbf16, #tpu.memory_space<vmem>>, vector<1x16x16x16xbf16>
    %3 = arith.extf %2 : vector<1x16x16x16xbf16> to vector<1x16x16x16xf32>
    %c0_7 = arith.constant 0 : index
    %c0_8 = arith.constant 0 : index
    %4 = vector.load %arg2[%c0_7, %c0_8] : memref<1x16xf32, #tpu.memory_space<vmem>>, vector<1x16xf32>
    %5 = vector.shape_cast %4 : vector<1x16xf32> to vector<1x1x1x16xf32>
    %6 = vector.broadcast %5 : vector<1x1x1x16xf32> to vector<1x16x16x16xf32>
    %7 = arith.mulf %3, %6 : vector<1x16x16x16xf32>
    %c0_9 = arith.constant 0 : index
    %c0_10 = arith.constant 0 : index
    %8 = vector.load %arg3[%c0_9, %c0_10] : memref<1x16xf32, #tpu.memory_space<vmem>>, vector<1x16xf32>
    %9 = vector.shape_cast %8 : vector<1x16xf32> to vector<1x1x1x16xf32>
    %10 = vector.broadcast %9 : vector<1x1x1x16xf32> to vector<1x16x16x16xf32>
    %11 = arith.addf %7, %10 : vector<1x16x16x16xf32>
    %cst_11 = arith.constant 0.000000e+00 : f32
    %12 = vector.broadcast %cst_11 : f32 to vector<1x16x16x16xf32>
    %13 = arith.maximumf %11, %12 : vector<1x16x16x16xf32>
    %c0_12 = arith.constant 0 : index
    %c1 = arith.constant 1 : index
    %c1_13 = arith.constant 1 : index
    %c0_14 = arith.constant 0 : index
    %14 = vector.load %arg8[%c0_12, %c1, %c1_13, %c0_14] : memref<1x18x18x16xf32, #tpu.memory_space<vmem>>, vector<1x16x16x16xf32>
    tpu.vector_store %arg8[%c0_12, %c1, %c1_13, %c0_14], %13 {strides = array<i32>} : memref<1x18x18x16xf32, #tpu.memory_space<vmem>>, vector<1x16x16x16xf32>,
    %c0_15 = arith.constant 0 : index
    %c0_16 = arith.constant 0 : index
    %c0_17 = arith.constant 0 : index
    %c0_18 = arith.constant 0 : index
    %15 = vector.load %arg8[%c0_15, %c0_16, %c0_17, %c0_18] : memref<1x18x18x16xf32, #tpu.memory_space<vmem>>, vector<1x18x18x16xf32>
    %16 = vector.extract_strided_slice %15 {offsets = [0, 0, 0, 0], sizes = [1, 16, 16, 16], strides = [1, 1, 1, 1]} : vector<1x18x18x16xf32> to vector<1x16x16x16xf32>
    %17 = vector.shape_cast %16 : vector<1x16x16x16xf32> to vector<16x16x16xf32>
    %18 = vector.shape_cast %17 : vector<16x16x16xf32> to vector<256x16xf32>
    %c0_19 = arith.constant 0 : index
    %c0_20 = arith.constant 0 : index
    %19 = vector.load %arg9[%c0_19, %c0_20] : memref<256x144xf32, #tpu.memory_space<vmem>>, vector<256x16xf32>
    tpu.vector_store %arg9[%c0_19, %c0_20], %18 {strides = array<i32>} : memref<256x144xf32, #tpu.memory_space<vmem>>, vector<256x16xf32>,
    %20 = vector.extract_strided_slice %15 {offsets = [0, 0, 1, 0], sizes = [1, 16, 16, 16], strides = [1, 1, 1, 1]} : vector<1x18x18x16xf32> to vector<1x16x16x16xf32>
    %21 = vector.shape_cast %20 : vector<1x16x16x16xf32> to vector<16x16x16xf32>
    %22 = vector.shape_cast %21 : vector<16x16x16xf32> to vector<256x16xf32>
    %c0_21 = arith.constant 0 : index
    %c16 = arith.constant 16 : index
    %23 = vector.load %arg9[%c0_21, %c16] : memref<256x144xf32, #tpu.memory_space<vmem>>, vector<256x16xf32>
    tpu.vector_store %arg9[%c0_21, %c16], %22 {strides = array<i32>} : memref<256x144xf32, #tpu.memory_space<vmem>>, vector<256x16xf32>,
    %24 = vector.extract_strided_slice %15 {offsets = [0, 0, 2, 0], sizes = [1, 16, 16, 16], strides = [1, 1, 1, 1]} : vector<1x18x18x16xf32> to vector<1x16x16x16xf32>
    %25 = vector.shape_cast %24 : vector<1x16x16x16xf32> to vector<16x16x16xf32>
    %26 = vector.shape_cast %25 : vector<16x16x16xf32> to vector<256x16xf32>
    %c0_22 = arith.constant 0 : index
    %c32 = arith.constant 32 : index
    %27 = vector.load %arg9[%c0_22, %c32] : memref<256x144xf32, #tpu.memory_space<vmem>>, vector<256x16xf32>
    tpu.vector_store %arg9[%c0_22, %c32], %26 {strides = array<i32>} : memref<256x144xf32, #tpu.memory_space<vmem>>, vector<256x16xf32>,
    %28 = vector.extract_strided_slice %15 {offsets = [0, 1, 0, 0], sizes = [1, 16, 16, 16], strides = [1, 1, 1, 1]} : vector<1x18x18x16xf32> to vector<1x16x16x16xf32>
    %29 = vector.shape_cast %28 : vector<1x16x16x16xf32> to vector<16x16x16xf32>
    %30 = vector.shape_cast %29 : vector<16x16x16xf32> to vector<256x16xf32>
    %c0_23 = arith.constant 0 : index
    %c48 = arith.constant 48 : index
    %31 = vector.load %arg9[%c0_23, %c48] : memref<256x144xf32, #tpu.memory_space<vmem>>, vector<256x16xf32>
    tpu.vector_store %arg9[%c0_23, %c48], %30 {strides = array<i32>} : memref<256x144xf32, #tpu.memory_space<vmem>>, vector<256x16xf32>,
    %32 = vector.extract_strided_slice %15 {offsets = [0, 1, 1, 0], sizes = [1, 16, 16, 16], strides = [1, 1, 1, 1]} : vector<1x18x18x16xf32> to vector<1x16x16x16xf32>
    %33 = vector.shape_cast %32 : vector<1x16x16x16xf32> to vector<16x16x16xf32>
    %34 = vector.shape_cast %33 : vector<16x16x16xf32> to vector<256x16xf32>
    %c0_24 = arith.constant 0 : index
    %c64 = arith.constant 64 : index
    %35 = vector.load %arg9[%c0_24, %c64] : memref<256x144xf32, #tpu.memory_space<vmem>>, vector<256x16xf32>
    tpu.vector_store %arg9[%c0_24, %c64], %34 {strides = array<i32>} : memref<256x144xf32, #tpu.memory_space<vmem>>, vector<256x16xf32>,
    %36 = vector.extract_strided_slice %15 {offsets = [0, 1, 2, 0], sizes = [1, 16, 16, 16], strides = [1, 1, 1, 1]} : vector<1x18x18x16xf32> to vector<1x16x16x16xf32>
    %37 = vector.shape_cast %36 : vector<1x16x16x16xf32> to vector<16x16x16xf32>
    %38 = vector.shape_cast %37 : vector<16x16x16xf32> to vector<256x16xf32>
    %c0_25 = arith.constant 0 : index
    %c80 = arith.constant 80 : index
    %39 = vector.load %arg9[%c0_25, %c80] : memref<256x144xf32, #tpu.memory_space<vmem>>, vector<256x16xf32>
    tpu.vector_store %arg9[%c0_25, %c80], %38 {strides = array<i32>} : memref<256x144xf32, #tpu.memory_space<vmem>>, vector<256x16xf32>,
    %40 = vector.extract_strided_slice %15 {offsets = [0, 2, 0, 0], sizes = [1, 16, 16, 16], strides = [1, 1, 1, 1]} : vector<1x18x18x16xf32> to vector<1x16x16x16xf32>
    %41 = vector.shape_cast %40 : vector<1x16x16x16xf32> to vector<16x16x16xf32>
    %42 = vector.shape_cast %41 : vector<16x16x16xf32> to vector<256x16xf32>
    %c0_26 = arith.constant 0 : index
    %c96 = arith.constant 96 : index
    %43 = vector.load %arg9[%c0_26, %c96] : memref<256x144xf32, #tpu.memory_space<vmem>>, vector<256x16xf32>
    tpu.vector_store %arg9[%c0_26, %c96], %42 {strides = array<i32>} : memref<256x144xf32, #tpu.memory_space<vmem>>, vector<256x16xf32>,
    %44 = vector.extract_strided_slice %15 {offsets = [0, 2, 1, 0], sizes = [1, 16, 16, 16], strides = [1, 1, 1, 1]} : vector<1x18x18x16xf32> to vector<1x16x16x16xf32>
    %45 = vector.shape_cast %44 : vector<1x16x16x16xf32> to vector<16x16x16xf32>
    %46 = vector.shape_cast %45 : vector<16x16x16xf32> to vector<256x16xf32>
    %c0_27 = arith.constant 0 : index
    %c112 = arith.constant 112 : index
    %47 = vector.load %arg9[%c0_27, %c112] : memref<256x144xf32, #tpu.memory_space<vmem>>, vector<256x16xf32>
    tpu.vector_store %arg9[%c0_27, %c112], %46 {strides = array<i32>} : memref<256x144xf32, #tpu.memory_space<vmem>>, vector<256x16xf32>,
    %48 = vector.extract_strided_slice %15 {offsets = [0, 2, 2, 0], sizes = [1, 16, 16, 16], strides = [1, 1, 1, 1]} : vector<1x18x18x16xf32> to vector<1x16x16x16xf32>
    %49 = vector.shape_cast %48 : vector<1x16x16x16xf32> to vector<16x16x16xf32>
    %50 = vector.shape_cast %49 : vector<16x16x16xf32> to vector<256x16xf32>
    %c0_28 = arith.constant 0 : index
    %c128 = arith.constant 128 : index
    %51 = vector.load %arg9[%c0_28, %c128] : memref<256x144xf32, #tpu.memory_space<vmem>>, vector<256x16xf32>
    tpu.vector_store %arg9[%c0_28, %c128], %50 {strides = array<i32>} : memref<256x144xf32, #tpu.memory_space<vmem>>, vector<256x16xf32>,
    %c0_29 = arith.constant 0 : index
    %c0_30 = arith.constant 0 : index
    %52 = vector.load %arg9[%c0_29, %c0_30] : memref<256x144xf32, #tpu.memory_space<vmem>>, vector<256x144xf32>
    %53 = arith.truncf %52 : vector<256x144xf32> to vector<256x144xbf16>
    %c0_31 = arith.constant 0 : index
    %c0_32 = arith.constant 0 : index
    %54 = vector.load %arg4[%c0_31, %c0_32] : memref<144x16xbf16, #tpu.memory_space<vmem>>, vector<144x16xbf16>
    %cst_33 = arith.constant dense<0.000000e+00> : vector<256x16xf32>
    %55 = tpu.matmul %53, %54, %cst_33 {dimension_numbers = #tpu.dot_dimension_numbers<[1], [0], [0], [1], [0, 0, 1, 1], [], []>} : vector<256x144xbf16>, vector<144x16xbf16>, vector<256x16xf32> -> vector<256x16xf32>
    %56 = vector.shape_cast %55 : vector<256x16xf32> to vector<1x16x16x16xf32>
    %57 = arith.truncf %56 : vector<1x16x16x16xf32> to vector<1x16x16x16xbf16>
    %c0_34 = arith.constant 0 : index
    %c0_35 = arith.constant 0 : index
    %c0_36 = arith.constant 0 : index
    %c0_37 = arith.constant 0 : index
    %58 = vector.load %arg5[%c0_34, %c0_35, %c0_36, %c0_37] : memref<1x16x16x16xbf16, #tpu.memory_space<vmem>>, vector<1x16x16x16xbf16>
    tpu.vector_store %arg5[%c0_34, %c0_35, %c0_36, %c0_37], %57 {strides = array<i32>} : memref<1x16x16x16xbf16, #tpu.memory_space<vmem>>, vector<1x16x16x16xbf16>,
    %cst_38 = arith.constant dense<0.000000e+00> : vector<16xf32>
    %59 = vector.multi_reduction <add>, %55, %cst_38 [0] : vector<256x16xf32> to vector<16xf32>
    %60 = vector.shape_cast %59 : vector<16xf32> to vector<1x16xf32>
    %61 = vector.shape_cast %60 : vector<1x16xf32> to vector<1x1x16xf32>
    %c0_39 = arith.constant 0 : index
    %c0_40 = arith.constant 0 : index
    %c0_41 = arith.constant 0 : index
    %62 = vector.load %arg6[%c0_39, %c0_40, %c0_41] : memref<1x1x16xf32, #tpu.memory_space<vmem>>, vector<1x1x16xf32>
    tpu.vector_store %arg6[%c0_39, %c0_40, %c0_41], %61 {strides = array<i32>} : memref<1x1x16xf32, #tpu.memory_space<vmem>>, vector<1x1x16xf32>,
    %63 = arith.mulf %55, %55 : vector<256x16xf32>
    %cst_42 = arith.constant dense<0.000000e+00> : vector<16xf32>
    %64 = vector.multi_reduction <add>, %63, %cst_42 [0] : vector<256x16xf32> to vector<16xf32>
    %65 = vector.shape_cast %64 : vector<16xf32> to vector<1x16xf32>
    %66 = vector.shape_cast %65 : vector<1x16xf32> to vector<1x1x16xf32>
    %c0_43 = arith.constant 0 : index
    %c0_44 = arith.constant 0 : index
    %c0_45 = arith.constant 0 : index
    %67 = vector.load %arg7[%c0_43, %c0_44, %c0_45] : memref<1x1x16xf32, #tpu.memory_space<vmem>>, vector<1x1x16xf32>
    tpu.vector_store %arg7[%c0_43, %c0_44, %c0_45], %66 {strides = array<i32>} : memref<1x1x16xf32, #tpu.memory_space<vmem>>, vector<1x1x16xf32>,
    return
  }
  func.func @transform_0(%arg0: i32) -> (i32, i32, i32, i32) {
    %c0_i32 = arith.constant 0 : i32
    %c0_i32_0 = arith.constant 0 : i32
    %c0_i32_1 = arith.constant 0 : i32
    %c0_i32_2 = arith.constant 0 : i32
    return %arg0, %c0_i32, %c0_i32_0, %c0_i32_1 : i32, i32, i32, i32
  }
  func.func @transform_1(%arg0: i32) -> (i32, i32) {
    %c0_i32 = arith.constant 0 : i32
    %c0_i32_0 = arith.constant 0 : i32
    %c0_i32_1 = arith.constant 0 : i32
    return %c0_i32, %c0_i32_0 : i32, i32
  }
  func.func @transform_2(%arg0: i32) -> (i32, i32) {
    %c0_i32 = arith.constant 0 : i32
    %c0_i32_0 = arith.constant 0 : i32
    %c0_i32_1 = arith.constant 0 : i32
    return %c0_i32, %c0_i32_0 : i32, i32
  }
  func.func @transform_3(%arg0: i32) -> (i32, i32) {
    %c0_i32 = arith.constant 0 : i32
    %c0_i32_0 = arith.constant 0 : i32
    %c0_i32_1 = arith.constant 0 : i32
    return %c0_i32, %c0_i32_0 : i32, i32
  }
  func.func @transform_4(%arg0: i32) -> (i32, i32, i32, i32) {
    %c0_i32 = arith.constant 0 : i32
    %c0_i32_0 = arith.constant 0 : i32
    %c0_i32_1 = arith.constant 0 : i32
    %c0_i32_2 = arith.constant 0 : i32
    return %arg0, %c0_i32, %c0_i32_0, %c0_i32_1 : i32, i32, i32, i32
  }
  func.func @transform_5(%arg0: i32) -> (i32, i32, i32) {
    %c0_i32 = arith.constant 0 : i32
    %c0_i32_0 = arith.constant 0 : i32
    %c0_i32_1 = arith.constant 0 : i32
    return %arg0, %c0_i32, %c0_i32_0 : i32, i32, i32
  }
  func.func @transform_6(%arg0: i32) -> (i32, i32, i32) {
    %c0_i32 = arith.constant 0 : i32
    %c0_i32_0 = arith.constant 0 : i32
    %c0_i32_1 = arith.constant 0 : i32
    return %arg0, %c0_i32, %c0_i32_0 : i32, i32, i32
  }
}

module attributes {stable_mosaic.version = 11 : i64} {
  func.func @bn_residual_relu_kernel(%arg0: i32, %arg1: memref<2x4096xbf16, #tpu.memory_space<vmem>>, %arg2: memref<1x4096xf32, #tpu.memory_space<vmem>>, %arg3: memref<1x4096xf32, #tpu.memory_space<vmem>>, %arg4: memref<2x4096xf32, #tpu.memory_space<vmem>>, %arg5: memref<2x4096xf32, #tpu.memory_space<vmem>>) attributes {dimension_semantics = [#tpu.dimension_semantics<parallel>], iteration_bounds = array<i64: 1>, scalar_prefetch = 0 : i64, scratch_operands = 0 : i64, tpu.core_type = #tpu.core_type<tc>, window_params = [{pipeline_mode = #tpu.pipeline_mode<synchronous>, transform_indices = @transform_0, window_bounds = array<i64: 2, 4096>}, {pipeline_mode = #tpu.pipeline_mode<synchronous>, transform_indices = @transform_1, window_bounds = array<i64: 1, 4096>}, {pipeline_mode = #tpu.pipeline_mode<synchronous>, transform_indices = @transform_2, window_bounds = array<i64: 1, 4096>}, {pipeline_mode = #tpu.pipeline_mode<synchronous>, transform_indices = @transform_3, window_bounds = array<i64: 2, 4096>}, {pipeline_mode = #tpu.pipeline_mode<synchronous>, transform_indices = @transform_4, window_bounds = array<i64: 2, 4096>}]} {
    %c0 = arith.constant 0 : index
    %c0_0 = arith.constant 0 : index
    %0 = vector.load %arg1[%c0, %c0_0] : memref<2x4096xbf16, #tpu.memory_space<vmem>>, vector<2x4096xbf16>
    %1 = arith.extf %0 : vector<2x4096xbf16> to vector<2x4096xf32>
    %c0_1 = arith.constant 0 : index
    %c0_2 = arith.constant 0 : index
    %2 = vector.load %arg2[%c0_1, %c0_2] : memref<1x4096xf32, #tpu.memory_space<vmem>>, vector<1x4096xf32>
    %3 = vector.broadcast %2 : vector<1x4096xf32> to vector<2x4096xf32>
    %4 = arith.mulf %1, %3 : vector<2x4096xf32>
    %c0_3 = arith.constant 0 : index
    %c0_4 = arith.constant 0 : index
    %5 = vector.load %arg3[%c0_3, %c0_4] : memref<1x4096xf32, #tpu.memory_space<vmem>>, vector<1x4096xf32>
    %6 = vector.broadcast %5 : vector<1x4096xf32> to vector<2x4096xf32>
    %7 = arith.addf %4, %6 : vector<2x4096xf32>
    %c0_5 = arith.constant 0 : index
    %c0_6 = arith.constant 0 : index
    %8 = vector.load %arg4[%c0_5, %c0_6] : memref<2x4096xf32, #tpu.memory_space<vmem>>, vector<2x4096xf32>
    %9 = arith.addf %7, %8 : vector<2x4096xf32>
    %cst = arith.constant 0.000000e+00 : f32
    %10 = vector.broadcast %cst : f32 to vector<2x4096xf32>
    %11 = arith.maximumf %9, %10 : vector<2x4096xf32>
    %c0_7 = arith.constant 0 : index
    %c0_8 = arith.constant 0 : index
    %12 = vector.load %arg5[%c0_7, %c0_8] : memref<2x4096xf32, #tpu.memory_space<vmem>>, vector<2x4096xf32>
    tpu.vector_store %arg5[%c0_7, %c0_8], %11 {strides = array<i32>} : memref<2x4096xf32, #tpu.memory_space<vmem>>, vector<2x4096xf32>,
    return
  }
  func.func @transform_0(%arg0: i32) -> (i32, i32) {
    %c0_i32 = arith.constant 0 : i32
    %c0_i32_0 = arith.constant 0 : i32
    %c0_i32_1 = arith.constant 0 : i32
    return %c0_i32, %c0_i32_0 : i32, i32
  }
  func.func @transform_1(%arg0: i32) -> (i32, i32) {
    %c0_i32 = arith.constant 0 : i32
    %c0_i32_0 = arith.constant 0 : i32
    %c0_i32_1 = arith.constant 0 : i32
    return %c0_i32, %c0_i32_0 : i32, i32
  }
  func.func @transform_2(%arg0: i32) -> (i32, i32) {
    %c0_i32 = arith.constant 0 : i32
    %c0_i32_0 = arith.constant 0 : i32
    %c0_i32_1 = arith.constant 0 : i32
    return %c0_i32, %c0_i32_0 : i32, i32
  }
  func.func @transform_3(%arg0: i32) -> (i32, i32) {
    %c0_i32 = arith.constant 0 : i32
    %c0_i32_0 = arith.constant 0 : i32
    %c0_i32_1 = arith.constant 0 : i32
    return %c0_i32, %c0_i32_0 : i32, i32
  }
  func.func @transform_4(%arg0: i32) -> (i32, i32) {
    %c0_i32 = arith.constant 0 : i32
    %c0_i32_0 = arith.constant 0 : i32
    %c0_i32_1 = arith.constant 0 : i32
    return %c0_i32, %c0_i32_0 : i32, i32
  }
}

</mosaic_0001>

<bundles_post_ra>
// kernel: basic_resnet_block_forward.5
= control target key start
LH: loop header
LB: loop body
LE: loop exit
PB: predicated region body
PF: predicated region fallthrough
CT: control target
= control target key end

     0   :  { %v37_v0 = vlaneseq  ;;  %v642_v2 = vmov 1983009808   ;;  %s878_s0 = inlined_call_operand.vmem [shape: bf16[2,4096], index: 0, kind: input, shape index: {}]   ;;  %s879_s1 = inlined_call_operand.vmem [shape: f32[1,4096], index: 1, kind: input, shape index: {}]   ;;  %s880_s2 = inlined_call_operand.vmem [shape: f32[1,4096], index: 2, kind: input, shape index: {}]   ;;  %s881_s3 = inlined_call_operand.vmem [shape: f32[2,4096], index: 3, kind: input, shape index: {}]   ;;  %s882_s4 = inlined_call_operand.vmem [shape: f32[2,4096], index: 4, kind: output, shape index: {}]  }
   0x1   :  { %v671_v1 = vld [vmem:[%s878_s0] sm:$0xff]  ;;  %v168_v3 = vunpack.c.l.s4 %v642_v2  ;;  %v676_v5 = vld [vmem:[%s878_s0 + $0x8] sm:$0xff] }
   0x2   :  { %v38_v4 = vshrl.u32 %v37_v0, 7  ;;  %v21_v6 = vunpack.c.l.bf16 %v671_v1  ;;  %v29_v7 = vld [vmem:[%s879_s1] sm:$0xff]  ;;  %v22_v9 = vunpack.c.h.bf16 %v671_v1  ;;  %v23_v10 = vunpack.c.l.bf16 %v676_v5  ;;  %v30_v40 = vld [vmem:[%s879_s1 + $0x8] sm:$0xff] }
   0x3   :  { %v169_v8 = vunpack.c.0.s8 %v168_v3  ;;  %v317_v15 = vld [vmem:[%s880_s2] sm:$0xff]  ;;  %v318_v49 = vld [vmem:[%s880_s2 + $0x8] sm:$0xff] }
   0x4   :  { %v684_v11 = vsub.s32 0, %v38_v4  ;;  %v686_v12 = vsub.s32 1, %v38_v4  ;;  %v688_v13 = vsub.s32 2, %v38_v4  ;;  %v690_v14 = vsub.s32 3, %v38_v4  ;;  %v605_v58 = vld [vmem:[%s881_s3] sm:$0xff] }
   0x5   :  { %v695_v16 = vsub.s32 %v169_v8, %v38_v4  ;;  %v697_v17 = vsub.s32 4, %v38_v4  ;;  %v699_v18 = vsub.s32 5, %v38_v4  ;;  %v701_v19 = vsub.s32 6, %v38_v4 }
   0x6   :  { %v40_v20 = vrot.slane %v29_v7, %v684_v11  ;;  %v44_v21 = vrot.slane %v29_v7, %v686_v12  ;;  %v48_v22 = vrot.slane %v29_v7, %v688_v13  ;;  %v52_v23 = vrot.slane %v29_v7, %v690_v14 }
   0x7   :  { %v328_v24 = vrot.slane %v317_v15, %v684_v11  ;;  %v332_v25 = vrot.slane %v317_v15, %v686_v12  ;;  %v336_v26 = vrot.slane %v317_v15, %v688_v13  ;;  %v340_v27 = vrot.slane %v317_v15, %v690_v14 }
   0x8   :  { %v165_v28 = vcombine.low %v40_v20, %v44_v21  ;;  %v166_v29 = vcombine.low %v48_v22, %v52_v23  ;;  %v56_v30 = vrot.slane %v29_v7, %v697_v17  ;;  %v60_v31 = vrot.slane %v29_v7, %v699_v18 }
   0x9   :  { %v453_v32 = vcombine.low %v328_v24, %v332_v25  ;;  %v454_v33 = vcombine.low %v336_v26, %v340_v27  ;;  %v64_v34 = vrot.slane %v29_v7, %v701_v19  ;;  %v714_v35 = vsub.s32 7, %v38_v4 }
   0xa   :  { %v173_v36 = vrot.slane %v165_v28, %v695_v16  ;;  %v180_v37 = vrot.slane %v166_v29, %v695_v16  ;;  %v182_v38 = vcombine.low %v56_v30, %v60_v31  ;;  %v344_v39 = vrot.slane %v317_v15, %v697_v17  ;;  %v606_v28 = vld [vmem:[%s881_s3 + $0x8] sm:$0xff] }
   0xb   :  { %v461_v41 = vrot.slane %v453_v32, %v695_v16  ;;  %v468_v42 = vrot.slane %v454_v33, %v695_v16  ;;  %v68_v43 = vrot.slane %v29_v7, %v714_v35  ;;  %v348_v44 = vrot.slane %v317_v15, %v699_v18 }
   0xc   :  { %v181_v45 = vcombine.low %v173_v36, %v180_v37  ;;  %v190_v46 = vrot.slane %v182_v38, %v695_v16  ;;  %v352_v47 = vrot.slane %v317_v15, %v701_v19  ;;  %v356_v48 = vrot.slane %v317_v15, %v714_v35 }
   0xd   :  { %v469_v50 = vcombine.low %v461_v41, %v468_v42  ;;  %v183_v51 = vcombine.low %v64_v34, %v68_v43  ;;  %v470_v52 = vcombine.low %v344_v39, %v348_v44  ;;  %v72_v53 = vrot.slane %v30_v40, %v684_v11  ;;  %v31_v39 = vld [vmem:[%s879_s1 + $0x10] sm:$0xff] }
   0xe   :  { %v309_v54 = vmul.f32 %v181_v45, %v21_v6  ;;  %v471_v55 = vcombine.low %v352_v47, %v356_v48  ;;  %v76_v56 = vrot.slane %v30_v40, %v686_v12  ;;  %v80_v57 = vrot.slane %v30_v40, %v688_v13  ;;  %v607_v44 = vld [vmem:[%s881_s3 + $0x10] sm:$0xff] }
   0xf   :  { %v197_v59 = vrot.slane %v183_v51, %v695_v16  ;;  %v478_v60 = vrot.slane %v470_v52, %v695_v16  ;;  %v84_v61 = vrot.slane %v30_v40, %v690_v14  ;;  %v360_v62 = vrot.slane %v318_v49, %v684_v11 }
  0x10   :  { %v597_v63 = vadd.f32 %v469_v50, %v309_v54  ;;  %v485_v0 = vrot.slane %v471_v55, %v695_v16  ;;  %v199_v2 = vcombine.low %v72_v53, %v76_v56  ;;  %v364_v3 = vrot.slane %v318_v49, %v686_v12  ;;  %v319_v50 = vld [vmem:[%s880_s2 + $0x10] sm:$0xff] }
  0x11   :  { %v198_v4 = vcombine.low %v190_v46, %v197_v59  ;;  %v200_v6 = vcombine.low %v80_v57, %v84_v61  ;;  %v368_v7 = vrot.slane %v318_v49, %v688_v13  ;;  %v372_v8 = vrot.slane %v318_v49, %v690_v14 }
  0x12   :  { %v613_v15 = vadd.f32 %v605_v58, %v597_v63  ;;  %v486_v20 = vcombine.low %v478_v60, %v485_v0  ;;  %v207_v21 = vrot.slane %v199_v2, %v695_v16  ;;  %v487_v22 = vcombine.low %v360_v62, %v364_v3  ;;  %v19_v58 = vld [vmem:[%s878_s0 + $0x10] sm:$0xff] }
  0x13   :  { %v310_v23 = vmul.f32 %v198_v4, %v22_v9  ;;  %v214_v24 = vrot.slane %v200_v6, %v695_v16  ;;  %v488_v25 = vcombine.low %v368_v7, %v372_v8  ;;  %v88_v26 = vrot.slane %v30_v40, %v697_v17 }
  0x14   :  { %v621_v27 = vmax.f32 %v613_v15, 0.0  ;;  %v495_v29 = vrot.slane %v487_v22, %v695_v16  ;;  %v92_v30 = vrot.slane %v30_v40, %v699_v18  ;;  %v96_v31 = vrot.slane %v30_v40, %v701_v19 }
  0x15   :  { %v598_v32 = vadd.f32 %v486_v20, %v310_v23  ;;  %v215_v33 = vcombine.low %v207_v21, %v214_v24  ;;  %v502_v1 = vrot.slane %v488_v25, %v695_v16  ;;  %v100_v9 = vrot.slane %v30_v40, %v714_v35  ;;  %v608_v21 = vld [vmem:[%s881_s3 + $0x18] sm:$0xff] }
  0x16   :  { %629 = vst [vmem:[%s882_s4] sm:$0xff] %v621_v27  ;;  %v216_v34 = vcombine.low %v88_v26, %v92_v30  ;;  %v376_v36 = vrot.slane %v318_v49, %v697_v17  ;;  %v380_v37 = vrot.slane %v318_v49, %v699_v18  ;;  %v384_v38 = vrot.slane %v318_v49, %v701_v19 }
  0x17   :  { %v614_v41 = vadd.f32 %v606_v28, %v598_v32  ;;  %v311_v42 = vmul.f32 %v215_v33, %v23_v10  ;;  %v503_v40 = vcombine.low %v495_v29, %v502_v1  ;;  %v217_v43 = vcombine.low %v96_v31, %v100_v9 }
  0x18   :  { %v24_v45 = vunpack.c.h.bf16 %v676_v5  ;;  %v224_v46 = vrot.slane %v216_v34, %v695_v16  ;;  %v388_v47 = vrot.slane %v318_v49, %v714_v35  ;;  %v504_v48 = vcombine.low %v376_v36, %v380_v37  ;;  %v32_v37 = vld [vmem:[%s879_s1 + $0x18] sm:$0xff] }
  0x19   :  { %v622_v51 = vmax.f32 %v614_v41, 0.0  ;;  %v599_v52 = vadd.f32 %v503_v40, %v311_v42  ;;  %v231_v10 = vrot.slane %v217_v43, %v695_v16  ;;  %v104_v53 = vrot.slane %v31_v39, %v684_v11  ;;  %v609_v43 = vld [vmem:[%s881_s3 + $0x20] sm:$0xff] }
  0x1a   :  { %v505_v54 = vcombine.low %v384_v38, %v388_v47  ;;  %v512_v55 = vrot.slane %v504_v48, %v695_v16  ;;  %v108_v5 = vrot.slane %v31_v39, %v686_v12  ;;  %v112_v56 = vrot.slane %v31_v39, %v688_v13  ;;  %v320_v47 = vld [vmem:[%s880_s2 + $0x18] sm:$0xff] }
  0x1b   :  { %630 = vst [vmem:[%s882_s4 + $0x8] sm:$0xff] %v622_v51  ;;  %v615_v49 = vadd.f32 %v607_v44, %v599_v52  ;;  %v232_v57 = vcombine.low %v224_v46, %v231_v10  ;;  %v116_v59 = vrot.slane %v31_v39, %v690_v14  ;;  %v392_v60 = vrot.slane %v319_v50, %v684_v11 }
  0x1c   :  { %v519_v61 = vrot.slane %v505_v54, %v695_v16  ;;  %v233_v62 = vcombine.low %v104_v53, %v108_v5  ;;  %v396_v63 = vrot.slane %v319_v50, %v686_v12  ;;  %v400_v0 = vrot.slane %v319_v50, %v688_v13 }
  0x1d   :  { %v623_v2 = vmax.f32 %v615_v49, 0.0  ;;  %v312_v3 = vmul.f32 %v232_v57, %v24_v45  ;;  %v234_v4 = vcombine.low %v112_v56, %v116_v59  ;;  %v404_v6 = vrot.slane %v319_v50, %v690_v14  ;;  %v20_v49 = vld [vmem:[%s878_s0 + $0x18] sm:$0xff] }
  0x1e   :  { %v520_v7 = vcombine.low %v512_v55, %v519_v61  ;;  %v25_v8 = vunpack.c.l.bf16 %v19_v58  ;;  %v241_v15 = vrot.slane %v233_v62, %v695_v16  ;;  %v521_v20 = vcombine.low %v392_v60, %v396_v63 }
  0x1f   :  { %631 = vst [vmem:[%s882_s4 + $0x10] sm:$0xff] %v623_v2  ;;  %v248_v22 = vrot.slane %v234_v4, %v695_v16  ;;  %v522_v23 = vcombine.low %v400_v0, %v404_v6  ;;  %v120_v24 = vrot.slane %v31_v39, %v697_v17  ;;  %v124_v25 = vrot.slane %v31_v39, %v699_v18  ;;  %v610_v4 = vld [vmem:[%s881_s3 + $0x28] sm:$0xff] }
  0x20   :  { %v600_v26 = vadd.f32 %v520_v7, %v312_v3  ;;  %v529_v27 = vrot.slane %v521_v20, %v695_v16  ;;  %v128_v28 = vrot.slane %v31_v39, %v701_v19  ;;  %v132_v29 = vrot.slane %v31_v39, %v714_v35 }
  0x21   :  { %v249_v30 = vcombine.low %v241_v15, %v248_v22  ;;  %v536_v31 = vrot.slane %v522_v23, %v695_v16  ;;  %v250_v32 = vcombine.low %v120_v24, %v124_v25  ;;  %v408_v33 = vrot.slane %v319_v50, %v697_v17 }
  0x22   :  { %v616_v1 = vadd.f32 %v608_v21, %v600_v26  ;;  %v251_v9 = vcombine.low %v128_v28, %v132_v29  ;;  %v412_v34 = vrot.slane %v319_v50, %v699_v18  ;;  %v416_v36 = vrot.slane %v319_v50, %v701_v19 }
  0x23   :  { %v313_v38 = vmul.f32 %v249_v30, %v25_v8  ;;  %v537_v41 = vcombine.low %v529_v27, %v536_v31  ;;  %v258_v39 = vrot.slane %v250_v32, %v695_v16  ;;  %v420_v42 = vrot.slane %v319_v50, %v714_v35 }
  0x24   :  { %v624_v40 = vmax.f32 %v616_v1, 0.0  ;;  %v26_v44 = vunpack.c.h.bf16 %v19_v58  ;;  %v265_v45 = vrot.slane %v251_v9, %v695_v16  ;;  %v538_v46 = vcombine.low %v408_v33, %v412_v34 }
  0x25   :  { %v601_v48 = vadd.f32 %v537_v41, %v313_v38  ;;  %v539_v51 = vcombine.low %v416_v36, %v420_v42  ;;  %v136_v52 = vrot.slane %v32_v37, %v684_v11  ;;  %v140_v10 = vrot.slane %v32_v37, %v686_v12 }
  0x26   :  { %632 = vst [vmem:[%s882_s4 + $0x18] sm:$0xff] %v624_v40  ;;  %v266_v50 = vcombine.low %v258_v39, %v265_v45  ;;  %v546_v53 = vrot.slane %v538_v46, %v695_v16  ;;  %v144_v54 = vrot.slane %v32_v37, %v688_v13  ;;  %v148_v55 = vrot.slane %v32_v37, %v690_v14 }
  0x27   :  { %v617_v5 = vadd.f32 %v609_v43, %v601_v48  ;;  %v553_v56 = vrot.slane %v539_v51, %v695_v16  ;;  %v267_v57 = vcombine.low %v136_v52, %v140_v10  ;;  %v424_v58 = vrot.slane %v320_v47, %v684_v11  ;;  %v612_v43 = vld [vmem:[%s881_s3 + $0x38] sm:$0xff] }
  0x28   :  { %v314_v59 = vmul.f32 %v266_v50, %v26_v44  ;;  %v268_v60 = vcombine.low %v144_v54, %v148_v55  ;;  %v428_v61 = vrot.slane %v320_v47, %v686_v12  ;;  %v432_v62 = vrot.slane %v320_v47, %v688_v13 }
  0x29   :  { %v625_v63 = vmax.f32 %v617_v5, 0.0  ;;  %v554_v0 = vcombine.low %v546_v53, %v553_v56  ;;  %v275_v2 = vrot.slane %v267_v57, %v695_v16  ;;  %v436_v3 = vrot.slane %v320_v47, %v690_v14 }
  0x2a   :  { %v27_v6 = vunpack.c.l.bf16 %v20_v49  ;;  %v282_v7 = vrot.slane %v268_v60, %v695_v16  ;;  %v555_v11 = vcombine.low %v424_v58, %v428_v61  ;;  %v152_v8 = vrot.slane %v32_v37, %v697_v17 }
  0x2b   :  { %633 = vst [vmem:[%s882_s4 + $0x20] sm:$0xff] %v625_v63  ;;  %v602_v12 = vadd.f32 %v554_v0, %v314_v59  ;;  %v556_v13 = vcombine.low %v432_v62, %v436_v3  ;;  %v156_v15 = vrot.slane %v32_v37, %v699_v18  ;;  %v160_v14 = vrot.slane %v32_v37, %v701_v19 }
  0x2c   :  { %v283_v20 = vcombine.low %v275_v2, %v282_v7  ;;  %v563_v21 = vrot.slane %v555_v11, %v695_v16  ;;  %v164_v22 = vrot.slane %v32_v37, %v714_v35  ;;  %v440_v23 = vrot.slane %v320_v47, %v697_v17  ;;  %v611_v17 = vld [vmem:[%s881_s3 + $0x30] sm:$0xff] }
  0x2d   :  { %v618_v24 = vadd.f32 %v610_v4, %v602_v12  ;;  %v570_v25 = vrot.slane %v556_v13, %v695_v16  ;;  %v284_v26 = vcombine.low %v152_v8, %v156_v15  ;;  %v444_v27 = vrot.slane %v320_v47, %v699_v18 }
  0x2e   :  { %v315_v28 = vmul.f32 %v283_v20, %v27_v6  ;;  %v285_v29 = vcombine.low %v160_v14, %v164_v22  ;;  %v448_v30 = vrot.slane %v320_v47, %v701_v19  ;;  %v452_v31 = vrot.slane %v320_v47, %v714_v35 }
  0x2f   :  { %v626_v32 = vmax.f32 %v618_v24, 0.0  ;;  %v571_v33 = vcombine.low %v563_v21, %v570_v25  ;;  %v292_v1 = vrot.slane %v284_v26, %v695_v16  ;;  %v572_v9 = vcombine.low %v440_v23, %v444_v27 }
  0x30   :  { %v28_v34 = vunpack.c.h.bf16 %v20_v49  ;;  %v299_v36 = vrot.slane %v285_v29, %v695_v16  ;;  %v573_v37 = vcombine.low %v448_v30, %v452_v31 }
  0x31   :  { %634 = vst [vmem:[%s882_s4 + $0x28] sm:$0xff] %v626_v32  ;;  %v603_v18 = vadd.f32 %v571_v33, %v315_v28  ;;  %v580_v19 = vrot.slane %v572_v9, %v695_v16 }
  0x32   :  { %v300_v35 = vcombine.low %v292_v1, %v299_v36  ;;  %v587_v38 = vrot.slane %v573_v37, %v695_v16 }
  0x33   :  { %v619_v41 = vadd.f32 %v611_v17, %v603_v18 }
  0x34   :  { %v316_v39 = vmul.f32 %v300_v35, %v28_v34  ;;  %v588_v42 = vcombine.low %v580_v19, %v587_v38 }
  0x35   :  { %v627_v40 = vmax.f32 %v619_v41, 0.0 }
  0x36   :  { %v604_v44 = vadd.f32 %v588_v42, %v316_v39 }
  0x37   :  { %635 = vst [vmem:[%s882_s4 + $0x30] sm:$0xff] %v627_v40 }
  0x38   :  { %v620_v45 = vadd.f32 %v612_v43, %v604_v44 }
  0x3a   :  { %v628_v46 = vmax.f32 %v620_v45, 0.0 }
  0x3c   :  { %636 = vst [vmem:[%s882_s4 + $0x38] sm:$0xff] %v628_v46 }

// kernel: basic_resnet_block_forward.3
= control target key start
LH: loop header
LB: loop body
LE: loop exit
PB: predicated region body
PF: predicated region fallthrough
CT: control target
= control target key end

     0   :  { %s3165_s15 = smov 0   ;;  %s4478_s0 = inlined_call_operand.vmem [shape: bf16[2,18,18,16], index: 0, kind: input, shape index: {}]   ;;  %s4479_s1 = inlined_call_operand.vmem [shape: bf16[144,16], index: 1, kind: input, shape index: {}]   ;;  %s4480_s2 = inlined_call_operand.vmem [shape: bf16[2,16,16,16], index: 2, kind: output, shape index: {0}]   ;;  %s4481_s3 = inlined_call_operand.vmem [shape: f32[2,1,16], index: 3, kind: output, shape index: {1}]   ;;  %s4482_s4 = inlined_call_operand.vmem [shape: f32[2,1,16], index: 4, kind: output, shape index: {2}]  }
   0x1 LB: > { %s2376_s16 = sadd.s32 4294967295, %s3130_s15   ;;  %p2380_p0 = scmp.ge.s32.totalorder %s3130_s15, 1  ;;  %s3130_s15 = sphi %s3165_s15, %s15_s15  }
   0x2   : > { %p167_p1 = scmp.lt.s32.totalorder %s3130_s15, 3 }
   0x4   : > { %p168_p2 = pnand %p2380_p0, %p167_p1 }
   0x6   : > { %171 = sbr.rel (%p168_p2) target bundleno = 611 (0x263), region = 28 }
   0xd   : > { %p199_p3 = scmp.lt.s32.totalorder %s2376_s16, 1  ;;  %vm405_vm0 = vcmask 1046528   ;;  %vm324_vm1 = vcmask 130048   ;;  %s3132_s21 = smov 16   ;;  %vm615_vm2 = vcmask 1045504   ;;  %vm582_vm3 = vcmask 261248  }
   0xe   : > { %s3133_s22 = smov 48   ;;  %s3134_s23 = smov 32   ;;  %vm792_vm4 = vcmask 392448   ;;  %vm923_vm5 = vcmask 523648   ;;  %vm1058_vm6 = vcmask 654848   ;;  %vm1192_vm7 = vcmask 786048  }
   0xf   : > { %s4528_s16 = smov (!%p199_p3, %s2376_s16), 1  ;;  %s3135_s24 = smov 80   ;;  %vm1323_vm8 = vcmask 917248   ;;  %vm1458_vm9 = vcmask 1048448   ;;  %vm2065_vm10 = vcmask 125952   ;;  %vm2167_vm11 = vcmask 122880  }
  0x10   : > { %s2538_s17 = smul.u32 216, %s4528_s16  ;;  %s3136_s25 = smov 64  }
  0x11   : > { %s3137_s26 = smov 112   ;;  %s3138_s27 = smov 96  }
  0x12   : > { %s3179_s20 = scalar_lea.vmem %s4478_s0, %s2538_s17  ;;  %s214_s5 = scalar_lea.vmem %s4482_s4, %s4528_s16 }
  0x13   : > { %v2512_v0 = vld [vmem:[%s3179_s20 + $0x18] sm:$0xff]   ;;  %v3183_v1 = vld [vmem:[%s3179_s20 + $0x20] sm:$0x1]  ;;  %v3194_v7 = vld [vmem:[%s3179_s20 + $0x8] sm:$0x1] }
  0x14   : > { %v2477_v2 = vld [vmem:[%s3179_s20] sm:$0xff]   ;;  %v3186_v3 = vunpack.c.l.bf16 %v2512_v0  ;;  %v3188_v4 = vunpack.c.h.bf16 %v2512_v0  ;;  %v4491_v5 = vunpack.c.l.bf16 %v3183_v1  ;;  %v3198_v9 = vld [vmem:[%s3179_s20 + $0x2c] sm:$0x1]  ;;  %v4493_v11 = vunpack.c.l.bf16 %v3194_v7  ;;  %v3225_v23 = vld [vmem:[%s3179_s20 + $0x14] sm:$0x1] }
  0x15   : > { %v3191_v6 = vunpack.c.l.bf16 %v2477_v2  ;;  %v225_v8 = vld [vmem:[%s3179_s20 + $0x24] sm:$0xff]   ;;  %v3200_v10 = vunpack.c.h.bf16 %v2477_v2  ;;  %v219_v14 = vld [vmem:[%s3179_s20 + $0xc] sm:$0xff]   ;;  %v4490_v21 = vunpack.c.l.bf16 %v3198_v9  ;;  %v231_v28 = vld [vmem:[%s3179_s20 + $0x3c] sm:$0xff]   ;;  %v4492_v37 = vunpack.c.l.bf16 %v3225_v23 }
  0x16   : > { %v3203_v12 = vunpack.c.l.bf16 %v225_v8  ;;  %v3205_v13 = vunpack.c.h.bf16 %v225_v8  ;;  %v416_v15 = vrot.slane %v3186_v3, 1  ;;  %v417_v16 = vrot.slane %v3188_v4, 1  ;;  %329 = vst.msk [vmem:[#allocation2 + $0x40] sm:$0xff] %vm324_vm1, %v3186_v3  ;;  %330 = vst.msk [vmem:[#allocation2 + $0x50] sm:$0xff] %vm324_vm1, %v3188_v4  ;;  %v3246_v33 = vld [vmem:[%s3179_s20 + $0x44] sm:$0x1] }
  0x17   : > { %v419_v17 = vrot.slane %v4491_v5, 1  ;;  %v406_v18 = vrot.slane %v3191_v6, 1  ;;  %325 = vst.msk [vmem:[#allocation2] sm:$0xff] %vm324_vm1, %v3191_v6  ;;  %v407_v19 = vrot.slane %v3200_v10, 1  ;;  %v409_v20 = vrot.slane %v4493_v11, 1  ;;  %326 = vst.msk [vmem:[#allocation2 + $0x10] sm:$0xff] %vm324_vm1, %v3200_v10 }
  0x18   : > { %v421_v22 = vrot.slane %v3203_v12, 1  ;;  %331 = vst.msk [vmem:[#allocation2 + $0x60] sm:$0xff] %vm324_vm1, %v3203_v12  ;;  %332 = vst.msk [vmem:[#allocation2 + $0x70] sm:$0xff] %vm324_vm1, %v3205_v13  ;;  %v418_v24 = vsel %vm405_vm0, %v416_v15, %v417_v16  ;;  %v422_v26 = vrot.slane %v3205_v13, 1  ;;  %v3236_v27 = vunpack.c.l.bf16 %v219_v14  ;;  %v2513_v38 = vld [vmem:[%s3179_s20 + $0x30] sm:$0xff]   ;;  %v2514_v58 = vld [vmem:[%s3179_s20 + $0x48] sm:$0xff]  }
  0x19   : > { %v420_v25 = vsel %vm405_vm0, %v417_v16, %v419_v17  ;;  %v408_v30 = vsel %vm405_vm0, %v406_v18, %v407_v19  ;;  %v410_v31 = vsel %vm405_vm0, %v407_v19, %v409_v20  ;;  %v424_v32 = vrot.slane %v4490_v21, 1  ;;  %v3264_v43 = vld [vmem:[%s3179_s20 + $0x38] sm:$0x1]  ;;  %v3283_v53 = vld [vmem:[%s3179_s20 + $0x5c] sm:$0x1]  ;;  %v243_v19 = vld [vmem:[%s3179_s20 + $0x6c] sm:$0xff]  }
  0x1a   : > { %v3239_v29 = vpack.i.bf16 %v420_v25, %v418_v24  ;;  %v2555_v34 = vpack.i.bf16 %v410_v31, %v408_v30  ;;  %v423_v35 = vsel %vm405_vm0, %v421_v22, %v422_v26  ;;  %v3249_v36 = vunpack.c.h.bf16 %v219_v14  ;;  %327 = vst.msk [vmem:[#allocation2 + $0x20] sm:$0xff] %vm324_vm1, %v3236_v27  ;;  %v237_v48 = vld [vmem:[%s3179_s20 + $0x54] sm:$0xff]   ;;  %v3314_v14 = vld [vmem:[%s3179_s20 + $0x50] sm:$0x1] }
  0x1b   : > { %v425_v39 = vsel %vm405_vm0, %v422_v26, %v424_v32  ;;  %v411_v40 = vrot.slane %v3236_v27, 1  ;;  %v3259_v41 = vunpack.c.l.bf16 %v231_v28  ;;  %v3261_v42 = vunpack.c.h.bf16 %v231_v28  ;;  %v3331_v26 = vld [vmem:[%s3179_s20 + $0x74] sm:$0x1]  ;;  %v2515_v28 = vld [vmem:[%s3179_s20 + $0x60] sm:$0xff]  }
  0x1c   : > { %2566 = vrot.lane.b32.xlu1 %v3239_v29, %s3132_s21  ;;  %2556 = vrot.lane.b32.xlu0 %v2555_v34, %s3132_s21  ;;  %v3267_v44 = vpack.i.bf16 %v425_v39, %v423_v35  ;;  %v412_v45 = vrot.slane %v3249_v36, 1  ;;  %v414_v46 = vrot.slane %v4492_v37, 1  ;;  %v4485_v47 = vunpack.c.l.bf16 %v3246_v33  ;;  %328 = vst.msk [vmem:[#allocation2 + $0x30] sm:$0xff] %vm324_vm1, %v3249_v36 }
  0x1d   : > { %v431_v49 = vrot.slane %v3259_v41, 1  ;;  %v432_v50 = vrot.slane %v3261_v42, 1  ;;  %v3278_v51 = vunpack.c.l.bf16 %v2513_v38  ;;  %v3280_v52 = vunpack.c.h.bf16 %v2513_v38  ;;  %335 = vst.msk [vmem:[#allocation2 + $0xa0] sm:$0xff] %vm324_vm1, %v3259_v41  ;;  %336 = vst.msk [vmem:[#allocation2 + $0xb0] sm:$0xff] %vm324_vm1, %v3261_v42 }
  0x1e   : > { %v413_v54 = vsel %vm405_vm0, %v411_v40, %v412_v45  ;;  %v415_v55 = vsel %vm405_vm0, %v412_v45, %v414_v46  ;;  %v434_v56 = vrot.slane %v4485_v47, 1  ;;  %v4488_v57 = vunpack.c.l.bf16 %v3264_v43  ;;  %v3355_v45 = vld [vmem:[%s3179_s20 + $0x68] sm:$0x1] }
  0x1f   : > { %v3297_v59 = vpack.i.bf16 %v415_v55, %v413_v54  ;;  %v433_v60 = vsel %vm405_vm0, %v431_v49, %v432_v50  ;;  %v426_v61 = vrot.slane %v3278_v51, 1  ;;  %v427_v62 = vrot.slane %v3280_v52, 1  ;;  %333 = vst.msk [vmem:[#allocation2 + $0x80] sm:$0xff] %vm324_vm1, %v3278_v51  ;;  %334 = vst.msk [vmem:[#allocation2 + $0x90] sm:$0xff] %vm324_vm1, %v3280_v52  ;;  %v249_v54 = vld [vmem:[%s3179_s20 + $0x84] sm:$0xff]  }
  0x20   : > { %2571 = vrot.lane.b32.xlu1 %v3267_v44, %s3132_s21  ;;  %v435_v63 = vsel %vm405_vm0, %v432_v50, %v434_v56  ;;  %v429_v0 = vrot.slane %v4488_v57, 1  ;;  %v3309_v2 = vunpack.c.l.bf16 %v237_v48  ;;  %v3311_v8 = vunpack.c.h.bf16 %v237_v48 }
  0x21   : > { %2561 = vrot.lane.b32.xlu0 %v3297_v59, %s3132_s21  ;;  %v3318_v15 = vpack.i.bf16 %v435_v63, %v433_v60  ;;  %v428_v16 = vsel %vm405_vm0, %v426_v61, %v427_v62  ;;  %v4483_v17 = vunpack.c.l.bf16 %v3283_v53  ;;  %v3322_v18 = vunpack.c.l.bf16 %v2514_v58 }
  0x22   : > { %v430_v20 = vsel %vm405_vm0, %v427_v62, %v429_v0  ;;  %v441_v22 = vrot.slane %v3309_v2, 1  ;;  %v442_v24 = vrot.slane %v3311_v8, 1  ;;  %v3328_v25 = vunpack.c.h.bf16 %v2514_v58  ;;  %339 = vst.msk [vmem:[#allocation2 + $0xe0] sm:$0xff] %vm324_vm1, %v3309_v2  ;;  %340 = vst.msk [vmem:[#allocation2 + $0xf0] sm:$0xff] %vm324_vm1, %v3311_v8 }
  0x23   : > { %v3340_v30 = vpack.i.bf16 %v430_v20, %v428_v16  ;;  %v444_v31 = vrot.slane %v4483_v17, 1  ;;  %v4484_v32 = vunpack.c.l.bf16 %v3314_v14  ;;  %v436_v34 = vrot.slane %v3322_v18, 1  ;;  %337 = vst.msk [vmem:[#allocation2 + $0xc0] sm:$0xff] %vm324_vm1, %v3322_v18  ;;  %v3384_v16 = vld [vmem:[%s3179_s20 + $0x8c] sm:$0x1] }
  0x24   : > { %2581 = vrot.lane.b32.xlu1 %v3318_v15, %s3132_s21  ;;  %v443_v35 = vsel %vm405_vm0, %v441_v22, %v442_v24  ;;  %v437_v38 = vrot.slane %v3328_v25, 1  ;;  %v3350_v39 = vunpack.c.l.bf16 %v243_v19  ;;  %v3352_v40 = vunpack.c.h.bf16 %v243_v19  ;;  %338 = vst.msk [vmem:[#allocation2 + $0xd0] sm:$0xff] %vm324_vm1, %v3328_v25  ;;  %v2516_v19 = vld [vmem:[%s3179_s20 + $0x78] sm:$0xff]  }
  0x25   : > { %2576 = vrot.lane.b32.xlu0 %v3340_v30, %s3132_s21  ;;  %v445_v46 = vsel %vm405_vm0, %v442_v24, %v444_v31  ;;  %v439_v48 = vrot.slane %v4484_v32, 1  ;;  %v4486_v49 = vunpack.c.l.bf16 %v3331_v26  ;;  %v3365_v50 = vunpack.c.l.bf16 %v2515_v28 }
  0x26   : > { %v3368_v55 = vpack.i.bf16 %v445_v46, %v443_v35  ;;  %v438_v56 = vsel %vm405_vm0, %v436_v34, %v437_v38  ;;  %v451_v58 = vrot.slane %v3350_v39, 1  ;;  %v452_v60 = vrot.slane %v3352_v40, 1  ;;  %343 = vst.msk [vmem:[#allocation2 + $0x120] sm:$0xff] %vm324_vm1, %v3350_v39  ;;  %344 = vst.msk [vmem:[#allocation2 + $0x130] sm:$0xff] %vm324_vm1, %v3352_v40  ;;  %v3404_v46 = vld [vmem:[%s3179_s20 + $0x80] sm:$0x1] }
  0x27   : > { %v440_v61 = vsel %vm405_vm0, %v437_v38, %v439_v48  ;;  %v454_v62 = vrot.slane %v4486_v49, 1  ;;  %v3380_v63 = vunpack.c.h.bf16 %v2515_v28  ;;  %v4487_v0 = vunpack.c.l.bf16 %v3355_v45  ;;  %341 = vst.msk [vmem:[#allocation2 + $0x100] sm:$0xff] %vm324_vm1, %v3365_v50 }
  0x28   : > { %4505 = vst [vmem:[#allocation3_spill] sm:$0xff] %v3368_v55  ;;  %2591 = vrot.lane.b32.xlu1 %v3368_v55, %s3132_s21  ;;  %v3391_v20 = vpack.i.bf16 %v440_v61, %v438_v56  ;;  %v453_v22 = vsel %vm405_vm0, %v451_v58, %v452_v60  ;;  %v446_v24 = vrot.slane %v3365_v50, 1  ;;  %v3395_v28 = vunpack.c.l.bf16 %v249_v54  ;;  %v255_v61 = vld [vmem:[%s3179_s20 + $0x9c] sm:$0xff]  }
  0x29   : > { %v455_v31 = vsel %vm405_vm0, %v452_v60, %v454_v62  ;;  %v447_v34 = vrot.slane %v3380_v63, 1  ;;  %v449_v35 = vrot.slane %v4487_v0, 1  ;;  %v3401_v38 = vunpack.c.h.bf16 %v249_v54  ;;  %342 = vst.msk [vmem:[#allocation2 + $0x110] sm:$0xff] %vm324_vm1, %v3380_v63 }
  0x2a   : > { %4506 = vst [vmem:[#allocation4_spill] sm:$0xff] %v3391_v20  ;;  %2586 = vrot.lane.b32.xlu0 %v3391_v20, %s3132_s21  ;;  %v3410_v48 = vpack.i.bf16 %v455_v31, %v453_v22  ;;  %v4489_v56 = vunpack.c.l.bf16 %v3384_v16  ;;  %v461_v58 = vrot.slane %v3395_v28, 1  ;;  %v3414_v60 = vunpack.c.l.bf16 %v2516_v19  ;;  %347 = vst.msk [vmem:[#allocation2 + $0x160] sm:$0xff] %vm324_vm1, %v3395_v28  ;;  %v3425_v22 = vld [vmem:[%s3179_s20 + $0xa4] sm:$0x1]  ;;  %v2517_v31 = vld [vmem:[%s3179_s20 + $0x90] sm:$0xff]  }
  0x2b   : > { %v448_v54 = vsel %vm405_vm0, %v446_v24, %v447_v34  ;;  %v450_v62 = vsel %vm405_vm0, %v447_v34, %v449_v35  ;;  %v462_v17 = vrot.slane %v3401_v38, 1  ;;  %v3422_v32 = vunpack.c.h.bf16 %v2516_v19  ;;  %348 = vst.msk [vmem:[#allocation2 + $0x170] sm:$0xff] %vm324_vm1, %v3401_v38 }
  0x2c   : > { %2601 = vrot.lane.b32.xlu1 %v3410_v48, %s3132_s21  ;;  %v3432_v47 = vpack.i.bf16 %v450_v62, %v448_v54  ;;  %v464_v24 = vrot.slane %v4489_v56, 1  ;;  %v4494_v34 = vunpack.c.l.bf16 %v3404_v46  ;;  %v456_v35 = vrot.slane %v3414_v60, 1  ;;  %345 = vst.msk [vmem:[#allocation2 + $0x140] sm:$0xff] %vm324_vm1, %v3414_v60  ;;  %v3447_v54 = vld [vmem:[%s3179_s20 + $0x98] sm:$0x1] }
  0x2d   : > { %v463_v19 = vsel %vm405_vm0, %v461_v58, %v462_v17  ;;  %v457_v49 = vrot.slane %v3422_v32, 1  ;;  %v3442_v0 = vunpack.c.l.bf16 %v255_v61  ;;  %v3444_v57 = vunpack.c.h.bf16 %v255_v61  ;;  %346 = vst.msk [vmem:[#allocation2 + $0x150] sm:$0xff] %vm324_vm1, %v3422_v32 }
  0x2e   : > { %4507 = vst [vmem:[#allocation5_spill] sm:$0xff] %v3432_v47  ;;  %2596 = vrot.lane.b32.xlu0 %v3432_v47, %s3132_s21  ;;  %v465_v62 = vsel %vm405_vm0, %v462_v17, %v464_v24  ;;  %v459_v56 = vrot.slane %v4494_v34, 1  ;;  %v4497_v58 = vunpack.c.l.bf16 %v3425_v22  ;;  %v3457_v21 = vunpack.c.l.bf16 %v2517_v31 }
  0x2f   : > { %v3459_v5 = vpack.i.bf16 %v465_v62, %v463_v19  ;;  %v458_v61 = vsel %vm405_vm0, %v456_v35, %v457_v49  ;;  %v471_v37 = vrot.slane %v3442_v0, 1  ;;  %v472_v11 = vrot.slane %v3444_v57, 1  ;;  %351 = vst.msk [vmem:[#allocation2 + $0x1a0] sm:$0xff] %vm324_vm1, %v3442_v0  ;;  %352 = vst.msk [vmem:[#allocation2 + $0x1b0] sm:$0xff] %vm324_vm1, %v3444_v57 }
  0x30   : > { %v460_v17 = vsel %vm405_vm0, %v457_v49, %v459_v56  ;;  %v474_v24 = vrot.slane %v4497_v58, 1  ;;  %v3471_v34 = vunpack.c.h.bf16 %v2517_v31  ;;  %v4500_v19 = vunpack.c.l.bf16 %v3447_v54  ;;  %349 = vst.msk [vmem:[#allocation2 + $0x180] sm:$0xff] %vm324_vm1, %v3457_v21 }
  0x31   : > { %4508 = vst [vmem:[#allocation6_spill] sm:$0xff] %v3459_v5  ;;  %2611 = vrot.lane.b32.xlu1 %v3459_v5, %s3132_s21  ;;  %v3478_v35 = vpack.i.bf16 %v460_v17, %v458_v61  ;;  %v473_v62 = vsel %vm405_vm0, %v471_v37, %v472_v11  ;;  %v466_v47 = vrot.slane %v3457_v21, 1  ;;  %v616_v58 = vrot.slane %v3191_v6, 2 }
  0x32   : > { %v475_v49 = vsel %vm405_vm0, %v472_v11, %v474_v24  ;;  %v467_v56 = vrot.slane %v3471_v34, 1  ;;  %v469_v31 = vrot.slane %v4500_v19, 1  ;;  %350 = vst.msk [vmem:[#allocation2 + $0x190] sm:$0xff] %vm324_vm1, %v3471_v34  ;;  %v617_v37 = vrot.slane %v3200_v10, 2 }
  0x33   : > { %2606 = vrot.lane.b32.xlu0 %v3478_v35, %s3132_s21  ;;  %v3491_v61 = vpack.i.bf16 %v475_v49, %v473_v62  ;;  %v4509_v17 = vunpack.c.l.bf16 %v3194_v7  ;;  %v621_v24 = vrot.slane %v3236_v27, 2  ;;  %v622_v6 = vrot.slane %v3249_v36, 2 }
  0x34   : > { %v468_v55 = vsel %vm405_vm0, %v466_v47, %v467_v56  ;;  %v470_v19 = vsel %vm405_vm0, %v467_v56, %v469_v31  ;;  %v4510_v5 = vunpack.c.l.bf16 %v3225_v23  ;;  %v2630_v7 = vpack.i.bf16 %v3249_v36, %v3236_v27 }
  0x35   : > { %v619_v11 = vrot.slane %v4509_v17, 2  ;;  %2621 = vrot.lane.b32.xlu1 %v3491_v61, %s3132_s21  ;;  %v3504_v62 = vpack.i.bf16 %v470_v19, %v468_v55  ;;  %v618_v10 = vsel %vm615_vm2, %v616_v58, %v617_v37  ;;  %v623_v47 = vsel %vm615_vm2, %v621_v24, %v622_v6 }
  0x36   : > { %v624_v20 = vrot.slane %v4510_v5, 2  ;;  %v626_v23 = vrot.slane %v3186_v3, 2  ;;  %v627_v55 = vrot.slane %v3188_v4, 2  ;;  %v4511_v19 = vunpack.c.l.bf16 %v3183_v1 }
  0x37   : > { %v620_v49 = vsel %vm615_vm2, %v617_v37, %v619_v11  ;;  %2616 = vrot.lane.b32.xlu0 %v3504_v62, %s3132_s21  ;;  %v631_v36 = vrot.slane %v3203_v12, 2  ;;  %v632_v37 = vrot.slane %v3205_v13, 2  ;;  %v4512_v17 = vunpack.c.l.bf16 %v3198_v9 }
  0x38   : > { %v625_v56 = vsel %vm615_vm2, %v622_v6, %v624_v20  ;;  %v2625_v5 = vpack.i.bf16 %v620_v49, %v618_v10  ;;  %v629_v31 = vrot.slane %v4511_v19, 2  ;;  %v628_v58 = vsel %vm615_vm2, %v626_v23, %v627_v55 }
  0x39   : > { %2631 = vrot.lane.b32.xlu1 %v2630_v7, %s3133_s22  ;;  %v2640_v27 = vpack.i.bf16 %v625_v56, %v623_v47  ;;  %v634_v11 = vrot.slane %v4512_v17, 2  ;;  %1528 = vst.msk [vmem:[#allocation2 + $0x8] sm:$0xff] %vm324_vm1, %v628_v58  ;;  %v2645_v1 = vpack.i.bf16 %v3188_v4, %v3186_v3  ;;  %v3531_v24 = vsel %vm615_vm2, %v631_v36, %v632_v37 }
  0x3a   : > { %v630_v20 = vsel %vm615_vm2, %v627_v55, %v629_v31  ;;  %1530 = vst.msk [vmem:[#allocation2 + $0x28] sm:$0xff] %vm324_vm1, %v3531_v24  ;;  %v636_v9 = vrot.slane %v3278_v51, 2  ;;  %v637_v7 = vrot.slane %v3280_v52, 2  ;;  %v4513_v3 = vunpack.c.l.bf16 %v3264_v43 }
  0x3b   : > { %2626 = vrot.lane.b32.xlu0 %v2625_v5, %s3134_s23  ;;  %1529 = vst.msk [vmem:[#allocation2 + $0x18] sm:$0xff] %vm324_vm1, %v630_v20  ;;  %v3534_v6 = vsel %vm615_vm2, %v632_v37, %v634_v11  ;;  %v3547_v10 = vpack.i.bf16 %v3261_v42, %v3259_v41  ;;  %v656_v47 = vrot.slane %v3365_v50, 2  ;;  %v657_v56 = vrot.slane %v3380_v63, 2 }
  0x3c   : > { %1531 = vst.msk [vmem:[#allocation2 + $0x38] sm:$0xff] %vm324_vm1, %v3534_v6  ;;  %v639_v4 = vrot.slane %v4513_v3, 2  ;;  %v3552_v49 = vsel %vm615_vm2, %v636_v9, %v637_v7  ;;  %v4514_v5 = vunpack.c.l.bf16 %v3355_v45  ;;  %v3565_v55 = vpack.i.bf16 %v3352_v40, %v3350_v39 }
  0x3d   : > { %2641 = vrot.lane.b32.xlu1 %v2640_v27, %s3135_s24  ;;  %1532 = vst.msk [vmem:[#allocation2 + $0x48] sm:$0xff] %vm324_vm1, %v3552_v49  ;;  %v3576_v45 = vsel %vm615_vm2, %v656_v47, %v657_v56  ;;  %v3581_v31 = vpack.i.bf16 %v630_v20, %v628_v58  ;;  %v4515_v36 = vunpack.c.l.bf16 %v3331_v26  ;;  %v641_v17 = vrot.slane %v3259_v41, 2 }
  0x3e   : > { %v659_v23 = vrot.slane %v4514_v5, 2  ;;  %v3559_v43 = vsel %vm615_vm2, %v637_v7, %v639_v4  ;;  %1540 = vst.msk [vmem:[#allocation2 + $0xc8] sm:$0xff] %vm324_vm1, %v3576_v45  ;;  %v642_v58 = vrot.slane %v3261_v42, 2  ;;  %v4516_v20 = vunpack.c.l.bf16 %v3246_v33 }
  0x3f   : > { %2636 = vrot.lane.b32.xlu0 %v3297_v59, %s3136_s25  ;;  %v3571_v59 = vpack.i.bf16 %v3205_v13, %v3203_v12  ;;  %1533 = vst.msk [vmem:[#allocation2 + $0x58] sm:$0xff] %vm324_vm1, %v3559_v43  ;;  %v661_v12 = vrot.slane %v3350_v39, 2  ;;  %v662_v13 = vrot.slane %v3352_v40, 2  ;;  %v664_v37 = vrot.slane %v4515_v36, 2  ;;  %v3116_v36 = vld [vmem:[%s4479_s1 + $0x8] sm:$0xff]  }
  0x40   : > { %v3579_v19 = vsel %vm615_vm2, %v657_v56, %v659_v23  ;;  %v644_v11 = vrot.slane %v4516_v20, 2  ;;  %v3601_v39 = vpack.i.bf16 %v3422_v32, %v3414_v60  ;;  %v3605_v40 = vpack.i.bf16 %v3328_v25, %v3322_v18 }
  0x41   : > { %2651 = vrot.lane.b32.xlu1 %v3239_v29, %s3137_s26  ;;  %1541 = vst.msk [vmem:[#allocation2 + $0xd8] sm:$0xff] %vm324_vm1, %v3579_v19  ;;  %v3597_v9 = vsel %vm615_vm2, %v661_v12, %v662_v13  ;;  %v3609_v41 = vsel %vm615_vm2, %v662_v13, %v664_v37  ;;  %v3614_v33 = vsel %vm615_vm2, %v641_v17, %v642_v58  ;;  %v666_v26 = vrot.slane %v3414_v60, 2  ;;  %v3115_v60 = vld [vmem:[%s4479_s1] sm:$0xff]  }
  0x42   : > { %1542 = vst.msk [vmem:[#allocation2 + $0xe8] sm:$0xff] %vm324_vm1, %v3597_v9  ;;  %v3617_v42 = vsel %vm615_vm2, %v642_v58, %v644_v11  ;;  %1543 = vst.msk [vmem:[#allocation2 + $0xf8] sm:$0xff] %vm324_vm1, %v3609_v41  ;;  %v4517_v7 = vunpack.c.l.bf16 %v3404_v46  ;;  %v646_v4 = vrot.slane %v3322_v18, 2  ;;  %v647_v47 = vrot.slane %v3328_v25, 2 }
  0x43   : > { %2646 = vrot.lane.b32.xlu0 %v2645_v1, %s3138_s27  ;;  %1535 = vst.msk [vmem:[#allocation2 + $0x78] sm:$0xff] %vm324_vm1, %v3617_v42  ;;  %1534 = vst.msk [vmem:[#allocation2 + $0x68] sm:$0xff] %vm324_vm1, %v3614_v33  ;;  %v4518_v56 = vunpack.c.l.bf16 %v3314_v14  ;;  %v671_v13 = vrot.slane %v3395_v28, 2  ;;  %v672_v37 = vrot.slane %v3401_v38, 2  ;;  %v4519_v17 = vunpack.c.l.bf16 %v3384_v16 }
  0x44   : > { %v669_v3 = vrot.slane %v4517_v7, 2  ;;  %v648_v25 = vsel %vm615_vm2, %v646_v4, %v647_v47  ;;  %v651_v20 = vrot.slane %v3309_v2, 2  ;;  %v652_v11 = vrot.slane %v3311_v8, 2  ;;  %v1561_v7 = vld [vmem:[#allocation2 + $0x8] sm:$0xff] }
  0x45   : > { %2661 = vrot.lane.b32.xlu1 %v2645_v1, %s3133_s22  ;;  %v667_v1 = vrot.slane %v3422_v32, 2  ;;  %v649_v5 = vrot.slane %v4518_v56, 2  ;;  %v3642_v32 = vpack.i.bf16 %v3311_v8, %v3309_v2  ;;  %1536 = vst.msk [vmem:[#allocation2 + $0x88] sm:$0xff] %vm324_vm1, %v648_v25  ;;  %v674_v58 = vrot.slane %v4519_v17, 2 }
  0x46   : > { %v3685_v16 = vpack.i.bf16 %v3471_v34, %v3457_v21  ;;  %v3689_v2 = vpack.i.bf16 %v3380_v63, %v3365_v50  ;;  %v673_v8 = vsel %vm615_vm2, %v671_v13, %v672_v37  ;;  %v2705_v50 = vpack.i.bf16 %v3280_v52, %v3278_v51 }
  0x47   : > { %2656 = vrot.lane.b32.xlu0 %v2640_v27, %s3134_s23  ;;  %v3638_v27 = vpack.i.bf16 %v3401_v38, %v3395_v28  ;;  %v668_v46 = vsel %vm615_vm2, %v666_v26, %v667_v1  ;;  %v670_v18 = vsel %vm615_vm2, %v667_v1, %v669_v3  ;;  %v650_v23 = vsel %vm615_vm2, %v647_v47, %v649_v5  ;;  %v1563_v3 = vld [vmem:[#allocation2 + $0x18] sm:$0xff] }
  0x48   : > { %1545 = vst.msk [vmem:[#allocation2 + $0x118] sm:$0xff] %vm324_vm1, %v670_v18  ;;  %v3652_v14 = vpack.i.bf16 %v670_v18, %v668_v46  ;;  %1544 = vst.msk [vmem:[#allocation2 + $0x108] sm:$0xff] %vm324_vm1, %v668_v46  ;;  %v3658_v12 = vpack.i.bf16 %v650_v23, %v648_v25  ;;  %v3678_v28 = vpack.i.bf16 %v3534_v6, %v3531_v24  ;;  %v4520_v38 = vunpack.c.l.bf16 %v3283_v53  ;;  %v260_v46 = vld [vmem:[%s3179_s20 + $0xb0] sm:$0x1] }
  0x49   : > { %2671 = vrot.lane.b32.xlu1 %v3581_v31, %s3135_s24  ;;  %1537 = vst.msk [vmem:[#allocation2 + $0x98] sm:$0xff] %vm324_vm1, %v650_v23  ;;  %v675_v1 = vsel %vm615_vm2, %v672_v37, %v674_v58  ;;  %v653_v24 = vsel %vm615_vm2, %v651_v20, %v652_v11  ;;  %1546 = vst.msk [vmem:[#allocation2 + $0x128] sm:$0xff] %vm324_vm1, %v673_v8  ;;  %v676_v4 = vrot.slane %v3457_v21, 2  ;;  %v677_v51 = vrot.slane %v3471_v34, 2  ;;  %v3118_v21 = vld [vmem:[%s4479_s1 + $0x18] sm:$0xff]   ;;  %v2518_v34 = vld [vmem:[%s3179_s20 + $0xa8] sm:$0xff]  }
  0x4a   : > { %v654_v26 = vrot.slane %v4520_v38, 2  ;;  %1547 = vst.msk [vmem:[#allocation2 + $0x138] sm:$0xff] %vm324_vm1, %v675_v1  ;;  %v3697_v53 = vpack.i.bf16 %v675_v1, %v673_v8  ;;  %1538 = vst.msk [vmem:[#allocation2 + $0xa8] sm:$0xff] %vm324_vm1, %v653_v24  ;;  %v4521_v52 = vunpack.c.l.bf16 %v3447_v54  ;;  %v3722_v56 = vpack.i.bf16 %v3579_v19, %v3576_v45  ;;  %v3119_v37 = vld [vmem:[%s4479_s1 + $0x20] sm:$0xff]  }
  0x4b   : > { %2666 = vrot.lane.b32.xlu0 %v3239_v29, %s3136_s25  ;;  %v3139_v29 = vmov 0   ;;  %v1625_v5 = vpack.c.bf16 %v1563_v3, %v1561_v7  ;;  %v678_v54 = vsel %vm615_vm2, %v676_v4, %v677_v51  ;;  %v681_v19 = vrot.slane %v3442_v0, 2 }
  0x4c   : > { %1776 = vmatprep.subr.bf16.mxu0 %v3139_v29  ;;  %2520 = vmatprep.subr.bf16.mxu1 %v3139_v29  ;;  %v655_v6 = vsel %vm615_vm2, %v652_v11, %v654_v26  ;;  %v679_v47 = vrot.slane %v4521_v52, 2  ;;  %1548 = vst.msk [vmem:[#allocation2 + $0x148] sm:$0xff] %vm324_vm1, %v678_v54  ;;  %v4522_v25 = vunpack.c.l.bf16 %v3425_v22  ;;  %v2506_v13 = vunpack.c.l.bf16 %v2518_v34  ;;  %v263_v11 = vld [vmem:[%s3179_s20 + $0xbc] sm:$0x1] }
  0x4d   : > { %2681 = vrot.lane.b32.xlu1 %v3267_v44, %s3137_s26  ;;  %1777 = vmatpush1.bf16.msra.mxu0 %v3115_v60  ;;  %1539 = vst.msk [vmem:[#allocation2 + $0xb8] sm:$0xff] %vm324_vm1, %v655_v6  ;;  %v3706_v63 = vpack.i.bf16 %v655_v6, %v653_v24  ;;  %v314_v17 = vunpack.c.l.bf16 %v260_v46 }
  0x4e   : > { %1778 = vmatprep.subr.bf16.mxu0 %v3139_v29  ;;  %2529 = vmatpush1.bf16.msra.mxu1 %v3115_v60  ;;  %v680_v45 = vsel %vm615_vm2, %v677_v51, %v679_v47  ;;  %v261_v60 = vld [vmem:[%s3179_s20 + $0xb4] sm:$0xff]   ;;  %v684_v23 = vrot.slane %v4522_v25, 2  ;;  %353 = vst.msk [vmem:[#allocation2 + $0x1c0] sm:$0xff] %vm324_vm1, %v2506_v13  ;;  %v476_v20 = vrot.slane %v2506_v13, 1  ;;  %v686_v1 = vrot.slane %v2506_v13, 2 }
  0x4f   : > { %2676 = vrot.lane.b32.xlu0 %v3571_v59, %s3138_s27  ;;  %2521 = vmatprep.subr.bf16.mxu1 %v3139_v29  ;;  %1549 = vst.msk [vmem:[#allocation2 + $0x158] sm:$0xff] %vm324_vm1, %v680_v45  ;;  %v3741_v18 = vpack.i.bf16 %v680_v45, %v678_v54  ;;  %v3758_v58 = vunpack.c.l.bf16 %v261_v60  ;;  %v479_v8 = vrot.slane %v314_v17, 1  ;;  %v689_v6 = vrot.slane %v314_v17, 2  ;;  %v3121_v54 = vld [vmem:[%s4479_s1 + $0x30] sm:$0xff]  }
  0x50   : > { %2393 = vmatprep.mubr.msk.bf16.mxu0 %vm324_vm1, %v1625_v5  ;;  %v317_v51 = vunpack.c.l.bf16 %v263_v11 }
  0x51   : > { %2691 = vrot.lane.b32.xlu1 %v3571_v59, %s3133_s22  ;;  %1779 = vmatpush1.bf16.msra.mxu0 %v3116_v36  ;;  %v3117_v59 = vld [vmem:[%s4479_s1 + $0x10] sm:$0xff]   ;;  %355 = vst.msk [vmem:[#allocation2 + $0x1e0] sm:$0xff] %vm324_vm1, %v3758_v58  ;;  %v481_v47 = vrot.slane %v3758_v58, 1 }
  0x52   : > { %1780 = vmatprep.subr.bf16.mxu0 %v3139_v29  ;;  %2530 = vmatpush1.bf16.msra.mxu1 %v3116_v36  ;;  %v3753_v36 = vpack.i.bf16 %v3559_v43, %v3552_v49 }
  0x53   : > { %2686 = vrot.lane.b32.xlu0 %v3581_v31, %s3134_s23  ;;  %2522 = vmatprep.subr.bf16.mxu1 %v3139_v29  ;;  %v3730_v31 = vpack.i.bf16 %v3444_v57, %v3442_v0  ;;  %v2507_v0 = vunpack.c.h.bf16 %v2518_v34  ;;  %v484_v34 = vrot.slane %v317_v51, 1 }
  0x55   : > { %2701 = vrot.lane.b32.xlu1 %v3678_v28, %s3135_s24  ;;  %1781 = vmatpush1.bf16.msra.mxu0 %v3117_v59  ;;  %v3767_v43 = vpack.i.bf16 %v2507_v0, %v2506_v13  ;;  %354 = vst.msk [vmem:[#allocation2 + $0x1d0] sm:$0xff] %vm324_vm1, %v2507_v0  ;;  %v477_v26 = vrot.slane %v2507_v0, 1  ;;  %v687_v24 = vrot.slane %v2507_v0, 2  ;;  %v266_v13 = vld [vmem:[%s3179_s20 + $0xc8] sm:$0x1] }
  0x56   : > { %1782 = vmatprep.subr.bf16.mxu0 %v3139_v29  ;;  %2531 = vmatpush1.bf16.msra.mxu1 %v3117_v59  ;;  %v3120_v59 = vld [vmem:[%s4479_s1 + $0x28] sm:$0xff]  }
  0x57   : > { %2696 = vrot.lane.b32.xlu0 %v3267_v44, %s3136_s25  ;;  %v682_v44 = vrot.slane %v3444_v57, 2  ;;  %v3760_v57 = vunpack.c.h.bf16 %v261_v60  ;;  %2523 = vmatprep.subr.bf16.mxu1 %v3139_v29  ;;  %v478_v7 = vsel %vm405_vm0, %v476_v20, %v477_v26  ;;  %v480_v3 = vsel %vm405_vm0, %v477_v26, %v479_v8  ;;  %v3122_v60 = vld [vmem:[%s4479_s1 + $0x38] sm:$0xff]  }
  0x58   : > { %v688_v52 = vsel %vm615_vm2, %v686_v1, %v687_v24  ;;  %v690_v5 = vsel %vm615_vm2, %v687_v24, %v689_v6 }
  0x59   : > { %2711 = vrot.lane.b32.xlu1 %v3340_v30, %s3137_s26  ;;  %1783 = vmatpush1.bf16.msra.mxu0 %v3118_v21  ;;  %v683_v22 = vsel %vm615_vm2, %v681_v19, %v682_v44  ;;  %v685_v49 = vsel %vm615_vm2, %v682_v44, %v684_v23  ;;  %356 = vst.msk [vmem:[#allocation2 + $0x1f0] sm:$0xff] %vm324_vm1, %v3760_v57  ;;  %1552 = vst.msk [vmem:[#allocation2 + $0x188] sm:$0xff] %vm324_vm1, %v688_v52  ;;  %v691_v44 = vrot.slane %v3758_v58, 2 }
  0x5a   : > { %1784 = vmatprep.subr.bf16.mxu0 %v3139_v29  ;;  %1551 = vst.msk [vmem:[#allocation2 + $0x178] sm:$0xff] %vm324_vm1, %v685_v49  ;;  %v3773_v38 = vpack.i.bf16 %v685_v49, %v683_v22  ;;  %1550 = vst.msk [vmem:[#allocation2 + $0x168] sm:$0xff] %vm324_vm1, %v683_v22  ;;  %2532 = vmatpush1.bf16.msra.mxu1 %v3118_v21  ;;  %v3788_v4 = vpack.i.bf16 %v3760_v57, %v3758_v58  ;;  %v482_v21 = vrot.slane %v3760_v57, 1  ;;  %v3123_v49 = vld [vmem:[%s4479_s1 + $0x40] sm:$0xff]  }
  0x5b   : > { %2706 = vrot.lane.b32.xlu0 %v2705_v50, %s3138_s27  ;;  %2524 = vmatprep.subr.bf16.mxu1 %v3139_v29  ;;  %1553 = vst.msk [vmem:[#allocation2 + $0x198] sm:$0xff] %vm324_vm1, %v690_v5  ;;  %v692_v25 = vrot.slane %v3760_v57, 2  ;;  %v694_v23 = vrot.slane %v317_v51, 2  ;;  %v320_v57 = vunpack.c.l.bf16 %v266_v13 }
  0x5c   : > { %v483_v45 = vsel %vm405_vm0, %v481_v47, %v482_v21  ;;  %v485_v19 = vsel %vm405_vm0, %v482_v21, %v484_v34 }
  0x5d   : > { %2721 = vrot.lane.b32.xlu1 %v2705_v50, %s3133_s22  ;;  %1785 = vmatpush1.bf16.msra.mxu0 %v3119_v37  ;;  %v3794_v50 = vpack.i.bf16 %v480_v3, %v478_v7  ;;  %v3815_v46 = vpack.i.bf16 %v485_v19, %v483_v45  ;;  %v693_v0 = vsel %vm615_vm2, %v691_v44, %v692_v25  ;;  %v960_v8 = vrot.slane %v320_v57, 1  ;;  %v1593_v19 = vld [vmem:[#allocation2 + $0x108] sm:$0xff] }
  0x5e   : > { %1786 = vmatprep.subr.bf16.mxu0 %v3139_v29  ;;  %2533 = vmatpush1.bf16.msra.mxu1 %v3119_v37  ;;  %v695_v37 = vsel %vm615_vm2, %v692_v25, %v694_v23  ;;  %1554 = vst.msk [vmem:[#allocation2 + $0x1a8] sm:$0xff] %vm324_vm1, %v693_v0  ;;  %v1094_v51 = vrot.slane %v320_v57, 2 }
  0x5f   : > { %2716 = vrot.lane.b32.xlu0 %v3678_v28, %s3134_s23  ;;  %v3804_v28 = vpack.i.bf16 %v690_v5, %v688_v52  ;;  %2525 = vmatprep.subr.bf16.mxu1 %v3139_v29  ;;  %1555 = vst.msk [vmem:[#allocation2 + $0x1b8] sm:$0xff] %vm324_vm1, %v695_v37  ;;  %v3835_v58 = vpack.i.bf16 %v695_v37, %v693_v0  ;;  %v269_v52 = vld [vmem:[%s3179_s20 + $0xd4] sm:$0x1] }
  0x61   : > { %2731 = vrot.lane.b32.xlu1 %v3753_v36, %s3135_s24  ;;  %1787 = vmatpush1.bf16.msra.mxu0 %v3120_v59 }
  0x62   : > { %1788 = vmatprep.subr.bf16.mxu0 %v3139_v29  ;;  %2534 = vmatpush1.bf16.msra.mxu1 %v3120_v59  ;;  %v2775_v59 = vpack.i.bf16 %v3617_v42, %v3614_v33  ;;  %v323_v33 = vunpack.c.l.bf16 %v269_v52 }
  0x63   : > { %2726 = vrot.lane.b32.xlu0 %v3340_v30, %s3136_s25  ;;  %2526 = vmatprep.subr.bf16.mxu1 %v3139_v29  ;;  %v2519_v30 = vld [vmem:[%s3179_s20 + $0xc0] sm:$0xff]  }
  0x64   : > { %v2510_v17 = vunpack.c.l.bf16 %v2519_v30  ;;  %v2511_v22 = vunpack.c.h.bf16 %v2519_v30  ;;  %v1360_v21 = vrot.slane %v323_v33, 1  ;;  %v1494_v13 = vrot.slane %v323_v33, 2 }
  0x65   : > { %2741 = vrot.lane.b32.xlu1 %v3318_v15, %s3137_s26  ;;  %1789 = vmatpush1.bf16.msra.mxu0 %v3121_v54 }
  0x66   : > { %1790 = vmatprep.subr.bf16.mxu0 %v3139_v29  ;;  %2535 = vmatpush1.bf16.msra.mxu1 %v3121_v54  ;;  %v3841_v20 = vpack.i.bf16 %v2511_v22, %v2510_v17  ;;  %v957_v11 = vrot.slane %v2510_v17, 1  ;;  %v958_v26 = vrot.slane %v2511_v22, 1  ;;  %v1091_v7 = vrot.slane %v2510_v17, 2  ;;  %v4523_v17 = vld [vmem:[#allocation4_spill] sm:$0xff] }
  0x67   : > { %2736 = vrot.lane.b32.xlu0 %v3547_v10, %s3138_s27  ;;  %2527 = vmatprep.subr.bf16.mxu1 %v3139_v29  ;;  %v1092_v3 = vrot.slane %v2511_v22, 2 }
  0x68   : > { %v959_v1 = vsel %vm405_vm0, %v957_v11, %v958_v26  ;;  %v961_v24 = vsel %vm405_vm0, %v958_v26, %v960_v8 }
  0x69   : > { %2751 = vrot.lane.b32.xlu1 %v3722_v56, %s3134_s23  ;;  %1791 = vmatpush1.bf16.msra.mxu0 %v3122_v60  ;;  %v3851_v6 = vpack.i.bf16 %v961_v24, %v959_v1  ;;  %v3871_v47 = vsel %vm615_vm2, %v1092_v3, %v1094_v51 }
  0x6a   : > { %1792 = vmatprep.subr.bf16.mxu0 %v3139_v29  ;;  %2536 = vmatpush1.bf16.msra.mxu1 %v3122_v60  ;;  %1557 = vst.msk [vmem:[#allocation2 + $0x1d8] sm:$0xff] %vm324_vm1, %v3871_v47  ;;  %v1595_v60 = vld [vmem:[#allocation2 + $0x118] sm:$0xff] }
  0x6b   : > { %2746 = vrot.lane.b32.xlu0 %v3753_v36, %s3134_s23  ;;  %2528 = vmatprep.subr.bf16.mxu1 %v3139_v29  ;;  %v2780_v36 = vpack.i.bf16 %v3609_v41, %v3597_v9  ;;  %v267_v29 = vld [vmem:[%s3179_s20 + $0xcc] sm:$0xff]   ;;  %v1641_v25 = vpack.c.bf16 %v1595_v60, %v1593_v19  ;;  %s2443_s20 = sshll.u32 %s4528_s16, 7 }
  0x6c   : > { %v3873_v9 = vunpack.c.l.bf16 %v267_v29  ;;  %v3881_v41 = vunpack.c.h.bf16 %v267_v29  ;;  %v4525_v29 = vld [vmem:[#allocation3_spill] sm:$0xff] }
  0x6d   : > { %2761 = vrot.lane.b32.xlu1 %v3565_v55, %s3133_s22  ;;  %1793 = vmatpush1.bf16.msra.mxu0 %v3123_v49 }
  0x6e   : > { %2537 = vmatpush1.bf16.msra.mxu1 %v3123_v49  ;;  %v1357_v42 = vrot.slane %v3873_v9, 1  ;;  %v1358_v5 = vrot.slane %v3881_v41, 1  ;;  %v3105_v34 = vpack.i.bf16 %v3881_v41, %v3873_v9  ;;  %v1492_v23 = vrot.slane %v3881_v41, 2  ;;  %2401 = vmatprep.mubr.msk.bf16.mxu1 %vm324_vm1, %v1641_v25 }
  0x6f   : > { %2756 = vrot.lane.b32.xlu0 %v3547_v10, %s3133_s22  ;;  %v3868_v10 = vsel %vm615_vm2, %v1091_v7, %v1092_v3  ;;  %v1491_v30 = vrot.slane %v3873_v9, 2 }
  0x70   : > { %1556 = vst.msk [vmem:[#allocation2 + $0x1c8] sm:$0xff] %vm324_vm1, %v3868_v10  ;;  %v3891_v54 = vsel %vm405_vm0, %v1357_v42, %v1358_v5  ;;  %v3894_v45 = vsel %vm405_vm0, %v1358_v5, %v1360_v21  ;;  %v1495_v37 = vsel %vm615_vm2, %v1492_v23, %v1494_v13 }
  0x71   : > { %2771 = vrot.lane.b32.xlu1 %v3410_v48, %s3136_s25  ;;  %v3110_v44 = vpack.i.bf16 %v3894_v45, %v3891_v54  ;;  %v1493_v0 = vsel %vm615_vm2, %v1491_v30, %v1492_v23  ;;  %1559 = vst.msk [vmem:[#allocation2 + $0x1f8] sm:$0xff] %vm324_vm1, %v1495_v37 }
  0x72   : > { %1558 = vst.msk [vmem:[#allocation2 + $0x1e8] sm:$0xff] %vm324_vm1, %v1493_v0 }
  0x73   : > { %2766 = vrot.lane.b32.xlu0 %v3318_v15, %s3136_s25  ;;  %v3100_v15 = vpack.i.bf16 %v3871_v47, %v3868_v10  ;;  %v1581_v10 = vld [vmem:[#allocation2 + $0xa8] sm:$0xff]  ;;  %v1583_v47 = vld [vmem:[#allocation2 + $0xb8] sm:$0xff] }
  0x74   : > { %v1635_v54 = vpack.c.bf16 %v1583_v47, %v1581_v10 }
  0x75   : > { %2781 = vrot.lane.b32.xlu1 %v2780_v36, %s3135_s24 }
  0x77   : > { %2776 = vrot.lane.b32.xlu0 %v2775_v59, %s3135_s24 }
  0x79   : > { %2791 = vrot.lane.b32.xlu1 %v3601_v39, %s3138_s27 }
  0x7b   : > { %2786 = vrot.lane.b32.xlu0 %v3605_v40, %s3138_s27 }
  0x7d   : > { %2801 = vrot.lane.b32.xlu1 %v3478_v35, %s3137_s26 }
  0x7f   : > { %2796 = vrot.lane.b32.xlu0 %v4523_v17, %s3137_s26 }
  0x81   : > { %2811 = vrot.lane.b32.xlu1 %v2780_v36, %s3134_s23 }
  0x83   : > { %2806 = vrot.lane.b32.xlu0 %v2775_v59, %s3134_s23  ;;  %v4524_v59 = vld [vmem:[#allocation6_spill] sm:$0xff] }
  0x85   : > { %2821 = vrot.lane.b32.xlu1 %v3601_v39, %s3133_s22 }
  0x87   : > { %2816 = vrot.lane.b32.xlu0 %v3605_v40, %s3133_s22 }
  0x89   : > { %2831 = vrot.lane.b32.xlu1 %v3478_v35, %s3136_s25 }
  0x8b   : > { %2826 = vrot.lane.b32.xlu0 %v4523_v17, %s3136_s25 }
  0x8d   : > { %2841 = vrot.lane.b32.xlu1 %v3652_v14, %s3135_s24 }
  0x8e   : > { %v2567_v22 = vpop.permute.xlu1 %2566  ;;  %v2557_v11 = vpop.permute.xlu0 %2556 }
  0x8f   : > { %v2569_v57 = vunpack.i.h.bf16 %v2567_v22  ;;  %v2568_v49 = vunpack.i.l.bf16 %v2567_v22  ;;  %2836 = vrot.lane.b32.xlu0 %v3658_v12, %s3135_s24  ;;  %v2559_v39 = vunpack.i.h.bf16 %v2557_v11  ;;  %v2558_v26 = vunpack.i.l.bf16 %v2557_v11 }
  0x91   : > { %588 = vst.msk [vmem:[#allocation2 + $0x50] sm:$0xff] %vm582_vm3, %v2569_v57  ;;  %587 = vst.msk [vmem:[#allocation2 + $0x40] sm:$0xff] %vm582_vm3, %v2568_v49  ;;  %2851 = vrot.lane.b32.xlu1 %v3638_v27, %s3138_s27 }
  0x92   : > { %584 = vst.msk [vmem:[#allocation2 + $0x10] sm:$0xff] %vm582_vm3, %v2559_v39  ;;  %583 = vst.msk [vmem:[#allocation2] sm:$0xff] %vm582_vm3, %v2558_v26  ;;  %v2572_v35 = vpop.permute.xlu1 %2571 }
  0x93   : > { %v2574_v40 = vunpack.i.h.bf16 %v2572_v35  ;;  %v2573_v8 = vunpack.i.l.bf16 %v2572_v35  ;;  %2846 = vrot.lane.b32.xlu0 %v3642_v32, %s3138_s27  ;;  %v2562_v1 = vpop.permute.xlu0 %2561 }
  0x94   : > { %v2564_v24 = vunpack.i.h.bf16 %v2562_v1  ;;  %v2563_v36 = vunpack.i.l.bf16 %v2562_v1 }
  0x95   : > { %590 = vst.msk [vmem:[#allocation2 + $0x70] sm:$0xff] %vm582_vm3, %v2574_v40  ;;  %589 = vst.msk [vmem:[#allocation2 + $0x60] sm:$0xff] %vm582_vm3, %v2573_v8  ;;  %2861 = vrot.lane.b32.xlu1 %v4524_v59, %s3137_s26 }
  0x96   : > { %v2582_v7 = vpop.permute.xlu1 %2581  ;;  %586 = vst.msk [vmem:[#allocation2 + $0x30] sm:$0xff] %vm582_vm3, %v2564_v24  ;;  %585 = vst.msk [vmem:[#allocation2 + $0x20] sm:$0xff] %vm582_vm3, %v2563_v36 }
  0x97   : > { %v2584_v3 = vunpack.i.h.bf16 %v2582_v7  ;;  %v2583_v51 = vunpack.i.l.bf16 %v2582_v7  ;;  %2856 = vrot.lane.b32.xlu0 %v4525_v29, %s3137_s26  ;;  %v2577_v52 = vpop.permute.xlu0 %2576 }
  0x98   : > { %v2579_v33 = vunpack.i.h.bf16 %v2577_v52  ;;  %v2578_v42 = vunpack.i.l.bf16 %v2577_v52 }
  0x99   : > { %594 = vst.msk [vmem:[#allocation2 + $0xb0] sm:$0xff] %vm582_vm3, %v2584_v3  ;;  %593 = vst.msk [vmem:[#allocation2 + $0xa0] sm:$0xff] %vm582_vm3, %v2583_v51  ;;  %2871 = vrot.lane.b32.xlu1 %v3652_v14, %s3134_s23  ;;  %v4526_v51 = vld [vmem:[#allocation5_spill] sm:$0xff] }
  0x9a   : > { %592 = vst.msk [vmem:[#allocation2 + $0x90] sm:$0xff] %vm582_vm3, %v2579_v33  ;;  %591 = vst.msk [vmem:[#allocation2 + $0x80] sm:$0xff] %vm582_vm3, %v2578_v42  ;;  %v2592_v5 = vpop.permute.xlu1 %2591 }
  0x9b   : > { %2866 = vrot.lane.b32.xlu0 %v3658_v12, %s3134_s23  ;;  %v2594_v21 = vunpack.i.h.bf16 %v2592_v5  ;;  %v2593_v19 = vunpack.i.l.bf16 %v2592_v5 }
  0x9c   : > { %v2587_v60 = vpop.permute.xlu0 %2586 }
  0x9d   : > { %598 = vst.msk [vmem:[#allocation2 + $0xf0] sm:$0xff] %vm582_vm3, %v2594_v21  ;;  %597 = vst.msk [vmem:[#allocation2 + $0xe0] sm:$0xff] %vm582_vm3, %v2593_v19  ;;  %v2589_v25 = vunpack.i.h.bf16 %v2587_v60  ;;  %v2588_v23 = vunpack.i.l.bf16 %v2587_v60  ;;  %2881 = vrot.lane.b32.xlu1 %v3638_v27, %s3133_s22 }
  0x9e   : > { %v2602_v14 = vpop.permute.xlu1 %2601 }
  0x9f   : > { %596 = vst.msk [vmem:[#allocation2 + $0xd0] sm:$0xff] %vm582_vm3, %v2589_v25  ;;  %595 = vst.msk [vmem:[#allocation2 + $0xc0] sm:$0xff] %vm582_vm3, %v2588_v23  ;;  %2876 = vrot.lane.b32.xlu0 %v3642_v32, %s3133_s22  ;;  %v2604_v12 = vunpack.i.h.bf16 %v2602_v14  ;;  %v2603_v30 = vunpack.i.l.bf16 %v2602_v14 }
  0xa0   : > { %v2597_v13 = vpop.permute.xlu0 %2596 }
  0xa1   : > { %602 = vst.msk [vmem:[#allocation2 + $0x130] sm:$0xff] %vm582_vm3, %v2604_v12  ;;  %601 = vst.msk [vmem:[#allocation2 + $0x120] sm:$0xff] %vm582_vm3, %v2603_v30  ;;  %v2599_v0 = vunpack.i.h.bf16 %v2597_v13  ;;  %v2598_v37 = vunpack.i.l.bf16 %v2597_v13  ;;  %2891 = vrot.lane.b32.xlu1 %v4524_v59, %s3136_s25 }
  0xa3   : > { %600 = vst.msk [vmem:[#allocation2 + $0x110] sm:$0xff] %vm582_vm3, %v2599_v0  ;;  %599 = vst.msk [vmem:[#allocation2 + $0x100] sm:$0xff] %vm582_vm3, %v2598_v37  ;;  %2886 = vrot.lane.b32.xlu0 %v4525_v29, %s3136_s25  ;;  %v2612_v27 = vpop.permute.xlu1 %2611 }
  0xa4   : > { %v2614_v32 = vunpack.i.h.bf16 %v2612_v27  ;;  %v2613_v17 = vunpack.i.l.bf16 %v2612_v27 }
  0xa5   : > { %v2607_v22 = vpop.permute.xlu0 %2606  ;;  %2901 = vrot.lane.b32.xlu1 %v3697_v53, %s3135_s24 }
  0xa6   : > { %606 = vst.msk [vmem:[#allocation2 + $0x170] sm:$0xff] %vm582_vm3, %v2614_v32  ;;  %605 = vst.msk [vmem:[#allocation2 + $0x160] sm:$0xff] %vm582_vm3, %v2613_v17  ;;  %v2609_v57 = vunpack.i.h.bf16 %v2607_v22  ;;  %v2608_v49 = vunpack.i.l.bf16 %v2607_v22  ;;  %v1567_v17 = vld [vmem:[#allocation2 + $0x38] sm:$0xff] }
  0xa7   : > { %2896 = vrot.lane.b32.xlu0 %v3706_v63, %s3135_s24  ;;  %v2622_v11 = vpop.permute.xlu1 %2621 }
  0xa8   : > { %604 = vst.msk [vmem:[#allocation2 + $0x150] sm:$0xff] %vm582_vm3, %v2609_v57  ;;  %603 = vst.msk [vmem:[#allocation2 + $0x140] sm:$0xff] %vm582_vm3, %v2608_v49  ;;  %v2624_v39 = vunpack.i.h.bf16 %v2622_v11  ;;  %v2623_v26 = vunpack.i.l.bf16 %v2622_v11 }
  0xa9   : > { %v2617_v35 = vpop.permute.xlu0 %2616  ;;  %2911 = vrot.lane.b32.xlu1 %v3685_v16, %s3138_s27 }
  0xaa   : > { %610 = vst.msk [vmem:[#allocation2 + $0x1b0] sm:$0xff] %vm582_vm3, %v2624_v39  ;;  %609 = vst.msk [vmem:[#allocation2 + $0x1a0] sm:$0xff] %vm582_vm3, %v2623_v26  ;;  %v2619_v40 = vunpack.i.h.bf16 %v2617_v35  ;;  %v2618_v8 = vunpack.i.l.bf16 %v2617_v35 }
  0xab   : > { %2906 = vrot.lane.b32.xlu0 %v3689_v2, %s3138_s27  ;;  %v2632_v1 = vpop.permute.xlu1 %2631 }
  0xac   : > { %608 = vst.msk [vmem:[#allocation2 + $0x190] sm:$0xff] %vm582_vm3, %v2619_v40  ;;  %607 = vst.msk [vmem:[#allocation2 + $0x180] sm:$0xff] %vm582_vm3, %v2618_v8  ;;  %v2634_v24 = vunpack.i.h.bf16 %v2632_v1  ;;  %v2633_v36 = vunpack.i.l.bf16 %v2632_v1 }
  0xad   : > { %v2627_v59 = vpop.permute.xlu0 %2626  ;;  %2921 = vrot.lane.b32.xlu1 %v3504_v62, %s3137_s26 }
  0xae   : > { %v2629_v7 = vunpack.i.h.bf16 %v2627_v59  ;;  %v2628_v3 = vunpack.i.l.bf16 %v2627_v59 }
  0xaf   : > { %2916 = vrot.lane.b32.xlu0 %v4526_v51, %s3137_s26  ;;  %v2642_v29 = vpop.permute.xlu1 %2641 }
  0xb0   : > { %793 = vst.msk [vmem:[#allocation2] sm:$0xff] %vm792_vm4, %v2628_v3  ;;  %794 = vst.msk [vmem:[#allocation2 + $0x10] sm:$0xff] %vm792_vm4, %v2629_v7  ;;  %v2644_v52 = vunpack.i.h.bf16 %v2642_v29  ;;  %v2643_v33 = vunpack.i.l.bf16 %v2642_v29 }
  0xb1   : > { %v2637_v42 = vpop.permute.xlu0 %2636  ;;  %924 = vst.msk [vmem:[#allocation2] sm:$0xff] %vm923_vm5, %v2633_v36  ;;  %925 = vst.msk [vmem:[#allocation2 + $0x10] sm:$0xff] %vm923_vm5, %v2634_v24  ;;  %2931 = vrot.lane.b32.xlu1 %v3697_v53, %s3134_s23 }
  0xb2   : > { %v2639_v5 = vunpack.i.h.bf16 %v2637_v42  ;;  %v2638_v21 = vunpack.i.l.bf16 %v2637_v42 }
  0xb3   : > { %2926 = vrot.lane.b32.xlu0 %v3706_v63, %s3134_s23  ;;  %v2652_v19 = vpop.permute.xlu1 %2651 }
  0xb4   : > { %1059 = vst.msk [vmem:[#allocation2] sm:$0xff] %vm1058_vm6, %v2638_v21  ;;  %1060 = vst.msk [vmem:[#allocation2 + $0x10] sm:$0xff] %vm1058_vm6, %v2639_v5  ;;  %v2654_v60 = vunpack.i.h.bf16 %v2652_v19  ;;  %v2653_v25 = vunpack.i.l.bf16 %v2652_v19  ;;  %v1569_v5 = vld [vmem:[#allocation2 + $0x48] sm:$0xff]  ;;  %v1571_v21 = vld [vmem:[#allocation2 + $0x58] sm:$0xff] }
  0xb5   : > { %v2647_v23 = vpop.permute.xlu0 %2646  ;;  %1193 = vst.msk [vmem:[#allocation2] sm:$0xff] %vm1192_vm7, %v2643_v33  ;;  %1194 = vst.msk [vmem:[#allocation2 + $0x10] sm:$0xff] %vm1192_vm7, %v2644_v52  ;;  %2941 = vrot.lane.b32.xlu1 %v3685_v16, %s3133_s22 }
  0xb6   : > { %v2649_v53 = vunpack.i.h.bf16 %v2647_v23  ;;  %v2648_v14 = vunpack.i.l.bf16 %v2647_v23 }
  0xb7   : > { %2936 = vrot.lane.b32.xlu0 %v3689_v2, %s3133_s22  ;;  %v2662_v63 = vpop.permute.xlu1 %2661 }
  0xb8   : > { %1324 = vst.msk [vmem:[#allocation2] sm:$0xff] %vm1323_vm8, %v2648_v14  ;;  %1325 = vst.msk [vmem:[#allocation2 + $0x10] sm:$0xff] %vm1323_vm8, %v2649_v53  ;;  %v2664_v12 = vunpack.i.h.bf16 %v2662_v63  ;;  %v2663_v30 = vunpack.i.l.bf16 %v2662_v63  ;;  %v1629_v53 = vpack.c.bf16 %v1571_v21, %v1569_v5  ;;  %v1577_v5 = vld [vmem:[#allocation2 + $0x88] sm:$0xff]  ;;  %v1579_v21 = vld [vmem:[#allocation2 + $0x98] sm:$0xff] }
  0xb9   : > { %1459 = vst.msk [vmem:[#allocation2] sm:$0xff] %vm1458_vm9, %v2653_v25  ;;  %1460 = vst.msk [vmem:[#allocation2 + $0x10] sm:$0xff] %vm1458_vm9, %v2654_v60  ;;  %v2657_v13 = vpop.permute.xlu0 %2656  ;;  %2951 = vrot.lane.b32.xlu1 %v3504_v62, %s3136_s25  ;;  %v1565_v62 = vld [vmem:[#allocation2 + $0x28] sm:$0xff] }
  0xba   : > { %v2659_v16 = vunpack.i.h.bf16 %v2657_v13  ;;  %v2658_v0 = vunpack.i.l.bf16 %v2657_v13  ;;  %v1627_v26 = vpack.c.bf16 %v1567_v17, %v1565_v62 }
  0xbb   : > { %2946 = vrot.lane.b32.xlu0 %v4526_v51, %s3136_s25  ;;  %v2672_v2 = vpop.permute.xlu1 %2671 }
  0xbc   : > { %795 = vst.msk [vmem:[#allocation2 + $0x20] sm:$0xff] %vm792_vm4, %v2658_v0  ;;  %796 = vst.msk [vmem:[#allocation2 + $0x30] sm:$0xff] %vm792_vm4, %v2659_v16  ;;  %v2674_v37 = vunpack.i.h.bf16 %v2672_v2  ;;  %v2673_v27 = vunpack.i.l.bf16 %v2672_v2 }
  0xbd   : > { %926 = vst.msk [vmem:[#allocation2 + $0x20] sm:$0xff] %vm923_vm5, %v2663_v30  ;;  %927 = vst.msk [vmem:[#allocation2 + $0x30] sm:$0xff] %vm923_vm5, %v2664_v12  ;;  %v2667_v32 = vpop.permute.xlu0 %2666  ;;  %2961 = vrot.lane.b32.xlu1 %v3741_v18, %s3135_s24 }
  0xbe   : > { %v2669_v22 = vunpack.i.h.bf16 %v2667_v32  ;;  %v2668_v57 = vunpack.i.l.bf16 %v2667_v32 }
  0xbf   : > { %2956 = vrot.lane.b32.xlu0 %v3722_v56, %s3135_s24  ;;  %v2682_v49 = vpop.permute.xlu1 %2681 }
  0xc0   : > { %1061 = vst.msk [vmem:[#allocation2 + $0x20] sm:$0xff] %vm1058_vm6, %v2668_v57  ;;  %1062 = vst.msk [vmem:[#allocation2 + $0x30] sm:$0xff] %vm1058_vm6, %v2669_v22  ;;  %v1560_v11 = vld [vmem:[#allocation2] sm:$0xff]  ;;  %v1562_v39 = vld [vmem:[#allocation2 + $0x10] sm:$0xff]  ;;  %v2684_v35 = vunpack.i.h.bf16 %v2682_v49  ;;  %v2683_v40 = vunpack.i.l.bf16 %v2682_v49 }
  0xc1   : > { %1195 = vst.msk [vmem:[#allocation2 + $0x20] sm:$0xff] %vm1192_vm7, %v2673_v27  ;;  %1196 = vst.msk [vmem:[#allocation2 + $0x30] sm:$0xff] %vm1192_vm7, %v2674_v37  ;;  %v2677_v8 = vpop.permute.xlu0 %2676  ;;  %2971 = vrot.lane.b32.xlu1 %v3730_v31, %s3138_s27  ;;  %v1624_v1 = vpack.c.bf16 %v1562_v39, %v1560_v11  ;;  %v1573_v22 = vld [vmem:[#allocation2 + $0x68] sm:$0xff]  ;;  %v1575_v57 = vld [vmem:[#allocation2 + $0x78] sm:$0xff] }
  0xc2   : > { %v2679_v56 = vunpack.i.h.bf16 %v2677_v8  ;;  %v2678_v24 = vunpack.i.l.bf16 %v2677_v8 }
  0xc3   : > { %2966 = vrot.lane.b32.xlu0 %v3565_v55, %s3138_s27  ;;  %1809 = vmatmul.mubr.bf16.vlgmr.msra.gmra.mrb[0].mxu0 %v1624_v1  ;;  %v2692_v36 = vpop.permute.xlu1 %2691 }
  0xc4   : > { %1326 = vst.msk [vmem:[#allocation2 + $0x20] sm:$0xff] %vm1323_vm8, %v2678_v24  ;;  %1327 = vst.msk [vmem:[#allocation2 + $0x30] sm:$0xff] %vm1323_vm8, %v2679_v56  ;;  %2394 = vmatprep.mubr.msk.bf16.mxu0 %vm324_vm1, %v1627_v26  ;;  %v2694_v59 = vunpack.i.h.bf16 %v2692_v36  ;;  %v2693_v7 = vunpack.i.l.bf16 %v2692_v36 }
  0xc5   : > { %1461 = vst.msk [vmem:[#allocation2 + $0x20] sm:$0xff] %vm1458_vm9, %v2683_v40  ;;  %1462 = vst.msk [vmem:[#allocation2 + $0x30] sm:$0xff] %vm1458_vm9, %v2684_v35  ;;  %v2687_v3 = vpop.permute.xlu0 %2686  ;;  %2981 = vrot.lane.b32.xlu1 %v3491_v61, %s3137_s26  ;;  %v1631_v40 = vpack.c.bf16 %v1575_v57, %v1573_v22 }
  0xc6   : > { %v2689_v51 = vunpack.i.h.bf16 %v2687_v3  ;;  %v2688_v55 = vunpack.i.l.bf16 %v2687_v3 }
  0xc7   : > { %2976 = vrot.lane.b32.xlu0 %v3410_v48, %s3137_s26  ;;  %v2702_v29 = vpop.permute.xlu1 %2701 }
  0xc8   : > { %798 = vst.msk [vmem:[#allocation2 + $0x50] sm:$0xff] %vm792_vm4, %v2689_v51  ;;  %797 = vst.msk [vmem:[#allocation2 + $0x40] sm:$0xff] %vm792_vm4, %v2688_v55  ;;  %v2704_v52 = vunpack.i.h.bf16 %v2702_v29  ;;  %v2703_v33 = vunpack.i.l.bf16 %v2702_v29 }
  0xc9   : > { %928 = vst.msk [vmem:[#allocation2 + $0x40] sm:$0xff] %vm923_vm5, %v2693_v7  ;;  %929 = vst.msk [vmem:[#allocation2 + $0x50] sm:$0xff] %vm923_vm5, %v2694_v59  ;;  %v2697_v42 = vpop.permute.xlu0 %2696  ;;  %2991 = vrot.lane.b32.xlu1 %v3730_v31, %s3133_s22 }
  0xca   : > { %v2699_v19 = vunpack.i.h.bf16 %v2697_v42  ;;  %v2698_v60 = vunpack.i.l.bf16 %v2697_v42 }
  0xcb   : > { %2986 = vrot.lane.b32.xlu0 %v3741_v18, %s3134_s23  ;;  %v2712_v48 = vpop.permute.xlu1 %2711 }
  0xcc   : > { %1063 = vst.msk [vmem:[#allocation2 + $0x40] sm:$0xff] %vm1058_vm6, %v2698_v60  ;;  %1064 = vst.msk [vmem:[#allocation2 + $0x50] sm:$0xff] %vm1058_vm6, %v2699_v19  ;;  %v1564_v25 = vld [vmem:[#allocation2 + $0x20] sm:$0xff]  ;;  %v1566_v23 = vld [vmem:[#allocation2 + $0x30] sm:$0xff]  ;;  %v2714_v31 = vunpack.i.h.bf16 %v2712_v48  ;;  %v2713_v14 = vunpack.i.l.bf16 %v2712_v48 }
  0xcd   : > { %1197 = vst.msk [vmem:[#allocation2 + $0x40] sm:$0xff] %vm1192_vm7, %v2703_v33  ;;  %1198 = vst.msk [vmem:[#allocation2 + $0x50] sm:$0xff] %vm1192_vm7, %v2704_v52  ;;  %v2707_v63 = vpop.permute.xlu0 %2706  ;;  %v1626_v12 = vpack.c.bf16 %v1566_v23, %v1564_v25  ;;  %3001 = vrot.lane.b32.xlu1 %v3773_v38, %s3135_s24 }
  0xce   : > { %v2709_v18 = vunpack.i.h.bf16 %v2707_v63  ;;  %v2708_v30 = vunpack.i.l.bf16 %v2707_v63 }
  0xcf   : > { %2996 = vrot.lane.b32.xlu0 %v3491_v61, %s3136_s25  ;;  %1817 = vmatmul.mubr.bf16.gmra.mrb[4].mxu0 %v1626_v12  ;;  %v2722_v13 = vpop.permute.xlu1 %2721 }
  0xd0   : > { %1328 = vst.msk [vmem:[#allocation2 + $0x40] sm:$0xff] %vm1323_vm8, %v2708_v30  ;;  %1329 = vst.msk [vmem:[#allocation2 + $0x50] sm:$0xff] %vm1323_vm8, %v2709_v18  ;;  %2395 = vmatprep.mubr.msk.bf16.mxu0 %vm324_vm1, %v1629_v53  ;;  %v2724_v16 = vunpack.i.h.bf16 %v2722_v13  ;;  %v2723_v0 = vunpack.i.l.bf16 %v2722_v13 }
  0xd1   : > { %1463 = vst.msk [vmem:[#allocation2 + $0x40] sm:$0xff] %vm1458_vm9, %v2713_v14  ;;  %1464 = vst.msk [vmem:[#allocation2 + $0x50] sm:$0xff] %vm1458_vm9, %v2714_v31  ;;  %v2717_v2 = vpop.permute.xlu0 %2716  ;;  %3011 = vrot.lane.b32.xlu1 %v3794_v50, %s3137_s26  ;;  %v1633_v31 = vpack.c.bf16 %v1579_v21, %v1577_v5 }
  0xd2   : > { %v2719_v37 = vunpack.i.h.bf16 %v2717_v2  ;;  %v2718_v61 = vunpack.i.l.bf16 %v2717_v2 }
  0xd3   : > { %3006 = vrot.lane.b32.xlu0 %v3767_v43, %s3138_s27  ;;  %v2732_v27 = vpop.permute.xlu1 %2731 }
  0xd4   : > { %800 = vst.msk [vmem:[#allocation2 + $0x70] sm:$0xff] %vm792_vm4, %v2719_v37  ;;  %799 = vst.msk [vmem:[#allocation2 + $0x60] sm:$0xff] %vm792_vm4, %v2718_v61  ;;  %v2734_v32 = vunpack.i.h.bf16 %v2732_v27  ;;  %v2733_v62 = vunpack.i.l.bf16 %v2732_v27 }
  0xd5   : > { %930 = vst.msk [vmem:[#allocation2 + $0x60] sm:$0xff] %vm923_vm5, %v2723_v0  ;;  %931 = vst.msk [vmem:[#allocation2 + $0x70] sm:$0xff] %vm923_vm5, %v2724_v16  ;;  %v2727_v17 = vpop.permute.xlu0 %2726  ;;  %3021 = vrot.lane.b32.xlu1 %v3767_v43, %s3133_s22 }
  0xd6   : > { %v2729_v49 = vunpack.i.h.bf16 %v2727_v17  ;;  %v2728_v11 = vunpack.i.l.bf16 %v2727_v17 }
  0xd7   : > { %3016 = vrot.lane.b32.xlu0 %v3773_v38, %s3134_s23  ;;  %v2742_v39 = vpop.permute.xlu1 %2741 }
  0xd8   : > { %1065 = vst.msk [vmem:[#allocation2 + $0x60] sm:$0xff] %vm1058_vm6, %v2728_v11  ;;  %1066 = vst.msk [vmem:[#allocation2 + $0x70] sm:$0xff] %vm1058_vm6, %v2729_v49  ;;  %v1568_v26 = vld [vmem:[#allocation2 + $0x40] sm:$0xff]  ;;  %v1570_v35 = vld [vmem:[#allocation2 + $0x50] sm:$0xff]  ;;  %v2744_v43 = vunpack.i.h.bf16 %v2742_v39  ;;  %v2743_v8 = vunpack.i.l.bf16 %v2742_v39 }
  0xd9   : > { %1199 = vst.msk [vmem:[#allocation2 + $0x60] sm:$0xff] %vm1192_vm7, %v2733_v62  ;;  %1200 = vst.msk [vmem:[#allocation2 + $0x70] sm:$0xff] %vm1192_vm7, %v2734_v32  ;;  %v2737_v1 = vpop.permute.xlu0 %2736  ;;  %v1628_v56 = vpack.c.bf16 %v1570_v35, %v1568_v26  ;;  %3031 = vrot.lane.b32.xlu1 %v3804_v28, %s3135_s24 }
  0xda   : > { %v2739_v38 = vunpack.i.h.bf16 %v2737_v1  ;;  %v2738_v24 = vunpack.i.l.bf16 %v2737_v1 }
  0xdb   : > { %3026 = vrot.lane.b32.xlu0 %v3794_v50, %s3136_s25  ;;  %1825 = vmatmul.mubr.bf16.gmra.mrb[8].mxu0 %v1628_v56  ;;  %v2752_v36 = vpop.permute.xlu1 %2751 }
  0xdc   : > { %1330 = vst.msk [vmem:[#allocation2 + $0x60] sm:$0xff] %vm1323_vm8, %v2738_v24  ;;  %1331 = vst.msk [vmem:[#allocation2 + $0x70] sm:$0xff] %vm1323_vm8, %v2739_v38  ;;  %v2754_v59 = vunpack.i.h.bf16 %v2752_v36  ;;  %v2753_v7 = vunpack.i.l.bf16 %v2752_v36  ;;  %2396 = vmatprep.mubr.msk.bf16.mxu0 %vm324_vm1, %v1631_v40 }
  0xdd   : > { %1465 = vst.msk [vmem:[#allocation2 + $0x60] sm:$0xff] %vm1458_vm9, %v2743_v8  ;;  %1466 = vst.msk [vmem:[#allocation2 + $0x70] sm:$0xff] %vm1458_vm9, %v2744_v43  ;;  %v2747_v3 = vpop.permute.xlu0 %2746  ;;  %3041 = vrot.lane.b32.xlu1 %v3815_v46, %s3137_s26  ;;  %v1599_v8 = vld [vmem:[#allocation2 + $0x138] sm:$0xff] }
  0xde   : > { %809 = vst.msk [vmem:[#allocation2 + $0x100] sm:$0xff] %vm792_vm4, %v2753_v7  ;;  %810 = vst.msk [vmem:[#allocation2 + $0x110] sm:$0xff] %vm792_vm4, %v2754_v59  ;;  %v2749_v51 = vunpack.i.h.bf16 %v2747_v3  ;;  %v2748_v55 = vunpack.i.l.bf16 %v2747_v3 }
  0xdf   : > { %3036 = vrot.lane.b32.xlu0 %v3788_v4, %s3138_s27  ;;  %v2762_v29 = vpop.permute.xlu1 %2761 }
  0xe0   : > { %801 = vst.msk [vmem:[#allocation2 + $0x80] sm:$0xff] %vm792_vm4, %v2748_v55  ;;  %802 = vst.msk [vmem:[#allocation2 + $0x90] sm:$0xff] %vm792_vm4, %v2749_v51  ;;  %v2764_v52 = vunpack.i.h.bf16 %v2762_v29  ;;  %v2763_v33 = vunpack.i.l.bf16 %v2762_v29 }
  0xe1   : > { %v2757_v42 = vpop.permute.xlu0 %2756  ;;  %3051 = vrot.lane.b32.xlu1 %v3804_v28, %s3134_s23 }
  0xe2   : > { %940 = vst.msk [vmem:[#allocation2 + $0x100] sm:$0xff] %vm923_vm5, %v2763_v33  ;;  %941 = vst.msk [vmem:[#allocation2 + $0x110] sm:$0xff] %vm923_vm5, %v2764_v52  ;;  %v2759_v19 = vunpack.i.h.bf16 %v2757_v42  ;;  %v2758_v60 = vunpack.i.l.bf16 %v2757_v42 }
  0xe3   : > { %3046 = vrot.lane.b32.xlu0 %v3794_v50, %s3132_s21  ;;  %v2772_v48 = vpop.permute.xlu1 %2771 }
  0xe4   : > { %932 = vst.msk [vmem:[#allocation2 + $0x80] sm:$0xff] %vm923_vm5, %v2758_v60  ;;  %933 = vst.msk [vmem:[#allocation2 + $0x90] sm:$0xff] %vm923_vm5, %v2759_v19  ;;  %v2774_v25 = vunpack.i.h.bf16 %v2772_v48  ;;  %v2773_v23 = vunpack.i.l.bf16 %v2772_v48  ;;  %v1572_v53 = vld [vmem:[#allocation2 + $0x60] sm:$0xff]  ;;  %v1574_v28 = vld [vmem:[#allocation2 + $0x70] sm:$0xff] }
  0xe5   : > { %v2767_v14 = vpop.permute.xlu0 %2766  ;;  %v1630_v63 = vpack.c.bf16 %v1574_v28, %v1572_v53  ;;  %3061 = vrot.lane.b32.xlu1 %v3815_v46, %s3136_s25 }
  0xe6   : > { %1075 = vst.msk [vmem:[#allocation2 + $0x100] sm:$0xff] %vm1058_vm6, %v2773_v23  ;;  %1076 = vst.msk [vmem:[#allocation2 + $0x110] sm:$0xff] %vm1058_vm6, %v2774_v25  ;;  %v2769_v50 = vunpack.i.h.bf16 %v2767_v14  ;;  %v2768_v12 = vunpack.i.l.bf16 %v2767_v14 }
  0xe7   : > { %3056 = vrot.lane.b32.xlu0 %v3788_v4, %s3133_s22  ;;  %1833 = vmatmul.mubr.bf16.gmra.mrb[12].mxu0 %v1630_v63  ;;  %v2782_v18 = vpop.permute.xlu1 %2781 }
  0xe8   : > { %1067 = vst.msk [vmem:[#allocation2 + $0x80] sm:$0xff] %vm1058_vm6, %v2768_v12  ;;  %1068 = vst.msk [vmem:[#allocation2 + $0x90] sm:$0xff] %vm1058_vm6, %v2769_v50  ;;  %v2784_v30 = vunpack.i.h.bf16 %v2782_v18  ;;  %v2783_v13 = vunpack.i.l.bf16 %v2782_v18  ;;  %2397 = vmatprep.mubr.msk.bf16.mxu0 %vm324_vm1, %v1633_v31 }
  0xe9   : > { %v2777_v16 = vpop.permute.xlu0 %2776  ;;  %3071 = vrot.lane.b32.xlu1 %v3841_v20, %s3138_s27 }
  0xea   : > { %1209 = vst.msk [vmem:[#allocation2 + $0x100] sm:$0xff] %vm1192_vm7, %v2783_v13  ;;  %1210 = vst.msk [vmem:[#allocation2 + $0x110] sm:$0xff] %vm1192_vm7, %v2784_v30  ;;  %v2779_v0 = vunpack.i.h.bf16 %v2777_v16  ;;  %v2778_v4 = vunpack.i.l.bf16 %v2777_v16 }
  0xeb   : > { %3066 = vrot.lane.b32.xlu0 %v3835_v58, %s3135_s24  ;;  %v2792_v2 = vpop.permute.xlu1 %2791 }
  0xec   : > { %1201 = vst.msk [vmem:[#allocation2 + $0x80] sm:$0xff] %vm1192_vm7, %v2778_v4  ;;  %1202 = vst.msk [vmem:[#allocation2 + $0x90] sm:$0xff] %vm1192_vm7, %v2779_v0  ;;  %v2794_v37 = vunpack.i.h.bf16 %v2792_v2  ;;  %v2793_v61 = vunpack.i.l.bf16 %v2792_v2 }
  0xed   : > { %v2787_v27 = vpop.permute.xlu0 %2786  ;;  %3081 = vrot.lane.b32.xlu1 %v3815_v46, %s3132_s21 }
  0xee   : > { %1340 = vst.msk [vmem:[#allocation2 + $0x100] sm:$0xff] %vm1323_vm8, %v2793_v61  ;;  %1341 = vst.msk [vmem:[#allocation2 + $0x110] sm:$0xff] %vm1323_vm8, %v2794_v37  ;;  %v2789_v32 = vunpack.i.h.bf16 %v2787_v27  ;;  %v2788_v62 = vunpack.i.l.bf16 %v2787_v27  ;;  %v1601_v61 = vld [vmem:[#allocation2 + $0x148] sm:$0xff]  ;;  %v1603_v27 = vld [vmem:[#allocation2 + $0x158] sm:$0xff] }
  0xef   : > { %3076 = vrot.lane.b32.xlu0 %v3851_v6, %s3137_s26  ;;  %v2802_v17 = vpop.permute.xlu1 %2801 }
  0xf0   : > { %1332 = vst.msk [vmem:[#allocation2 + $0x80] sm:$0xff] %vm1323_vm8, %v2788_v62  ;;  %1333 = vst.msk [vmem:[#allocation2 + $0x90] sm:$0xff] %vm1323_vm8, %v2789_v32  ;;  %v2804_v22 = vunpack.i.h.bf16 %v2802_v17  ;;  %v2803_v57 = vunpack.i.l.bf16 %v2802_v17 }
  0xf1   : > { %v2797_v49 = vpop.permute.xlu0 %2796  ;;  %3091 = vrot.lane.b32.xlu1 %v3841_v20, %s3133_s22 }
  0xf2   : > { %1475 = vst.msk [vmem:[#allocation2 + $0x100] sm:$0xff] %vm1458_vm9, %v2803_v57  ;;  %1476 = vst.msk [vmem:[#allocation2 + $0x110] sm:$0xff] %vm1458_vm9, %v2804_v22  ;;  %v2799_v46 = vunpack.i.h.bf16 %v2797_v49  ;;  %v2798_v11 = vunpack.i.l.bf16 %v2797_v49  ;;  %v1585_v22 = vld [vmem:[#allocation2 + $0xc8] sm:$0xff]  ;;  %v1587_v57 = vld [vmem:[#allocation2 + $0xd8] sm:$0xff] }
  0xf3   : > { %3086 = vrot.lane.b32.xlu0 %v3835_v58, %s3134_s23  ;;  %v2812_v39 = vpop.permute.xlu1 %2811  ;;  %v1597_v58 = vld [vmem:[#allocation2 + $0x128] sm:$0xff]  ;;  %s4281_s23 = scalar_lea.vmem %s4480_s2, %s2443_s20 }
  0xf4   : > { %1467 = vst.msk [vmem:[#allocation2 + $0x80] sm:$0xff] %vm1458_vm9, %v2798_v11  ;;  %1468 = vst.msk [vmem:[#allocation2 + $0x90] sm:$0xff] %vm1458_vm9, %v2799_v46  ;;  %v2814_v26 = vunpack.i.h.bf16 %v2812_v39  ;;  %v2813_v35 = vunpack.i.l.bf16 %v2812_v39  ;;  %v1643_v59 = vpack.c.bf16 %v1599_v8, %v1597_v58  ;;  %v1645_v39 = vpack.c.bf16 %v1603_v27, %v1601_v61 }
  0xf5   : > { %v2807_v40 = vpop.permute.xlu0 %2806  ;;  %3101 = vrot.lane.b32.xlu1 %v3100_v15, %s3135_s24  ;;  %v1637_v8 = vpack.c.bf16 %v1587_v57, %v1585_v22 }
  0xf6   : > { %812 = vst.msk [vmem:[#allocation2 + $0x130] sm:$0xff] %vm792_vm4, %v2814_v26  ;;  %811 = vst.msk [vmem:[#allocation2 + $0x120] sm:$0xff] %vm792_vm4, %v2813_v35  ;;  %v2809_v20 = vunpack.i.h.bf16 %v2807_v40  ;;  %v2808_v43 = vunpack.i.l.bf16 %v2807_v40 }
  0xf7   : > { %3096 = vrot.lane.b32.xlu0 %v3851_v6, %s3136_s25  ;;  %v2822_v1 = vpop.permute.xlu1 %2821 }
  0xf8   : > { %804 = vst.msk [vmem:[#allocation2 + $0xb0] sm:$0xff] %vm792_vm4, %v2809_v20  ;;  %803 = vst.msk [vmem:[#allocation2 + $0xa0] sm:$0xff] %vm792_vm4, %v2808_v43  ;;  %v2824_v56 = vunpack.i.h.bf16 %v2822_v1  ;;  %v2823_v38 = vunpack.i.l.bf16 %v2822_v1 }
  0xf9   : > { %v2817_v15 = vpop.permute.xlu0 %2816  ;;  %3111 = vrot.lane.b32.xlu1 %v3110_v44, %s3137_s26  ;;  %v1592_v24 = vld [vmem:[#allocation2 + $0x100] sm:$0xff]  ;;  %v1594_v36 = vld [vmem:[#allocation2 + $0x110] sm:$0xff]  ;;  %s211_s26 = scalar_lea.vmem %s4481_s3, %s4528_s16 }
  0xfa   : > { %942 = vst.msk [vmem:[#allocation2 + $0x120] sm:$0xff] %vm923_vm5, %v2823_v38  ;;  %943 = vst.msk [vmem:[#allocation2 + $0x130] sm:$0xff] %vm923_vm5, %v2824_v56  ;;  %v2819_v6 = vunpack.i.h.bf16 %v2817_v15  ;;  %v2818_v7 = vunpack.i.l.bf16 %v2817_v15  ;;  %v1640_v3 = vpack.c.bf16 %v1594_v36, %v1592_v24 }
  0xfb   : > { %3106 = vrot.lane.b32.xlu0 %v3105_v34, %s3138_s27  ;;  %v2832_v51 = vpop.permute.xlu1 %2831  ;;  %v1576_v55 = vld [vmem:[#allocation2 + $0x80] sm:$0xff]  ;;  %v1578_v29 = vld [vmem:[#allocation2 + $0x90] sm:$0xff] }
  0xfc   : > { %934 = vst.msk [vmem:[#allocation2 + $0xa0] sm:$0xff] %vm923_vm5, %v2818_v7  ;;  %935 = vst.msk [vmem:[#allocation2 + $0xb0] sm:$0xff] %vm923_vm5, %v2819_v6  ;;  %v2834_v45 = vunpack.i.h.bf16 %v2832_v51  ;;  %v2833_v44 = vunpack.i.l.bf16 %v2832_v51  ;;  %v1632_v52 = vpack.c.bf16 %v1578_v29, %v1576_v55  ;;  %1873 = vmatmul.mubr.bf16.vlgmr.msra.gmra.mrb[0].mxu1 %v1640_v3 }
  0xfd   : > { %v2827_v33 = vpop.permute.xlu0 %2826  ;;  %2402 = vmatprep.mubr.msk.bf16.mxu1 %vm324_vm1, %v1643_v59 }
  0xfe   : > { %1077 = vst.msk [vmem:[#allocation2 + $0x120] sm:$0xff] %vm1058_vm6, %v2833_v44  ;;  %1078 = vst.msk [vmem:[#allocation2 + $0x130] sm:$0xff] %vm1058_vm6, %v2834_v45  ;;  %v2829_v9 = vunpack.i.h.bf16 %v2827_v33  ;;  %v2828_v41 = vunpack.i.l.bf16 %v2827_v33  ;;  %1841 = vmatmul.mubr.bf16.gmra.mrb[16].mxu0 %v1632_v52 }
  0xff   : > { %v2842_v34 = vpop.permute.xlu1 %2841  ;;  %2398 = vmatprep.mubr.msk.bf16.mxu0 %vm324_vm1, %v1635_v54 }
 0x100   : > { %1069 = vst.msk [vmem:[#allocation2 + $0xa0] sm:$0xff] %vm1058_vm6, %v2828_v41  ;;  %1070 = vst.msk [vmem:[#allocation2 + $0xb0] sm:$0xff] %vm1058_vm6, %v2829_v9  ;;  %v2844_v42 = vunpack.i.h.bf16 %v2842_v34  ;;  %v2843_v5 = vunpack.i.l.bf16 %v2842_v34 }
 0x101   : > { %v2837_v21 = vpop.permute.xlu0 %2836 }
 0x102   : > { %1211 = vst.msk [vmem:[#allocation2 + $0x120] sm:$0xff] %vm1192_vm7, %v2843_v5  ;;  %1212 = vst.msk [vmem:[#allocation2 + $0x130] sm:$0xff] %vm1192_vm7, %v2844_v42  ;;  %v2839_v19 = vunpack.i.h.bf16 %v2837_v21  ;;  %v2838_v60 = vunpack.i.l.bf16 %v2837_v21 }
 0x103   : > { %v2852_v48 = vpop.permute.xlu1 %2851 }
 0x104   : > { %1203 = vst.msk [vmem:[#allocation2 + $0xa0] sm:$0xff] %vm1192_vm7, %v2838_v60  ;;  %1204 = vst.msk [vmem:[#allocation2 + $0xb0] sm:$0xff] %vm1192_vm7, %v2839_v19  ;;  %v2854_v25 = vunpack.i.h.bf16 %v2852_v48  ;;  %v2853_v23 = vunpack.i.l.bf16 %v2852_v48 }
 0x105   : > { %v2847_v53 = vpop.permute.xlu0 %2846 }
 0x106   : > { %1342 = vst.msk [vmem:[#allocation2 + $0x120] sm:$0xff] %vm1323_vm8, %v2853_v23  ;;  %1343 = vst.msk [vmem:[#allocation2 + $0x130] sm:$0xff] %vm1323_vm8, %v2854_v25  ;;  %v2849_v28 = vunpack.i.h.bf16 %v2847_v53  ;;  %v2848_v31 = vunpack.i.l.bf16 %v2847_v53  ;;  %v1605_v23 = vld [vmem:[#allocation2 + $0x168] sm:$0xff]  ;;  %v1607_v53 = vld [vmem:[#allocation2 + $0x178] sm:$0xff] }
 0x107   : > { %v2862_v14 = vpop.permute.xlu1 %2861 }
 0x108   : > { %1334 = vst.msk [vmem:[#allocation2 + $0xa0] sm:$0xff] %vm1323_vm8, %v2848_v31  ;;  %1335 = vst.msk [vmem:[#allocation2 + $0xb0] sm:$0xff] %vm1323_vm8, %v2849_v28  ;;  %v2864_v63 = vunpack.i.h.bf16 %v2862_v14  ;;  %v2863_v50 = vunpack.i.l.bf16 %v2862_v14 }
 0x109   : > { %v2857_v12 = vpop.permute.xlu0 %2856 }
 0x10a   : > { %1477 = vst.msk [vmem:[#allocation2 + $0x120] sm:$0xff] %vm1458_vm9, %v2863_v50  ;;  %1478 = vst.msk [vmem:[#allocation2 + $0x130] sm:$0xff] %vm1458_vm9, %v2864_v63  ;;  %v2859_v18 = vunpack.i.h.bf16 %v2857_v12  ;;  %v2858_v30 = vunpack.i.l.bf16 %v2857_v12  ;;  %v1589_v63 = vld [vmem:[#allocation2 + $0xe8] sm:$0xff]  ;;  %v1591_v50 = vld [vmem:[#allocation2 + $0xf8] sm:$0xff] }
 0x10b   : > { %v2872_v13 = vpop.permute.xlu1 %2871  ;;  %v1639_v27 = vpack.c.bf16 %v1591_v50, %v1589_v63 }
 0x10c   : > { %1469 = vst.msk [vmem:[#allocation2 + $0xa0] sm:$0xff] %vm1458_vm9, %v2858_v30  ;;  %1470 = vst.msk [vmem:[#allocation2 + $0xb0] sm:$0xff] %vm1458_vm9, %v2859_v18  ;;  %v2874_v16 = vunpack.i.h.bf16 %v2872_v13  ;;  %v2873_v0 = vunpack.i.l.bf16 %v2872_v13  ;;  %v1647_v13 = vpack.c.bf16 %v1607_v53, %v1605_v23 }
 0x10d   : > { %v2867_v4 = vpop.permute.xlu0 %2866 }
 0x10e   : > { %813 = vst.msk [vmem:[#allocation2 + $0x140] sm:$0xff] %vm792_vm4, %v2873_v0  ;;  %814 = vst.msk [vmem:[#allocation2 + $0x150] sm:$0xff] %vm792_vm4, %v2874_v16  ;;  %v2869_v2 = vunpack.i.h.bf16 %v2867_v4  ;;  %v2868_v37 = vunpack.i.l.bf16 %v2867_v4 }
 0x10f   : > { %v2882_v32 = vpop.permute.xlu1 %2881 }
 0x110   : > { %805 = vst.msk [vmem:[#allocation2 + $0xc0] sm:$0xff] %vm792_vm4, %v2868_v37  ;;  %806 = vst.msk [vmem:[#allocation2 + $0xd0] sm:$0xff] %vm792_vm4, %v2869_v2  ;;  %v2884_v62 = vunpack.i.h.bf16 %v2882_v32  ;;  %v2883_v17 = vunpack.i.l.bf16 %v2882_v32 }
 0x111   : > { %v2877_v49 = vpop.permute.xlu0 %2876  ;;  %v1596_v46 = vld [vmem:[#allocation2 + $0x120] sm:$0xff]  ;;  %v1598_v11 = vld [vmem:[#allocation2 + $0x130] sm:$0xff] }
 0x112   : > { %944 = vst.msk [vmem:[#allocation2 + $0x140] sm:$0xff] %vm923_vm5, %v2883_v17  ;;  %945 = vst.msk [vmem:[#allocation2 + $0x150] sm:$0xff] %vm923_vm5, %v2884_v62  ;;  %v2879_v26 = vunpack.i.h.bf16 %v2877_v49  ;;  %v2878_v35 = vunpack.i.l.bf16 %v2877_v49  ;;  %v1642_v40 = vpack.c.bf16 %v1598_v11, %v1596_v46 }
 0x113   : > { %v2892_v20 = vpop.permute.xlu1 %2891  ;;  %v1580_v43 = vld [vmem:[#allocation2 + $0xa0] sm:$0xff]  ;;  %v1582_v58 = vld [vmem:[#allocation2 + $0xb0] sm:$0xff] }
 0x114   : > { %936 = vst.msk [vmem:[#allocation2 + $0xc0] sm:$0xff] %vm923_vm5, %v2878_v35  ;;  %937 = vst.msk [vmem:[#allocation2 + $0xd0] sm:$0xff] %vm923_vm5, %v2879_v26  ;;  %v2894_v1 = vunpack.i.h.bf16 %v2892_v20  ;;  %v2893_v56 = vunpack.i.l.bf16 %v2892_v20  ;;  %v1634_v38 = vpack.c.bf16 %v1582_v58, %v1580_v43  ;;  %1881 = vmatmul.mubr.bf16.gmra.mrb[4].mxu1 %v1642_v40 }
 0x115   : > { %v2887_v10 = vpop.permute.xlu0 %2886  ;;  %2403 = vmatprep.mubr.msk.bf16.mxu1 %vm324_vm1, %v1645_v39 }
 0x116   : > { %1079 = vst.msk [vmem:[#allocation2 + $0x140] sm:$0xff] %vm1058_vm6, %v2893_v56  ;;  %1080 = vst.msk [vmem:[#allocation2 + $0x150] sm:$0xff] %vm1058_vm6, %v2894_v1  ;;  %v2889_v47 = vunpack.i.h.bf16 %v2887_v10  ;;  %v2888_v15 = vunpack.i.l.bf16 %v2887_v10  ;;  %1849 = vmatmul.mubr.bf16.gmra.mrb[20].mxu0 %v1634_v38 }
 0x117   : > { %v2902_v24 = vpop.permute.xlu1 %2901  ;;  %2399 = vmatprep.mubr.msk.bf16.mxu0 %vm324_vm1, %v1637_v8 }
 0x118   : > { %1071 = vst.msk [vmem:[#allocation2 + $0xc0] sm:$0xff] %vm1058_vm6, %v2888_v15  ;;  %1072 = vst.msk [vmem:[#allocation2 + $0xd0] sm:$0xff] %vm1058_vm6, %v2889_v47  ;;  %v2904_v36 = vunpack.i.h.bf16 %v2902_v24  ;;  %v2903_v59 = vunpack.i.l.bf16 %v2902_v24 }
 0x119   : > { %v2897_v6 = vpop.permute.xlu0 %2896 }
 0x11a   : > { %1213 = vst.msk [vmem:[#allocation2 + $0x140] sm:$0xff] %vm1192_vm7, %v2903_v59  ;;  %1214 = vst.msk [vmem:[#allocation2 + $0x150] sm:$0xff] %vm1192_vm7, %v2904_v36  ;;  %v2899_v7 = vunpack.i.h.bf16 %v2897_v6  ;;  %v2898_v3 = vunpack.i.l.bf16 %v2897_v6 }
 0x11b   : > { %v2912_v51 = vpop.permute.xlu1 %2911 }
 0x11c   : > { %1205 = vst.msk [vmem:[#allocation2 + $0xc0] sm:$0xff] %vm1192_vm7, %v2898_v3  ;;  %1206 = vst.msk [vmem:[#allocation2 + $0xd0] sm:$0xff] %vm1192_vm7, %v2899_v7  ;;  %v2914_v55 = vunpack.i.h.bf16 %v2912_v51  ;;  %v2913_v29 = vunpack.i.l.bf16 %v2912_v51 }
 0x11d   : > { %v2907_v54 = vpop.permute.xlu0 %2906 }
 0x11e   : > { %1344 = vst.msk [vmem:[#allocation2 + $0x140] sm:$0xff] %vm1323_vm8, %v2913_v29  ;;  %1345 = vst.msk [vmem:[#allocation2 + $0x150] sm:$0xff] %vm1323_vm8, %v2914_v55  ;;  %v2909_v45 = vunpack.i.h.bf16 %v2907_v54  ;;  %v2908_v44 = vunpack.i.l.bf16 %v2907_v54  ;;  %v1609_v29 = vld [vmem:[#allocation2 + $0x188] sm:$0xff]  ;;  %v1611_v54 = vld [vmem:[#allocation2 + $0x198] sm:$0xff] }
 0x11f   : > { %v2922_v52 = vpop.permute.xlu1 %2921 }
 0x120   : > { %1336 = vst.msk [vmem:[#allocation2 + $0xc0] sm:$0xff] %vm1323_vm8, %v2908_v44  ;;  %1337 = vst.msk [vmem:[#allocation2 + $0xd0] sm:$0xff] %vm1323_vm8, %v2909_v45  ;;  %v2924_v33 = vunpack.i.h.bf16 %v2922_v52  ;;  %v2923_v9 = vunpack.i.l.bf16 %v2922_v52 }
 0x121   : > { %v2917_v41 = vpop.permute.xlu0 %2916 }
 0x122   : > { %1479 = vst.msk [vmem:[#allocation2 + $0x140] sm:$0xff] %vm1458_vm9, %v2923_v9  ;;  %1480 = vst.msk [vmem:[#allocation2 + $0x150] sm:$0xff] %vm1458_vm9, %v2924_v33  ;;  %v2919_v34 = vunpack.i.h.bf16 %v2917_v41  ;;  %v2918_v42 = vunpack.i.l.bf16 %v2917_v41 }
 0x123   : > { %v2932_v5 = vpop.permute.xlu1 %2931 }
 0x124   : > { %1471 = vst.msk [vmem:[#allocation2 + $0xc0] sm:$0xff] %vm1458_vm9, %v2918_v42  ;;  %1472 = vst.msk [vmem:[#allocation2 + $0xd0] sm:$0xff] %vm1458_vm9, %v2919_v34  ;;  %v2934_v21 = vunpack.i.h.bf16 %v2932_v5  ;;  %v2933_v19 = vunpack.i.l.bf16 %v2932_v5  ;;  %v1649_v34 = vpack.c.bf16 %v1611_v54, %v1609_v29 }
 0x125   : > { %v2927_v60 = vpop.permute.xlu0 %2926 }
 0x126   : > { %816 = vst.msk [vmem:[#allocation2 + $0x170] sm:$0xff] %vm792_vm4, %v2934_v21  ;;  %815 = vst.msk [vmem:[#allocation2 + $0x160] sm:$0xff] %vm792_vm4, %v2933_v19  ;;  %v2929_v48 = vunpack.i.h.bf16 %v2927_v60  ;;  %v2928_v25 = vunpack.i.l.bf16 %v2927_v60 }
 0x127   : > { %v2942_v28 = vpop.permute.xlu1 %2941 }
 0x128   : > { %808 = vst.msk [vmem:[#allocation2 + $0xf0] sm:$0xff] %vm792_vm4, %v2929_v48  ;;  %807 = vst.msk [vmem:[#allocation2 + $0xe0] sm:$0xff] %vm792_vm4, %v2928_v25  ;;  %v2944_v31 = vunpack.i.h.bf16 %v2942_v28  ;;  %v2943_v14 = vunpack.i.l.bf16 %v2942_v28 }
 0x129   : > { %v2937_v12 = vpop.permute.xlu0 %2936  ;;  %v1600_v18 = vld [vmem:[#allocation2 + $0x140] sm:$0xff]  ;;  %v1602_v30 = vld [vmem:[#allocation2 + $0x150] sm:$0xff] }
 0x12a   : > { %946 = vst.msk [vmem:[#allocation2 + $0x160] sm:$0xff] %vm923_vm5, %v2943_v14  ;;  %947 = vst.msk [vmem:[#allocation2 + $0x170] sm:$0xff] %vm923_vm5, %v2944_v31  ;;  %v2939_v16 = vunpack.i.h.bf16 %v2937_v12  ;;  %v2938_v0 = vunpack.i.l.bf16 %v2937_v12  ;;  %v1644_v4 = vpack.c.bf16 %v1602_v30, %v1600_v18 }
 0x12b   : > { %v2952_v2 = vpop.permute.xlu1 %2951  ;;  %v1584_v37 = vld [vmem:[#allocation2 + $0xc0] sm:$0xff]  ;;  %v1586_v61 = vld [vmem:[#allocation2 + $0xd0] sm:$0xff] }
 0x12c   : > { %938 = vst.msk [vmem:[#allocation2 + $0xe0] sm:$0xff] %vm923_vm5, %v2938_v0  ;;  %939 = vst.msk [vmem:[#allocation2 + $0xf0] sm:$0xff] %vm923_vm5, %v2939_v16  ;;  %v2954_v32 = vunpack.i.h.bf16 %v2952_v2  ;;  %v2953_v62 = vunpack.i.l.bf16 %v2952_v2  ;;  %v1636_v17 = vpack.c.bf16 %v1586_v61, %v1584_v37  ;;  %1889 = vmatmul.mubr.bf16.gmra.mrb[8].mxu1 %v1644_v4  ;;  %v1613_v37 = vld [vmem:[#allocation2 + $0x1a8] sm:$0xff]  ;;  %v1615_v61 = vld [vmem:[#allocation2 + $0x1b8] sm:$0xff] }
 0x12d   : > { %v2947_v22 = vpop.permute.xlu0 %2946  ;;  %2404 = vmatprep.mubr.msk.bf16.mxu1 %vm324_vm1, %v1647_v13 }
 0x12e   : > { %1081 = vst.msk [vmem:[#allocation2 + $0x160] sm:$0xff] %vm1058_vm6, %v2953_v62  ;;  %1082 = vst.msk [vmem:[#allocation2 + $0x170] sm:$0xff] %vm1058_vm6, %v2954_v32  ;;  %v2949_v57 = vunpack.i.h.bf16 %v2947_v22  ;;  %v2948_v49 = vunpack.i.l.bf16 %v2947_v22  ;;  %1857 = vmatmul.mubr.bf16.gmra.mrb[24].mxu0 %v1636_v17 }
 0x12f   : > { %v2962_v46 = vpop.permute.xlu1 %2961  ;;  %2400 = vmatprep.mubr.msk.bf16.mxu0 %vm324_vm1, %v1639_v27 }
 0x130   : > { %1073 = vst.msk [vmem:[#allocation2 + $0xe0] sm:$0xff] %vm1058_vm6, %v2948_v49  ;;  %1074 = vst.msk [vmem:[#allocation2 + $0xf0] sm:$0xff] %vm1058_vm6, %v2949_v57  ;;  %v2964_v11 = vunpack.i.h.bf16 %v2962_v46  ;;  %v2963_v39 = vunpack.i.l.bf16 %v2962_v46  ;;  %v1651_v57 = vpack.c.bf16 %v1615_v61, %v1613_v37 }
 0x131   : > { %v2957_v26 = vpop.permute.xlu0 %2956 }
 0x132   : > { %1215 = vst.msk [vmem:[#allocation2 + $0x160] sm:$0xff] %vm1192_vm7, %v2963_v39  ;;  %1216 = vst.msk [vmem:[#allocation2 + $0x170] sm:$0xff] %vm1192_vm7, %v2964_v11  ;;  %v2959_v35 = vunpack.i.h.bf16 %v2957_v26  ;;  %v2958_v40 = vunpack.i.l.bf16 %v2957_v26 }
 0x133   : > { %v2972_v20 = vpop.permute.xlu1 %2971 }
 0x134   : > { %1207 = vst.msk [vmem:[#allocation2 + $0xe0] sm:$0xff] %vm1192_vm7, %v2958_v40  ;;  %1208 = vst.msk [vmem:[#allocation2 + $0xf0] sm:$0xff] %vm1192_vm7, %v2959_v35  ;;  %v2974_v43 = vunpack.i.h.bf16 %v2972_v20  ;;  %v2973_v58 = vunpack.i.l.bf16 %v2972_v20 }
 0x135   : > { %v2967_v8 = vpop.permute.xlu0 %2966 }
 0x136   : > { %1346 = vst.msk [vmem:[#allocation2 + $0x160] sm:$0xff] %vm1323_vm8, %v2973_v58  ;;  %1347 = vst.msk [vmem:[#allocation2 + $0x170] sm:$0xff] %vm1323_vm8, %v2974_v43  ;;  %v2969_v1 = vunpack.i.h.bf16 %v2967_v8  ;;  %v2968_v56 = vunpack.i.l.bf16 %v2967_v8 }
 0x137   : > { %v2982_v38 = vpop.permute.xlu1 %2981 }
 0x138   : > { %1338 = vst.msk [vmem:[#allocation2 + $0xe0] sm:$0xff] %vm1323_vm8, %v2968_v56  ;;  %1339 = vst.msk [vmem:[#allocation2 + $0xf0] sm:$0xff] %vm1323_vm8, %v2969_v1  ;;  %v2984_v10 = vunpack.i.h.bf16 %v2982_v38  ;;  %v2983_v47 = vunpack.i.l.bf16 %v2982_v38 }
 0x139   : > { %v2977_v15 = vpop.permute.xlu0 %2976 }
 0x13a   : > { %1481 = vst.msk [vmem:[#allocation2 + $0x160] sm:$0xff] %vm1458_vm9, %v2983_v47  ;;  %1482 = vst.msk [vmem:[#allocation2 + $0x170] sm:$0xff] %vm1458_vm9, %v2984_v10  ;;  %v2979_v24 = vunpack.i.h.bf16 %v2977_v15  ;;  %v2978_v36 = vunpack.i.l.bf16 %v2977_v15  ;;  %v1617_v15 = vld [vmem:[#allocation2 + $0x1c8] sm:$0xff] }
 0x13b   : > { %v2992_v59 = vpop.permute.xlu1 %2991 }
 0x13c   : > { %1473 = vst.msk [vmem:[#allocation2 + $0xe0] sm:$0xff] %vm1458_vm9, %v2978_v36  ;;  %1474 = vst.msk [vmem:[#allocation2 + $0xf0] sm:$0xff] %vm1458_vm9, %v2979_v24  ;;  %v2994_v7 = vunpack.i.h.bf16 %v2992_v59  ;;  %v2993_v3 = vunpack.i.l.bf16 %v2992_v59  ;;  %v1619_v24 = vld [vmem:[#allocation2 + $0x1d8] sm:$0xff] }
 0x13d   : > { %v2987_v6 = vpop.permute.xlu0 %2986 }
 0x13e   : > { %v2989_v51 = vunpack.i.h.bf16 %v2987_v6  ;;  %v2988_v55 = vunpack.i.l.bf16 %v2987_v6 }
 0x13f   : > { %v3002_v45 = vpop.permute.xlu1 %3001 }
 0x140   : > { %817 = vst.msk [vmem:[#allocation2 + $0x180] sm:$0xff] %vm792_vm4, %v2988_v55  ;;  %818 = vst.msk [vmem:[#allocation2 + $0x190] sm:$0xff] %vm792_vm4, %v2989_v51  ;;  %v3004_v52 = vunpack.i.h.bf16 %v3002_v45  ;;  %v3003_v33 = vunpack.i.l.bf16 %v3002_v45  ;;  %v1653_v51 = vpack.c.bf16 %v1619_v24, %v1617_v15 }
 0x141   : > { %948 = vst.msk [vmem:[#allocation2 + $0x180] sm:$0xff] %vm923_vm5, %v2993_v3  ;;  %949 = vst.msk [vmem:[#allocation2 + $0x190] sm:$0xff] %vm923_vm5, %v2994_v7  ;;  %v2997_v44 = vpop.permute.xlu0 %2996  ;;  %v1604_v9 = vld [vmem:[#allocation2 + $0x160] sm:$0xff]  ;;  %v1606_v41 = vld [vmem:[#allocation2 + $0x170] sm:$0xff] }
 0x142   : > { %v2999_v42 = vunpack.i.h.bf16 %v2997_v44  ;;  %v2998_v5 = vunpack.i.l.bf16 %v2997_v44  ;;  %v1646_v21 = vpack.c.bf16 %v1606_v41, %v1604_v9 }
 0x143   : > { %v3012_v19 = vpop.permute.xlu1 %3011  ;;  %v1588_v60 = vld [vmem:[#allocation2 + $0xe0] sm:$0xff]  ;;  %v1590_v48 = vld [vmem:[#allocation2 + $0xf0] sm:$0xff] }
 0x144   : > { %1083 = vst.msk [vmem:[#allocation2 + $0x180] sm:$0xff] %vm1058_vm6, %v2998_v5  ;;  %1084 = vst.msk [vmem:[#allocation2 + $0x190] sm:$0xff] %vm1058_vm6, %v2999_v42  ;;  %v1638_v25 = vpack.c.bf16 %v1590_v48, %v1588_v60  ;;  %1897 = vmatmul.mubr.bf16.gmra.mrb[12].mxu1 %v1646_v21  ;;  %v3014_v53 = vunpack.i.h.bf16 %v3012_v19  ;;  %v3013_v28 = vunpack.i.l.bf16 %v3012_v19 }
 0x145   : > { %1217 = vst.msk [vmem:[#allocation2 + $0x180] sm:$0xff] %vm1192_vm7, %v3003_v33  ;;  %1218 = vst.msk [vmem:[#allocation2 + $0x190] sm:$0xff] %vm1192_vm7, %v3004_v52  ;;  %v3007_v23 = vpop.permute.xlu0 %3006  ;;  %2405 = vmatprep.mubr.msk.bf16.mxu1 %vm324_vm1, %v1649_v34 }
 0x146   : > { %v3009_v31 = vunpack.i.h.bf16 %v3007_v23  ;;  %v3008_v14 = vunpack.i.l.bf16 %v3007_v23  ;;  %1865 = vmatmul.mubr.bf16.gmra.mrb[28].mxu0 %v1638_v25 }
 0x147   : > { %v3022_v63 = vpop.permute.xlu1 %3021 }
 0x148   : > { %1348 = vst.msk [vmem:[#allocation2 + $0x180] sm:$0xff] %vm1323_vm8, %v3008_v14  ;;  %1349 = vst.msk [vmem:[#allocation2 + $0x190] sm:$0xff] %vm1323_vm8, %v3009_v31  ;;  %v3024_v12 = vunpack.i.h.bf16 %v3022_v63  ;;  %v3023_v18 = vunpack.i.l.bf16 %v3022_v63  ;;  %v1623_v31 = vld [vmem:[#allocation2 + $0x1f8] sm:$0xff] }
 0x149   : > { %1483 = vst.msk [vmem:[#allocation2 + $0x180] sm:$0xff] %vm1458_vm9, %v3013_v28  ;;  %1484 = vst.msk [vmem:[#allocation2 + $0x190] sm:$0xff] %vm1458_vm9, %v3014_v53  ;;  %v3017_v50 = vpop.permute.xlu0 %3016  ;;  %v1621_v28 = vld [vmem:[#allocation2 + $0x1e8] sm:$0xff] }
 0x14a   : > { %v3019_v30 = vunpack.i.h.bf16 %v3017_v50  ;;  %v3018_v13 = vunpack.i.l.bf16 %v3017_v50 }
 0x14b   : > { %v3032_v16 = vpop.permute.xlu1 %3031 }
 0x14c   : > { %820 = vst.msk [vmem:[#allocation2 + $0x1b0] sm:$0xff] %vm792_vm4, %v3019_v30  ;;  %819 = vst.msk [vmem:[#allocation2 + $0x1a0] sm:$0xff] %vm792_vm4, %v3018_v13  ;;  %v3034_v4 = vunpack.i.h.bf16 %v3032_v16  ;;  %v3033_v2 = vunpack.i.l.bf16 %v3032_v16 }
 0x14d   : > { %950 = vst.msk [vmem:[#allocation2 + $0x1a0] sm:$0xff] %vm923_vm5, %v3023_v18  ;;  %951 = vst.msk [vmem:[#allocation2 + $0x1b0] sm:$0xff] %vm923_vm5, %v3024_v12  ;;  %v3027_v0 = vpop.permute.xlu0 %3026 }
 0x14e   : > { %v3029_v27 = vunpack.i.h.bf16 %v3027_v0  ;;  %v3028_v32 = vunpack.i.l.bf16 %v3027_v0  ;;  %v1655_v0 = vpack.c.bf16 %v1623_v31, %v1621_v28 }
 0x14f   : > { %v3042_v62 = vpop.permute.xlu1 %3041 }
 0x150   : > { %1085 = vst.msk [vmem:[#allocation2 + $0x1a0] sm:$0xff] %vm1058_vm6, %v3028_v32  ;;  %1086 = vst.msk [vmem:[#allocation2 + $0x1b0] sm:$0xff] %vm1058_vm6, %v3029_v27  ;;  %v1608_v17 = vld [vmem:[#allocation2 + $0x180] sm:$0xff]  ;;  %v1610_v22 = vld [vmem:[#allocation2 + $0x190] sm:$0xff]  ;;  %v3044_v46 = vunpack.i.h.bf16 %v3042_v62  ;;  %v3043_v11 = vunpack.i.l.bf16 %v3042_v62 }
 0x151   : > { %1219 = vst.msk [vmem:[#allocation2 + $0x1a0] sm:$0xff] %vm1192_vm7, %v3033_v2  ;;  %1220 = vst.msk [vmem:[#allocation2 + $0x1b0] sm:$0xff] %vm1192_vm7, %v3034_v4  ;;  %v3037_v49 = vpop.permute.xlu0 %3036  ;;  %v1648_v39 = vpack.c.bf16 %v1610_v22, %v1608_v17 }
 0x152   : > { %v3039_v26 = vunpack.i.h.bf16 %v3037_v49  ;;  %v3038_v35 = vunpack.i.l.bf16 %v3037_v49 }
 0x153   : > { %1905 = vmatmul.mubr.bf16.gmra.mrb[16].mxu1 %v1648_v39  ;;  %v3052_v40 = vpop.permute.xlu1 %3051 }
 0x154   : > { %1350 = vst.msk [vmem:[#allocation2 + $0x1a0] sm:$0xff] %vm1323_vm8, %v3038_v35  ;;  %1351 = vst.msk [vmem:[#allocation2 + $0x1b0] sm:$0xff] %vm1323_vm8, %v3039_v26  ;;  %2406 = vmatprep.mubr.msk.bf16.mxu1 %vm324_vm1, %v1651_v57  ;;  %v3054_v43 = vunpack.i.h.bf16 %v3052_v40  ;;  %v3053_v58 = vunpack.i.l.bf16 %v3052_v40 }
 0x155   : > { %1485 = vst.msk [vmem:[#allocation2 + $0x1a0] sm:$0xff] %vm1458_vm9, %v3043_v11  ;;  %1486 = vst.msk [vmem:[#allocation2 + $0x1b0] sm:$0xff] %vm1458_vm9, %v3044_v46  ;;  %v3047_v20 = vpop.permute.xlu0 %3046 }
 0x156   : > { %v3049_v8 = vunpack.i.h.bf16 %v3047_v20  ;;  %v3048_v1 = vunpack.i.l.bf16 %v3047_v20 }
 0x157   : > { %v3062_v56 = vpop.permute.xlu1 %3061 }
 0x158   : > { %612 = vst.msk [vmem:[#allocation2 + $0x1d0] sm:$0xff] %vm582_vm3, %v3049_v8  ;;  %611 = vst.msk [vmem:[#allocation2 + $0x1c0] sm:$0xff] %vm582_vm3, %v3048_v1  ;;  %v3064_v10 = vunpack.i.h.bf16 %v3062_v56  ;;  %v3063_v47 = vunpack.i.l.bf16 %v3062_v56 }
 0x159   : > { %821 = vst.msk [vmem:[#allocation2 + $0x1c0] sm:$0xff] %vm792_vm4, %v3053_v58  ;;  %822 = vst.msk [vmem:[#allocation2 + $0x1d0] sm:$0xff] %vm792_vm4, %v3054_v43  ;;  %v3057_v38 = vpop.permute.xlu0 %3056 }
 0x15a   : > { %v3059_v36 = vunpack.i.h.bf16 %v3057_v38  ;;  %v3058_v59 = vunpack.i.l.bf16 %v3057_v38 }
 0x15b   : > { %v3072_v6 = vpop.permute.xlu1 %3071 }
 0x15c   : > { %952 = vst.msk [vmem:[#allocation2 + $0x1c0] sm:$0xff] %vm923_vm5, %v3058_v59  ;;  %953 = vst.msk [vmem:[#allocation2 + $0x1d0] sm:$0xff] %vm923_vm5, %v3059_v36  ;;  %v1612_v7 = vld [vmem:[#allocation2 + $0x1a0] sm:$0xff]  ;;  %v1614_v3 = vld [vmem:[#allocation2 + $0x1b0] sm:$0xff]  ;;  %v3074_v29 = vunpack.i.h.bf16 %v3072_v6  ;;  %v3073_v54 = vunpack.i.l.bf16 %v3072_v6 }
 0x15d   : > { %1087 = vst.msk [vmem:[#allocation2 + $0x1c0] sm:$0xff] %vm1058_vm6, %v3063_v47  ;;  %1088 = vst.msk [vmem:[#allocation2 + $0x1d0] sm:$0xff] %vm1058_vm6, %v3064_v10  ;;  %v3067_v55 = vpop.permute.xlu0 %3066  ;;  %v1650_v45 = vpack.c.bf16 %v1614_v3, %v1612_v7 }
 0x15e   : > { %v3069_v44 = vunpack.i.h.bf16 %v3067_v55  ;;  %v3068_v52 = vunpack.i.l.bf16 %v3067_v55 }
 0x15f   : > { %1913 = vmatmul.mubr.bf16.gmra.mrb[20].mxu1 %v1650_v45  ;;  %v3082_v33 = vpop.permute.xlu1 %3081 }
 0x160   : > { %1221 = vst.msk [vmem:[#allocation2 + $0x1c0] sm:$0xff] %vm1192_vm7, %v3068_v52  ;;  %1222 = vst.msk [vmem:[#allocation2 + $0x1d0] sm:$0xff] %vm1192_vm7, %v3069_v44  ;;  %v3084_v9 = vunpack.i.h.bf16 %v3082_v33  ;;  %v3083_v41 = vunpack.i.l.bf16 %v3082_v33  ;;  %2407 = vmatprep.mubr.msk.bf16.mxu1 %vm324_vm1, %v1653_v51 }
 0x161   : > { %1352 = vst.msk [vmem:[#allocation2 + $0x1c0] sm:$0xff] %vm1323_vm8, %v3073_v54  ;;  %1353 = vst.msk [vmem:[#allocation2 + $0x1d0] sm:$0xff] %vm1323_vm8, %v3074_v29  ;;  %v3077_v34 = vpop.permute.xlu0 %3076 }
 0x162   : > { %v3079_v42 = vunpack.i.h.bf16 %v3077_v34  ;;  %v3078_v5 = vunpack.i.l.bf16 %v3077_v34  ;;  %614 = vst.msk [vmem:[#allocation2 + $0x1f0] sm:$0xff] %vm582_vm3, %v3084_v9  ;;  %613 = vst.msk [vmem:[#allocation2 + $0x1e0] sm:$0xff] %vm582_vm3, %v3083_v41 }
 0x163   : > { %v3092_v21 = vpop.permute.xlu1 %3091 }
 0x164   : > { %1487 = vst.msk [vmem:[#allocation2 + $0x1c0] sm:$0xff] %vm1458_vm9, %v3078_v5  ;;  %1488 = vst.msk [vmem:[#allocation2 + $0x1d0] sm:$0xff] %vm1458_vm9, %v3079_v42  ;;  %v3094_v60 = vunpack.i.h.bf16 %v3092_v21  ;;  %v3093_v48 = vunpack.i.l.bf16 %v3092_v21 }
 0x165   : > { %v3087_v19 = vpop.permute.xlu0 %3086 }
 0x166   : > { %v3089_v25 = vunpack.i.h.bf16 %v3087_v19  ;;  %v3088_v23 = vunpack.i.l.bf16 %v3087_v19 }
 0x167   : > { %v3102_v53 = vpop.permute.xlu1 %3101 }
 0x168   : > { %824 = vst.msk [vmem:[#allocation2 + $0x1f0] sm:$0xff] %vm792_vm4, %v3089_v25  ;;  %823 = vst.msk [vmem:[#allocation2 + $0x1e0] sm:$0xff] %vm792_vm4, %v3088_v23  ;;  %v3104_v63 = vunpack.i.h.bf16 %v3102_v53  ;;  %v3103_v50 = vunpack.i.l.bf16 %v3102_v53 }
 0x169   : > { %954 = vst.msk [vmem:[#allocation2 + $0x1e0] sm:$0xff] %vm923_vm5, %v3093_v48  ;;  %955 = vst.msk [vmem:[#allocation2 + $0x1f0] sm:$0xff] %vm923_vm5, %v3094_v60  ;;  %v3097_v14 = vpop.permute.xlu0 %3096 }
 0x16a   : > { %v3099_v12 = vunpack.i.h.bf16 %v3097_v14  ;;  %v3098_v18 = vunpack.i.l.bf16 %v3097_v14 }
 0x16b   : > { %v3112_v30 = vpop.permute.xlu1 %3111  ;;  %v1616_v13 = vld [vmem:[#allocation2 + $0x1c0] sm:$0xff]  ;;  %v1618_v16 = vld [vmem:[#allocation2 + $0x1d0] sm:$0xff] }
 0x16c   : > { %1089 = vst.msk [vmem:[#allocation2 + $0x1e0] sm:$0xff] %vm1058_vm6, %v3098_v18  ;;  %1090 = vst.msk [vmem:[#allocation2 + $0x1f0] sm:$0xff] %vm1058_vm6, %v3099_v12  ;;  %v1652_v4 = vpack.c.bf16 %v1618_v16, %v1616_v13  ;;  %v3114_v37 = vunpack.i.h.bf16 %v3112_v30  ;;  %v3113_v61 = vunpack.i.l.bf16 %v3112_v30 }
 0x16d   : > { %1223 = vst.msk [vmem:[#allocation2 + $0x1e0] sm:$0xff] %vm1192_vm7, %v3103_v50  ;;  %1224 = vst.msk [vmem:[#allocation2 + $0x1f0] sm:$0xff] %vm1192_vm7, %v3104_v63  ;;  %v3107_v2 = vpop.permute.xlu0 %3106 }
 0x16e   : > { %v3109_v27 = vunpack.i.h.bf16 %v3107_v2  ;;  %v3108_v32 = vunpack.i.l.bf16 %v3107_v2  ;;  %1921 = vmatmul.mubr.bf16.gmra.mrb[24].mxu1 %v1652_v4 }
 0x16f   : > { %2408 = vmatprep.mubr.msk.bf16.mxu1 %vm324_vm1, %v1655_v0 }
 0x170   : > { %1354 = vst.msk [vmem:[#allocation2 + $0x1e0] sm:$0xff] %vm1323_vm8, %v3108_v32  ;;  %1355 = vst.msk [vmem:[#allocation2 + $0x1f0] sm:$0xff] %vm1323_vm8, %v3109_v27 }
 0x171   : > { %1489 = vst.msk [vmem:[#allocation2 + $0x1e0] sm:$0xff] %vm1458_vm9, %v3113_v61  ;;  %1490 = vst.msk [vmem:[#allocation2 + $0x1f0] sm:$0xff] %vm1458_vm9, %v3114_v37 }
 0x178   : > { %v1620_v62 = vld [vmem:[#allocation2 + $0x1e0] sm:$0xff]  ;;  %v1622_v17 = vld [vmem:[#allocation2 + $0x1f0] sm:$0xff] }
 0x179   : > { %v1654_v22 = vpack.c.bf16 %v1622_v17, %v1620_v62 }
 0x17b   : > { %1929 = vmatmul.mubr.bf16.gmra.mrb[28].mxu1 %v1654_v22 }
 0x196   : > { %v1810_v57 = vpop.f32.mrb[0].mxu0 }
 0x197   : > { %v2444_v49 = vpack.c.bf16 %v1810_v57, %v1810_v57  ;;  %v2169_v46 = vmul.f32 %v1810_v57, %v1810_v57  ;;  %v1812_v11 = vpop.f32.mrb[1].mxu0  ;;  %v2098_v26 = vsel %vm324_vm1, %v1810_v57, 0.0 }
 0x198   : > { %v1813_v39 = vpop.f32.mrb[2].mxu0 }
 0x199   : > { %2066 = vst.msk [vmem:[%s4281_s23] sm:$0xf] %vm2065_vm10, %v2444_v49  ;;  %v2445_v35 = vpack.c.bf16 %v1813_v39, %v1813_v39  ;;  %v2099_v40 = vsel %vm324_vm1, %v1813_v39, 0.0  ;;  %v2170_v20 = vmul.f32 %v1813_v39, %v1813_v39  ;;  %v1815_v43 = vpop.f32.mrb[3].mxu0  ;;  %v2201_v8 = vsel %vm324_vm1, %v2169_v46, 0.0 }
 0x19a   : > { %v2100_v58 = vadd.f32 %v2099_v40, %v2098_v26 }
 0x19b   : > { %2067 = vst.msk [vmem:[%s4281_s23 + $0x4] sm:$0xf] %vm2065_vm10, %v2445_v35  ;;  %v2202_v1 = vsel %vm324_vm1, %v2170_v20, 0.0 }
 0x19c   : > { %v2203_v56 = vadd.f32 %v2202_v1, %v2201_v8 }
 0x1a2   : > { %v1818_v38 = vpop.f32.mrb[4].mxu0 }
 0x1a3   : > { %v2446_v10 = vpack.c.bf16 %v1818_v38, %v1818_v38  ;;  %v2101_v47 = vsel %vm324_vm1, %v1818_v38, 0.0  ;;  %v2171_v15 = vmul.f32 %v1818_v38, %v1818_v38  ;;  %v1820_v24 = vpop.f32.mrb[5].mxu0 }
 0x1a4   : > { %v2102_v36 = vadd.f32 %v2101_v47, %v2100_v58  ;;  %v1821_v59 = vpop.f32.mrb[6].mxu0 }
 0x1a5   : > { %2068 = vst.msk [vmem:[%s4281_s23 + $0x8] sm:$0xf] %vm2065_vm10, %v2446_v10  ;;  %v2204_v6 = vsel %vm324_vm1, %v2171_v15, 0.0  ;;  %v2447_v7 = vpack.c.bf16 %v1821_v59, %v1821_v59  ;;  %v2103_v3 = vsel %vm324_vm1, %v1821_v59, 0.0  ;;  %v2172_v51 = vmul.f32 %v1821_v59, %v1821_v59  ;;  %v1823_v55 = vpop.f32.mrb[7].mxu0 }
 0x1a6   : > { %v2205_v29 = vadd.f32 %v2204_v6, %v2203_v56  ;;  %v2104_v54 = vadd.f32 %v2103_v3, %v2102_v36 }
 0x1a7   : > { %2069 = vst.msk [vmem:[%s4281_s23 + $0xc] sm:$0xf] %vm2065_vm10, %v2447_v7  ;;  %v2206_v45 = vsel %vm324_vm1, %v2172_v51, 0.0 }
 0x1a8   : > { %v2207_v44 = vadd.f32 %v2206_v45, %v2205_v29 }
 0x1ae   : > { %v1826_v52 = vpop.f32.mrb[8].mxu0 }
 0x1af   : > { %v2448_v33 = vpack.c.bf16 %v1826_v52, %v1826_v52  ;;  %v2105_v9 = vsel %vm324_vm1, %v1826_v52, 0.0  ;;  %v2173_v41 = vmul.f32 %v1826_v52, %v1826_v52  ;;  %v1828_v34 = vpop.f32.mrb[9].mxu0 }
 0x1b0   : > { %v2106_v42 = vadd.f32 %v2105_v9, %v2104_v54  ;;  %v1829_v5 = vpop.f32.mrb[10].mxu0 }
 0x1b1   : > { %2070 = vst.msk [vmem:[%s4281_s23 + $0x10] sm:$0xf] %vm2065_vm10, %v2448_v33  ;;  %v2208_v21 = vsel %vm324_vm1, %v2173_v41, 0.0  ;;  %v2449_v19 = vpack.c.bf16 %v1829_v5, %v1829_v5  ;;  %v2107_v60 = vsel %vm324_vm1, %v1829_v5, 0.0  ;;  %v2174_v48 = vmul.f32 %v1829_v5, %v1829_v5  ;;  %v1831_v25 = vpop.f32.mrb[11].mxu0 }
 0x1b2   : > { %v2209_v23 = vadd.f32 %v2208_v21, %v2207_v44  ;;  %v2108_v53 = vadd.f32 %v2107_v60, %v2106_v42 }
 0x1b3   : > { %2071 = vst.msk [vmem:[%s4281_s23 + $0x14] sm:$0xf] %vm2065_vm10, %v2449_v19  ;;  %v2210_v28 = vsel %vm324_vm1, %v2174_v48, 0.0 }
 0x1b4   : > { %v2211_v31 = vadd.f32 %v2210_v28, %v2209_v23 }
 0x1ba   : > { %v1834_v14 = vpop.f32.mrb[12].mxu0 }
 0x1bb   : > { %v2450_v63 = vpack.c.bf16 %v1834_v14, %v1834_v14  ;;  %v2109_v50 = vsel %vm324_vm1, %v1834_v14, 0.0  ;;  %v2175_v12 = vmul.f32 %v1834_v14, %v1834_v14  ;;  %v1836_v18 = vpop.f32.mrb[13].mxu0 }
 0x1bc   : > { %v2110_v30 = vadd.f32 %v2109_v50, %v2108_v53  ;;  %v1837_v13 = vpop.f32.mrb[14].mxu0 }
 0x1bd   : > { %2072 = vst.msk [vmem:[%s4281_s23 + $0x18] sm:$0xf] %vm2065_vm10, %v2450_v63  ;;  %v2212_v16 = vsel %vm324_vm1, %v2175_v12, 0.0  ;;  %v2451_v0 = vpack.c.bf16 %v1837_v13, %v1837_v13  ;;  %v2111_v4 = vsel %vm324_vm1, %v1837_v13, 0.0  ;;  %v2176_v2 = vmul.f32 %v1837_v13, %v1837_v13  ;;  %v1839_v37 = vpop.f32.mrb[15].mxu0 }
 0x1be   : > { %v2213_v61 = vadd.f32 %v2212_v16, %v2211_v31  ;;  %v2112_v27 = vadd.f32 %v2111_v4, %v2110_v30 }
 0x1bf   : > { %2073 = vst.msk [vmem:[%s4281_s23 + $0x1c] sm:$0xf] %vm2065_vm10, %v2451_v0  ;;  %v2214_v32 = vsel %vm324_vm1, %v2176_v2, 0.0 }
 0x1c0   : > { %v2215_v62 = vadd.f32 %v2214_v32, %v2213_v61 }
 0x1cf   : > { %v4315_v17 = vpop.f32.mrb[0].mxu1 }
 0x1d0   : > { %v2460_v22 = vpack.c.bf16 %v4315_v17, %v4315_v17  ;;  %v1876_v57 = vpop.f32.mrb[1].mxu1 }
 0x1d1   : > { %v1842_v49 = vpop.f32.mrb[16].mxu0  ;;  %v4319_v46 = vpop.f32.mrb[2].mxu1 }
 0x1d2   : > { %v2452_v11 = vpack.c.bf16 %v1842_v49, %v1842_v49  ;;  %v2113_v39 = vsel %vm324_vm1, %v1842_v49, 0.0  ;;  %v2177_v26 = vmul.f32 %v1842_v49, %v1842_v49  ;;  %2082 = vst.msk [vmem:[%s4281_s23 + $0x40] sm:$0xf] %vm2065_vm10, %v2460_v22  ;;  %v1844_v35 = vpop.f32.mrb[17].mxu0  ;;  %v1879_v40 = vpop.f32.mrb[3].mxu1  ;;  %v2461_v58 = vpack.c.bf16 %v4319_v46, %v4319_v46 }
 0x1d3   : > { %v2114_v20 = vadd.f32 %v2113_v39, %v2112_v27  ;;  %v1845_v43 = vpop.f32.mrb[18].mxu0 }
 0x1d4   : > { %2074 = vst.msk [vmem:[%s4281_s23 + $0x20] sm:$0xf] %vm2065_vm10, %v2452_v11  ;;  %v2216_v8 = vsel %vm324_vm1, %v2177_v26, 0.0  ;;  %v2453_v1 = vpack.c.bf16 %v1845_v43, %v1845_v43  ;;  %v2115_v56 = vsel %vm324_vm1, %v1845_v43, 0.0  ;;  %v2178_v38 = vmul.f32 %v1845_v43, %v1845_v43  ;;  %v1847_v10 = vpop.f32.mrb[19].mxu0 }
 0x1d5   : > { %v2217_v47 = vadd.f32 %v2216_v8, %v2215_v62  ;;  %v2116_v15 = vadd.f32 %v2115_v56, %v2114_v20  ;;  %2083 = vst.msk [vmem:[%s4281_s23 + $0x44] sm:$0xf] %vm2065_vm10, %v2461_v58 }
 0x1d6   : > { %2075 = vst.msk [vmem:[%s4281_s23 + $0x24] sm:$0xf] %vm2065_vm10, %v2453_v1  ;;  %v2218_v24 = vsel %vm324_vm1, %v2178_v38, 0.0  ;;  %v2185_v1 = vmul.f32 %v4315_v17, %v4315_v17 }
 0x1d7   : > { %v2219_v36 = vadd.f32 %v2218_v24, %v2217_v47 }
 0x1e7   : > { %v4335_v59 = vpop.f32.mrb[4].mxu1 }
 0x1e8   : > { %v2462_v6 = vpack.c.bf16 %v4335_v59, %v4335_v59  ;;  %v1884_v7 = vpop.f32.mrb[5].mxu1 }
 0x1e9   : > { %v1850_v3 = vpop.f32.mrb[20].mxu0  ;;  %v4339_v51 = vpop.f32.mrb[6].mxu1 }
 0x1ea   : > { %v2454_v55 = vpack.c.bf16 %v1850_v3, %v1850_v3  ;;  %v2117_v29 = vsel %vm324_vm1, %v1850_v3, 0.0  ;;  %v2179_v54 = vmul.f32 %v1850_v3, %v1850_v3  ;;  %2084 = vst.msk [vmem:[%s4281_s23 + $0x48] sm:$0xf] %vm2065_vm10, %v2462_v6  ;;  %v1852_v45 = vpop.f32.mrb[21].mxu0  ;;  %v1887_v44 = vpop.f32.mrb[7].mxu1  ;;  %v2463_v9 = vpack.c.bf16 %v4339_v51, %v4339_v51 }
 0x1eb   : > { %v2118_v52 = vadd.f32 %v2117_v29, %v2116_v15  ;;  %v1853_v33 = vpop.f32.mrb[22].mxu0  ;;  %v2186_v29 = vmul.f32 %v4319_v46, %v4319_v46 }
 0x1ec   : > { %2076 = vst.msk [vmem:[%s4281_s23 + $0x28] sm:$0xf] %vm2065_vm10, %v2454_v55  ;;  %v2220_v41 = vsel %vm324_vm1, %v2179_v54, 0.0  ;;  %v2455_v34 = vpack.c.bf16 %v1853_v33, %v1853_v33  ;;  %v2119_v42 = vsel %vm324_vm1, %v1853_v33, 0.0  ;;  %v2180_v5 = vmul.f32 %v1853_v33, %v1853_v33  ;;  %v1855_v21 = vpop.f32.mrb[23].mxu0 }
 0x1ed   : > { %v2221_v19 = vadd.f32 %v2220_v41, %v2219_v36  ;;  %v2120_v60 = vadd.f32 %v2119_v42, %v2118_v52  ;;  %2085 = vst.msk [vmem:[%s4281_s23 + $0x4c] sm:$0xf] %vm2065_vm10, %v2463_v9  ;;  %v2129_v55 = vsel %vm324_vm1, %v4315_v17, 0.0  ;;  %v2232_v52 = vsel %vm324_vm1, %v2185_v1, 0.0 }
 0x1ee   : > { %2077 = vst.msk [vmem:[%s4281_s23 + $0x2c] sm:$0xf] %vm2065_vm10, %v2455_v34  ;;  %v2222_v48 = vsel %vm324_vm1, %v2180_v5, 0.0  ;;  %v2131_v33 = vsel %vm324_vm1, %v4319_v46, 0.0  ;;  %v2187_v9 = vmul.f32 %v4335_v59, %v4335_v59  ;;  %v2234_v17 = vsel %vm324_vm1, %v2186_v29, 0.0 }
 0x1ef   : > { %v2223_v25 = vadd.f32 %v2222_v48, %v2221_v19  ;;  %v2133_v42 = vsel %vm324_vm1, %v4335_v59, 0.0  ;;  %v2188_v5 = vmul.f32 %v4339_v51, %v4339_v51  ;;  %v2135_v46 = vsel %vm324_vm1, %v4339_v51, 0.0 }
 0x1ff   : > { %v4355_v23 = vpop.f32.mrb[8].mxu1 }
 0x200   : > { %v2464_v53 = vpack.c.bf16 %v4355_v23, %v4355_v23  ;;  %v1892_v28 = vpop.f32.mrb[9].mxu1  ;;  %v2189_v48 = vmul.f32 %v4355_v23, %v4355_v23  ;;  %v2137_v59 = vsel %vm324_vm1, %v4355_v23, 0.0 }
 0x201   : > { %v1858_v31 = vpop.f32.mrb[24].mxu0  ;;  %v4359_v14 = vpop.f32.mrb[10].mxu1  ;;  %v2238_v28 = vsel %vm324_vm1, %v2188_v5, 0.0 }
 0x202   : > { %v2456_v63 = vpack.c.bf16 %v1858_v31, %v1858_v31  ;;  %v2121_v50 = vsel %vm324_vm1, %v1858_v31, 0.0  ;;  %v2181_v12 = vmul.f32 %v1858_v31, %v1858_v31  ;;  %2086 = vst.msk [vmem:[%s4281_s23 + $0x50] sm:$0xf] %vm2065_vm10, %v2464_v53  ;;  %v1860_v18 = vpop.f32.mrb[25].mxu0  ;;  %v1895_v30 = vpop.f32.mrb[11].mxu1  ;;  %v2465_v0 = vpack.c.bf16 %v4359_v14, %v4359_v14 }
 0x203   : > { %v2122_v13 = vadd.f32 %v2121_v50, %v2120_v60  ;;  %v1861_v16 = vpop.f32.mrb[26].mxu0  ;;  %v2236_v60 = vsel %vm324_vm1, %v2187_v9, 0.0  ;;  %v2190_v31 = vmul.f32 %v4359_v14, %v4359_v14  ;;  %v2240_v30 = vsel %vm324_vm1, %v2189_v48, 0.0 }
 0x204   : > { %2078 = vst.msk [vmem:[%s4281_s23 + $0x30] sm:$0xf] %vm2065_vm10, %v2456_v63  ;;  %v2224_v4 = vsel %vm324_vm1, %v2181_v12, 0.0  ;;  %v2457_v2 = vpack.c.bf16 %v1861_v16, %v1861_v16  ;;  %v2123_v37 = vsel %vm324_vm1, %v1861_v16, 0.0  ;;  %v2182_v61 = vmul.f32 %v1861_v16, %v1861_v16  ;;  %v1863_v27 = vpop.f32.mrb[27].mxu0 }
 0x205   : > { %v2225_v32 = vadd.f32 %v2224_v4, %v2223_v25  ;;  %v2124_v62 = vadd.f32 %v2123_v37, %v2122_v13  ;;  %2087 = vst.msk [vmem:[%s4281_s23 + $0x54] sm:$0xf] %vm2065_vm10, %v2465_v0  ;;  %v2139_v13 = vsel %vm324_vm1, %v4359_v14, 0.0 }
 0x206   : > { %2079 = vst.msk [vmem:[%s4281_s23 + $0x34] sm:$0xf] %vm2065_vm10, %v2457_v2  ;;  %v2226_v22 = vsel %vm324_vm1, %v2182_v61, 0.0  ;;  %v2242_v61 = vsel %vm324_vm1, %v2190_v31, 0.0 }
 0x207   : > { %v2227_v57 = vadd.f32 %v2226_v22, %v2225_v32 }
 0x217   : > { %v4375_v49 = vpop.f32.mrb[12].mxu1 }
 0x218   : > { %v2466_v11 = vpack.c.bf16 %v4375_v49, %v4375_v49  ;;  %v1900_v39 = vpop.f32.mrb[13].mxu1  ;;  %v2191_v16 = vmul.f32 %v4375_v49, %v4375_v49  ;;  %v2141_v27 = vsel %vm324_vm1, %v4375_v49, 0.0 }
 0x219   : > { %v1866_v26 = vpop.f32.mrb[28].mxu0  ;;  %v4379_v35 = vpop.f32.mrb[14].mxu1 }
 0x21a   : > { %v2458_v40 = vpack.c.bf16 %v1866_v26, %v1866_v26  ;;  %v2125_v20 = vsel %vm324_vm1, %v1866_v26, 0.0  ;;  %v2183_v43 = vmul.f32 %v1866_v26, %v1866_v26  ;;  %2088 = vst.msk [vmem:[%s4281_s23 + $0x58] sm:$0xf] %vm2065_vm10, %v2466_v11  ;;  %v1868_v58 = vpop.f32.mrb[29].mxu0  ;;  %v1903_v8 = vpop.f32.mrb[15].mxu1  ;;  %v2467_v10 = vpack.c.bf16 %v4379_v35, %v4379_v35 }
 0x21b   : > { %v2126_v56 = vadd.f32 %v2125_v20, %v2124_v62  ;;  %v1869_v38 = vpop.f32.mrb[30].mxu0  ;;  %v2192_v32 = vmul.f32 %v4379_v35, %v4379_v35  ;;  %v2244_v22 = vsel %vm324_vm1, %v2191_v16, 0.0 }
 0x21c   : > { %2080 = vst.msk [vmem:[%s4281_s23 + $0x38] sm:$0xf] %vm2065_vm10, %v2458_v40  ;;  %v2228_v47 = vsel %vm324_vm1, %v2183_v43, 0.0  ;;  %v2459_v15 = vpack.c.bf16 %v1869_v38, %v1869_v38  ;;  %v2127_v24 = vsel %vm324_vm1, %v1869_v38, 0.0  ;;  %v2184_v36 = vmul.f32 %v1869_v38, %v1869_v38  ;;  %v1871_v6 = vpop.f32.mrb[31].mxu0 }
 0x21d   : > { %v2229_v7 = vadd.f32 %v2228_v47, %v2227_v57  ;;  %v2128_v3 = vadd.f32 %v2127_v24, %v2126_v56  ;;  %2089 = vst.msk [vmem:[%s4281_s23 + $0x5c] sm:$0xf] %vm2065_vm10, %v2467_v10  ;;  %v2143_v57 = vsel %vm324_vm1, %v4379_v35, 0.0  ;;  %v2246_v40 = vsel %vm324_vm1, %v2192_v32, 0.0 }
 0x21e   : > { %2081 = vst.msk [vmem:[%s4281_s23 + $0x3c] sm:$0xf] %vm2065_vm10, %v2459_v15  ;;  %v2230_v54 = vsel %vm324_vm1, %v2184_v36, 0.0 }
 0x21f   : > { %v2130_v45 = vadd.f32 %v2129_v55, %v2128_v3  ;;  %v2231_v44 = vadd.f32 %v2230_v54, %v2229_v7 }
 0x221   : > { %v2132_v41 = vadd.f32 %v2131_v33, %v2130_v45  ;;  %v2233_v34 = vadd.f32 %v2232_v52, %v2231_v44 }
 0x223   : > { %v2134_v21 = vadd.f32 %v2133_v42, %v2132_v41  ;;  %v2235_v19 = vadd.f32 %v2234_v17, %v2233_v34 }
 0x225   : > { %v2237_v25 = vadd.f32 %v2236_v60, %v2235_v19  ;;  %v2136_v53 = vadd.f32 %v2135_v46, %v2134_v21 }
 0x226   : > { %v1906_v63 = vpop.f32.mrb[16].mxu1 }
 0x227   : > { %v2138_v50 = vadd.f32 %v2137_v59, %v2136_v53  ;;  %v2239_v12 = vadd.f32 %v2238_v28, %v2237_v25  ;;  %v2468_v18 = vpack.c.bf16 %v1906_v63, %v1906_v63  ;;  %v1908_v51 = vpop.f32.mrb[17].mxu1  ;;  %v2193_v11 = vmul.f32 %v1906_v63, %v1906_v63 }
 0x228   : > { %v1909_v0 = vpop.f32.mrb[18].mxu1  ;;  %v2145_v20 = vsel %vm324_vm1, %v1906_v63, 0.0 }
 0x229   : > { %v2140_v4 = vadd.f32 %v2139_v13, %v2138_v50  ;;  %v2241_v23 = vadd.f32 %v2240_v30, %v2239_v12  ;;  %2090 = vst.msk [vmem:[%s4281_s23 + $0x60] sm:$0xf] %vm2065_vm10, %v2468_v18  ;;  %v2469_v2 = vpack.c.bf16 %v1909_v0, %v1909_v0  ;;  %v1911_v37 = vpop.f32.mrb[19].mxu1  ;;  %v2194_v49 = vmul.f32 %v1909_v0, %v1909_v0 }
 0x22a   : > { %v2248_v8 = vsel %vm324_vm1, %v2193_v11, 0.0  ;;  %v2147_v1 = vsel %vm324_vm1, %v1909_v0, 0.0 }
 0x22b   : > { %v2142_v62 = vadd.f32 %v2141_v27, %v2140_v4  ;;  %v2243_v14 = vadd.f32 %v2242_v61, %v2241_v23  ;;  %2091 = vst.msk [vmem:[%s4281_s23 + $0x64] sm:$0xf] %vm2065_vm10, %v2469_v2  ;;  %v2250_v10 = vsel %vm324_vm1, %v2194_v49, 0.0 }
 0x22d   : > { %v2144_v39 = vadd.f32 %v2143_v57, %v2142_v62  ;;  %v2245_v26 = vadd.f32 %v2244_v22, %v2243_v14 }
 0x22f   : > { %v2247_v43 = vadd.f32 %v2246_v40, %v2245_v26  ;;  %v2146_v58 = vadd.f32 %v2145_v20, %v2144_v39 }
 0x231   : > { %v2249_v56 = vadd.f32 %v2248_v8, %v2247_v43  ;;  %v2148_v38 = vadd.f32 %v2147_v1, %v2146_v58 }
 0x232   : > { %v1914_v35 = vpop.f32.mrb[20].mxu1 }
 0x233   : > { %v2251_v47 = vadd.f32 %v2250_v10, %v2249_v56  ;;  %v2470_v15 = vpack.c.bf16 %v1914_v35, %v1914_v35  ;;  %v2149_v24 = vsel %vm324_vm1, %v1914_v35, 0.0  ;;  %v2195_v36 = vmul.f32 %v1914_v35, %v1914_v35  ;;  %v1916_v6 = vpop.f32.mrb[21].mxu1 }
 0x234   : > { %v2150_v7 = vadd.f32 %v2149_v24, %v2148_v38  ;;  %v1917_v3 = vpop.f32.mrb[22].mxu1 }
 0x235   : > { %2092 = vst.msk [vmem:[%s4281_s23 + $0x68] sm:$0xf] %vm2065_vm10, %v2470_v15  ;;  %v2252_v55 = vsel %vm324_vm1, %v2195_v36, 0.0  ;;  %v2471_v29 = vpack.c.bf16 %v1917_v3, %v1917_v3  ;;  %v2151_v54 = vsel %vm324_vm1, %v1917_v3, 0.0  ;;  %v2196_v45 = vmul.f32 %v1917_v3, %v1917_v3  ;;  %v1919_v44 = vpop.f32.mrb[23].mxu1 }
 0x236   : > { %v2253_v52 = vadd.f32 %v2252_v55, %v2251_v47  ;;  %v2152_v33 = vadd.f32 %v2151_v54, %v2150_v7 }
 0x237   : > { %2093 = vst.msk [vmem:[%s4281_s23 + $0x6c] sm:$0xf] %vm2065_vm10, %v2471_v29  ;;  %v2254_v9 = vsel %vm324_vm1, %v2196_v45, 0.0 }
 0x238   : > { %v2255_v41 = vadd.f32 %v2254_v9, %v2253_v52 }
 0x241   : > { %v1922_v34 = vpop.f32.mrb[24].mxu1 }
 0x242   : > { %v2472_v17 = vpack.c.bf16 %v1922_v34, %v1922_v34  ;;  %v2153_v42 = vsel %vm324_vm1, %v1922_v34, 0.0  ;;  %v2197_v5 = vmul.f32 %v1922_v34, %v1922_v34  ;;  %v1924_v21 = vpop.f32.mrb[25].mxu1 }
 0x243   : > { %v2154_v19 = vadd.f32 %v2153_v42, %v2152_v33  ;;  %v1925_v60 = vpop.f32.mrb[26].mxu1 }
 0x244   : > { %2094 = vst.msk [vmem:[%s4281_s23 + $0x70] sm:$0xf] %vm2065_vm10, %v2472_v17  ;;  %v2256_v46 = vsel %vm324_vm1, %v2197_v5, 0.0  ;;  %v2473_v48 = vpack.c.bf16 %v1925_v60, %v1925_v60  ;;  %v2155_v25 = vsel %vm324_vm1, %v1925_v60, 0.0  ;;  %v2198_v53 = vmul.f32 %v1925_v60, %v1925_v60  ;;  %v1927_v28 = vpop.f32.mrb[27].mxu1 }
 0x245   : > { %v2257_v59 = vadd.f32 %v2256_v46, %v2255_v41  ;;  %v2156_v31 = vadd.f32 %v2155_v25, %v2154_v19 }
 0x246   : > { %2095 = vst.msk [vmem:[%s4281_s23 + $0x74] sm:$0xf] %vm2065_vm10, %v2473_v48  ;;  %v2258_v63 = vsel %vm324_vm1, %v2198_v53, 0.0 }
 0x247   : > { %v2259_v50 = vadd.f32 %v2258_v63, %v2257_v59 }
 0x24e   : > { %v1930_v12 = vpop.f32.mrb[28].mxu1 }
 0x24f   : > { %v2474_v18 = vpack.c.bf16 %v1930_v12, %v1930_v12  ;;  %v2157_v51 = vsel %vm324_vm1, %v1930_v12, 0.0  ;;  %v2199_v30 = vmul.f32 %v1930_v12, %v1930_v12  ;;  %v1932_v13 = vpop.f32.mrb[29].mxu1 }
 0x250   : > { %v2158_v16 = vadd.f32 %v2157_v51, %v2156_v31  ;;  %v1933_v0 = vpop.f32.mrb[30].mxu1 }
 0x251   : > { %2096 = vst.msk [vmem:[%s4281_s23 + $0x78] sm:$0xf] %vm2065_vm10, %v2474_v18  ;;  %v2260_v4 = vsel %vm324_vm1, %v2199_v30, 0.0  ;;  %v2475_v23 = vpack.c.bf16 %v1933_v0, %v1933_v0  ;;  %v2159_v2 = vsel %vm324_vm1, %v1933_v0, 0.0  ;;  %v2200_v37 = vmul.f32 %v1933_v0, %v1933_v0  ;;  %v1935_v61 = vpop.f32.mrb[31].mxu1 }
 0x252   : > { %v2261_v27 = vadd.f32 %v2260_v4, %v2259_v50  ;;  %v2160_v32 = vadd.f32 %v2159_v2, %v2158_v16 }
 0x253   : > { %2097 = vst.msk [vmem:[%s4281_s23 + $0x7c] sm:$0xf] %vm2065_vm10, %v2475_v23  ;;  %v2262_v62 = vsel %vm324_vm1, %v2200_v37, 0.0 }
 0x254   : > { %v2161_v14 = vrot.slane %v2160_v32, 4  ;;  %v2263_v22 = vadd.f32 %v2262_v62, %v2261_v27 }
 0x256   : > { %v2162_v57 = vadd.f32 %v2161_v14, %v2160_v32  ;;  %v2264_v11 = vrot.slane %v2263_v22, 4 }
 0x258   : > { %v2163_v39 = vrot.slane %v2162_v57, 2  ;;  %v2265_v26 = vadd.f32 %v2264_v11, %v2263_v22 }
 0x25a   : > { %v2164_v40 = vadd.f32 %v2163_v39, %v2162_v57  ;;  %v2266_v20 = vrot.slane %v2265_v26, 2 }
 0x25c   : > { %v2165_v49 = vrot.slane %v2164_v40, 1  ;;  %v2267_v43 = vadd.f32 %v2266_v20, %v2265_v26 }
 0x25e   : > { %v2166_v58 = vadd.f32 %v2165_v49, %v2164_v40  ;;  %v2268_v8 = vrot.slane %v2267_v43, 1 }
 0x260   : > { %2168 = vst.msk [vmem:[%s211_s26] sm:$0x1] %vm2167_vm11, %v2166_v58  ;;  %v2269_v1 = vadd.f32 %v2268_v8, %v2267_v43 }
 0x262   : > { %2270 = vst.msk [vmem:[%s214_s5] sm:$0x1] %vm2167_vm11, %v2269_v1 }
 0x263 PF: > { %s15_s15 = sadd.s32 1, %s3130_s15  }
 0x264   : > { %p12_p4 = scmp.ge.s32.totalorder %s15_s15, 4  }
 0x266   :  { %14 = sbr.rel (!%p12_p4) target bundleno = 1 (0x1), region = 82 }

// kernel: basic_resnet_block_forward.4
= control target key start
LH: loop header
LB: loop body
LE: loop exit
PB: predicated region body
PF: predicated region fallthrough
CT: control target
= control target key end

     0   :  { %s2919_s21 = smov 0   ;;  %s4583_s0 = inlined_call_operand.vmem [shape: bf16[2,16,16,16], index: 0, kind: input, shape index: {}]   ;;  %s4584_s1 = inlined_call_operand.vmem [shape: f32[1,16], index: 1, kind: input, shape index: {}]   ;;  %s4585_s2 = inlined_call_operand.vmem [shape: f32[1,16], index: 2, kind: input, shape index: {}]   ;;  %s4586_s3 = inlined_call_operand.vmem [shape: bf16[144,16], index: 3, kind: input, shape index: {}]   ;;  %s4587_s4 = inlined_call_operand.vmem [shape: bf16[2,16,16,16], index: 4, kind: output, shape index: {0}]   ;;  %s4588_s5 = inlined_call_operand.vmem [shape: f32[2,1,16], index: 5, kind: output, shape index: {1}]   ;;  %s4589_s6 = inlined_call_operand.vmem [shape: f32[2,1,16], index: 6, kind: output, shape index: {2}]  }
   0x1 LB: > { %s2638_s22 = sadd.s32 4294967295, %s2873_s21   ;;  %p2642_p0 = scmp.ge.s32.totalorder %s2873_s21, 1  ;;  %s2873_s21 = sphi %s2919_s21, %s17_s21  }
   0x2   : > { %p217_p1 = scmp.lt.s32.totalorder %s2873_s21, 3 }
   0x4   : > { %p218_p2 = pnand %p2642_p0, %p217_p1 }
   0x6   : > { %221 = sbr.rel (%p218_p2) target bundleno = 854 (0x356), region = 36 }
   0xd   : > { %vm270_vm0 = vcmask 130048   ;;  %p2929_p3 = scmp.lt.s32.totalorder %s2638_s22, 1  ;;  %vm273_vm1 = vcmask 123904   ;;  %v2875_v0 = vmov 0.0   ;;  %v2997_v1 = vld [vmem:[%s4584_s1] ss:$0 sm:$0xff] }
   0xe   : > { %271 = vst.msk [vmem:[#allocation2] sm:$0xff] %vm270_vm0, %v2875_v0  ;;  %272 = vst.msk [vmem:[#allocation2 + $0x8] sm:$0xff] %vm270_vm0, %v2875_v0  ;;  %vm667_vm2 = vcmask 1046528   ;;  %v3012_v7 = vld [vmem:[%s4585_s2] ss:$0 sm:$0xff]  ;;  %s2876_s8 = smov 16  }
   0xf   : > { %275 = vst.msk [vmem:[#allocation2 + $0x18] sm:$0xff] %vm270_vm0, %v2875_v0  ;;  %276 = vst.msk [vmem:[#allocation2 + $0x20] sm:$0xff] %vm270_vm0, %v2875_v0  ;;  %s4669_s22 = smov (!%p2929_p3, %s2638_s22), 1  ;;  %vm877_vm3 = vcmask 1045504   ;;  %s2878_s17 = smov 32   ;;  %vm844_vm4 = vcmask 261248  }
  0x10   : > { %278 = vst.msk [vmem:[#allocation2 + $0x30] sm:$0xff] %vm270_vm0, %v2875_v0  ;;  %279 = vst.msk [vmem:[#allocation2 + $0x38] sm:$0xff] %vm270_vm0, %v2875_v0  ;;  %s2708_s24 = sshll.u32 %s4669_s22, 7  ;;  %s2879_s20 = smov 48   ;;  %vm1054_vm5 = vcmask 392448   ;;  %vm1185_vm6 = vcmask 523648  }
  0x11   : > { %281 = vst.msk [vmem:[#allocation2 + $0x48] sm:$0xff] %vm270_vm0, %v2875_v0  ;;  %282 = vst.msk [vmem:[#allocation2 + $0x50] sm:$0xff] %vm270_vm0, %v2875_v0  ;;  %s3004_s29 = scalar_lea.vmem %s4583_s0, %s2708_s24  ;;  %s2880_s26 = smov 64   ;;  %vm1320_vm7 = vcmask 654848   ;;  %vm1454_vm8 = vcmask 786048   ;;  %vm1585_vm9 = vcmask 917248  }
  0x12   : > { %284 = vst.msk [vmem:[#allocation2 + $0x60] sm:$0xff] %vm270_vm0, %v2875_v0  ;;  %285 = vst.msk [vmem:[#allocation2 + $0x68] sm:$0xff] %vm270_vm0, %v2875_v0  ;;  %v2743_v2 = vld [vmem:[%s3004_s29] sm:$0xff]   ;;  %v2806_v3 = vld [vmem:[%s3004_s29 + $0x8] sm:$0xff]   ;;  %s2881_s30 = smov 80   ;;  %s2882_s10 = smov 96  }
  0x13   : > { %287 = vst.msk [vmem:[#allocation2 + $0x78] sm:$0xff] %vm270_vm0, %v2875_v0  ;;  %288 = vst.msk [vmem:[#allocation2 + $0x80] sm:$0xff] %vm270_vm0, %v2875_v0  ;;  %v2807_v4 = vld [vmem:[%s3004_s29 + $0x10] sm:$0xff]   ;;  %v2744_v5 = vunpack.c.l.bf16 %v2743_v2  ;;  %v2745_v6 = vunpack.c.h.bf16 %v2743_v2  ;;  %v2748_v8 = vunpack.c.l.bf16 %v2806_v3  ;;  %v2749_v9 = vunpack.c.h.bf16 %v2806_v3  ;;  %v2808_v10 = vld [vmem:[%s3004_s29 + $0x18] sm:$0xff]   ;;  %s2883_s13 = smov 112   ;;  %s4298_s23 = scalar_lea.vmem %s4587_s4, %s2708_s24 }
  0x14   : > { %290 = vst.msk [vmem:[#allocation2 + $0x90] sm:$0xff] %vm270_vm0, %v2875_v0  ;;  %291 = vst.msk [vmem:[#allocation2 + $0x98] sm:$0xff] %vm270_vm0, %v2875_v0  ;;  %v2752_v14 = vunpack.c.l.bf16 %v2807_v4  ;;  %v2753_v15 = vunpack.c.h.bf16 %v2807_v4  ;;  %v2756_v16 = vunpack.c.l.bf16 %v2808_v10  ;;  %v2757_v17 = vunpack.c.h.bf16 %v2808_v10  ;;  %v2809_v26 = vld [vmem:[%s3004_s29 + $0x20] sm:$0xff]   ;;  %v2810_v31 = vld [vmem:[%s3004_s29 + $0x28] sm:$0xff]  }
  0x15   : > { %293 = vst.msk [vmem:[#allocation2 + $0xa8] sm:$0xff] %vm270_vm0, %v2875_v0  ;;  %294 = vst.msk [vmem:[#allocation2 + $0xb0] sm:$0xff] %vm270_vm0, %v2875_v0  ;;  %v3015_v11 = vld [vmem:[#allocation2] sm:$0xff]  ;;  %v3017_v12 = vld [vmem:[#allocation2 + $0x8] sm:$0xff]  ;;  %v397_v20 = vmul.f32 %v2744_v5, %v2997_v1  ;;  %v398_v21 = vmul.f32 %v2745_v6, %v2997_v1  ;;  %v399_v23 = vmul.f32 %v2748_v8, %v2997_v1  ;;  %v2760_v47 = vunpack.c.l.bf16 %v2809_v26 }
  0x16   : > { %296 = vst.msk [vmem:[#allocation2 + $0xc0] sm:$0xff] %vm270_vm0, %v2875_v0  ;;  %297 = vst.msk [vmem:[#allocation2 + $0xc8] sm:$0xff] %vm270_vm0, %v2875_v0  ;;  %v668_v18 = vrot.slane %v3015_v11, 1  ;;  %v669_v19 = vrot.slane %v3017_v12, 1  ;;  %v400_v24 = vmul.f32 %v2749_v9, %v2997_v1  ;;  %v401_v25 = vmul.f32 %v2752_v14, %v2997_v1  ;;  %v2811_v32 = vld [vmem:[%s3004_s29 + $0x30] sm:$0xff]   ;;  %v2812_v53 = vld [vmem:[%s3004_s29 + $0x38] sm:$0xff]  }
  0x17   : > { %299 = vst.msk [vmem:[#allocation2 + $0xd8] sm:$0xff] %vm270_vm0, %v2875_v0  ;;  %300 = vst.msk [vmem:[#allocation2 + $0xe0] sm:$0xff] %vm270_vm0, %v2875_v0  ;;  %v436_v28 = vadd.f32 %v3012_v7, %v397_v20  ;;  %v437_v29 = vadd.f32 %v3012_v7, %v398_v21  ;;  %v402_v30 = vmul.f32 %v2753_v15, %v2997_v1  ;;  %v2761_v48 = vunpack.c.h.bf16 %v2809_v26  ;;  %v3073_v14 = vld [vmem:[%s3004_s29 + $0x40] sm:$0xff]  }
  0x18   : > { %302 = vst.msk [vmem:[#allocation2 + $0xf0] sm:$0xff] %vm270_vm0, %v2875_v0  ;;  %303 = vst.msk [vmem:[#allocation2 + $0xf8] sm:$0xff] %vm270_vm0, %v2875_v0  ;;  %v670_v27 = vsel %vm667_vm2, %v668_v18, %v669_v19  ;;  %v438_v34 = vadd.f32 %v3012_v7, %v399_v23  ;;  %v439_v35 = vadd.f32 %v3012_v7, %v400_v24  ;;  %v2764_v50 = vunpack.c.l.bf16 %v2810_v31 }
  0x19   : > { %305 = vst.msk [vmem:[#allocation2 + $0x108] sm:$0xff] %vm270_vm0, %v2875_v0  ;;  %306 = vst.msk [vmem:[#allocation2 + $0x110] sm:$0xff] %vm270_vm0, %v2875_v0  ;;  %748 = vrot.lane.b32.xlu0 %v670_v27, %s2876_s8  ;;  %v440_v36 = vadd.f32 %v3012_v7, %v401_v25  ;;  %v468_v37 = vmax.f32 %v436_v28, 0.0  ;;  %v469_v38 = vmax.f32 %v437_v29, 0.0  ;;  %v441_v39 = vadd.f32 %v3012_v7, %v402_v30 }
  0x1a   : > { %308 = vst.msk [vmem:[#allocation2 + $0x120] sm:$0xff] %vm270_vm0, %v2875_v0  ;;  %309 = vst.msk [vmem:[#allocation2 + $0x128] sm:$0xff] %vm270_vm0, %v2875_v0  ;;  %v403_v40 = vmul.f32 %v2756_v16, %v2997_v1  ;;  %v470_v41 = vmax.f32 %v438_v34, 0.0  ;;  %v471_v42 = vmax.f32 %v439_v35, 0.0  ;;  %v404_v44 = vmul.f32 %v2757_v17, %v2997_v1 }
  0x1b   : > { %311 = vst.msk [vmem:[#allocation2 + $0x138] sm:$0xff] %vm270_vm0, %v2875_v0  ;;  %312 = vst.msk [vmem:[#allocation2 + $0x140] sm:$0xff] %vm270_vm0, %v2875_v0  ;;  %v472_v43 = vmax.f32 %v440_v36, 0.0  ;;  %v473_v45 = vmax.f32 %v441_v39, 0.0  ;;  %v2765_v51 = vunpack.c.h.bf16 %v2810_v31  ;;  %v2768_v52 = vunpack.c.l.bf16 %v2811_v32 }
  0x1c   : > { %314 = vst.msk [vmem:[#allocation2 + $0x150] sm:$0xff] %vm270_vm0, %v2875_v0  ;;  %315 = vst.msk [vmem:[#allocation2 + $0x158] sm:$0xff] %vm270_vm0, %v2875_v0  ;;  %v442_v46 = vadd.f32 %v3012_v7, %v403_v40  ;;  %v443_v49 = vadd.f32 %v3012_v7, %v404_v44  ;;  %v405_v55 = vmul.f32 %v2760_v47, %v2997_v1  ;;  %v2769_v57 = vunpack.c.h.bf16 %v2811_v32 }
  0x1d   : > { %317 = vst.msk [vmem:[#allocation2 + $0x168] sm:$0xff] %vm270_vm0, %v2875_v0  ;;  %318 = vst.msk [vmem:[#allocation2 + $0x170] sm:$0xff] %vm270_vm0, %v2875_v0  ;;  %v406_v56 = vmul.f32 %v2761_v48, %v2997_v1  ;;  %v407_v59 = vmul.f32 %v2764_v50, %v2997_v1  ;;  %v408_v60 = vmul.f32 %v2765_v51, %v2997_v1  ;;  %v2772_v2 = vunpack.c.l.bf16 %v2812_v53 }
  0x1e   : > { %320 = vst.msk [vmem:[#allocation2 + $0x180] sm:$0xff] %vm270_vm0, %v2875_v0  ;;  %321 = vst.msk [vmem:[#allocation2 + $0x188] sm:$0xff] %vm270_vm0, %v2875_v0  ;;  %v474_v54 = vmax.f32 %v442_v46, 0.0  ;;  %v475_v58 = vmax.f32 %v443_v49, 0.0  ;;  %v409_v61 = vmul.f32 %v2768_v52, %v2997_v1  ;;  %v444_v62 = vadd.f32 %v3012_v7, %v405_v55  ;;  %v2815_v52 = vld [vmem:[%s3004_s29 + $0x50] sm:$0xff]  }
  0x1f   : > { %323 = vst.msk [vmem:[#allocation2 + $0x198] sm:$0xff] %vm270_vm0, %v2875_v0  ;;  %324 = vst.msk [vmem:[#allocation2 + $0x1a0] sm:$0xff] %vm270_vm0, %v2875_v0  ;;  %v445_v63 = vadd.f32 %v3012_v7, %v406_v56  ;;  %v446_v3 = vadd.f32 %v3012_v7, %v407_v59  ;;  %v447_v4 = vadd.f32 %v3012_v7, %v408_v60  ;;  %v2773_v5 = vunpack.c.h.bf16 %v2812_v53 }
  0x20   : > { %277 = vst.msk [vmem:[#allocation2 + $0x28] sm:$0x3] %vm273_vm1, %v2875_v0  ;;  %274 = vst.msk [vmem:[#allocation2 + $0x10] sm:$0x3] %vm273_vm1, %v2875_v0  ;;  %v476_v6 = vmax.f32 %v444_v62, 0.0  ;;  %v448_v9 = vadd.f32 %v3012_v7, %v409_v61  ;;  %v411_v10 = vmul.f32 %v2772_v2, %v2997_v1  ;;  %v2777_v53 = vunpack.c.h.bf16 %v3073_v14 }
  0x21   : > { %280 = vst.msk [vmem:[#allocation2 + $0x40] sm:$0x3] %vm273_vm1, %v2875_v0  ;;  %283 = vst.msk [vmem:[#allocation2 + $0x58] sm:$0x3] %vm273_vm1, %v2875_v0  ;;  %v477_v8 = vmax.f32 %v445_v63, 0.0  ;;  %v478_v18 = vmax.f32 %v446_v3, 0.0  ;;  %v412_v21 = vmul.f32 %v2773_v5, %v2997_v1  ;;  %v2784_v3 = vunpack.c.l.bf16 %v2815_v52 }
  0x22   : > { %286 = vst.msk [vmem:[#allocation2 + $0x70] sm:$0x3] %vm273_vm1, %v2875_v0  ;;  %289 = vst.msk [vmem:[#allocation2 + $0x88] sm:$0x3] %vm273_vm1, %v2875_v0  ;;  %v450_v28 = vadd.f32 %v3012_v7, %v411_v10  ;;  %v414_v2 = vmul.f32 %v2777_v53, %v2997_v1  ;;  %vm1720_vm10 = vcmask 1048448   ;;  %vm2327_vm11 = vcmask 125952  }
  0x23   : > { %292 = vst.msk [vmem:[#allocation2 + $0xa0] sm:$0x3] %vm273_vm1, %v2875_v0  ;;  %295 = vst.msk [vmem:[#allocation2 + $0xb8] sm:$0x3] %vm273_vm1, %v2875_v0  ;;  %v451_v34 = vadd.f32 %v3012_v7, %v412_v21  ;;  %vm2429_vm12 = vcmask 122880  }
  0x24   : > { %298 = vst.msk [vmem:[#allocation2 + $0xd0] sm:$0x3] %vm273_vm1, %v2875_v0  ;;  %301 = vst.msk [vmem:[#allocation2 + $0xe8] sm:$0x3] %vm273_vm1, %v2875_v0  ;;  %v482_v48 = vmax.f32 %v450_v28, 0.0 }
  0x25   : > { %304 = vst.msk [vmem:[#allocation2 + $0x100] sm:$0x3] %vm273_vm1, %v2875_v0  ;;  %307 = vst.msk [vmem:[#allocation2 + $0x118] sm:$0x3] %vm273_vm1, %v2875_v0  ;;  %v483_v51 = vmax.f32 %v451_v34, 0.0 }
  0x26   : > { %310 = vst.msk [vmem:[#allocation2 + $0x130] sm:$0x3] %vm273_vm1, %v2875_v0  ;;  %313 = vst.msk [vmem:[#allocation2 + $0x148] sm:$0x3] %vm273_vm1, %v2875_v0 }
  0x27   : > { %316 = vst.msk [vmem:[#allocation2 + $0x160] sm:$0x3] %vm273_vm1, %v2875_v0  ;;  %319 = vst.msk [vmem:[#allocation2 + $0x178] sm:$0x3] %vm273_vm1, %v2875_v0  ;;  %v3019_v13 = vld [vmem:[#allocation2 + $0x10] sm:$0x3] }
  0x28   : > { %322 = vst.msk [vmem:[#allocation2 + $0x190] sm:$0x3] %vm273_vm1, %v2875_v0  ;;  %325 = vst.msk [vmem:[#allocation2 + $0x1a8] sm:$0x3] %vm273_vm1, %v2875_v0  ;;  %v671_v22 = vrot.slane %v3019_v13, 1  ;;  %v410_v0 = vmul.f32 %v2769_v57, %v2997_v1 }
  0x29   : > { %587 = vst.msk [vmem:[#allocation3] sm:$0xff] %vm270_vm0, %v3015_v11  ;;  %588 = vst.msk [vmem:[#allocation3 + $0x10] sm:$0xff] %vm270_vm0, %v3017_v12 }
  0x2a   : > { %v672_v33 = vsel %vm667_vm2, %v669_v19, %v671_v22  ;;  %501 = vst.msk [vmem:[#allocation2 + $0x19] sm:$0xff] %vm270_vm0, %v468_v37  ;;  %502 = vst.msk [vmem:[#allocation2 + $0x21] sm:$0xff] %vm270_vm0, %v469_v38  ;;  %v479_v19 = vmax.f32 %v447_v4, 0.0  ;;  %v449_v20 = vadd.f32 %v3012_v7, %v410_v0  ;;  %v2776_v37 = vunpack.c.l.bf16 %v3073_v14 }
  0x2b   : > { %750 = vrot.lane.b32.xlu0 %v672_v33, %s2876_s8  ;;  %503 = vst.msk [vmem:[#allocation2 + $0x31] sm:$0xff] %vm270_vm0, %v470_v41  ;;  %504 = vst.msk [vmem:[#allocation2 + $0x39] sm:$0xff] %vm270_vm0, %v471_v42  ;;  %v480_v41 = vmax.f32 %v448_v9, 0.0  ;;  %v2785_v4 = vunpack.c.h.bf16 %v2815_v52 }
  0x2c   : > { %505 = vst.msk [vmem:[#allocation2 + $0x49] sm:$0xff] %vm270_vm0, %v472_v43  ;;  %506 = vst.msk [vmem:[#allocation2 + $0x51] sm:$0xff] %vm270_vm0, %v473_v45  ;;  %v481_v42 = vmax.f32 %v449_v20, 0.0  ;;  %v2814_v43 = vld [vmem:[%s3004_s29 + $0x48] sm:$0xff]  }
  0x2d   : > { %507 = vst.msk [vmem:[#allocation2 + $0x61] sm:$0xff] %vm270_vm0, %v474_v54  ;;  %508 = vst.msk [vmem:[#allocation2 + $0x69] sm:$0xff] %vm270_vm0, %v475_v58  ;;  %v413_v54 = vmul.f32 %v2776_v37, %v2997_v1  ;;  %v2780_v55 = vunpack.c.l.bf16 %v2814_v43  ;;  %v2781_v61 = vunpack.c.h.bf16 %v2814_v43  ;;  %v418_v34 = vmul.f32 %v2785_v4, %v2997_v1 }
  0x2e   : > { %509 = vst.msk [vmem:[#allocation2 + $0x79] sm:$0xff] %vm270_vm0, %v476_v6  ;;  %510 = vst.msk [vmem:[#allocation2 + $0x81] sm:$0xff] %vm270_vm0, %v477_v8 }
  0x2f   : > { %511 = vst.msk [vmem:[#allocation2 + $0x91] sm:$0xff] %vm270_vm0, %v478_v18  ;;  %512 = vst.msk [vmem:[#allocation2 + $0x99] sm:$0xff] %vm270_vm0, %v479_v19  ;;  %v452_v8 = vadd.f32 %v3012_v7, %v413_v54  ;;  %v415_v9 = vmul.f32 %v2780_v55, %v2997_v1  ;;  %v453_v18 = vadd.f32 %v3012_v7, %v414_v2 }
  0x30   : > { %513 = vst.msk [vmem:[#allocation2 + $0xa9] sm:$0xff] %vm270_vm0, %v480_v41  ;;  %514 = vst.msk [vmem:[#allocation2 + $0xb1] sm:$0xff] %vm270_vm0, %v481_v42  ;;  %v416_v21 = vmul.f32 %v2781_v61, %v2997_v1  ;;  %v2816_v41 = vld [vmem:[%s3004_s29 + $0x58] sm:$0xff]  }
  0x31   : > { %v3075_v15 = vld [vmem:[#allocation2 + $0x18] sm:$0xff]  ;;  %v3077_v16 = vld [vmem:[#allocation2 + $0x20] sm:$0xff]  ;;  %v3079_v17 = vld [vmem:[#allocation2 + $0x28] sm:$0x3]  ;;  %515 = vst.msk [vmem:[#allocation2 + $0xc1] sm:$0xff] %vm270_vm0, %v482_v48  ;;  %v484_v20 = vmax.f32 %v452_v8, 0.0  ;;  %v457_v48 = vadd.f32 %v3012_v7, %v418_v34  ;;  %v2788_v2 = vunpack.c.l.bf16 %v2816_v41 }
  0x32   : > { %v673_v22 = vrot.slane %v3075_v15, 1  ;;  %v674_v23 = vrot.slane %v3077_v16, 1  ;;  %589 = vst.msk [vmem:[#allocation3 + $0x20] sm:$0xff] %vm270_vm0, %v3075_v15  ;;  %590 = vst.msk [vmem:[#allocation3 + $0x30] sm:$0xff] %vm270_vm0, %v3077_v16  ;;  %v676_v24 = vrot.slane %v3079_v17, 1  ;;  %v3090_v25 = vld [vmem:[#allocation2 + $0x30] sm:$0xff] }
  0x33   : > { %v3092_v26 = vld [vmem:[#allocation2 + $0x38] sm:$0xff]  ;;  %v3094_v27 = vld [vmem:[#allocation2 + $0x48] sm:$0xff]  ;;  %v678_v29 = vrot.slane %v3090_v25, 1  ;;  %591 = vst.msk [vmem:[#allocation3 + $0x40] sm:$0xff] %vm270_vm0, %v3090_v25  ;;  %v3105_v31 = vld [vmem:[#allocation2 + $0x40] sm:$0x3] }
  0x34   : > { %v679_v30 = vrot.slane %v3092_v26, 1  ;;  %592 = vst.msk [vmem:[#allocation3 + $0x50] sm:$0xff] %vm270_vm0, %v3092_v26  ;;  %v3107_v32 = vld [vmem:[#allocation2 + $0x50] sm:$0xff]  ;;  %v683_v33 = vrot.slane %v3094_v27, 1  ;;  %593 = vst.msk [vmem:[#allocation3 + $0x60] sm:$0xff] %vm270_vm0, %v3094_v27  ;;  %v3116_v35 = vsel %vm667_vm2, %v673_v22, %v674_v23  ;;  %v681_v39 = vrot.slane %v3105_v31, 1 }
  0x35   : > { %v684_v36 = vrot.slane %v3107_v32, 1  ;;  %594 = vst.msk [vmem:[#allocation3 + $0x70] sm:$0xff] %vm270_vm0, %v3107_v32  ;;  %752 = vrot.lane.b32.xlu1 %v3116_v35, %s2876_s8  ;;  %v3128_v40 = vld [vmem:[#allocation2 + $0x60] sm:$0xff]  ;;  %v3132_v44 = vsel %vm667_vm2, %v674_v23, %v676_v24  ;;  %v3136_v45 = vld [vmem:[#allocation2 + $0x58] sm:$0x3]  ;;  %v3138_v46 = vld [vmem:[#allocation2 + $0x68] sm:$0xff]  ;;  %v454_v22 = vadd.f32 %v3012_v7, %v415_v9  ;;  %v419_v9 = vmul.f32 %v2788_v2, %v2997_v1 }
  0x36   : > { %v3125_v38 = vsel %vm667_vm2, %v678_v29, %v679_v30  ;;  %v688_v47 = vrot.slane %v3128_v40, 1  ;;  %595 = vst.msk [vmem:[#allocation3 + $0x80] sm:$0xff] %vm270_vm0, %v3128_v40  ;;  %v689_v50 = vrot.slane %v3138_v46, 1  ;;  %596 = vst.msk [vmem:[#allocation3 + $0x90] sm:$0xff] %vm270_vm0, %v3138_v46  ;;  %v3158_v56 = vsel %vm667_vm2, %v679_v30, %v681_v39  ;;  %v3161_v58 = vld [vmem:[#allocation2 + $0x70] sm:$0x3] }
  0x37   : > { %756 = vrot.lane.b32.xlu0 %v3125_v38, %s2876_s8  ;;  %v3144_v49 = vsel %vm667_vm2, %v683_v33, %v684_v36  ;;  %v686_v57 = vrot.slane %v3136_v45, 1  ;;  %v3163_v59 = vld [vmem:[#allocation2 + $0x78] sm:$0xff]  ;;  %v3165_v60 = vld [vmem:[#allocation2 + $0x80] sm:$0xff]  ;;  %516 = vst.msk [vmem:[#allocation2 + $0xc9] sm:$0xff] %vm270_vm0, %v483_v51  ;;  %v3179_v63 = vld [vmem:[#allocation2 + $0x90] sm:$0xff]  ;;  %v691_v10 = vrot.slane %v3161_v58, 1  ;;  %v417_v33 = vmul.f32 %v2784_v3, %v2997_v1 }
  0x38   : > { %v3173_v62 = vsel %vm667_vm2, %v688_v47, %v689_v50  ;;  %597 = vst.msk [vmem:[#allocation3 + $0xa0] sm:$0xff] %vm270_vm0, %v3163_v59  ;;  %598 = vst.msk [vmem:[#allocation3 + $0xb0] sm:$0xff] %vm270_vm0, %v3165_v60  ;;  %v3181_v0 = vld [vmem:[#allocation2 + $0x98] sm:$0xff]  ;;  %v693_v5 = vrot.slane %v3163_v59, 1  ;;  %v694_v6 = vrot.slane %v3165_v60, 1  ;;  %v698_v14 = vrot.slane %v3179_v63, 1 }
  0x39   : > { %754 = vrot.lane.b32.xlu1 %v3132_v44, %s2876_s8  ;;  %599 = vst.msk [vmem:[#allocation3 + $0xc0] sm:$0xff] %vm270_vm0, %v3179_v63  ;;  %600 = vst.msk [vmem:[#allocation3 + $0xd0] sm:$0xff] %vm270_vm0, %v3181_v0  ;;  %v699_v19 = vrot.slane %v3181_v0, 1  ;;  %v3201_v23 = vsel %vm667_vm2, %v684_v36, %v686_v57  ;;  %v3205_v24 = vld [vmem:[#allocation2 + $0x88] sm:$0x3]  ;;  %v3209_v29 = vld [vmem:[#allocation2 + $0xb0] sm:$0xff]  ;;  %v455_v39 = vadd.f32 %v3012_v7, %v416_v21 }
  0x3a   : > { %v3207_v28 = vld [vmem:[#allocation2 + $0xa8] sm:$0xff]  ;;  %v485_v30 = vmax.f32 %v453_v18, 0.0  ;;  %v3214_v37 = vsel %vm667_vm2, %v693_v5, %v694_v6  ;;  %602 = vst.msk [vmem:[#allocation3 + $0xf0] sm:$0xff] %vm270_vm0, %v3209_v29  ;;  %v3220_v36 = vld [vmem:[#allocation2 + $0xc0] sm:$0xff]  ;;  %517 = vst.msk [vmem:[#allocation2 + $0xd9] sm:$0xff] %vm270_vm0, %v484_v20  ;;  %v486_v43 = vmax.f32 %v454_v22, 0.0  ;;  %v456_v47 = vadd.f32 %v3012_v7, %v417_v33 }
  0x3b   : > { %760 = vrot.lane.b32.xlu0 %v3144_v49, %s2876_s8  ;;  %601 = vst.msk [vmem:[#allocation3 + $0xe0] sm:$0xff] %vm270_vm0, %v3207_v28  ;;  %4630 = vst [vmem:[#allocation4_spill] sm:$0xff] %v3220_v36  ;;  %v2817_v51 = vld [vmem:[%s3004_s29 + $0x60] sm:$0xff]   ;;  %v3238_v52 = vsel %vm667_vm2, %v689_v50, %v691_v10  ;;  %v696_v53 = vrot.slane %v3205_v24, 1  ;;  %v3244_v54 = vsel %vm667_vm2, %v698_v14, %v699_v19  ;;  %v487_v57 = vmax.f32 %v455_v39, 0.0 }
  0x3c   : > { %603 = vst.msk [vmem:[#allocation3 + $0x100] sm:$0xff] %vm270_vm0, %v3220_v36  ;;  %518 = vst.msk [vmem:[#allocation2 + $0xe1] sm:$0xff] %vm270_vm0, %v485_v30  ;;  %v3250_v55 = vld [vmem:[#allocation2 + $0xa0] sm:$0x3]  ;;  %v488_v50 = vmax.f32 %v456_v47, 0.0  ;;  %v489_v61 = vmax.f32 %v457_v48, 0.0  ;;  %v2789_v5 = vunpack.c.h.bf16 %v2816_v41  ;;  %v2792_v8 = vunpack.c.l.bf16 %v2817_v51 }
  0x3d   : > { %758 = vrot.lane.b32.xlu1 %v3158_v56, %s2876_s8  ;;  %4632 = vst [vmem:[#allocation6_spill] sm:$0xff] %v3244_v54  ;;  %519 = vst.msk [vmem:[#allocation2 + $0xf1] sm:$0xff] %vm270_vm0, %v486_v43  ;;  %v703_v3 = vrot.slane %v3207_v28, 1  ;;  %v704_v4 = vrot.slane %v3209_v29, 1  ;;  %v2793_v10 = vunpack.c.h.bf16 %v2817_v51  ;;  %v701_v14 = vrot.slane %v3250_v55, 1 }
  0x3e   : > { %v3225_v42 = vld [vmem:[#allocation2 + $0xc8] sm:$0xff]  ;;  %520 = vst.msk [vmem:[#allocation2 + $0xf9] sm:$0xff] %vm270_vm0, %v487_v57  ;;  %521 = vst.msk [vmem:[#allocation2 + $0x109] sm:$0xff] %vm270_vm0, %v488_v50  ;;  %v420_v18 = vmul.f32 %v2789_v5, %v2997_v1  ;;  %v421_v20 = vmul.f32 %v2792_v8, %v2997_v1  ;;  %v3265_v21 = vsel %vm667_vm2, %v694_v6, %v696_v53  ;;  %v3269_v22 = vld [vmem:[#allocation2 + $0xb8] sm:$0x3]  ;;  %v708_v30 = vrot.slane %v3220_v36, 1 }
  0x3f   : > { %764 = vrot.lane.b32.xlu0 %v3173_v62, %s2876_s8  ;;  %4631 = vst [vmem:[#allocation5_spill] sm:$0xff] %v3225_v42  ;;  %604 = vst.msk [vmem:[#allocation3 + $0x110] sm:$0xff] %vm270_vm0, %v3225_v42  ;;  %v458_v34 = vadd.f32 %v3012_v7, %v419_v9  ;;  %v422_v39 = vmul.f32 %v2793_v10, %v2997_v1  ;;  %v3277_v41 = vsel %vm667_vm2, %v703_v3, %v704_v4  ;;  %v3280_v6 = vld [vmem:[#allocation2 + $0xd0] sm:$0x3] }
  0x40   : > { %522 = vst.msk [vmem:[#allocation2 + $0x111] sm:$0xff] %vm270_vm0, %v489_v61  ;;  %4633 = vst [vmem:[#allocation7_spill] sm:$0xff] %v3277_v41  ;;  %v709_v43 = vrot.slane %v3225_v42, 1  ;;  %v459_v48 = vadd.f32 %v3012_v7, %v420_v18  ;;  %v460_v51 = vadd.f32 %v3012_v7, %v421_v20  ;;  %v3296_v57 = vsel %vm667_vm2, %v699_v19, %v701_v14 }
  0x41   : > { %762 = vrot.lane.b32.xlu1 %v3201_v23, %s2876_s8  ;;  %v3272_v33 = vld [vmem:[#allocation2 + $0xd8] sm:$0xff]  ;;  %v490_v1 = vmax.f32 %v458_v34, 0.0  ;;  %v461_v53 = vadd.f32 %v3012_v7, %v422_v39  ;;  %4634 = vst [vmem:[#allocation8_spill] sm:$0xff] %v3296_v57  ;;  %v706_v50 = vrot.slane %v3269_v22, 1  ;;  %v711_v5 = vrot.slane %v3280_v6, 1 }
  0x42   : > { %605 = vst.msk [vmem:[#allocation3 + $0x120] sm:$0xff] %vm270_vm0, %v3272_v33  ;;  %v491_v2 = vmax.f32 %v459_v48, 0.0  ;;  %v492_v3 = vmax.f32 %v460_v51, 0.0  ;;  %v713_v7 = vrot.slane %v3272_v33, 1  ;;  %v3310_v9 = vsel %vm667_vm2, %v708_v30, %v709_v43 }
  0x43   : > { %768 = vrot.lane.b32.xlu0 %v3214_v37, %s2876_s8  ;;  %v3282_v47 = vld [vmem:[#allocation2 + $0xe0] sm:$0xff]  ;;  %523 = vst.msk [vmem:[#allocation2 + $0x121] sm:$0xff] %vm270_vm0, %v490_v1  ;;  %v493_v19 = vmax.f32 %v461_v53, 0.0  ;;  %4635 = vst [vmem:[#allocation9_spill] sm:$0xff] %v3310_v9  ;;  %v888_v18 = vrot.slane %v3090_v25, 2  ;;  %v889_v20 = vrot.slane %v3092_v26, 2  ;;  %v3336_v48 = vsel %vm667_vm2, %v704_v4, %v706_v50 }
  0x44   : > { %606 = vst.msk [vmem:[#allocation3 + $0x130] sm:$0xff] %vm270_vm0, %v3282_v47  ;;  %v3299_v61 = vld [vmem:[#allocation2 + $0xf0] sm:$0xff]  ;;  %v4590_v8 = vrot.slane %v3282_v47, 1  ;;  %524 = vst.msk [vmem:[#allocation2 + $0x129] sm:$0xff] %vm270_vm0, %v491_v2  ;;  %v891_v39 = vrot.slane %v3105_v31, 2  ;;  %v3341_v51 = vsel %vm667_vm2, %v709_v43, %v711_v5  ;;  %v893_v53 = vrot.slane %v3094_v27, 2 }
  0x45   : > { %766 = vrot.lane.b32.xlu1 %v3238_v52, %s2876_s8  ;;  %607 = vst.msk [vmem:[#allocation3 + $0x140] sm:$0xff] %vm270_vm0, %v3299_v61  ;;  %v3312_v10 = vld [vmem:[#allocation2 + $0xf8] sm:$0xff]  ;;  %v3314_v14 = vld [vmem:[#allocation2 + $0x108] sm:$0xff]  ;;  %525 = vst.msk [vmem:[#allocation2 + $0x139] sm:$0xff] %vm270_vm0, %v492_v3  ;;  %v3332_v30 = vsel %vm877_vm3, %v888_v18, %v889_v20  ;;  %v718_v4 = vrot.slane %v3299_v61, 1  ;;  %v894_v43 = vrot.slane %v3107_v32, 2 }
  0x46   : > { %608 = vst.msk [vmem:[#allocation3 + $0x150] sm:$0xff] %vm270_vm0, %v3312_v10  ;;  %609 = vst.msk [vmem:[#allocation3 + $0x160] sm:$0xff] %vm270_vm0, %v3314_v14  ;;  %v3346_v1 = vsel %vm667_vm2, %v713_v7, %v4590_v8  ;;  %v3351_v31 = vld [vmem:[#allocation2 + $0xe8] sm:$0x3]  ;;  %v719_v50 = vrot.slane %v3312_v10, 1  ;;  %v3356_v2 = vsel %vm877_vm3, %v889_v20, %v891_v39  ;;  %v896_v3 = vrot.slane %v3136_v45, 2 }
  0x47   : > { %772 = vrot.lane.b32.xlu0 %v3244_v54, %s2876_s8  ;;  %v3322_v34 = vld [vmem:[#allocation2 + $0x110] sm:$0xff]  ;;  %526 = vst.msk [vmem:[#allocation2 + $0x141] sm:$0xff] %vm270_vm0, %v493_v19  ;;  %4636 = vst [vmem:[#allocation10_spill] sm:$0xff] %v3336_v48  ;;  %v898_v5 = vrot.slane %v3128_v40, 2  ;;  %v899_v7 = vrot.slane %v3138_v46, 2  ;;  %v901_v19 = vrot.slane %v3161_v58, 2  ;;  %v3370_v20 = vsel %vm877_vm3, %v893_v53, %v894_v43 }
  0x48   : > { %610 = vst.msk [vmem:[#allocation3 + $0x170] sm:$0xff] %vm270_vm0, %v3322_v34  ;;  %4637 = vst [vmem:[#allocation11_spill] sm:$0xff] %v3341_v51  ;;  %v918_v39 = vrot.slane %v3220_v36, 2  ;;  %v919_v8 = vrot.slane %v3225_v42, 2  ;;  %v921_v45 = vrot.slane %v3280_v6, 2  ;;  %v3387_v53 = vsel %vm877_vm3, %v894_v43, %v896_v3 }
  0x49   : > { %770 = vrot.lane.b32.xlu1 %v3265_v21, %s2876_s8  ;;  %4638 = vst [vmem:[#allocation12_spill] sm:$0xff] %v3346_v1  ;;  %1790 = vst.msk [vmem:[#allocation3 + $0x8] sm:$0xff] %vm270_vm0, %v3332_v30  ;;  %v3390_v6 = vsel %vm877_vm3, %v898_v5, %v899_v7  ;;  %v3393_v42 = vsel %vm877_vm3, %v899_v7, %v901_v19  ;;  %v3396_v36 = vsel %vm667_vm2, %v718_v4, %v719_v50 }
  0x4a   : > { %1791 = vst.msk [vmem:[#allocation3 + $0x18] sm:$0xff] %vm270_vm0, %v3356_v2  ;;  %v3367_v18 = vld [vmem:[#allocation2 + $0x120] sm:$0xff]  ;;  %1792 = vst.msk [vmem:[#allocation3 + $0x28] sm:$0xff] %vm270_vm0, %v3370_v20  ;;  %v724_v54 = vrot.slane %v3322_v34, 1  ;;  %v3415_v4 = vsel %vm877_vm3, %v918_v39, %v919_v8  ;;  %v3422_v3 = vsel %vm877_vm3, %v919_v8, %v921_v45  ;;  %v4644_v5 = vrot.slane %v3282_v47, 1 }
  0x4b   : > { %776 = vrot.lane.b32.xlu0 %v3277_v41, %s2876_s8  ;;  %4639 = vst [vmem:[#allocation13_spill] sm:$0xff] %v3367_v18  ;;  %v3378_v58 = vld [vmem:[#allocation2 + $0x128] sm:$0xff]  ;;  %611 = vst.msk [vmem:[#allocation3 + $0x180] sm:$0xff] %vm270_vm0, %v3367_v18  ;;  %v3398_v41 = vld [vmem:[#allocation2 + $0x100] sm:$0x3]  ;;  %v728_v45 = vrot.slane %v3367_v18, 1 }
  0x4c   : > { %4640 = vst [vmem:[#allocation14_spill] sm:$0xff] %v3378_v58  ;;  %4642 = vst [vmem:[#allocation16_spill] sm:$0xff] %v3396_v36  ;;  %v721_v19 = vrot.slane %v3398_v41, 1  ;;  %v3439_v8 = vld [vmem:[#allocation2 + $0x118] sm:$0x3] }
  0x4d   : > { %774 = vrot.lane.b32.xlu1 %v3296_v57, %s2876_s8  ;;  %v723_v57 = vrot.slane %v3314_v14, 1  ;;  %612 = vst.msk [vmem:[#allocation3 + $0x190] sm:$0xff] %vm270_vm0, %v3378_v58  ;;  %1793 = vst.msk [vmem:[#allocation3 + $0x38] sm:$0xff] %vm270_vm0, %v3387_v53  ;;  %v3458_v18 = vld [vmem:[#allocation2 + $0x130] sm:$0x3] }
  0x4e   : > { %v3404_v43 = vld [vmem:[#allocation2 + $0x140] sm:$0xff]  ;;  %1794 = vst.msk [vmem:[#allocation3 + $0x48] sm:$0xff] %vm270_vm0, %v3390_v6  ;;  %1795 = vst.msk [vmem:[#allocation3 + $0x58] sm:$0xff] %vm270_vm0, %v3393_v42 }
  0x4f   : > { %780 = vrot.lane.b32.xlu0 %v3310_v9, %s2876_s8  ;;  %v716_v9 = vrot.slane %v3351_v31, 1  ;;  %4643 = vst [vmem:[#allocation17_spill] sm:$0xff] %v3404_v43  ;;  %614 = vst.msk [vmem:[#allocation3 + $0x1b0] sm:$0xff] %vm270_vm0, %v3404_v43  ;;  %v3437_v39 = vsel %vm667_vm2, %v723_v57, %v724_v54  ;;  %v726_v57 = vrot.slane %v3439_v8, 1 }
  0x50   : > { %1802 = vst.msk [vmem:[#allocation3 + $0xc8] sm:$0xff] %vm270_vm0, %v3415_v4  ;;  %1803 = vst.msk [vmem:[#allocation3 + $0xd8] sm:$0xff] %vm270_vm0, %v3422_v3 }
  0x51   : > { %778 = vrot.lane.b32.xlu1 %v3336_v48, %s2876_s8  ;;  %v3382_v48 = vld [vmem:[#allocation2 + $0x138] sm:$0xff]  ;;  %v3431_v7 = vsel %vm667_vm2, %v4644_v5, %v716_v9  ;;  %4646 = vst [vmem:[#allocation19_spill] sm:$0xff] %v3437_v39  ;;  %v2856_v9 = vld [vmem:[%s4586_s3] sm:$0xff]   ;;  %v3449_v5 = vsel %vm667_vm2, %v719_v50, %v721_v19  ;;  %v2857_v50 = vld [vmem:[%s4586_s3 + $0x8] sm:$0xff]   ;;  %v3471_v19 = vsel %vm667_vm2, %v724_v54, %v726_v57 }
  0x52   : > { %4641 = vst [vmem:[#allocation15_spill] sm:$0xff] %v3382_v48  ;;  %613 = vst.msk [vmem:[#allocation3 + $0x1a0] sm:$0xff] %vm270_vm0, %v3382_v48  ;;  %v2858_v57 = vld [vmem:[%s4586_s3 + $0x10] sm:$0xff]  }
  0x53   : > { %784 = vrot.lane.b32.xlu0 %v3346_v1, %s2876_s8  ;;  %4645 = vst [vmem:[#allocation18_spill] sm:$0xff] %v3431_v7  ;;  %v734_v1 = vrot.slane %v3404_v43, 1  ;;  %4648 = vst [vmem:[#allocation21_spill] sm:$0xff] %v3471_v19  ;;  %v878_v43 = vrot.slane %v3015_v11, 2  ;;  %v903_v11 = vrot.slane %v3163_v59, 2 }
  0x55   : > { %782 = vrot.lane.b32.xlu1 %v3341_v51, %s2876_s8  ;;  %v729_v51 = vrot.slane %v3378_v58, 1 }
  0x57   : > { %788 = vrot.lane.b32.xlu0 %v3396_v36, %s2876_s8  ;;  %v4627_v36 = vmov 0   ;;  %v3456_v58 = vsel %vm667_vm2, %v728_v45, %v729_v51  ;;  %v731_v45 = vrot.slane %v3458_v18, 1 }
  0x58   : > { %2038 = vmatprep.subr.bf16.mxu0 %v4627_v36  ;;  %4647 = vst [vmem:[#allocation20_spill] sm:$0xff] %v3456_v58  ;;  %2821 = vmatprep.subr.bf16.mxu1 %v4627_v36 }
  0x59   : > { %786 = vrot.lane.b32.xlu1 %v3431_v7, %s2876_s8  ;;  %v733_v7 = vrot.slane %v3382_v48, 1  ;;  %2039 = vmatpush1.bf16.msra.mxu0 %v2856_v9  ;;  %v879_v48 = vrot.slane %v3017_v12, 2  ;;  %v904_v12 = vrot.slane %v3165_v60, 2 }
  0x5a   : > { %2040 = vmatprep.subr.bf16.mxu0 %v4627_v36  ;;  %2830 = vmatpush1.bf16.msra.mxu1 %v2856_v9 }
  0x5b   : > { %792 = vrot.lane.b32.xlu0 %v3437_v39, %s2876_s8  ;;  %2822 = vmatprep.subr.bf16.mxu1 %v4627_v36  ;;  %v3476_v39 = vld [vmem:[#allocation2 + $0x148] sm:$0x3]  ;;  %v3479_v9 = vsel %vm667_vm2, %v733_v7, %v734_v1  ;;  %v3492_v7 = vsel %vm667_vm2, %v729_v51, %v731_v45  ;;  %v4649_v51 = vmov 0   ;;  %v881_v45 = vrot.slane %v3019_v13, 2 }
  0x5c   : > { %v736_v54 = vrot.slane %v3476_v39, 1  ;;  %v923_v13 = vrot.slane %v3272_v33, 2 }
  0x5d   : > { %790 = vrot.lane.b32.xlu1 %v3449_v5, %s2876_s8  ;;  %2041 = vmatpush1.bf16.msra.mxu0 %v2857_v50 }
  0x5e   : > { %2042 = vmatprep.subr.bf16.mxu0 %v4627_v36  ;;  %2831 = vmatpush1.bf16.msra.mxu1 %v2857_v50  ;;  %v906_v50 = vrot.slane %v3205_v24, 2  ;;  %v2859_v24 = vld [vmem:[%s4586_s3 + $0x18] sm:$0xff]  }
  0x5f   : > { %796 = vrot.lane.b32.xlu0 %v3456_v58, %s2876_s8  ;;  %2823 = vmatprep.subr.bf16.mxu1 %v4627_v36  ;;  %v880_v58 = vsel %vm877_vm3, %v878_v43, %v879_v48  ;;  %v3519_v43 = vsel %vm667_vm2, %v734_v1, %v736_v54  ;;  %v2860_v1 = vld [vmem:[%s4586_s3 + $0x20] sm:$0xff]   ;;  %v884_v54 = vrot.slane %v3077_v16, 2 }
  0x60   : > { %v3504_v36 = vsel %vm877_vm3, %v904_v12, %v906_v50 }
  0x61   : > { %794 = vrot.lane.b32.xlu1 %v3471_v19, %s2876_s8  ;;  %2043 = vmatpush1.bf16.msra.mxu0 %v2858_v57  ;;  %v3501_v19 = vsel %vm877_vm3, %v903_v11, %v904_v12  ;;  %1797 = vst.msk [vmem:[#allocation3 + $0x78] sm:$0xff] %vm270_vm0, %v3504_v36  ;;  %v926_v11 = vrot.slane %v3351_v31, 2  ;;  %v882_v31 = vsel %vm877_vm3, %v879_v48, %v881_v45  ;;  %v2862_v48 = vld [vmem:[%s4586_s3 + $0x30] sm:$0xff]  }
  0x62   : > { %2044 = vmatprep.subr.bf16.mxu0 %v4649_v51  ;;  %2832 = vmatpush1.bf16.msra.mxu1 %v2858_v57  ;;  %1796 = vst.msk [vmem:[#allocation3 + $0x68] sm:$0xff] %vm270_vm0, %v3501_v19  ;;  %v924_v57 = vrot.slane %v3282_v47, 2 }
  0x63   : > { %800 = vrot.lane.b32.xlu0 %v3479_v9, %s2876_s8  ;;  %2824 = vmatprep.subr.bf16.mxu1 %v4649_v51 }
  0x64   : > { %v3526_v12 = vsel %vm877_vm3, %v923_v13, %v924_v57  ;;  %v3529_v50 = vsel %vm877_vm3, %v924_v57, %v926_v11  ;;  %v1825_v13 = vld [vmem:[#allocation3 + $0x18] sm:$0xff]  ;;  %v929_v11 = vrot.slane %v3312_v10, 2 }
  0x65   : > { %798 = vrot.lane.b32.xlu1 %v3492_v7, %s2876_s8  ;;  %2045 = vmatpush1.bf16.msra.mxu0 %v2859_v24  ;;  %1804 = vst.msk [vmem:[#allocation3 + $0xe8] sm:$0xff] %vm270_vm0, %v3526_v12  ;;  %1805 = vst.msk [vmem:[#allocation3 + $0xf8] sm:$0xff] %vm270_vm0, %v3529_v50 }
  0x66   : > { %2046 = vmatprep.subr.bf16.mxu0 %v4649_v51  ;;  %2833 = vmatpush1.bf16.msra.mxu1 %v2859_v24  ;;  %v2861_v24 = vld [vmem:[%s4586_s3 + $0x28] sm:$0xff]  }
  0x67   : > { %958 = vrot.lane.b32.xlu0 %v880_v58, %s2878_s17  ;;  %2825 = vmatprep.subr.bf16.mxu1 %v4649_v51  ;;  %v883_v58 = vrot.slane %v3075_v15, 2 }
  0x69   : > { %802 = vrot.lane.b32.xlu1 %v3519_v43, %s2876_s8  ;;  %2047 = vmatpush1.bf16.msra.mxu0 %v2860_v1 }
  0x6a   : > { %2048 = vmatprep.subr.bf16.mxu0 %v4649_v51  ;;  %2834 = vmatpush1.bf16.msra.mxu1 %v2860_v1  ;;  %v931_v1 = vrot.slane %v3398_v41, 2 }
  0x6b   : > { %1089 = vrot.lane.b32.xlu0 %v3075_v15, %s2879_s20  ;;  %2826 = vmatprep.subr.bf16.mxu1 %v4649_v51  ;;  %v885_v15 = vsel %vm877_vm3, %v883_v58, %v884_v54 }
  0x6c   : > { %v3630_v58 = vsel %vm877_vm3, %v929_v11, %v931_v1 }
  0x6d   : > { %960 = vrot.lane.b32.xlu1 %v882_v31, %s2878_s17  ;;  %2049 = vmatpush1.bf16.msra.mxu0 %v2861_v24  ;;  %1807 = vst.msk [vmem:[#allocation3 + $0x118] sm:$0xff] %vm270_vm0, %v3630_v58 }
  0x6e   : > { %2050 = vmatprep.subr.bf16.mxu0 %v4649_v51  ;;  %2835 = vmatpush1.bf16.msra.mxu1 %v2861_v24 }
  0x6f   : > { %1224 = vrot.lane.b32.xlu0 %v3116_v35, %s2880_s26  ;;  %2827 = vmatprep.subr.bf16.mxu1 %v4649_v51  ;;  %v886_v35 = vrot.slane %v3079_v17, 2  ;;  %v2864_v17 = vld [vmem:[%s4586_s3 + $0x40] sm:$0xff]  }
  0x71   : > { %1091 = vrot.lane.b32.xlu1 %v3077_v16, %s2879_s20  ;;  %2051 = vmatpush1.bf16.msra.mxu0 %v2862_v48  ;;  %v2863_v16 = vld [vmem:[%s4586_s3 + $0x38] sm:$0xff]   ;;  %v887_v45 = vsel %vm877_vm3, %v884_v54, %v886_v35  ;;  %v913_v35 = vrot.slane %v3207_v28, 2 }
  0x72   : > { %2052 = vmatprep.subr.bf16.mxu0 %v4649_v51  ;;  %2836 = vmatpush1.bf16.msra.mxu1 %v2862_v48 }
  0x73   : > { %1358 = vrot.lane.b32.xlu0 %v885_v15, %s2881_s30  ;;  %2828 = vmatprep.subr.bf16.mxu1 %v4649_v51 }
  0x75   : > { %1226 = vrot.lane.b32.xlu1 %v3132_v44, %s2880_s26  ;;  %2053 = vmatpush1.bf16.msra.mxu0 %v2863_v16  ;;  %v1823_v44 = vld [vmem:[#allocation3 + $0x8] sm:$0xff] }
  0x76   : > { %2054 = vmatprep.subr.bf16.mxu0 %v4649_v51  ;;  %2837 = vmatpush1.bf16.msra.mxu1 %v2863_v16  ;;  %v1887_v57 = vpack.c.bf16 %v1825_v13, %v1823_v44  ;;  %v916_v16 = vrot.slane %v3269_v22, 2  ;;  %v933_v22 = vrot.slane %v3314_v14, 2 }
  0x77   : > { %1489 = vrot.lane.b32.xlu0 %v3090_v25, %s2882_s10  ;;  %2829 = vmatprep.subr.bf16.mxu1 %v4649_v51 }
  0x78   : > { %2658 = vmatprep.mubr.msk.bf16.mxu0 %vm270_vm0, %v1887_v57  ;;  %v934_v57 = vrot.slane %v3322_v34, 2 }
  0x79   : > { %1360 = vrot.lane.b32.xlu1 %v887_v45, %s2881_s30  ;;  %2055 = vmatpush1.bf16.msra.mxu0 %v2864_v17 }
  0x7a   : > { %2838 = vmatpush1.bf16.msra.mxu1 %v2864_v17 }
  0x7b   : > { %1624 = vrot.lane.b32.xlu0 %v3125_v38, %s2883_s13 }
  0x7d   : > { %1491 = vrot.lane.b32.xlu1 %v3092_v26, %s2882_s10 }
  0x7f   : > { %962 = vrot.lane.b32.xlu0 %v885_v15, %s2878_s17 }
  0x81   : > { %1626 = vrot.lane.b32.xlu1 %v3158_v56, %s2883_s13 }
  0x83   : > { %1093 = vrot.lane.b32.xlu0 %v3090_v25, %s2879_s20  ;;  %v908_v25 = vrot.slane %v3179_v63, 2 }
  0x85   : > { %964 = vrot.lane.b32.xlu1 %v887_v45, %s2878_s17 }
  0x87   : > { %1228 = vrot.lane.b32.xlu0 %v3125_v38, %s2880_s26  ;;  %v909_v38 = vrot.slane %v3181_v0, 2 }
  0x89   : > { %1095 = vrot.lane.b32.xlu1 %v3092_v26, %s2879_s20  ;;  %v911_v26 = vrot.slane %v3250_v55, 2  ;;  %v3610_v51 = vsel %vm877_vm3, %v908_v25, %v909_v38  ;;  %v928_v55 = vrot.slane %v3299_v61, 2  ;;  %v936_v25 = vrot.slane %v3439_v8, 2 }
  0x8a   : > { %1798 = vst.msk [vmem:[#allocation3 + $0x88] sm:$0xff] %vm270_vm0, %v3610_v51 }
  0x8b   : > { %1362 = vrot.lane.b32.xlu0 %v3332_v30, %s2881_s30  ;;  %v3627_v31 = vsel %vm877_vm3, %v928_v55, %v929_v11  ;;  %v749_v54 = vpop.permute.xlu0 %748  ;;  %v3720_v55 = vsel %vm877_vm3, %v933_v22, %v934_v57  ;;  %v3723_v11 = vsel %vm877_vm3, %v934_v57, %v936_v25  ;;  %v4654_v22 = vld [vmem:[#allocation8_spill] sm:$0xff]  ;;  %v4655_v57 = vld [vmem:[#allocation13_spill] sm:$0xff] }
  0x8c   : > { %1806 = vst.msk [vmem:[#allocation3 + $0x108] sm:$0xff] %vm270_vm0, %v3627_v31  ;;  %1808 = vst.msk [vmem:[#allocation3 + $0x128] sm:$0xff] %vm270_vm0, %v3720_v55  ;;  %v938_v25 = vrot.slane %v4655_v57, 2 }
  0x8d   : > { %1230 = vrot.lane.b32.xlu1 %v3158_v56, %s2880_s26  ;;  %v3613_v56 = vsel %vm877_vm3, %v909_v38, %v911_v26  ;;  %845 = vst.msk [vmem:[#allocation3] sm:$0xff] %vm844_vm4, %v749_v54 }
  0x8e   : > { %1799 = vst.msk [vmem:[#allocation3 + $0x98] sm:$0xff] %vm270_vm0, %v3613_v56  ;;  %1809 = vst.msk [vmem:[#allocation3 + $0x138] sm:$0xff] %vm270_vm0, %v3723_v11 }
  0x8f   : > { %1493 = vrot.lane.b32.xlu0 %v3094_v27, %s2882_s10 }
  0x91   : > { %1364 = vrot.lane.b32.xlu1 %v3356_v2, %s2881_s30 }
  0x93   : > { %1628 = vrot.lane.b32.xlu0 %v3144_v49, %s2883_s13 }
  0x95   : > { %1495 = vrot.lane.b32.xlu1 %v3107_v32, %s2882_s10 }
  0x97   : > { %966 = vrot.lane.b32.xlu0 %v3332_v30, %s2878_s17 }
  0x99   : > { %1630 = vrot.lane.b32.xlu1 %v3201_v23, %s2883_s13 }
  0x9b   : > { %1097 = vrot.lane.b32.xlu0 %v3094_v27, %s2879_s20 }
  0x9d   : > { %968 = vrot.lane.b32.xlu1 %v3356_v2, %s2878_s17  ;;  %v751_v41 = vpop.permute.xlu0 %750 }
  0x9e   : > { %846 = vst.msk [vmem:[#allocation3 + $0x10] sm:$0xff] %vm844_vm4, %v751_v41 }
  0x9f   : > { %1232 = vrot.lane.b32.xlu0 %v3144_v49, %s2880_s26 }
  0xa1   : > { %1099 = vrot.lane.b32.xlu1 %v3107_v32, %s2879_s20 }
  0xa3   : > { %1366 = vrot.lane.b32.xlu0 %v3370_v20, %s2881_s30 }
  0xa5   : > { %1234 = vrot.lane.b32.xlu1 %v3201_v23, %s2880_s26 }
  0xa7   : > { %1497 = vrot.lane.b32.xlu0 %v3128_v40, %s2882_s10  ;;  %v753_v27 = vpop.permute.xlu1 %752 }
  0xa8   : > { %847 = vst.msk [vmem:[#allocation3 + $0x20] sm:$0xff] %vm844_vm4, %v753_v27 }
  0xa9   : > { %v757_v30 = vpop.permute.xlu0 %756  ;;  %1368 = vrot.lane.b32.xlu1 %v3387_v53, %s2881_s30 }
  0xaa   : > { %849 = vst.msk [vmem:[#allocation3 + $0x40] sm:$0xff] %vm844_vm4, %v757_v30  ;;  %v4650_v30 = vld [vmem:[#allocation12_spill] sm:$0xff] }
  0xab   : > { %1632 = vrot.lane.b32.xlu0 %v3173_v62, %s2883_s13  ;;  %v755_v32 = vpop.permute.xlu1 %754 }
  0xac   : > { %848 = vst.msk [vmem:[#allocation3 + $0x30] sm:$0xff] %vm844_vm4, %v755_v32 }
  0xad   : > { %v761_v49 = vpop.permute.xlu0 %760  ;;  %1499 = vrot.lane.b32.xlu1 %v3138_v46, %s2882_s10 }
  0xae   : > { %851 = vst.msk [vmem:[#allocation3 + $0x60] sm:$0xff] %vm844_vm4, %v761_v49 }
  0xaf   : > { %970 = vrot.lane.b32.xlu0 %v3370_v20, %s2878_s17  ;;  %v759_v23 = vpop.permute.xlu1 %758 }
  0xb0   : > { %850 = vst.msk [vmem:[#allocation3 + $0x50] sm:$0xff] %vm844_vm4, %v759_v23  ;;  %v4651_v23 = vld [vmem:[#allocation18_spill] sm:$0xff] }
  0xb1   : > { %v765_v2 = vpop.permute.xlu0 %764  ;;  %1634 = vrot.lane.b32.xlu1 %v3238_v52, %s2883_s13 }
  0xb2   : > { %853 = vst.msk [vmem:[#allocation3 + $0x80] sm:$0xff] %vm844_vm4, %v765_v2 }
  0xb3   : > { %1101 = vrot.lane.b32.xlu0 %v3128_v40, %s2879_s20  ;;  %v763_v24 = vpop.permute.xlu1 %762 }
  0xb4   : > { %852 = vst.msk [vmem:[#allocation3 + $0x70] sm:$0xff] %vm844_vm4, %v763_v24 }
  0xb5   : > { %v769_v15 = vpop.permute.xlu0 %768  ;;  %972 = vrot.lane.b32.xlu1 %v3387_v53, %s2878_s17 }
  0xb6   : > { %855 = vst.msk [vmem:[#allocation3 + $0xa0] sm:$0xff] %vm844_vm4, %v769_v15 }
  0xb7   : > { %1236 = vrot.lane.b32.xlu0 %v3173_v62, %s2880_s26  ;;  %v767_v20 = vpop.permute.xlu1 %766 }
  0xb8   : > { %854 = vst.msk [vmem:[#allocation3 + $0x90] sm:$0xff] %vm844_vm4, %v767_v20 }
  0xb9   : > { %v773_v48 = vpop.permute.xlu0 %772  ;;  %1103 = vrot.lane.b32.xlu1 %v3138_v46, %s2879_s20 }
  0xba   : > { %857 = vst.msk [vmem:[#allocation3 + $0xc0] sm:$0xff] %vm844_vm4, %v773_v48 }
  0xbb   : > { %1370 = vrot.lane.b32.xlu0 %v3390_v6, %s2881_s30  ;;  %v771_v40 = vpop.permute.xlu1 %770 }
  0xbc   : > { %856 = vst.msk [vmem:[#allocation3 + $0xb0] sm:$0xff] %vm844_vm4, %v771_v40  ;;  %v4652_v40 = vld [vmem:[#allocation6_spill] sm:$0xff] }
  0xbd   : > { %v777_v53 = vpop.permute.xlu0 %776  ;;  %1238 = vrot.lane.b32.xlu1 %v3238_v52, %s2880_s26  ;;  %v914_v52 = vrot.slane %v3209_v29, 2 }
  0xbe   : > { %859 = vst.msk [vmem:[#allocation3 + $0xe0] sm:$0xff] %vm844_vm4, %v777_v53 }
  0xbf   : > { %1501 = vrot.lane.b32.xlu0 %v3163_v59, %s2882_s10  ;;  %v775_v62 = vpop.permute.xlu1 %774  ;;  %v3701_v44 = vsel %vm877_vm3, %v913_v35, %v914_v52  ;;  %v3704_v13 = vsel %vm877_vm3, %v914_v52, %v916_v16  ;;  %v1855_v35 = vld [vmem:[#allocation3 + $0x108] sm:$0xff]  ;;  %v1857_v52 = vld [vmem:[#allocation3 + $0x118] sm:$0xff] }
  0xc0   : > { %858 = vst.msk [vmem:[#allocation3 + $0xd0] sm:$0xff] %vm844_vm4, %v775_v62 }
  0xc1   : > { %v781_v46 = vpop.permute.xlu0 %780  ;;  %1372 = vrot.lane.b32.xlu1 %v3393_v42, %s2881_s30  ;;  %1800 = vst.msk [vmem:[#allocation3 + $0xa8] sm:$0xff] %vm270_vm0, %v3701_v44  ;;  %1801 = vst.msk [vmem:[#allocation3 + $0xb8] sm:$0xff] %vm270_vm0, %v3704_v13 }
  0xc2   : > { %861 = vst.msk [vmem:[#allocation3 + $0x100] sm:$0xff] %vm844_vm4, %v781_v46  ;;  %v4653_v46 = vld [vmem:[#allocation16_spill] sm:$0xff] }
  0xc3   : > { %1636 = vrot.lane.b32.xlu0 %v3214_v37, %s2883_s13  ;;  %v779_v45 = vpop.permute.xlu1 %778 }
  0xc4   : > { %860 = vst.msk [vmem:[#allocation3 + $0xf0] sm:$0xff] %vm844_vm4, %v779_v45  ;;  %v1903_v45 = vpack.c.bf16 %v1857_v52, %v1855_v35  ;;  %v3866_v52 = vld [vmem:[%s4585_s2] ss:$0 sm:$0xff] }
  0xc5   : > { %v785_v17 = vpop.permute.xlu0 %784  ;;  %1503 = vrot.lane.b32.xlu1 %v3165_v60, %s2882_s10 }
  0xc6   : > { %863 = vst.msk [vmem:[#allocation3 + $0x120] sm:$0xff] %vm844_vm4, %v785_v17  ;;  %2666 = vmatprep.mubr.msk.bf16.mxu1 %vm270_vm0, %v1903_v45 }
  0xc7   : > { %974 = vrot.lane.b32.xlu0 %v3390_v6, %s2878_s17  ;;  %v783_v38 = vpop.permute.xlu1 %782 }
  0xc8   : > { %862 = vst.msk [vmem:[#allocation3 + $0x110] sm:$0xff] %vm844_vm4, %v783_v38  ;;  %v4656_v38 = vld [vmem:[#allocation14_spill] sm:$0xff] }
  0xc9   : > { %v789_v26 = vpop.permute.xlu0 %788  ;;  %1638 = vrot.lane.b32.xlu1 %v3265_v21, %s2883_s13 }
  0xca   : > { %865 = vst.msk [vmem:[#allocation3 + $0x140] sm:$0xff] %vm844_vm4, %v789_v26  ;;  %v939_v26 = vrot.slane %v4656_v38, 2 }
  0xcb   : > { %990 = vrot.lane.b32.xlu0 %v3415_v4, %s2878_s17  ;;  %v787_v6 = vpop.permute.xlu1 %786 }
  0xcc   : > { %864 = vst.msk [vmem:[#allocation3 + $0x130] sm:$0xff] %vm844_vm4, %v787_v6  ;;  %v941_v6 = vrot.slane %v3458_v18, 2 }
  0xcd   : > { %v793_v8 = vpop.permute.xlu0 %792  ;;  %976 = vrot.lane.b32.xlu1 %v3393_v42, %s2878_s17 }
  0xce   : > { %867 = vst.msk [vmem:[#allocation3 + $0x160] sm:$0xff] %vm844_vm4, %v793_v8 }
  0xcf   : > { %1105 = vrot.lane.b32.xlu0 %v3163_v59, %s2879_s20  ;;  %v791_v1 = vpop.permute.xlu1 %790 }
  0xd0   : > { %866 = vst.msk [vmem:[#allocation3 + $0x150] sm:$0xff] %vm844_vm4, %v791_v1 }
  0xd1   : > { %v797_v54 = vpop.permute.xlu0 %796  ;;  %992 = vrot.lane.b32.xlu1 %v3422_v3, %s2878_s17 }
  0xd2   : > { %869 = vst.msk [vmem:[#allocation3 + $0x180] sm:$0xff] %vm844_vm4, %v797_v54  ;;  %v1827_v54 = vld [vmem:[#allocation3 + $0x28] sm:$0xff] }
  0xd3   : > { %1121 = vrot.lane.b32.xlu0 %v3272_v33, %s2879_s20  ;;  %v795_v41 = vpop.permute.xlu1 %794 }
  0xd4   : > { %868 = vst.msk [vmem:[#allocation3 + $0x170] sm:$0xff] %vm844_vm4, %v795_v41  ;;  %v1829_v41 = vld [vmem:[#allocation3 + $0x38] sm:$0xff] }
  0xd5   : > { %v801_v42 = vpop.permute.xlu0 %800  ;;  %1107 = vrot.lane.b32.xlu1 %v3165_v60, %s2879_s20 }
  0xd6   : > { %871 = vst.msk [vmem:[#allocation3 + $0x1a0] sm:$0xff] %vm844_vm4, %v801_v42  ;;  %v3806_v42 = vsel %vm877_vm3, %v938_v25, %v939_v26 }
  0xd7   : > { %1240 = vrot.lane.b32.xlu0 %v3214_v37, %s2880_s26  ;;  %v799_v59 = vpop.permute.xlu1 %798  ;;  %1810 = vst.msk [vmem:[#allocation3 + $0x148] sm:$0xff] %vm270_vm0, %v3806_v42 }
  0xd8   : > { %870 = vst.msk [vmem:[#allocation3 + $0x190] sm:$0xff] %vm844_vm4, %v799_v59  ;;  %v3809_v59 = vsel %vm877_vm3, %v939_v26, %v941_v6 }
  0xd9   : > { %v959_v27 = vpop.permute.xlu0 %958  ;;  %1123 = vrot.lane.b32.xlu1 %v3282_v47, %s2879_s20  ;;  %1811 = vst.msk [vmem:[#allocation3 + $0x158] sm:$0xff] %vm270_vm0, %v3809_v59 }
  0xda   : > { %1055 = vst.msk [vmem:[#allocation3] sm:$0xff] %vm1054_vm5, %v959_v27 }
  0xdb   : > { %1256 = vrot.lane.b32.xlu0 %v4650_v30, %s2880_s26  ;;  %v803_v60 = vpop.permute.xlu1 %802 }
  0xdc   : > { %872 = vst.msk [vmem:[#allocation3 + $0x1b0] sm:$0xff] %vm844_vm4, %v803_v60  ;;  %v1889_v60 = vpack.c.bf16 %v1829_v41, %v1827_v54  ;;  %v4658_v41 = vld [vmem:[#allocation17_spill] sm:$0xff] }
  0xdd   : > { %v1090_v32 = vpop.permute.xlu0 %1089  ;;  %1242 = vrot.lane.b32.xlu1 %v3265_v21, %s2880_s26 }
  0xde   : > { %1186 = vst.msk [vmem:[#allocation3] sm:$0xff] %vm1185_vm6, %v1090_v32 }
  0xdf   : > { %1374 = vrot.lane.b32.xlu0 %v3501_v19, %s2881_s30  ;;  %v961_v37 = vpop.permute.xlu1 %960 }
  0xe0   : > { %1056 = vst.msk [vmem:[#allocation3 + $0x10] sm:$0xff] %vm1054_vm5, %v961_v37 }
  0xe1   : > { %v1225_v49 = vpop.permute.xlu0 %1224  ;;  %1258 = vrot.lane.b32.xlu1 %v4651_v23, %s2880_s26 }
  0xe2   : > { %1321 = vst.msk [vmem:[#allocation3] sm:$0xff] %vm1320_vm7, %v1225_v49 }
  0xe3   : > { %1390 = vrot.lane.b32.xlu0 %v3526_v12, %s2881_s30  ;;  %v1092_v21 = vpop.permute.xlu1 %1091 }
  0xe4   : > { %1187 = vst.msk [vmem:[#allocation3 + $0x10] sm:$0xff] %vm1185_vm6, %v1092_v21 }
  0xe5   : > { %v1359_v2 = vpop.permute.xlu0 %1358  ;;  %1376 = vrot.lane.b32.xlu1 %v3504_v36, %s2881_s30 }
  0xe6   : > { %1455 = vst.msk [vmem:[#allocation3] sm:$0xff] %vm1454_vm8, %v1359_v2  ;;  %v2818_v2 = vld [vmem:[%s3004_s29 + $0x68] sm:$0xff]  }
  0xe7   : > { %1505 = vrot.lane.b32.xlu0 %v3179_v63, %s2882_s10  ;;  %v1227_v24 = vpop.permute.xlu1 %1226 }
  0xe8   : > { %1322 = vst.msk [vmem:[#allocation3 + $0x10] sm:$0xff] %vm1320_vm7, %v1227_v24  ;;  %v2796_v24 = vunpack.c.l.bf16 %v2818_v2 }
  0xe9   : > { %v1490_v15 = vpop.permute.xlu0 %1489  ;;  %1392 = vrot.lane.b32.xlu1 %v3529_v50, %s2881_s30 }
  0xea   : > { %1586 = vst.msk [vmem:[#allocation3] sm:$0xff] %vm1585_vm9, %v1490_v15  ;;  %v2797_v15 = vunpack.c.h.bf16 %v2818_v2 }
  0xeb   : > { %1521 = vrot.lane.b32.xlu0 %v3299_v61, %s2882_s10  ;;  %v1361_v20 = vpop.permute.xlu1 %1360 }
  0xec   : > { %1456 = vst.msk [vmem:[#allocation3 + $0x10] sm:$0xff] %vm1454_vm8, %v1361_v20  ;;  %v3855_v20 = vld [vmem:[%s4584_s1] ss:$0 sm:$0xff] }
  0xed   : > { %v1625_v48 = vpop.permute.xlu0 %1624  ;;  %1507 = vrot.lane.b32.xlu1 %v3181_v0, %s2882_s10 }
  0xee   : > { %1721 = vst.msk [vmem:[#allocation3] sm:$0xff] %vm1720_vm10, %v1625_v48  ;;  %v423_v48 = vmul.f32 %v3855_v20, %v2796_v24  ;;  %v2819_v24 = vld [vmem:[%s3004_s29 + $0x70] sm:$0xff]  }
  0xef   : > { %1640 = vrot.lane.b32.xlu0 %v4652_v40, %s2883_s13  ;;  %v1492_v53 = vpop.permute.xlu1 %1491 }
  0xf0   : > { %1587 = vst.msk [vmem:[#allocation3 + $0x10] sm:$0xff] %vm1585_vm9, %v1492_v53 }
  0xf1   : > { %v963_v62 = vpop.permute.xlu0 %962  ;;  %1523 = vrot.lane.b32.xlu1 %v3312_v10, %s2882_s10 }
  0xf2   : > { %1057 = vst.msk [vmem:[#allocation3 + $0x20] sm:$0xff] %vm1054_vm5, %v963_v62  ;;  %v1831_v62 = vld [vmem:[#allocation3 + $0x48] sm:$0xff] }
  0xf3   : > { %1656 = vrot.lane.b32.xlu0 %v4653_v46, %s2883_s13  ;;  %v1627_v16 = vpop.permute.xlu1 %1626 }
  0xf4   : > { %1722 = vst.msk [vmem:[#allocation3 + $0x10] sm:$0xff] %vm1720_vm10, %v1627_v16  ;;  %v462_v16 = vadd.f32 %v3866_v52, %v423_v48  ;;  %v2801_v48 = vunpack.c.h.bf16 %v2819_v24 }
  0xf5   : > { %v1094_v17 = vpop.permute.xlu0 %1093  ;;  %1642 = vrot.lane.b32.xlu1 %v4654_v22, %s2883_s13 }
  0xf6   : > { %1188 = vst.msk [vmem:[#allocation3 + $0x20] sm:$0xff] %vm1185_vm6, %v1094_v17  ;;  %v494_v26 = vmax.f32 %v462_v16, 0.0  ;;  %v1837_v16 = vld [vmem:[#allocation3 + $0x78] sm:$0xff] }
  0xf7   : > { %978 = vrot.lane.b32.xlu0 %v3501_v19, %s2878_s17  ;;  %v965_v8 = vpop.permute.xlu1 %964  ;;  %v1822_v19 = vld [vmem:[#allocation3] sm:$0xff] }
  0xf8   : > { %1058 = vst.msk [vmem:[#allocation3 + $0x30] sm:$0xff] %vm1054_vm5, %v965_v8 }
  0xf9   : > { %v1229_v1 = vpop.permute.xlu0 %1228  ;;  %1658 = vrot.lane.b32.xlu1 %v3449_v5, %s2883_s13  ;;  %527 = vst.msk [vmem:[#allocation2 + $0x151] sm:$0xff] %vm270_vm0, %v494_v26 }
  0xfa   : > { %1323 = vst.msk [vmem:[#allocation3 + $0x20] sm:$0xff] %vm1320_vm7, %v1229_v1  ;;  %v4657_v1 = vld [vmem:[#allocation15_spill] sm:$0xff] }
  0xfb   : > { %994 = vrot.lane.b32.xlu0 %v3526_v12, %s2878_s17  ;;  %v1096_v18 = vpop.permute.xlu1 %1095  ;;  %v1824_v27 = vld [vmem:[#allocation3 + $0x10] sm:$0xff]  ;;  %v943_v54 = vrot.slane %v4657_v1, 2 }
  0xfc   : > { %1189 = vst.msk [vmem:[#allocation3 + $0x30] sm:$0xff] %vm1185_vm6, %v1096_v18  ;;  %v1886_v32 = vpack.c.bf16 %v1824_v27, %v1822_v19  ;;  %v944_v19 = vrot.slane %v4658_v41, 2  ;;  %v946_v18 = vrot.slane %v3476_v39, 2 }
  0xfd   : > { %v1363_v37 = vpop.permute.xlu0 %1362  ;;  %980 = vrot.lane.b32.xlu1 %v3504_v36, %s2878_s17 }
  0xfe   : > { %1457 = vst.msk [vmem:[#allocation3 + $0x20] sm:$0xff] %vm1454_vm8, %v1363_v37  ;;  %2071 = vmatmul.mubr.bf16.vlgmr.msra.gmra.mrb[0].mxu0 %v1886_v32  ;;  %v3886_v32 = vsel %vm877_vm3, %v943_v54, %v944_v19  ;;  %v3889_v37 = vsel %vm877_vm3, %v944_v19, %v946_v18 }
  0xff   : > { %1109 = vrot.lane.b32.xlu0 %v3179_v63, %s2879_s20  ;;  %v1231_v49 = vpop.permute.xlu1 %1230  ;;  %2659 = vmatprep.mubr.msk.bf16.mxu0 %vm270_vm0, %v1889_v60  ;;  %1812 = vst.msk [vmem:[#allocation3 + $0x168] sm:$0xff] %vm270_vm0, %v3886_v32  ;;  %1813 = vst.msk [vmem:[#allocation3 + $0x178] sm:$0xff] %vm270_vm0, %v3889_v37 }
 0x100   : > { %1324 = vst.msk [vmem:[#allocation3 + $0x30] sm:$0xff] %vm1320_vm7, %v1231_v49 }
 0x101   : > { %v1494_v12 = vpop.permute.xlu0 %1493  ;;  %996 = vrot.lane.b32.xlu1 %v3529_v50, %s2878_s17 }
 0x102   : > { %1588 = vst.msk [vmem:[#allocation3 + $0x20] sm:$0xff] %vm1585_vm9, %v1494_v12  ;;  %v3901_v12 = vld [vmem:[#allocation2 + $0x150] sm:$0xff] }
 0x103   : > { %1125 = vrot.lane.b32.xlu0 %v3299_v61, %s2879_s20  ;;  %v1365_v36 = vpop.permute.xlu1 %1364  ;;  %615 = vst.msk [vmem:[#allocation3 + $0x1c0] sm:$0xff] %vm270_vm0, %v3901_v12 }
 0x104   : > { %1458 = vst.msk [vmem:[#allocation3 + $0x30] sm:$0xff] %vm1454_vm8, %v1365_v36 }
 0x105   : > { %v1629_v21 = vpop.permute.xlu0 %1628  ;;  %1111 = vrot.lane.b32.xlu1 %v3181_v0, %s2879_s20 }
 0x106   : > { %1723 = vst.msk [vmem:[#allocation3 + $0x20] sm:$0xff] %vm1720_vm10, %v1629_v21  ;;  %v4659_v21 = vld [vmem:[#allocation7_spill] sm:$0xff] }
 0x107   : > { %1244 = vrot.lane.b32.xlu0 %v4652_v40, %s2880_s26  ;;  %v1496_v63 = vpop.permute.xlu1 %1495  ;;  %v424_v40 = vmul.f32 %v3855_v20, %v2797_v15  ;;  %v4661_v15 = vld [vmem:[#allocation10_spill] sm:$0xff] }
 0x108   : > { %1589 = vst.msk [vmem:[#allocation3 + $0x30] sm:$0xff] %vm1585_vm9, %v1496_v63 }
 0x109   : > { %v967_v50 = vpop.permute.xlu0 %966  ;;  %1127 = vrot.lane.b32.xlu1 %v3312_v10, %s2879_s20  ;;  %v463_v45 = vadd.f32 %v3866_v52, %v424_v40 }
 0x10a   : > { %1059 = vst.msk [vmem:[#allocation3 + $0x40] sm:$0xff] %vm1054_vm5, %v967_v50 }
 0x10b   : > { %1260 = vrot.lane.b32.xlu0 %v4653_v46, %s2880_s26  ;;  %v1631_v61 = vpop.permute.xlu1 %1630  ;;  %v1833_v46 = vld [vmem:[#allocation3 + $0x58] sm:$0xff] }
 0x10c   : > { %1724 = vst.msk [vmem:[#allocation3 + $0x30] sm:$0xff] %vm1720_vm10, %v1631_v61  ;;  %v1891_v25 = vpack.c.bf16 %v1833_v46, %v1831_v62  ;;  %v4660_v61 = vld [vmem:[#allocation19_spill] sm:$0xff]  ;;  %v426_v62 = vmul.f32 %v3855_v20, %v2801_v48 }
 0x10d   : > { %v1098_v0 = vpop.permute.xlu0 %1097  ;;  %1246 = vrot.lane.b32.xlu1 %v4654_v22, %s2880_s26  ;;  %v1826_v35 = vld [vmem:[#allocation3 + $0x20] sm:$0xff]  ;;  %v1841_v48 = vld [vmem:[#allocation3 + $0x98] sm:$0xff] }
 0x10e   : > { %1190 = vst.msk [vmem:[#allocation3 + $0x40] sm:$0xff] %vm1185_vm6, %v1098_v0 }
 0x10f   : > { %1378 = vrot.lane.b32.xlu0 %v3610_v51, %s2881_s30  ;;  %v969_v10 = vpop.permute.xlu1 %968 }
 0x110   : > { %1060 = vst.msk [vmem:[#allocation3 + $0x50] sm:$0xff] %vm1054_vm5, %v969_v10  ;;  %v2800_v10 = vunpack.c.l.bf16 %v2819_v24 }
 0x111   : > { %v1233_v53 = vpop.permute.xlu0 %1232  ;;  %1262 = vrot.lane.b32.xlu1 %v3449_v5, %s2880_s26  ;;  %v495_v5 = vmax.f32 %v463_v45, 0.0  ;;  %v4662_v45 = vld [vmem:[#allocation21_spill] sm:$0xff] }
 0x112   : > { %1325 = vst.msk [vmem:[#allocation3 + $0x40] sm:$0xff] %vm1320_vm7, %v1233_v53  ;;  %v425_v53 = vmul.f32 %v3855_v20, %v2800_v10  ;;  %v1839_v10 = vld [vmem:[#allocation3 + $0x88] sm:$0xff] }
 0x113   : > { %1394 = vrot.lane.b32.xlu0 %v3627_v31, %s2881_s30  ;;  %v1100_v17 = vpop.permute.xlu1 %1099  ;;  %v1828_v22 = vld [vmem:[#allocation3 + $0x30] sm:$0xff]  ;;  %528 = vst.msk [vmem:[#allocation2 + $0x159] sm:$0xff] %vm270_vm0, %v495_v5 }
 0x114   : > { %1191 = vst.msk [vmem:[#allocation3 + $0x50] sm:$0xff] %vm1185_vm6, %v1100_v17  ;;  %v1888_v6 = vpack.c.bf16 %v1828_v22, %v1826_v35  ;;  %v1835_v35 = vld [vmem:[#allocation3 + $0x68] sm:$0xff]  ;;  %v464_v22 = vadd.f32 %v3866_v52, %v425_v53 }
 0x115   : > { %v1367_v8 = vpop.permute.xlu0 %1366  ;;  %1380 = vrot.lane.b32.xlu1 %v3613_v56, %s2881_s30  ;;  %v1893_v5 = vpack.c.bf16 %v1837_v16, %v1835_v35  ;;  %v1895_v35 = vpack.c.bf16 %v1841_v48, %v1839_v10 }
 0x116   : > { %1459 = vst.msk [vmem:[#allocation3 + $0x40] sm:$0xff] %vm1454_vm8, %v1367_v8  ;;  %2079 = vmatmul.mubr.bf16.gmra.mrb[4].mxu0 %v1888_v6  ;;  %v496_v6 = vmax.f32 %v464_v22, 0.0 }
 0x117   : > { %1509 = vrot.lane.b32.xlu0 %v3207_v28, %s2882_s10  ;;  %v1235_v27 = vpop.permute.xlu1 %1234  ;;  %2660 = vmatprep.mubr.msk.bf16.mxu0 %vm270_vm0, %v1891_v25 }
 0x118   : > { %1326 = vst.msk [vmem:[#allocation3 + $0x50] sm:$0xff] %vm1320_vm7, %v1235_v27 }
 0x119   : > { %v1498_v60 = vpop.permute.xlu0 %1497  ;;  %1396 = vrot.lane.b32.xlu1 %v3630_v58, %s2881_s30  ;;  %529 = vst.msk [vmem:[#allocation2 + $0x169] sm:$0xff] %vm270_vm0, %v496_v6 }
 0x11a   : > { %1590 = vst.msk [vmem:[#allocation3 + $0x40] sm:$0xff] %vm1585_vm9, %v1498_v60  ;;  %v3903_v36 = vld [vmem:[#allocation2 + $0x158] sm:$0xff]  ;;  %v3941_v18 = vld [vmem:[#allocation2 + $0x160] sm:$0x3] }
 0x11b   : > { %1525 = vrot.lane.b32.xlu0 %v3314_v14, %s2882_s10  ;;  %v1369_v39 = vpop.permute.xlu1 %1368  ;;  %616 = vst.msk [vmem:[#allocation3 + $0x1d0] sm:$0xff] %vm270_vm0, %v3903_v36  ;;  %v949_v27 = vrot.slane %v3903_v36, 2  ;;  %v951_v60 = vrot.slane %v3941_v18, 2 }
 0x11c   : > { %1460 = vst.msk [vmem:[#allocation3 + $0x50] sm:$0xff] %vm1454_vm8, %v1369_v39 }
 0x11d   : > { %v1633_v49 = vpop.permute.xlu0 %1632  ;;  %1511 = vrot.lane.b32.xlu1 %v3209_v29, %s2882_s10 }
 0x11e   : > { %1725 = vst.msk [vmem:[#allocation3 + $0x40] sm:$0xff] %vm1720_vm10, %v1633_v49 }
 0x11f   : > { %1644 = vrot.lane.b32.xlu0 %v4659_v21, %s2883_s13  ;;  %v1500_v63 = vpop.permute.xlu1 %1499 }
 0x120   : > { %1591 = vst.msk [vmem:[#allocation3 + $0x50] sm:$0xff] %vm1585_vm9, %v1500_v63  ;;  %v3956_v63 = vsel %vm877_vm3, %v949_v27, %v951_v60 }
 0x121   : > { %v971_v50 = vpop.permute.xlu0 %970  ;;  %1527 = vrot.lane.b32.xlu1 %v3322_v34, %s2882_s10  ;;  %1815 = vst.msk [vmem:[#allocation3 + $0x198] sm:$0xff] %vm270_vm0, %v3956_v63 }
 0x122   : > { %1061 = vst.msk [vmem:[#allocation3 + $0x60] sm:$0xff] %vm1054_vm5, %v971_v50 }
 0x123   : > { %1660 = vrot.lane.b32.xlu0 %v4660_v61, %s2883_s13  ;;  %v1635_v0 = vpop.permute.xlu1 %1634 }
 0x124   : > { %1726 = vst.msk [vmem:[#allocation3 + $0x50] sm:$0xff] %vm1720_vm10, %v1635_v0  ;;  %v3968_v0 = vld [vmem:[#allocation2 + $0x168] sm:$0xff] }
 0x125   : > { %v1102_v2 = vpop.permute.xlu0 %1101  ;;  %1646 = vrot.lane.b32.xlu1 %v4661_v15, %s2883_s13  ;;  %v1830_v17 = vld [vmem:[#allocation3 + $0x40] sm:$0xff]  ;;  %617 = vst.msk [vmem:[#allocation3 + $0x1e0] sm:$0xff] %vm270_vm0, %v3968_v0 }
 0x126   : > { %1192 = vst.msk [vmem:[#allocation3 + $0x60] sm:$0xff] %vm1185_vm6, %v1102_v2 }
 0x127   : > { %982 = vrot.lane.b32.xlu0 %v3610_v51, %s2878_s17  ;;  %v973_v40 = vpop.permute.xlu1 %972  ;;  %v465_v51 = vadd.f32 %v3866_v52, %v426_v62 }
 0x128   : > { %1062 = vst.msk [vmem:[#allocation3 + $0x70] sm:$0xff] %vm1054_vm5, %v973_v40  ;;  %v2820_v40 = vld [vmem:[%s3004_s29 + $0x78] sm:$0xff]  }
 0x129   : > { %v1237_v46 = vpop.permute.xlu0 %1236  ;;  %1662 = vrot.lane.b32.xlu1 %v4662_v45, %s2883_s13  ;;  %v497_v8 = vmax.f32 %v465_v51, 0.0  ;;  %v2804_v53 = vunpack.c.l.bf16 %v2820_v40 }
 0x12a   : > { %1327 = vst.msk [vmem:[#allocation3 + $0x60] sm:$0xff] %vm1320_vm7, %v1237_v46 }
 0x12b   : > { %998 = vrot.lane.b32.xlu0 %v3627_v31, %s2878_s17  ;;  %v1104_v25 = vpop.permute.xlu1 %1103  ;;  %v1832_v26 = vld [vmem:[#allocation3 + $0x50] sm:$0xff]  ;;  %530 = vst.msk [vmem:[#allocation2 + $0x171] sm:$0xff] %vm270_vm0, %v497_v8  ;;  %v948_v31 = vrot.slane %v3901_v12, 2  ;;  %v427_v16 = vmul.f32 %v3855_v20, %v2804_v53 }
 0x12c   : > { %1193 = vst.msk [vmem:[#allocation3 + $0x70] sm:$0xff] %vm1185_vm6, %v1104_v25  ;;  %v1890_v54 = vpack.c.bf16 %v1832_v26, %v1830_v17  ;;  %v4663_v26 = vld [vmem:[#allocation4_spill] sm:$0xff] }
 0x12d   : > { %v1371_v19 = vpop.permute.xlu0 %1370  ;;  %984 = vrot.lane.b32.xlu1 %v3613_v56, %s2878_s17  ;;  %v3953_v49 = vsel %vm877_vm3, %v948_v31, %v949_v27 }
 0x12e   : > { %1461 = vst.msk [vmem:[#allocation3 + $0x60] sm:$0xff] %vm1454_vm8, %v1371_v19  ;;  %2087 = vmatmul.mubr.bf16.gmra.mrb[8].mxu0 %v1890_v54 }
 0x12f   : > { %1113 = vrot.lane.b32.xlu0 %v3207_v28, %s2879_s20  ;;  %v1239_v39 = vpop.permute.xlu1 %1238  ;;  %2661 = vmatprep.mubr.msk.bf16.mxu0 %vm270_vm0, %v1893_v5  ;;  %1814 = vst.msk [vmem:[#allocation3 + $0x188] sm:$0xff] %vm270_vm0, %v3953_v49 }
 0x130   : > { %1328 = vst.msk [vmem:[#allocation3 + $0x70] sm:$0xff] %vm1320_vm7, %v1239_v39 }
 0x131   : > { %v1502_v56 = vpop.permute.xlu0 %1501  ;;  %1000 = vrot.lane.b32.xlu1 %v3630_v58, %s2878_s17 }
 0x132   : > { %1592 = vst.msk [vmem:[#allocation3 + $0x60] sm:$0xff] %vm1585_vm9, %v1502_v56  ;;  %v3970_v2 = vld [vmem:[#allocation2 + $0x170] sm:$0xff]  ;;  %v4015_v54 = vld [vmem:[#allocation2 + $0x178] sm:$0x3] }
 0x133   : > { %1129 = vrot.lane.b32.xlu0 %v3314_v14, %s2879_s20  ;;  %v1373_v28 = vpop.permute.xlu1 %1372  ;;  %618 = vst.msk [vmem:[#allocation3 + $0x1f0] sm:$0xff] %vm270_vm0, %v3970_v2  ;;  %v954_v19 = vrot.slane %v3970_v2, 2  ;;  %v956_v31 = vrot.slane %v4015_v54, 2 }
 0x134   : > { %1462 = vst.msk [vmem:[#allocation3 + $0x70] sm:$0xff] %vm1454_vm8, %v1373_v28  ;;  %v4664_v28 = vld [vmem:[#allocation5_spill] sm:$0xff] }
 0x135   : > { %v1637_v50 = vpop.permute.xlu0 %1636  ;;  %1115 = vrot.lane.b32.xlu1 %v3209_v29, %s2879_s20  ;;  %v4029_v56 = vsel %vm877_vm3, %v954_v19, %v956_v31 }
 0x136   : > { %1727 = vst.msk [vmem:[#allocation3 + $0x60] sm:$0xff] %vm1720_vm10, %v1637_v50  ;;  %v4665_v50 = vld [vmem:[#allocation9_spill] sm:$0xff] }
 0x137   : > { %1248 = vrot.lane.b32.xlu0 %v4659_v21, %s2880_s26  ;;  %v1504_v14 = vpop.permute.xlu1 %1503  ;;  %1817 = vst.msk [vmem:[#allocation3 + $0x1b8] sm:$0xff] %vm270_vm0, %v4029_v56 }
 0x138   : > { %1593 = vst.msk [vmem:[#allocation3 + $0x70] sm:$0xff] %vm1585_vm9, %v1504_v14 }
 0x139   : > { %v975_v58 = vpop.permute.xlu0 %974  ;;  %1131 = vrot.lane.b32.xlu1 %v3322_v34, %s2879_s20 }
 0x13a   : > { %1063 = vst.msk [vmem:[#allocation3 + $0x80] sm:$0xff] %vm1054_vm5, %v975_v58 }
 0x13b   : > { %1264 = vrot.lane.b32.xlu0 %v4660_v61, %s2880_s26  ;;  %v1639_v29 = vpop.permute.xlu1 %1638 }
 0x13c   : > { %1728 = vst.msk [vmem:[#allocation3 + $0x70] sm:$0xff] %vm1720_vm10, %v1639_v29  ;;  %v4666_v29 = vld [vmem:[#allocation20_spill] sm:$0xff] }
 0x13d   : > { %v991_v24 = vpop.permute.xlu0 %990  ;;  %1250 = vrot.lane.b32.xlu1 %v4661_v15, %s2880_s26  ;;  %v1834_v61 = vld [vmem:[#allocation3 + $0x60] sm:$0xff]  ;;  %v2805_v15 = vunpack.c.h.bf16 %v2820_v40 }
 0x13e   : > { %1071 = vst.msk [vmem:[#allocation3 + $0x100] sm:$0xff] %vm1054_vm5, %v991_v24 }
 0x13f   : > { %1382 = vrot.lane.b32.xlu0 %v3701_v44, %s2881_s30  ;;  %v977_v21 = vpop.permute.xlu1 %976  ;;  %v428_v17 = vmul.f32 %v3855_v20, %v2805_v15 }
 0x140   : > { %1064 = vst.msk [vmem:[#allocation3 + $0x90] sm:$0xff] %vm1054_vm5, %v977_v21 }
 0x141   : > { %v1106_v34 = vpop.permute.xlu0 %1105  ;;  %1266 = vrot.lane.b32.xlu1 %v4662_v45, %s2880_s26  ;;  %v466_v45 = vadd.f32 %v3866_v52, %v427_v16  ;;  %v467_v25 = vadd.f32 %v3866_v52, %v428_v17  ;;  %v953_v52 = vrot.slane %v3968_v0, 2 }
 0x142   : > { %1194 = vst.msk [vmem:[#allocation3 + $0x80] sm:$0xff] %vm1185_vm6, %v1106_v34  ;;  %v4667_v34 = vld [vmem:[#allocation11_spill] sm:$0xff] }
 0x143   : > { %1398 = vrot.lane.b32.xlu0 %v3720_v55, %s2881_s30  ;;  %v993_v62 = vpop.permute.xlu1 %992  ;;  %v1836_v46 = vld [vmem:[#allocation3 + $0x70] sm:$0xff]  ;;  %v498_v20 = vmax.f32 %v466_v45, 0.0  ;;  %v499_v6 = vmax.f32 %v467_v25, 0.0  ;;  %v4026_v39 = vsel %vm877_vm3, %v953_v52, %v954_v19 }
 0x144   : > { %1072 = vst.msk [vmem:[#allocation3 + $0x110] sm:$0xff] %vm1054_vm5, %v993_v62  ;;  %v1892_v22 = vpack.c.bf16 %v1836_v46, %v1834_v61 }
 0x145   : > { %v1122_v51 = vpop.permute.xlu0 %1121  ;;  %1384 = vrot.lane.b32.xlu1 %v3704_v13, %s2881_s30  ;;  %531 = vst.msk [vmem:[#allocation2 + $0x181] sm:$0xff] %vm270_vm0, %v498_v20  ;;  %532 = vst.msk [vmem:[#allocation2 + $0x189] sm:$0xff] %vm270_vm0, %v499_v6  ;;  %v4107_v20 = vld [vmem:[#allocation2 + $0x198] sm:$0xff]  ;;  %v4109_v6 = vld [vmem:[#allocation2 + $0x1a0] sm:$0xff] }
 0x146   : > { %1202 = vst.msk [vmem:[#allocation3 + $0x100] sm:$0xff] %vm1185_vm6, %v1122_v51  ;;  %2095 = vmatmul.mubr.bf16.gmra.mrb[12].mxu0 %v1892_v22  ;;  %v1753_v31 = vrot.slane %v4107_v20, 2 }
 0x147   : > { %1513 = vrot.lane.b32.xlu0 %v4663_v26, %s2882_s10  ;;  %v1108_v5 = vpop.permute.xlu1 %1107  ;;  %2662 = vmatprep.mubr.msk.bf16.mxu0 %vm270_vm0, %v1895_v35  ;;  %1816 = vst.msk [vmem:[#allocation3 + $0x1a8] sm:$0xff] %vm270_vm0, %v4026_v39 }
 0x148   : > { %1195 = vst.msk [vmem:[#allocation3 + $0x90] sm:$0xff] %vm1185_vm6, %v1108_v5 }
 0x149   : > { %v1241_v8 = vpop.permute.xlu0 %1240  ;;  %1400 = vrot.lane.b32.xlu1 %v3723_v11, %s2881_s30 }
 0x14a   : > { %1329 = vst.msk [vmem:[#allocation3 + $0x80] sm:$0xff] %vm1320_vm7, %v1241_v8 }
 0x14b   : > { %1529 = vrot.lane.b32.xlu0 %v4655_v57, %s2882_s10  ;;  %v1124_v27 = vpop.permute.xlu1 %1123 }
 0x14c   : > { %1203 = vst.msk [vmem:[#allocation3 + $0x110] sm:$0xff] %vm1185_vm6, %v1124_v27  ;;  %v4070_v15 = vld [vmem:[#allocation2 + $0x180] sm:$0xff]  ;;  %v1754_v27 = vrot.slane %v4109_v6, 2 }
 0x14d   : > { %v1257_v60 = vpop.permute.xlu0 %1256  ;;  %1515 = vrot.lane.b32.xlu1 %v4664_v28, %s2882_s10  ;;  %v1353_v46 = vrot.slane %v4070_v15, 2 }
 0x14e   : > { %1337 = vst.msk [vmem:[#allocation3 + $0x100] sm:$0xff] %vm1320_vm7, %v1257_v60  ;;  %v4113_v60 = vld [vmem:[#allocation2 + $0x1a8] sm:$0x3] }
 0x14f   : > { %1648 = vrot.lane.b32.xlu0 %v4665_v50, %s2883_s13  ;;  %v1243_v14 = vpop.permute.xlu1 %1242 }
 0x150   : > { %1330 = vst.msk [vmem:[#allocation3 + $0x90] sm:$0xff] %vm1320_vm7, %v1243_v14  ;;  %v1859_v14 = vld [vmem:[#allocation3 + $0x128] sm:$0xff] }
 0x151   : > { %v1375_v58 = vpop.permute.xlu0 %1374  ;;  %1531 = vrot.lane.b32.xlu1 %v4656_v38, %s2882_s10 }
 0x152   : > { %1463 = vst.msk [vmem:[#allocation3 + $0x80] sm:$0xff] %vm1454_vm8, %v1375_v58  ;;  %v1861_v58 = vld [vmem:[#allocation3 + $0x138] sm:$0xff] }
 0x153   : > { %1664 = vrot.lane.b32.xlu0 %v4666_v29, %s2883_s13  ;;  %v1259_v24 = vpop.permute.xlu1 %1258 }
 0x154   : > { %1338 = vst.msk [vmem:[#allocation3 + $0x110] sm:$0xff] %vm1320_vm7, %v1259_v24  ;;  %v1755_v24 = vsel %vm877_vm3, %v1753_v31, %v1754_v27 }
 0x155   : > { %v1391_v21 = vpop.permute.xlu0 %1390  ;;  %1650 = vrot.lane.b32.xlu1 %v4667_v34, %s2883_s13  ;;  %1820 = vst.msk [vmem:[#allocation3 + $0x1e8] sm:$0xff] %vm270_vm0, %v1755_v24 }
 0x156   : > { %1471 = vst.msk [vmem:[#allocation3 + $0x100] sm:$0xff] %vm1454_vm8, %v1391_v21 }
 0x157   : > { %986 = vrot.lane.b32.xlu0 %v3701_v44, %s2878_s17  ;;  %v1377_v10 = vpop.permute.xlu1 %1376 }
 0x158   : > { %1464 = vst.msk [vmem:[#allocation3 + $0x90] sm:$0xff] %vm1454_vm8, %v1377_v10 }
 0x159   : > { %v1506_v48 = vpop.permute.xlu0 %1505  ;;  %1666 = vrot.lane.b32.xlu1 %v3492_v7, %s2883_s13 }
 0x15a   : > { %1594 = vst.msk [vmem:[#allocation3 + $0x80] sm:$0xff] %vm1585_vm9, %v1506_v48  ;;  %v1905_v48 = vpack.c.bf16 %v1861_v58, %v1859_v14  ;;  %v1865_v14 = vld [vmem:[#allocation3 + $0x158] sm:$0xff] }
 0x15b   : > { %1002 = vrot.lane.b32.xlu0 %v3720_v55, %s2878_s17  ;;  %v1393_v40 = vpop.permute.xlu1 %1392 }
 0x15c   : > { %1472 = vst.msk [vmem:[#allocation3 + $0x110] sm:$0xff] %vm1454_vm8, %v1393_v40 }
 0x15d   : > { %v1522_v61 = vpop.permute.xlu0 %1521  ;;  %988 = vrot.lane.b32.xlu1 %v3704_v13, %s2878_s17  ;;  %v4072_v13 = vld [vmem:[#allocation2 + $0x188] sm:$0xff] }
 0x15e   : > { %1602 = vst.msk [vmem:[#allocation3 + $0x100] sm:$0xff] %vm1585_vm9, %v1522_v61  ;;  %v1354_v35 = vrot.slane %v4072_v13, 2 }
 0x15f   : > { %1117 = vrot.lane.b32.xlu0 %v4663_v26, %s2879_s20  ;;  %v1508_v44 = vpop.permute.xlu1 %1507  ;;  %v1843_v26 = vld [vmem:[#allocation3 + $0xa8] sm:$0xff] }
 0x160   : > { %1595 = vst.msk [vmem:[#allocation3 + $0x90] sm:$0xff] %vm1585_vm9, %v1508_v44  ;;  %v4087_v22 = vsel %vm877_vm3, %v1353_v46, %v1354_v35 }
 0x161   : > { %v1641_v53 = vpop.permute.xlu0 %1640  ;;  %1004 = vrot.lane.b32.xlu1 %v3723_v11, %s2878_s17  ;;  %v4082_v11 = vld [vmem:[#allocation2 + $0x190] sm:$0x3]  ;;  %1818 = vst.msk [vmem:[#allocation3 + $0x1c8] sm:$0xff] %vm270_vm0, %v4087_v22 }
 0x162   : > { %1729 = vst.msk [vmem:[#allocation3 + $0x80] sm:$0xff] %vm1720_vm10, %v1641_v53  ;;  %v1356_v16 = vrot.slane %v4082_v11, 2 }
 0x163   : > { %1133 = vrot.lane.b32.xlu0 %v4655_v57, %s2879_s20  ;;  %v1524_v55 = vpop.permute.xlu1 %1523 }
 0x164   : > { %1603 = vst.msk [vmem:[#allocation3 + $0x110] sm:$0xff] %vm1585_vm9, %v1524_v55  ;;  %v4095_v51 = vsel %vm877_vm3, %v1354_v35, %v1356_v16  ;;  %v739_v16 = vrot.slane %v3903_v36, 1 }
 0x165   : > { %v1657_v62 = vpop.permute.xlu0 %1656  ;;  %1119 = vrot.lane.b32.xlu1 %v4664_v28, %s2879_s20  ;;  %1819 = vst.msk [vmem:[#allocation3 + $0x1d8] sm:$0xff] %vm270_vm0, %v4095_v51 }
 0x166   : > { %1737 = vst.msk [vmem:[#allocation3 + $0x100] sm:$0xff] %vm1720_vm10, %v1657_v62 }
 0x167   : > { %1252 = vrot.lane.b32.xlu0 %v4665_v50, %s2880_s26  ;;  %v1643_v57 = vpop.permute.xlu1 %1642 }
 0x168   : > { %1730 = vst.msk [vmem:[#allocation3 + $0x90] sm:$0xff] %vm1720_vm10, %v1643_v57 }
 0x169   : > { %v979_v17 = vpop.permute.xlu0 %978  ;;  %1135 = vrot.lane.b32.xlu1 %v4656_v38, %s2879_s20  ;;  %v1845_v38 = vld [vmem:[#allocation3 + $0xb8] sm:$0xff]  ;;  %v1838_v5 = vld [vmem:[#allocation3 + $0x80] sm:$0xff] }
 0x16a   : > { %1065 = vst.msk [vmem:[#allocation3 + $0xa0] sm:$0xff] %vm1054_vm5, %v979_v17  ;;  %v1897_v19 = vpack.c.bf16 %v1845_v38, %v1843_v26  ;;  %v1847_v38 = vld [vmem:[#allocation3 + $0xc8] sm:$0xff] }
 0x16b   : > { %1268 = vrot.lane.b32.xlu0 %v4666_v29, %s2880_s26  ;;  %v1659_v45 = vpop.permute.xlu1 %1658 }
 0x16c   : > { %1738 = vst.msk [vmem:[#allocation3 + $0x110] sm:$0xff] %vm1720_vm10, %v1659_v45 }
 0x16d   : > { %v995_v25 = vpop.permute.xlu0 %994  ;;  %1254 = vrot.lane.b32.xlu1 %v4667_v34, %s2880_s26  ;;  %v1854_v29 = vld [vmem:[#allocation3 + $0x100] sm:$0xff] }
 0x16e   : > { %1073 = vst.msk [vmem:[#allocation3 + $0x120] sm:$0xff] %vm1054_vm5, %v995_v25 }
 0x16f   : > { %1386 = vrot.lane.b32.xlu0 %v3415_v4, %s2881_s30  ;;  %v981_v8 = vpop.permute.xlu1 %980  ;;  %v1840_v52 = vld [vmem:[#allocation3 + $0x90] sm:$0xff]  ;;  %v1756_v4 = vrot.slane %v4113_v60, 2 }
 0x170   : > { %1066 = vst.msk [vmem:[#allocation3 + $0xb0] sm:$0xff] %vm1054_vm5, %v981_v8  ;;  %v1894_v28 = vpack.c.bf16 %v1840_v52, %v1838_v5  ;;  %v1849_v5 = vld [vmem:[#allocation3 + $0xd8] sm:$0xff] }
 0x171   : > { %v1110_v50 = vpop.permute.xlu0 %1109  ;;  %1270 = vrot.lane.b32.xlu1 %v3492_v7, %s2880_s26  ;;  %v1757_v21 = vsel %vm877_vm3, %v1754_v27, %v1756_v4  ;;  %v1899_v31 = vpack.c.bf16 %v1849_v5, %v1847_v38  ;;  %v1867_v38 = vld [vmem:[#allocation3 + $0x168] sm:$0xff]  ;;  %v1869_v5 = vld [vmem:[#allocation3 + $0x178] sm:$0xff] }
 0x172   : > { %1196 = vst.msk [vmem:[#allocation3 + $0xa0] sm:$0xff] %vm1185_vm6, %v1110_v50  ;;  %2103 = vmatmul.mubr.bf16.gmra.mrb[16].mxu0 %v1894_v28  ;;  %v1863_v50 = vld [vmem:[#allocation3 + $0x148] sm:$0xff] }
 0x173   : > { %1402 = vrot.lane.b32.xlu0 %v3806_v42, %s2881_s30  ;;  %v997_v34 = vpop.permute.xlu1 %996  ;;  %v1856_v10 = vld [vmem:[#allocation3 + $0x110] sm:$0xff]  ;;  %2663 = vmatprep.mubr.msk.bf16.mxu0 %vm270_vm0, %v1897_v19  ;;  %1821 = vst.msk [vmem:[#allocation3 + $0x1f8] sm:$0xff] %vm270_vm0, %v1757_v21 }
 0x174   : > { %1074 = vst.msk [vmem:[#allocation3 + $0x130] sm:$0xff] %vm1054_vm5, %v997_v34  ;;  %v1902_v7 = vpack.c.bf16 %v1856_v10, %v1854_v29  ;;  %v1907_v29 = vpack.c.bf16 %v1865_v14, %v1863_v50  ;;  %v743_v10 = vrot.slane %v3968_v0, 1  ;;  %v1909_v14 = vpack.c.bf16 %v1869_v5, %v1867_v38 }
 0x175   : > { %v1126_v40 = vpop.permute.xlu0 %1125  ;;  %1388 = vrot.lane.b32.xlu1 %v3422_v3, %s2881_s30 }
 0x176   : > { %1204 = vst.msk [vmem:[#allocation3 + $0x120] sm:$0xff] %vm1185_vm6, %v1126_v40  ;;  %2135 = vmatmul.mubr.bf16.vlgmr.msra.gmra.mrb[0].mxu1 %v1902_v7 }
 0x177   : > { %1517 = vrot.lane.b32.xlu0 %v3272_v33, %s2882_s10  ;;  %v1112_v61 = vpop.permute.xlu1 %1111  ;;  %2667 = vmatprep.mubr.msk.bf16.mxu1 %vm270_vm0, %v1905_v48  ;;  %v744_v48 = vrot.slane %v3970_v2, 1 }
 0x178   : > { %1197 = vst.msk [vmem:[#allocation3 + $0xb0] sm:$0xff] %vm1185_vm6, %v1112_v61 }
 0x179   : > { %v1245_v44 = vpop.permute.xlu0 %1244  ;;  %1404 = vrot.lane.b32.xlu1 %v3809_v59, %s2881_s30  ;;  %v4232_v40 = vsel %vm667_vm2, %v743_v10, %v744_v48 }
 0x17a   : > { %1331 = vst.msk [vmem:[#allocation3 + $0xa0] sm:$0xff] %vm1320_vm7, %v1245_v44  ;;  %v746_v44 = vrot.slane %v4015_v54, 1 }
 0x17b   : > { %1533 = vrot.lane.b32.xlu0 %v4657_v1, %s2882_s10  ;;  %v1128_v3 = vpop.permute.xlu1 %1127 }
 0x17c   : > { %1205 = vst.msk [vmem:[#allocation3 + $0x130] sm:$0xff] %vm1185_vm6, %v1128_v3 }
 0x17d   : > { %v1261_v53 = vpop.permute.xlu0 %1260  ;;  %1519 = vrot.lane.b32.xlu1 %v3282_v47, %s2882_s10 }
 0x17e   : > { %1339 = vst.msk [vmem:[#allocation3 + $0x120] sm:$0xff] %vm1320_vm7, %v1261_v53 }
 0x17f   : > { %1652 = vrot.lane.b32.xlu0 %v4650_v30, %s2883_s13  ;;  %v1247_v33 = vpop.permute.xlu1 %1246 }
 0x180   : > { %1332 = vst.msk [vmem:[#allocation3 + $0xb0] sm:$0xff] %vm1320_vm7, %v1247_v33  ;;  %v4246_v33 = vsel %vm667_vm2, %v744_v48, %v746_v44 }
 0x181   : > { %v1379_v55 = vpop.permute.xlu0 %1378  ;;  %1535 = vrot.lane.b32.xlu1 %v4658_v41, %s2882_s10 }
 0x182   : > { %1465 = vst.msk [vmem:[#allocation3 + $0xa0] sm:$0xff] %vm1454_vm8, %v1379_v55 }
 0x183   : > { %1668 = vrot.lane.b32.xlu0 %v3479_v9, %s2883_s13  ;;  %v1263_v62 = vpop.permute.xlu1 %1262 }
 0x184   : > { %1340 = vst.msk [vmem:[#allocation3 + $0x130] sm:$0xff] %vm1320_vm7, %v1263_v62 }
 0x185   : > { %v1395_v47 = vpop.permute.xlu0 %1394  ;;  %1654 = vrot.lane.b32.xlu1 %v4651_v23, %s2883_s13 }
 0x186   : > { %1473 = vst.msk [vmem:[#allocation3 + $0x120] sm:$0xff] %vm1454_vm8, %v1395_v47 }
 0x187   : > { %1006 = vrot.lane.b32.xlu0 %v3806_v42, %s2878_s17  ;;  %v1381_v30 = vpop.permute.xlu1 %1380 }
 0x188   : > { %1466 = vst.msk [vmem:[#allocation3 + $0xb0] sm:$0xff] %vm1454_vm8, %v1381_v30 }
 0x189   : > { %v1510_v46 = vpop.permute.xlu0 %1509  ;;  %1670 = vrot.lane.b32.xlu1 %v3519_v43, %s2883_s13 }
 0x18a   : > { %1596 = vst.msk [vmem:[#allocation3 + $0xa0] sm:$0xff] %vm1585_vm9, %v1510_v46 }
 0x18b   : > { %1137 = vrot.lane.b32.xlu0 %v4657_v1, %s2879_s20  ;;  %v1397_v35 = vpop.permute.xlu1 %1396 }
 0x18c   : > { %1474 = vst.msk [vmem:[#allocation3 + $0x130] sm:$0xff] %vm1454_vm8, %v1397_v35 }
 0x18d   : > { %v1526_v23 = vpop.permute.xlu0 %1525  ;;  %1008 = vrot.lane.b32.xlu1 %v3809_v59, %s2878_s17  ;;  %v738_v59 = vrot.slane %v3901_v12, 1 }
 0x18e   : > { %1604 = vst.msk [vmem:[#allocation3 + $0x120] sm:$0xff] %vm1585_vm9, %v1526_v23  ;;  %v1220_v23 = vrot.slane %v4072_v13, 1 }
 0x18f   : > { %1272 = vrot.lane.b32.xlu0 %v3479_v9, %s2880_s26  ;;  %v1512_v42 = vpop.permute.xlu1 %1511  ;;  %v4185_v17 = vsel %vm667_vm2, %v738_v59, %v739_v16  ;;  %v1851_v59 = vld [vmem:[#allocation3 + $0xe8] sm:$0xff] }
 0x190   : > { %1597 = vst.msk [vmem:[#allocation3 + $0xb0] sm:$0xff] %vm1585_vm9, %v1512_v42 }
 0x191   : > { %v1645_v57 = vpop.permute.xlu0 %1644  ;;  %1139 = vrot.lane.b32.xlu1 %v4658_v41, %s2879_s20 }
 0x192   : > { %1731 = vst.msk [vmem:[#allocation3 + $0xa0] sm:$0xff] %vm1720_vm10, %v1645_v57 }
 0x193   : > { %1406 = vrot.lane.b32.xlu0 %v3886_v32, %s2881_s30  ;;  %v1528_v1 = vpop.permute.xlu1 %1527 }
 0x194   : > { %1605 = vst.msk [vmem:[#allocation3 + $0x130] sm:$0xff] %vm1585_vm9, %v1528_v1 }
 0x195   : > { %v1661_v9 = vpop.permute.xlu0 %1660  ;;  %1274 = vrot.lane.b32.xlu1 %v3519_v43, %s2880_s26  ;;  %v741_v43 = vrot.slane %v3941_v18, 1 }
 0x196   : > { %1739 = vst.msk [vmem:[#allocation3 + $0x120] sm:$0xff] %vm1720_vm10, %v1661_v9 }
 0x197   : > { %1537 = vrot.lane.b32.xlu0 %v3901_v12, %s2882_s10  ;;  %v1647_v41 = vpop.permute.xlu1 %1646  ;;  %v4199_v52 = vsel %vm667_vm2, %v739_v16, %v741_v43  ;;  %v1853_v16 = vld [vmem:[#allocation3 + $0xf8] sm:$0xff] }
 0x198   : > { %1732 = vst.msk [vmem:[#allocation3 + $0xb0] sm:$0xff] %vm1720_vm10, %v1647_v41  ;;  %v1222_v41 = vrot.slane %v4082_v11, 1  ;;  %v1901_v43 = vpack.c.bf16 %v1853_v16, %v1851_v59 }
 0x199   : > { %v983_v45 = vpop.permute.xlu0 %982  ;;  %1408 = vrot.lane.b32.xlu1 %v3889_v37, %s2881_s30  ;;  %v1842_v8 = vld [vmem:[#allocation3 + $0xa0] sm:$0xff] }
 0x19a   : > { %1067 = vst.msk [vmem:[#allocation3 + $0xc0] sm:$0xff] %vm1054_vm5, %v983_v45 }
 0x19b   : > { %1672 = vrot.lane.b32.xlu0 %v4185_v17, %s2883_s13  ;;  %v1663_v25 = vpop.permute.xlu1 %1662 }
 0x19c   : > { %1740 = vst.msk [vmem:[#allocation3 + $0x130] sm:$0xff] %vm1720_vm10, %v1663_v25 }
 0x19d   : > { %v999_v26 = vpop.permute.xlu0 %998  ;;  %1539 = vrot.lane.b32.xlu1 %v3903_v36, %s2882_s10  ;;  %v1858_v58 = vld [vmem:[#allocation3 + $0x120] sm:$0xff] }
 0x19e   : > { %1075 = vst.msk [vmem:[#allocation3 + $0x140] sm:$0xff] %vm1054_vm5, %v999_v26 }
 0x19f   : > { %1010 = vrot.lane.b32.xlu0 %v3886_v32, %s2878_s17  ;;  %v985_v19 = vpop.permute.xlu1 %984  ;;  %v1844_v18 = vld [vmem:[#allocation3 + $0xb0] sm:$0xff] }
 0x1a0   : > { %1068 = vst.msk [vmem:[#allocation3 + $0xd0] sm:$0xff] %vm1054_vm5, %v985_v19  ;;  %v1896_v27 = vpack.c.bf16 %v1844_v18, %v1842_v8  ;;  %v1223_v18 = vsel %vm667_vm2, %v1220_v23, %v1222_v41 }
 0x1a1   : > { %v1114_v28 = vpop.permute.xlu0 %1113  ;;  %1674 = vrot.lane.b32.xlu1 %v4199_v52, %s2883_s13 }
 0x1a2   : > { %1198 = vst.msk [vmem:[#allocation3 + $0xc0] sm:$0xff] %vm1185_vm6, %v1114_v28  ;;  %2111 = vmatmul.mubr.bf16.gmra.mrb[20].mxu0 %v1896_v27 }
 0x1a3   : > { %1141 = vrot.lane.b32.xlu0 %v3901_v12, %s2879_s20  ;;  %v1001_v32 = vpop.permute.xlu1 %1000  ;;  %v1860_v4 = vld [vmem:[#allocation3 + $0x130] sm:$0xff]  ;;  %2664 = vmatprep.mubr.msk.bf16.mxu0 %vm270_vm0, %v1899_v31 }
 0x1a4   : > { %1076 = vst.msk [vmem:[#allocation3 + $0x150] sm:$0xff] %vm1054_vm5, %v1001_v32  ;;  %v1904_v24 = vpack.c.bf16 %v1860_v4, %v1858_v58 }
 0x1a5   : > { %v1130_v21 = vpop.permute.xlu0 %1129  ;;  %1012 = vrot.lane.b32.xlu1 %v3889_v37, %s2878_s17 }
 0x1a6   : > { %1206 = vst.msk [vmem:[#allocation3 + $0x140] sm:$0xff] %vm1185_vm6, %v1130_v21  ;;  %2143 = vmatmul.mubr.bf16.gmra.mrb[4].mxu1 %v1904_v24 }
 0x1a7   : > { %1276 = vrot.lane.b32.xlu0 %v4185_v17, %s2880_s26  ;;  %v1116_v34 = vpop.permute.xlu1 %1115  ;;  %2668 = vmatprep.mubr.msk.bf16.mxu1 %vm270_vm0, %v1907_v29 }
 0x1a8   : > { %1199 = vst.msk [vmem:[#allocation3 + $0xd0] sm:$0xff] %vm1185_vm6, %v1116_v34 }
 0x1a9   : > { %v1249_v12 = vpop.permute.xlu0 %1248  ;;  %1143 = vrot.lane.b32.xlu1 %v3903_v36, %s2879_s20 }
 0x1aa   : > { %1333 = vst.msk [vmem:[#allocation3 + $0xc0] sm:$0xff] %vm1320_vm7, %v1249_v12 }
 0x1ab   : > { %1410 = vrot.lane.b32.xlu0 %v3953_v49, %s2881_s30  ;;  %v1132_v37 = vpop.permute.xlu1 %1131 }
 0x1ac   : > { %1207 = vst.msk [vmem:[#allocation3 + $0x150] sm:$0xff] %vm1185_vm6, %v1132_v37 }
 0x1ad   : > { %v1265_v7 = vpop.permute.xlu0 %1264  ;;  %1278 = vrot.lane.b32.xlu1 %v4199_v52, %s2880_s26 }
 0x1ae   : > { %1341 = vst.msk [vmem:[#allocation3 + $0x140] sm:$0xff] %vm1320_vm7, %v1265_v7 }
 0x1af   : > { %1541 = vrot.lane.b32.xlu0 %v3968_v0, %s2882_s10  ;;  %v1251_v36 = vpop.permute.xlu1 %1250 }
 0x1b0   : > { %1334 = vst.msk [vmem:[#allocation3 + $0xd0] sm:$0xff] %vm1320_vm7, %v1251_v36 }
 0x1b1   : > { %v1383_v61 = vpop.permute.xlu0 %1382  ;;  %1412 = vrot.lane.b32.xlu1 %v3956_v63, %s2881_s30 }
 0x1b2   : > { %1467 = vst.msk [vmem:[#allocation3 + $0xc0] sm:$0xff] %vm1454_vm8, %v1383_v61 }
 0x1b3   : > { %1676 = vrot.lane.b32.xlu0 %v4232_v40, %s2883_s13  ;;  %v1267_v3 = vpop.permute.xlu1 %1266 }
 0x1b4   : > { %1342 = vst.msk [vmem:[#allocation3 + $0x150] sm:$0xff] %vm1320_vm7, %v1267_v3  ;;  %v1620_v3 = vrot.slane %v4109_v6, 1 }
 0x1b5   : > { %v1399_v53 = vpop.permute.xlu0 %1398  ;;  %1543 = vrot.lane.b32.xlu1 %v3970_v2, %s2882_s10 }
 0x1b6   : > { %1475 = vst.msk [vmem:[#allocation3 + $0x140] sm:$0xff] %vm1454_vm8, %v1399_v53 }
 0x1b7   : > { %804 = vrot.lane.b32.xlu0 %v4185_v17, %s2876_s8  ;;  %v1385_v55 = vpop.permute.xlu1 %1384 }
 0x1b8   : > { %1468 = vst.msk [vmem:[#allocation3 + $0xd0] sm:$0xff] %vm1454_vm8, %v1385_v55 }
 0x1b9   : > { %v1514_v62 = vpop.permute.xlu0 %1513  ;;  %1678 = vrot.lane.b32.xlu1 %v4246_v33, %s2883_s13 }
 0x1ba   : > { %1598 = vst.msk [vmem:[#allocation3 + $0xc0] sm:$0xff] %vm1585_vm9, %v1514_v62 }
 0x1bb   : > { %1014 = vrot.lane.b32.xlu0 %v3953_v49, %s2878_s17  ;;  %v1401_v54 = vpop.permute.xlu1 %1400 }
 0x1bc   : > { %1476 = vst.msk [vmem:[#allocation3 + $0x150] sm:$0xff] %vm1454_vm8, %v1401_v54 }
 0x1bd   : > { %v1530_v47 = vpop.permute.xlu0 %1529  ;;  %806 = vrot.lane.b32.xlu1 %v4199_v52, %s2876_s8 }
 0x1be   : > { %1606 = vst.msk [vmem:[#allocation3 + $0x140] sm:$0xff] %vm1585_vm9, %v1530_v47 }
 0x1bf   : > { %1145 = vrot.lane.b32.xlu0 %v3968_v0, %s2879_s20  ;;  %v1516_v30 = vpop.permute.xlu1 %1515 }
 0x1c0   : > { %1599 = vst.msk [vmem:[#allocation3 + $0xd0] sm:$0xff] %vm1585_vm9, %v1516_v30 }
 0x1c1   : > { %v1649_v46 = vpop.permute.xlu0 %1648  ;;  %1016 = vrot.lane.b32.xlu1 %v3956_v63, %s2878_s17  ;;  %v1219_v63 = vrot.slane %v4070_v15, 1 }
 0x1c2   : > { %1733 = vst.msk [vmem:[#allocation3 + $0xc0] sm:$0xff] %vm1720_vm10, %v1649_v46 }
 0x1c3   : > { %1280 = vrot.lane.b32.xlu0 %v4232_v40, %s2880_s26  ;;  %v1532_v49 = vpop.permute.xlu1 %1531  ;;  %v4283_v57 = vsel %vm667_vm2, %v1219_v63, %v1220_v23 }
 0x1c4   : > { %1607 = vst.msk [vmem:[#allocation3 + $0x150] sm:$0xff] %vm1585_vm9, %v1532_v49 }
 0x1c5   : > { %v1665_v35 = vpop.permute.xlu0 %1664  ;;  %1147 = vrot.lane.b32.xlu1 %v3970_v2, %s2879_s20 }
 0x1c6   : > { %1741 = vst.msk [vmem:[#allocation3 + $0x140] sm:$0xff] %vm1720_vm10, %v1665_v35 }
 0x1c7   : > { %1414 = vrot.lane.b32.xlu0 %v4026_v39, %s2881_s30  ;;  %v1651_v0 = vpop.permute.xlu1 %1650 }
 0x1c8   : > { %1734 = vst.msk [vmem:[#allocation3 + $0xd0] sm:$0xff] %vm1720_vm10, %v1651_v0 }
 0x1c9   : > { %v987_v42 = vpop.permute.xlu0 %986  ;;  %1282 = vrot.lane.b32.xlu1 %v4246_v33, %s2880_s26  ;;  %v1846_v9 = vld [vmem:[#allocation3 + $0xc0] sm:$0xff] }
 0x1ca   : > { %1069 = vst.msk [vmem:[#allocation3 + $0xe0] sm:$0xff] %vm1054_vm5, %v987_v42 }
 0x1cb   : > { %1545 = vrot.lane.b32.xlu0 %v4070_v15, %s2882_s10  ;;  %v1667_v2 = vpop.permute.xlu1 %1666 }
 0x1cc   : > { %1742 = vst.msk [vmem:[#allocation3 + $0x150] sm:$0xff] %vm1720_vm10, %v1667_v2 }
 0x1cd   : > { %v1003_v1 = vpop.permute.xlu0 %1002  ;;  %1416 = vrot.lane.b32.xlu1 %v4029_v56, %s2881_s30  ;;  %v1862_v31 = vld [vmem:[#allocation3 + $0x140] sm:$0xff] }
 0x1ce   : > { %1077 = vst.msk [vmem:[#allocation3 + $0x160] sm:$0xff] %vm1054_vm5, %v1003_v1 }
 0x1cf   : > { %1680 = vrot.lane.b32.xlu0 %v4283_v57, %s2883_s13  ;;  %v989_v17 = vpop.permute.xlu1 %988  ;;  %v1848_v45 = vld [vmem:[#allocation3 + $0xd0] sm:$0xff] }
 0x1d0   : > { %1070 = vst.msk [vmem:[#allocation3 + $0xf0] sm:$0xff] %vm1054_vm5, %v989_v17  ;;  %v1898_v25 = vpack.c.bf16 %v1848_v45, %v1846_v9 }
 0x1d1   : > { %v1118_v26 = vpop.permute.xlu0 %1117  ;;  %v2072_v8 = vpop.f32.mrb[0].mxu0  ;;  %1547 = vrot.lane.b32.xlu1 %v4072_v13, %s2882_s10 }
 0x1d2   : > { %1200 = vst.msk [vmem:[#allocation3 + $0xe0] sm:$0xff] %vm1185_vm6, %v1118_v26  ;;  %v2710_v11 = vpack.c.bf16 %v2072_v8, %v2072_v8  ;;  %v2431_v52 = vmul.f32 %v2072_v8, %v2072_v8  ;;  %v2074_v19 = vpop.f32.mrb[1].mxu0  ;;  %2119 = vmatmul.mubr.bf16.gmra.mrb[24].mxu0 %v1898_v25  ;;  %v2360_v58 = vsel %vm270_vm0, %v2072_v8, 0.0 }
 0x1d3   : > { %808 = vrot.lane.b32.xlu0 %v4232_v40, %s2876_s8  ;;  %v2075_v27 = vpop.f32.mrb[2].mxu0  ;;  %v1005_v28 = vpop.permute.xlu1 %1004  ;;  %v1864_v50 = vld [vmem:[#allocation3 + $0x150] sm:$0xff]  ;;  %2665 = vmatprep.mubr.msk.bf16.mxu0 %vm270_vm0, %v1901_v43  ;;  %v1871_v19 = vld [vmem:[#allocation3 + $0x188] sm:$0xff] }
 0x1d4   : > { %2328 = vst.msk [vmem:[%s4298_s23] sm:$0xf] %vm2327_vm11, %v2710_v11  ;;  %v2711_v32 = vpack.c.bf16 %v2075_v27, %v2075_v27  ;;  %v2361_v4 = vsel %vm270_vm0, %v2075_v27, 0.0  ;;  %v2432_v29 = vmul.f32 %v2075_v27, %v2075_v27  ;;  %v2077_v24 = vpop.f32.mrb[3].mxu0  ;;  %v1906_v12 = vpack.c.bf16 %v1864_v50, %v1862_v31 }
 0x1d5   : > { %1078 = vst.msk [vmem:[#allocation3 + $0x170] sm:$0xff] %vm1054_vm5, %v1005_v28  ;;  %v1134_v21 = vpop.permute.xlu0 %1133  ;;  %v2362_v34 = vadd.f32 %v2361_v4, %v2360_v58  ;;  %1682 = vrot.lane.b32.xlu1 %v1223_v18, %s2883_s13  ;;  %v2463_v37 = vsel %vm270_vm0, %v2431_v52, 0.0 }
 0x1d6   : > { %1208 = vst.msk [vmem:[#allocation3 + $0x160] sm:$0xff] %vm1185_vm6, %v1134_v21  ;;  %v2464_v10 = vsel %vm270_vm0, %v2432_v29, 0.0  ;;  %2151 = vmatmul.mubr.bf16.gmra.mrb[8].mxu1 %v1906_v12 }
 0x1d7   : > { %2329 = vst.msk [vmem:[%s4298_s23 + $0x4] sm:$0xf] %vm2327_vm11, %v2711_v32  ;;  %1018 = vrot.lane.b32.xlu0 %v4026_v39, %s2878_s17  ;;  %v2465_v48 = vadd.f32 %v2464_v10, %v2463_v37  ;;  %v1120_v7 = vpop.permute.xlu1 %1119  ;;  %2669 = vmatprep.mubr.msk.bf16.mxu1 %vm270_vm0, %v1909_v14 }
 0x1d8   : > { %1201 = vst.msk [vmem:[#allocation3 + $0xf0] sm:$0xff] %vm1185_vm6, %v1120_v7 }
 0x1d9   : > { %v1253_v36 = vpop.permute.xlu0 %1252  ;;  %810 = vrot.lane.b32.xlu1 %v4246_v33, %s2876_s8 }
 0x1da   : > { %1335 = vst.msk [vmem:[#allocation3 + $0xe0] sm:$0xff] %vm1320_vm7, %v1253_v36 }
 0x1db   : > { %1149 = vrot.lane.b32.xlu0 %v4070_v15, %s2879_s20  ;;  %v1136_v40 = vpop.permute.xlu1 %1135 }
 0x1dc   : > { %1209 = vst.msk [vmem:[#allocation3 + $0x170] sm:$0xff] %vm1185_vm6, %v1136_v40 }
 0x1dd   : > { %v1269_v39 = vpop.permute.xlu0 %1268  ;;  %1020 = vrot.lane.b32.xlu1 %v4029_v56, %s2878_s17  ;;  %v1619_v56 = vrot.slane %v4107_v20, 1  ;;  %s265_s17 = scalar_lea.vmem %s4588_s5, %s4669_s22 }
 0x1de   : > { %1343 = vst.msk [vmem:[#allocation3 + $0x160] sm:$0xff] %vm1320_vm7, %v1269_v39 }
 0x1df   : > { %1284 = vrot.lane.b32.xlu0 %v4283_v57, %s2880_s26  ;;  %v1255_v61 = vpop.permute.xlu1 %1254  ;;  %v1621_v33 = vsel %vm667_vm2, %v1619_v56, %v1620_v3 }
 0x1e0   : > { %1336 = vst.msk [vmem:[#allocation3 + $0xf0] sm:$0xff] %vm1320_vm7, %v1255_v61 }
 0x1e1   : > { %v1387_v44 = vpop.permute.xlu0 %1386  ;;  %1151 = vrot.lane.b32.xlu1 %v4072_v13, %s2879_s20 }
 0x1e2   : > { %1469 = vst.msk [vmem:[#allocation3 + $0xe0] sm:$0xff] %vm1454_vm8, %v1387_v44 }
 0x1e3   : > { %1418 = vrot.lane.b32.xlu0 %v4087_v22, %s2881_s30  ;;  %v1271_v15 = vpop.permute.xlu1 %1270 }
 0x1e4   : > { %1344 = vst.msk [vmem:[#allocation3 + $0x170] sm:$0xff] %vm1320_vm7, %v1271_v15 }
 0x1e5   : > { %v1403_v53 = vpop.permute.xlu0 %1402  ;;  %1286 = vrot.lane.b32.xlu1 %v1223_v18, %s2880_s26  ;;  %v1873_v18 = vld [vmem:[#allocation3 + $0x198] sm:$0xff]  ;;  %s268_s26 = scalar_lea.vmem %s4589_s6, %s4669_s22 }
 0x1e6   : > { %1477 = vst.msk [vmem:[#allocation3 + $0x160] sm:$0xff] %vm1454_vm8, %v1403_v53  ;;  %v1911_v21 = vpack.c.bf16 %v1873_v18, %v1871_v19 }
 0x1e7   : > { %1549 = vrot.lane.b32.xlu0 %v4107_v20, %s2882_s10  ;;  %v1389_v13 = vpop.permute.xlu1 %1388  ;;  %v1622_v20 = vrot.slane %v4113_v60, 1 }
 0x1e8   : > { %1470 = vst.msk [vmem:[#allocation3 + $0xf0] sm:$0xff] %vm1454_vm8, %v1389_v13 }
 0x1e9   : > { %v1518_v22 = vpop.permute.xlu0 %1517  ;;  %1420 = vrot.lane.b32.xlu1 %v4095_v51, %s2881_s30  ;;  %v2080_v55 = vpop.f32.mrb[4].mxu0  ;;  %v1623_v59 = vsel %vm667_vm2, %v1620_v3, %v1622_v20 }
 0x1ea   : > { %1600 = vst.msk [vmem:[#allocation3 + $0xe0] sm:$0xff] %vm1585_vm9, %v1518_v22  ;;  %v2712_v62 = vpack.c.bf16 %v2080_v55, %v2080_v55  ;;  %v2363_v54 = vsel %vm270_vm0, %v2080_v55, 0.0  ;;  %v2433_v47 = vmul.f32 %v2080_v55, %v2080_v55  ;;  %v2082_v30 = vpop.f32.mrb[5].mxu0 }
 0x1eb   : > { %1684 = vrot.lane.b32.xlu0 %v1621_v33, %s2883_s13  ;;  %v2364_v46 = vadd.f32 %v2363_v54, %v2362_v34  ;;  %v1405_v49 = vpop.permute.xlu1 %1404  ;;  %v2083_v35 = vpop.f32.mrb[6].mxu0  ;;  %v1877_v30 = vld [vmem:[#allocation3 + $0x1b8] sm:$0xff] }
 0x1ec   : > { %2330 = vst.msk [vmem:[%s4298_s23 + $0x8] sm:$0xf] %vm2327_vm11, %v2712_v62  ;;  %v2466_v51 = vsel %vm270_vm0, %v2433_v47, 0.0  ;;  %v2713_v0 = vpack.c.bf16 %v2083_v35, %v2083_v35  ;;  %v2365_v63 = vsel %vm270_vm0, %v2083_v35, 0.0  ;;  %v2434_v23 = vmul.f32 %v2083_v35, %v2083_v35  ;;  %v2085_v42 = vpop.f32.mrb[7].mxu0  ;;  %v1875_v47 = vld [vmem:[#allocation3 + $0x1a8] sm:$0xff] }
 0x1ed   : > { %1478 = vst.msk [vmem:[#allocation3 + $0x170] sm:$0xff] %vm1454_vm8, %v1405_v49  ;;  %v1534_v2 = vpop.permute.xlu0 %1533  ;;  %v2467_v57 = vadd.f32 %v2466_v51, %v2465_v48  ;;  %v2366_v1 = vadd.f32 %v2365_v63, %v2364_v46  ;;  %1551 = vrot.lane.b32.xlu1 %v4109_v6, %s2882_s10 }
 0x1ee   : > { %1608 = vst.msk [vmem:[#allocation3 + $0x160] sm:$0xff] %vm1585_vm9, %v1534_v2  ;;  %v2468_v60 = vsel %vm270_vm0, %v2434_v23, 0.0 }
 0x1ef   : > { %2331 = vst.msk [vmem:[%s4298_s23 + $0xc] sm:$0xf] %vm2327_vm11, %v2713_v0  ;;  %v2469_v16 = vadd.f32 %v2468_v60, %v2467_v57  ;;  %v1520_v9 = vpop.permute.xlu1 %1519  ;;  %v1913_v57 = vpack.c.bf16 %v1877_v30, %v1875_v47 }
 0x1f0   : > { %1601 = vst.msk [vmem:[#allocation3 + $0xf0] sm:$0xff] %vm1585_vm9, %v1520_v9 }
 0x1f1   : > { %v1653_v41 = vpop.permute.xlu0 %1652  ;;  %1686 = vrot.lane.b32.xlu1 %v1623_v59, %s2883_s13 }
 0x1f2   : > { %1735 = vst.msk [vmem:[#allocation3 + $0xe0] sm:$0xff] %vm1720_vm10, %v1653_v41 }
 0x1f3   : > { %v1536_v17 = vpop.permute.xlu1 %1535 }
 0x1f4   : > { %1609 = vst.msk [vmem:[#allocation3 + $0x170] sm:$0xff] %vm1585_vm9, %v1536_v17 }
 0x1f5   : > { %v1669_v6 = vpop.permute.xlu0 %1668 }
 0x1f6   : > { %1743 = vst.msk [vmem:[#allocation3 + $0x160] sm:$0xff] %vm1720_vm10, %v1669_v6 }
 0x1f7   : > { %v1655_v45 = vpop.permute.xlu1 %1654 }
 0x1f8   : > { %1736 = vst.msk [vmem:[#allocation3 + $0xf0] sm:$0xff] %vm1720_vm10, %v1655_v45 }
 0x1f9   : > { %v1007_v43 = vpop.permute.xlu0 %1006  ;;  %v1850_v38 = vld [vmem:[#allocation3 + $0xe0] sm:$0xff] }
 0x1fa   : > { %1079 = vst.msk [vmem:[#allocation3 + $0x180] sm:$0xff] %vm1054_vm5, %v1007_v43 }
 0x1fb   : > { %v1671_v25 = vpop.permute.xlu1 %1670 }
 0x1fc   : > { %1744 = vst.msk [vmem:[#allocation3 + $0x170] sm:$0xff] %vm1720_vm10, %v1671_v25 }
 0x1fd   : > { %v1138_v26 = vpop.permute.xlu0 %1137  ;;  %v1866_v58 = vld [vmem:[#allocation3 + $0x160] sm:$0xff] }
 0x1fe   : > { %1210 = vst.msk [vmem:[#allocation3 + $0x180] sm:$0xff] %vm1185_vm6, %v1138_v26 }
 0x1ff   : > { %v1009_v5 = vpop.permute.xlu1 %1008  ;;  %v1852_v8 = vld [vmem:[#allocation3 + $0xf0] sm:$0xff] }
 0x200   : > { %1080 = vst.msk [vmem:[#allocation3 + $0x190] sm:$0xff] %vm1054_vm5, %v1009_v5  ;;  %v1900_v11 = vpack.c.bf16 %v1852_v8, %v1850_v38 }
 0x201   : > { %v1273_v52 = vpop.permute.xlu0 %1272  ;;  %v2088_v31 = vpop.f32.mrb[8].mxu0 }
 0x202   : > { %1345 = vst.msk [vmem:[#allocation3 + $0x180] sm:$0xff] %vm1320_vm7, %v1273_v52  ;;  %v2714_v27 = vpack.c.bf16 %v2088_v31, %v2088_v31  ;;  %v2367_v28 = vsel %vm270_vm0, %v2088_v31, 0.0  ;;  %v2435_v50 = vmul.f32 %v2088_v31, %v2088_v31  ;;  %v2090_v14 = vpop.f32.mrb[9].mxu0  ;;  %2127 = vmatmul.mubr.bf16.gmra.mrb[28].mxu0 %v1900_v11 }
 0x203   : > { %v2368_v32 = vadd.f32 %v2367_v28, %v2366_v1  ;;  %v1140_v4 = vpop.permute.xlu1 %1139  ;;  %v2091_v29 = vpop.f32.mrb[10].mxu0  ;;  %v1868_v24 = vld [vmem:[#allocation3 + $0x170] sm:$0xff]  ;;  %v1879_v28 = vld [vmem:[#allocation3 + $0x1c8] sm:$0xff] }
 0x204   : > { %2332 = vst.msk [vmem:[%s4298_s23 + $0x10] sm:$0xf] %vm2327_vm11, %v2714_v27  ;;  %v2470_v34 = vsel %vm270_vm0, %v2435_v50, 0.0  ;;  %v2715_v12 = vpack.c.bf16 %v2091_v29, %v2091_v29  ;;  %v2369_v37 = vsel %vm270_vm0, %v2091_v29, 0.0  ;;  %v2436_v10 = vmul.f32 %v2091_v29, %v2091_v29  ;;  %v2093_v48 = vpop.f32.mrb[11].mxu0  ;;  %v1881_v50 = vld [vmem:[#allocation3 + $0x1d8] sm:$0xff] }
 0x205   : > { %1211 = vst.msk [vmem:[#allocation3 + $0x190] sm:$0xff] %vm1185_vm6, %v1140_v4  ;;  %v1407_v7 = vpop.permute.xlu0 %1406  ;;  %v2471_v36 = vadd.f32 %v2470_v34, %v2469_v16  ;;  %v2370_v40 = vadd.f32 %v2369_v37, %v2368_v32  ;;  %v1908_v39 = vpack.c.bf16 %v1868_v24, %v1866_v58  ;;  %v1915_v4 = vpack.c.bf16 %v1881_v50, %v1879_v28 }
 0x206   : > { %1479 = vst.msk [vmem:[#allocation3 + $0x180] sm:$0xff] %vm1454_vm8, %v1407_v7  ;;  %v2472_v61 = vsel %vm270_vm0, %v2436_v10, 0.0 }
 0x207   : > { %2333 = vst.msk [vmem:[%s4298_s23 + $0x14] sm:$0xf] %vm2327_vm11, %v2715_v12  ;;  %v2473_v44 = vadd.f32 %v2472_v61, %v2471_v36  ;;  %2159 = vmatmul.mubr.bf16.gmra.mrb[12].mxu1 %v1908_v39  ;;  %v1275_v15 = vpop.permute.xlu1 %1274 }
 0x208   : > { %1346 = vst.msk [vmem:[#allocation3 + $0x190] sm:$0xff] %vm1320_vm7, %v1275_v15  ;;  %2670 = vmatprep.mubr.msk.bf16.mxu1 %vm270_vm0, %v1911_v21 }
 0x209   : > { %v1538_v56 = vpop.permute.xlu0 %1537 }
 0x20a   : > { %1610 = vst.msk [vmem:[#allocation3 + $0x180] sm:$0xff] %vm1585_vm9, %v1538_v56 }
 0x20b   : > { %v1409_v3 = vpop.permute.xlu1 %1408 }
 0x20c   : > { %1480 = vst.msk [vmem:[#allocation3 + $0x190] sm:$0xff] %vm1454_vm8, %v1409_v3 }
 0x20d   : > { %v1673_v53 = vpop.permute.xlu0 %1672 }
 0x20e   : > { %1745 = vst.msk [vmem:[#allocation3 + $0x180] sm:$0xff] %vm1720_vm10, %v1673_v53 }
 0x20f   : > { %v1540_v13 = vpop.permute.xlu1 %1539 }
 0x210   : > { %1611 = vst.msk [vmem:[#allocation3 + $0x190] sm:$0xff] %vm1585_vm9, %v1540_v13 }
 0x211   : > { %v1011_v33 = vpop.permute.xlu0 %1010 }
 0x212   : > { %1081 = vst.msk [vmem:[#allocation3 + $0x1a0] sm:$0xff] %vm1054_vm5, %v1011_v33 }
 0x213   : > { %v1675_v22 = vpop.permute.xlu1 %1674 }
 0x214   : > { %1746 = vst.msk [vmem:[#allocation3 + $0x190] sm:$0xff] %vm1720_vm10, %v1675_v22 }
 0x215   : > { %v1142_v55 = vpop.permute.xlu0 %1141  ;;  %v1870_v0 = vld [vmem:[#allocation3 + $0x180] sm:$0xff] }
 0x216   : > { %1212 = vst.msk [vmem:[#allocation3 + $0x1a0] sm:$0xff] %vm1185_vm6, %v1142_v55 }
 0x217   : > { %v1013_v62 = vpop.permute.xlu1 %1012 }
 0x218   : > { %1082 = vst.msk [vmem:[#allocation3 + $0x1b0] sm:$0xff] %vm1054_vm5, %v1013_v62 }
 0x219   : > { %v1277_v54 = vpop.permute.xlu0 %1276  ;;  %v2096_v20 = vpop.f32.mrb[12].mxu0 }
 0x21a   : > { %1347 = vst.msk [vmem:[#allocation3 + $0x1a0] sm:$0xff] %vm1320_vm7, %v1277_v54  ;;  %v2716_v46 = vpack.c.bf16 %v2096_v20, %v2096_v20  ;;  %v2371_v49 = vsel %vm270_vm0, %v2096_v20, 0.0  ;;  %v2437_v35 = vmul.f32 %v2096_v20, %v2096_v20  ;;  %v2098_v51 = vpop.f32.mrb[13].mxu0 }
 0x21b   : > { %v2372_v63 = vadd.f32 %v2371_v49, %v2370_v40  ;;  %v1144_v23 = vpop.permute.xlu1 %1143  ;;  %v2099_v42 = vpop.f32.mrb[14].mxu0  ;;  %v1872_v2 = vld [vmem:[#allocation3 + $0x190] sm:$0xff] }
 0x21c   : > { %2334 = vst.msk [vmem:[%s4298_s23 + $0x18] sm:$0xf] %vm2327_vm11, %v2716_v46  ;;  %v2474_v1 = vsel %vm270_vm0, %v2437_v35, 0.0  ;;  %v2717_v60 = vpack.c.bf16 %v2099_v42, %v2099_v42  ;;  %v2373_v59 = vsel %vm270_vm0, %v2099_v42, 0.0  ;;  %v2438_v16 = vmul.f32 %v2099_v42, %v2099_v42  ;;  %v2101_v9 = vpop.f32.mrb[15].mxu0 }
 0x21d   : > { %1213 = vst.msk [vmem:[#allocation3 + $0x1b0] sm:$0xff] %vm1185_vm6, %v1144_v23  ;;  %v1411_v41 = vpop.permute.xlu0 %1410  ;;  %v2475_v17 = vadd.f32 %v2474_v1, %v2473_v44  ;;  %v2374_v6 = vadd.f32 %v2373_v59, %v2372_v63  ;;  %v1910_v45 = vpack.c.bf16 %v1872_v2, %v1870_v0  ;;  %v1885_v1 = vld [vmem:[#allocation3 + $0x1f8] sm:$0xff] }
 0x21e   : > { %1481 = vst.msk [vmem:[#allocation3 + $0x1a0] sm:$0xff] %vm1454_vm8, %v1411_v41  ;;  %v2476_v43 = vsel %vm270_vm0, %v2438_v16, 0.0 }
 0x21f   : > { %2335 = vst.msk [vmem:[%s4298_s23 + $0x1c] sm:$0xf] %vm2327_vm11, %v2717_v60  ;;  %v4408_v25 = vadd.f32 %v2476_v43, %v2475_v17  ;;  %2167 = vmatmul.mubr.bf16.gmra.mrb[16].mxu1 %v1910_v45  ;;  %v1279_v26 = vpop.permute.xlu1 %1278 }
 0x220   : > { %1348 = vst.msk [vmem:[#allocation3 + $0x1b0] sm:$0xff] %vm1320_vm7, %v1279_v26  ;;  %2671 = vmatprep.mubr.msk.bf16.mxu1 %vm270_vm0, %v1913_v57  ;;  %v1883_v57 = vld [vmem:[#allocation3 + $0x1e8] sm:$0xff] }
 0x221   : > { %v1542_v38 = vpop.permute.xlu0 %1541  ;;  %v1917_v9 = vpack.c.bf16 %v1885_v1, %v1883_v57 }
 0x222   : > { %1612 = vst.msk [vmem:[#allocation3 + $0x1a0] sm:$0xff] %vm1585_vm9, %v1542_v38 }
 0x223   : > { %v1413_v5 = vpop.permute.xlu1 %1412 }
 0x224   : > { %1482 = vst.msk [vmem:[#allocation3 + $0x1b0] sm:$0xff] %vm1454_vm8, %v1413_v5 }
 0x225   : > { %v1677_v8 = vpop.permute.xlu0 %1676 }
 0x226   : > { %1747 = vst.msk [vmem:[#allocation3 + $0x1a0] sm:$0xff] %vm1720_vm10, %v1677_v8 }
 0x227   : > { %v1544_v11 = vpop.permute.xlu1 %1543 }
 0x228   : > { %1613 = vst.msk [vmem:[#allocation3 + $0x1b0] sm:$0xff] %vm1585_vm9, %v1544_v11 }
 0x229   : > { %v805_v52 = vpop.permute.xlu0 %804 }
 0x22a   : > { %873 = vst.msk [vmem:[#allocation3 + $0x1c0] sm:$0xff] %vm844_vm4, %v805_v52 }
 0x22b   : > { %v1679_v19 = vpop.permute.xlu1 %1678 }
 0x22c   : > { %1748 = vst.msk [vmem:[#allocation3 + $0x1b0] sm:$0xff] %vm1720_vm10, %v1679_v19 }
 0x22d   : > { %v1015_v18 = vpop.permute.xlu0 %1014  ;;  %v1874_v14 = vld [vmem:[#allocation3 + $0x1a0] sm:$0xff] }
 0x22e   : > { %1083 = vst.msk [vmem:[#allocation3 + $0x1c0] sm:$0xff] %vm1054_vm5, %v1015_v18 }
 0x22f   : > { %v807_v31 = vpop.permute.xlu1 %806 }
 0x230   : > { %874 = vst.msk [vmem:[#allocation3 + $0x1d0] sm:$0xff] %vm844_vm4, %v807_v31 }
 0x231   : > { %v1146_v27 = vpop.permute.xlu0 %1145 }
 0x232   : > { %1214 = vst.msk [vmem:[#allocation3 + $0x1c0] sm:$0xff] %vm1185_vm6, %v1146_v27 }
 0x233   : > { %v1017_v58 = vpop.permute.xlu1 %1016  ;;  %v1876_v32 = vld [vmem:[#allocation3 + $0x1b0] sm:$0xff] }
 0x234   : > { %1084 = vst.msk [vmem:[#allocation3 + $0x1d0] sm:$0xff] %vm1054_vm5, %v1017_v58  ;;  %v1912_v29 = vpack.c.bf16 %v1876_v32, %v1874_v14 }
 0x235   : > { %v1281_v24 = vpop.permute.xlu0 %1280 }
 0x236   : > { %1349 = vst.msk [vmem:[#allocation3 + $0x1c0] sm:$0xff] %vm1320_vm7, %v1281_v24  ;;  %2175 = vmatmul.mubr.bf16.gmra.mrb[20].mxu1 %v1912_v29 }
 0x237   : > { %v1148_v21 = vpop.permute.xlu1 %1147  ;;  %2672 = vmatprep.mubr.msk.bf16.mxu1 %vm270_vm0, %v1915_v4 }
 0x238   : > { %1215 = vst.msk [vmem:[#allocation3 + $0x1d0] sm:$0xff] %vm1185_vm6, %v1148_v21 }
 0x239   : > { %v1415_v34 = vpop.permute.xlu0 %1414 }
 0x23a   : > { %1483 = vst.msk [vmem:[#allocation3 + $0x1c0] sm:$0xff] %vm1454_vm8, %v1415_v34 }
 0x23b   : > { %v1283_v12 = vpop.permute.xlu1 %1282 }
 0x23c   : > { %1350 = vst.msk [vmem:[#allocation3 + $0x1d0] sm:$0xff] %vm1320_vm7, %v1283_v12 }
 0x23d   : > { %v1546_v37 = vpop.permute.xlu0 %1545 }
 0x23e   : > { %1614 = vst.msk [vmem:[#allocation3 + $0x1c0] sm:$0xff] %vm1585_vm9, %v1546_v37 }
 0x23f   : > { %v1417_v10 = vpop.permute.xlu1 %1416 }
 0x240   : > { %1484 = vst.msk [vmem:[#allocation3 + $0x1d0] sm:$0xff] %vm1454_vm8, %v1417_v10 }
 0x241   : > { %v1681_v48 = vpop.permute.xlu0 %1680 }
 0x242   : > { %1749 = vst.msk [vmem:[#allocation3 + $0x1c0] sm:$0xff] %vm1720_vm10, %v1681_v48 }
 0x243   : > { %v1548_v7 = vpop.permute.xlu1 %1547 }
 0x244   : > { %1615 = vst.msk [vmem:[#allocation3 + $0x1d0] sm:$0xff] %vm1585_vm9, %v1548_v7 }
 0x245   : > { %v809_v36 = vpop.permute.xlu0 %808  ;;  %v2104_v40 = vpop.f32.mrb[16].mxu0 }
 0x246   : > { %875 = vst.msk [vmem:[#allocation3 + $0x1e0] sm:$0xff] %vm844_vm4, %v809_v36  ;;  %v2718_v39 = vpack.c.bf16 %v2104_v40, %v2104_v40  ;;  %v2375_v61 = vsel %vm270_vm0, %v2104_v40, 0.0  ;;  %v2439_v44 = vmul.f32 %v2104_v40, %v2104_v40  ;;  %v2106_v15 = vpop.f32.mrb[17].mxu0 }
 0x247   : > { %v2376_v56 = vadd.f32 %v2375_v61, %v2374_v6  ;;  %v1683_v3 = vpop.permute.xlu1 %1682  ;;  %v2107_v53 = vpop.f32.mrb[18].mxu0 }
 0x248   : > { %2336 = vst.msk [vmem:[%s4298_s23 + $0x20] sm:$0xf] %vm2327_vm11, %v2718_v39  ;;  %v2478_v13 = vsel %vm270_vm0, %v2439_v44, 0.0  ;;  %v2719_v33 = vpack.c.bf16 %v2107_v53, %v2107_v53  ;;  %v2377_v22 = vsel %vm270_vm0, %v2107_v53, 0.0  ;;  %v2440_v55 = vmul.f32 %v2107_v53, %v2107_v53  ;;  %v2109_v62 = vpop.f32.mrb[19].mxu0 }
 0x249   : > { %1750 = vst.msk [vmem:[#allocation3 + $0x1d0] sm:$0xff] %vm1720_vm10, %v1683_v3  ;;  %v1019_v54 = vpop.permute.xlu0 %1018  ;;  %v2479_v47 = vadd.f32 %v2478_v13, %v4408_v25  ;;  %v2378_v30 = vadd.f32 %v2377_v22, %v2376_v56  ;;  %v4439_v20 = vpop.f32.mrb[0].mxu1  ;;  %v1878_v60 = vld [vmem:[#allocation3 + $0x1c0] sm:$0xff] }
 0x24a   : > { %1085 = vst.msk [vmem:[#allocation3 + $0x1e0] sm:$0xff] %vm1054_vm5, %v1019_v54  ;;  %v2480_v46 = vsel %vm270_vm0, %v2440_v55, 0.0  ;;  %v2726_v49 = vpack.c.bf16 %v4439_v20, %v4439_v20  ;;  %v2138_v35 = vpop.f32.mrb[1].mxu1 }
 0x24b   : > { %2337 = vst.msk [vmem:[%s4298_s23 + $0x24] sm:$0xf] %vm2327_vm11, %v2719_v33  ;;  %v2481_v51 = vadd.f32 %v2480_v46, %v2479_v47  ;;  %v4447_v0 = vpop.f32.mrb[2].mxu1  ;;  %v811_v63 = vpop.permute.xlu1 %810 }
 0x24c   : > { %2344 = vst.msk [vmem:[%s4298_s23 + $0x40] sm:$0xf] %vm2327_vm11, %v2726_v49  ;;  %v2727_v23 = vpack.c.bf16 %v4447_v0, %v4447_v0  ;;  %v2141_v42 = vpop.f32.mrb[3].mxu1 }
 0x24d   : > { %876 = vst.msk [vmem:[#allocation3 + $0x1f0] sm:$0xff] %vm844_vm4, %v811_v63  ;;  %v1150_v2 = vpop.permute.xlu0 %1149 }
 0x24e   : > { %1216 = vst.msk [vmem:[#allocation3 + $0x1e0] sm:$0xff] %vm1185_vm6, %v1150_v2 }
 0x24f   : > { %2345 = vst.msk [vmem:[%s4298_s23 + $0x44] sm:$0xf] %vm2327_vm11, %v2727_v23  ;;  %v1021_v59 = vpop.permute.xlu1 %1020 }
 0x250   : > { %v1880_v16 = vld [vmem:[#allocation3 + $0x1d0] sm:$0xff]  ;;  %1086 = vst.msk [vmem:[#allocation3 + $0x1f0] sm:$0xff] %vm1054_vm5, %v1021_v59 }
 0x251   : > { %v1914_v41 = vpack.c.bf16 %v1880_v16, %v1878_v60  ;;  %v1285_v17 = vpop.permute.xlu0 %1284 }
 0x252   : > { %1351 = vst.msk [vmem:[#allocation3 + $0x1e0] sm:$0xff] %vm1320_vm7, %v1285_v17 }
 0x253   : > { %2183 = vmatmul.mubr.bf16.gmra.mrb[24].mxu1 %v1914_v41  ;;  %v1152_v6 = vpop.permute.xlu1 %1151  ;;  %v2447_v41 = vmul.f32 %v4439_v20, %v4439_v20 }
 0x254   : > { %2673 = vmatprep.mubr.msk.bf16.mxu1 %vm270_vm0, %v1917_v9  ;;  %1217 = vst.msk [vmem:[#allocation3 + $0x1f0] sm:$0xff] %vm1185_vm6, %v1152_v6 }
 0x255   : > { %v1419_v45 = vpop.permute.xlu0 %1418 }
 0x256   : > { %1485 = vst.msk [vmem:[#allocation3 + $0x1e0] sm:$0xff] %vm1454_vm8, %v1419_v45 }
 0x257   : > { %v1287_v43 = vpop.permute.xlu1 %1286 }
 0x258   : > { %1352 = vst.msk [vmem:[#allocation3 + $0x1f0] sm:$0xff] %vm1320_vm7, %v1287_v43 }
 0x259   : > { %v1550_v25 = vpop.permute.xlu0 %1549 }
 0x25a   : > { %1616 = vst.msk [vmem:[#allocation3 + $0x1e0] sm:$0xff] %vm1585_vm9, %v1550_v25 }
 0x25b   : > { %v1421_v26 = vpop.permute.xlu1 %1420 }
 0x25c   : > { %1486 = vst.msk [vmem:[#allocation3 + $0x1f0] sm:$0xff] %vm1454_vm8, %v1421_v26 }
 0x25d   : > { %v1685_v38 = vpop.permute.xlu0 %1684 }
 0x25e   : > { %1751 = vst.msk [vmem:[#allocation3 + $0x1e0] sm:$0xff] %vm1720_vm10, %v1685_v38 }
 0x25f   : > { %v1552_v5 = vpop.permute.xlu1 %1551 }
 0x260   : > { %1617 = vst.msk [vmem:[#allocation3 + $0x1f0] sm:$0xff] %vm1585_vm9, %v1552_v5 }
 0x263   : > { %v1687_v8 = vpop.permute.xlu1 %1686 }
 0x264   : > { %1752 = vst.msk [vmem:[#allocation3 + $0x1f0] sm:$0xff] %vm1720_vm10, %v1687_v8 }
 0x265   : > { %v1882_v11 = vld [vmem:[#allocation3 + $0x1e0] sm:$0xff] }
 0x26b   : > { %v1884_v52 = vld [vmem:[#allocation3 + $0x1f0] sm:$0xff] }
 0x26c   : > { %v1916_v19 = vpack.c.bf16 %v1884_v52, %v1882_v11  ;;  %v2391_v11 = vsel %vm270_vm0, %v4439_v20, 0.0  ;;  %v2448_v52 = vmul.f32 %v4447_v0, %v4447_v0 }
 0x26e   : > { %2191 = vmatmul.mubr.bf16.gmra.mrb[28].mxu1 %v1916_v19 }
 0x275   : > { %v2112_v18 = vpop.f32.mrb[20].mxu0 }
 0x276   : > { %v2720_v31 = vpack.c.bf16 %v2112_v18, %v2112_v18  ;;  %v2379_v27 = vsel %vm270_vm0, %v2112_v18, 0.0  ;;  %v2441_v28 = vmul.f32 %v2112_v18, %v2112_v18  ;;  %v2114_v50 = vpop.f32.mrb[21].mxu0 }
 0x277   : > { %v2380_v14 = vadd.f32 %v2379_v27, %v2378_v30  ;;  %v2115_v58 = vpop.f32.mrb[22].mxu0 }
 0x278   : > { %2338 = vst.msk [vmem:[%s4298_s23 + $0x28] sm:$0xf] %vm2327_vm11, %v2720_v31  ;;  %v2482_v32 = vsel %vm270_vm0, %v2441_v28, 0.0  ;;  %v2721_v4 = vpack.c.bf16 %v2115_v58, %v2115_v58  ;;  %v2381_v29 = vsel %vm270_vm0, %v2115_v58, 0.0  ;;  %v2442_v24 = vmul.f32 %v2115_v58, %v2115_v58  ;;  %v2117_v21 = vpop.f32.mrb[23].mxu0 }
 0x279   : > { %v2483_v34 = vadd.f32 %v2482_v32, %v2481_v51  ;;  %v2382_v12 = vadd.f32 %v2381_v29, %v2380_v14  ;;  %v4473_v37 = vpop.f32.mrb[4].mxu1  ;;  %v2494_v14 = vsel %vm270_vm0, %v2447_v41, 0.0  ;;  %v2393_v58 = vsel %vm270_vm0, %v4447_v0, 0.0 }
 0x27a   : > { %2339 = vst.msk [vmem:[%s4298_s23 + $0x2c] sm:$0xf] %vm2327_vm11, %v2721_v4  ;;  %v2484_v10 = vsel %vm270_vm0, %v2442_v24, 0.0  ;;  %v2728_v48 = vpack.c.bf16 %v4473_v37, %v4473_v37  ;;  %v2146_v7 = vpop.f32.mrb[5].mxu1  ;;  %v2449_v20 = vmul.f32 %v4473_v37, %v4473_v37 }
 0x27b   : > { %v2485_v36 = vadd.f32 %v2484_v10, %v2483_v34  ;;  %v4480_v40 = vpop.f32.mrb[6].mxu1  ;;  %v2496_v34 = vsel %vm270_vm0, %v2448_v52, 0.0 }
 0x27c   : > { %2346 = vst.msk [vmem:[%s4298_s23 + $0x48] sm:$0xf] %vm2327_vm11, %v2728_v48  ;;  %v2729_v39 = vpack.c.bf16 %v4480_v40, %v4480_v40  ;;  %v2149_v61 = vpop.f32.mrb[7].mxu1  ;;  %v2450_v10 = vmul.f32 %v4480_v40, %v4480_v40  ;;  %v2498_v7 = vsel %vm270_vm0, %v2449_v20, 0.0 }
 0x27e   : > { %2347 = vst.msk [vmem:[%s4298_s23 + $0x4c] sm:$0xf] %vm2327_vm11, %v2729_v39 }
 0x2a5   : > { %v2120_v44 = vpop.f32.mrb[24].mxu0 }
 0x2a6   : > { %v2722_v15 = vpack.c.bf16 %v2120_v44, %v2120_v44  ;;  %v2383_v56 = vsel %vm270_vm0, %v2120_v44, 0.0  ;;  %v2443_v3 = vmul.f32 %v2120_v44, %v2120_v44  ;;  %v2122_v53 = vpop.f32.mrb[25].mxu0 }
 0x2a7   : > { %v2384_v13 = vadd.f32 %v2383_v56, %v2382_v12  ;;  %v2123_v33 = vpop.f32.mrb[26].mxu0  ;;  %v2395_v12 = vsel %vm270_vm0, %v4473_v37, 0.0 }
 0x2a8   : > { %2340 = vst.msk [vmem:[%s4298_s23 + $0x30] sm:$0xf] %vm2327_vm11, %v2722_v15  ;;  %v2486_v22 = vsel %vm270_vm0, %v2443_v3, 0.0  ;;  %v2723_v55 = vpack.c.bf16 %v2123_v33, %v2123_v33  ;;  %v2385_v62 = vsel %vm270_vm0, %v2123_v33, 0.0  ;;  %v2444_v54 = vmul.f32 %v2123_v33, %v2123_v33  ;;  %v2125_v47 = vpop.f32.mrb[27].mxu0 }
 0x2a9   : > { %v2487_v30 = vadd.f32 %v2486_v22, %v2485_v36  ;;  %v2386_v46 = vadd.f32 %v2385_v62, %v2384_v13  ;;  %v2152_v35 = vpop.f32.mrb[8].mxu1  ;;  %v2397_v36 = vsel %vm270_vm0, %v4480_v40, 0.0  ;;  %v2500_v15 = vsel %vm270_vm0, %v2450_v10, 0.0 }
 0x2aa   : > { %2341 = vst.msk [vmem:[%s4298_s23 + $0x34] sm:$0xf] %vm2327_vm11, %v2723_v55  ;;  %v2488_v49 = vsel %vm270_vm0, %v2444_v54, 0.0  ;;  %v2730_v63 = vpack.c.bf16 %v2152_v35, %v2152_v35  ;;  %v2154_v23 = vpop.f32.mrb[9].mxu1  ;;  %v2451_v39 = vmul.f32 %v2152_v35, %v2152_v35  ;;  %v2399_v56 = vsel %vm270_vm0, %v2152_v35, 0.0 }
 0x2ab   : > { %v2489_v51 = vadd.f32 %v2488_v49, %v2487_v30  ;;  %v2155_v42 = vpop.f32.mrb[10].mxu1 }
 0x2ac   : > { %2348 = vst.msk [vmem:[%s4298_s23 + $0x50] sm:$0xf] %vm2327_vm11, %v2730_v63  ;;  %v2731_v2 = vpack.c.bf16 %v2155_v42, %v2155_v42  ;;  %v2157_v57 = vpop.f32.mrb[11].mxu1  ;;  %v2452_v37 = vmul.f32 %v2155_v42, %v2155_v42  ;;  %v2502_v13 = vsel %vm270_vm0, %v2451_v39, 0.0  ;;  %v2401_v33 = vsel %vm270_vm0, %v2155_v42, 0.0 }
 0x2ae   : > { %2349 = vst.msk [vmem:[%s4298_s23 + $0x54] sm:$0xf] %vm2327_vm11, %v2731_v2  ;;  %v2504_v54 = vsel %vm270_vm0, %v2452_v37, 0.0 }
 0x2d5   : > { %v2128_v1 = vpop.f32.mrb[28].mxu0 }
 0x2d6   : > { %v2724_v60 = vpack.c.bf16 %v2128_v1, %v2128_v1  ;;  %v2387_v59 = vsel %vm270_vm0, %v2128_v1, 0.0  ;;  %v2445_v16 = vmul.f32 %v2128_v1, %v2128_v1  ;;  %v2130_v9 = vpop.f32.mrb[29].mxu0 }
 0x2d7   : > { %v2388_v17 = vadd.f32 %v2387_v59, %v2386_v46  ;;  %v2131_v6 = vpop.f32.mrb[30].mxu0 }
 0x2d8   : > { %2342 = vst.msk [vmem:[%s4298_s23 + $0x38] sm:$0xf] %vm2327_vm11, %v2724_v60  ;;  %v2490_v45 = vsel %vm270_vm0, %v2445_v16, 0.0  ;;  %v2725_v43 = vpack.c.bf16 %v2131_v6, %v2131_v6  ;;  %v2389_v25 = vsel %vm270_vm0, %v2131_v6, 0.0  ;;  %v2446_v26 = vmul.f32 %v2131_v6, %v2131_v6  ;;  %v2133_v38 = vpop.f32.mrb[31].mxu0 }
 0x2d9   : > { %v2491_v5 = vadd.f32 %v2490_v45, %v2489_v51  ;;  %v2390_v8 = vadd.f32 %v2389_v25, %v2388_v17 }
 0x2da   : > { %2343 = vst.msk [vmem:[%s4298_s23 + $0x3c] sm:$0xf] %vm2327_vm11, %v2725_v43  ;;  %v2492_v19 = vsel %vm270_vm0, %v2446_v26, 0.0  ;;  %v2160_v18 = vpop.f32.mrb[12].mxu1 }
 0x2db   : > { %v2392_v31 = vadd.f32 %v2391_v11, %v2390_v8  ;;  %v2493_v27 = vadd.f32 %v2492_v19, %v2491_v5  ;;  %v2732_v28 = vpack.c.bf16 %v2160_v18, %v2160_v18  ;;  %v2162_v50 = vpop.f32.mrb[13].mxu1  ;;  %v2453_v22 = vmul.f32 %v2160_v18, %v2160_v18 }
 0x2dc   : > { %v2163_v32 = vpop.f32.mrb[14].mxu1  ;;  %v2403_v40 = vsel %vm270_vm0, %v2160_v18, 0.0 }
 0x2dd   : > { %v2394_v4 = vadd.f32 %v2393_v58, %v2392_v31  ;;  %v2495_v29 = vadd.f32 %v2494_v14, %v2493_v27  ;;  %2350 = vst.msk [vmem:[%s4298_s23 + $0x58] sm:$0xf] %vm2327_vm11, %v2732_v28  ;;  %v2733_v24 = vpack.c.bf16 %v2163_v32, %v2163_v32  ;;  %v2165_v21 = vpop.f32.mrb[15].mxu1  ;;  %v2454_v47 = vmul.f32 %v2163_v32, %v2163_v32 }
 0x2de   : > { %v2506_v49 = vsel %vm270_vm0, %v2453_v22, 0.0  ;;  %v2405_v35 = vsel %vm270_vm0, %v2163_v32, 0.0 }
 0x2df   : > { %v2396_v48 = vadd.f32 %v2395_v12, %v2394_v4  ;;  %v2497_v0 = vadd.f32 %v2496_v34, %v2495_v29  ;;  %2351 = vst.msk [vmem:[%s4298_s23 + $0x5c] sm:$0xf] %vm2327_vm11, %v2733_v24  ;;  %v2508_v23 = vsel %vm270_vm0, %v2454_v47, 0.0 }
 0x2e1   : > { %v2499_v61 = vadd.f32 %v2498_v7, %v2497_v0  ;;  %v2398_v44 = vadd.f32 %v2397_v36, %v2396_v48 }
 0x2e3   : > { %v2400_v3 = vadd.f32 %v2399_v56, %v2398_v44  ;;  %v2501_v53 = vadd.f32 %v2500_v15, %v2499_v61 }
 0x2e5   : > { %v2402_v55 = vadd.f32 %v2401_v33, %v2400_v3  ;;  %v2503_v62 = vadd.f32 %v2502_v13, %v2501_v53 }
 0x2e7   : > { %v2404_v30 = vadd.f32 %v2403_v40, %v2402_v55  ;;  %v2505_v46 = vadd.f32 %v2504_v54, %v2503_v62 }
 0x2e9   : > { %v2507_v51 = vadd.f32 %v2506_v49, %v2505_v46  ;;  %v2406_v63 = vadd.f32 %v2405_v35, %v2404_v30 }
 0x2eb   : > { %v2509_v42 = vadd.f32 %v2508_v23, %v2507_v51 }
 0x2f2   : > { %v2168_v2 = vpop.f32.mrb[16].mxu1 }
 0x2f3   : > { %v2734_v57 = vpack.c.bf16 %v2168_v2, %v2168_v2  ;;  %v2407_v1 = vsel %vm270_vm0, %v2168_v2, 0.0  ;;  %v2455_v60 = vmul.f32 %v2168_v2, %v2168_v2  ;;  %v2170_v59 = vpop.f32.mrb[17].mxu1 }
 0x2f4   : > { %v2408_v16 = vadd.f32 %v2407_v1, %v2406_v63  ;;  %v2171_v9 = vpop.f32.mrb[18].mxu1 }
 0x2f5   : > { %2352 = vst.msk [vmem:[%s4298_s23 + $0x60] sm:$0xf] %vm2327_vm11, %v2734_v57  ;;  %v2510_v41 = vsel %vm270_vm0, %v2455_v60, 0.0  ;;  %v2735_v17 = vpack.c.bf16 %v2171_v9, %v2171_v9  ;;  %v2409_v6 = vsel %vm270_vm0, %v2171_v9, 0.0  ;;  %v2456_v45 = vmul.f32 %v2171_v9, %v2171_v9  ;;  %v2173_v43 = vpop.f32.mrb[19].mxu1 }
 0x2f6   : > { %v2511_v25 = vadd.f32 %v2510_v41, %v2509_v42  ;;  %v2410_v26 = vadd.f32 %v2409_v6, %v2408_v16 }
 0x2f7   : > { %2353 = vst.msk [vmem:[%s4298_s23 + $0x64] sm:$0xf] %vm2327_vm11, %v2735_v17  ;;  %v2512_v38 = vsel %vm270_vm0, %v2456_v45, 0.0 }
 0x2f8   : > { %v2513_v5 = vadd.f32 %v2512_v38, %v2511_v25 }
 0x309   : > { %v2176_v8 = vpop.f32.mrb[20].mxu1 }
 0x30a   : > { %v2736_v11 = vpack.c.bf16 %v2176_v8, %v2176_v8  ;;  %v2411_v52 = vsel %vm270_vm0, %v2176_v8, 0.0  ;;  %v2457_v19 = vmul.f32 %v2176_v8, %v2176_v8  ;;  %v2178_v18 = vpop.f32.mrb[21].mxu1 }
 0x30b   : > { %v2412_v31 = vadd.f32 %v2411_v52, %v2410_v26  ;;  %v2179_v27 = vpop.f32.mrb[22].mxu1 }
 0x30c   : > { %2354 = vst.msk [vmem:[%s4298_s23 + $0x68] sm:$0xf] %vm2327_vm11, %v2736_v11  ;;  %v2514_v28 = vsel %vm270_vm0, %v2457_v19, 0.0  ;;  %v2737_v50 = vpack.c.bf16 %v2179_v27, %v2179_v27  ;;  %v2413_v14 = vsel %vm270_vm0, %v2179_v27, 0.0  ;;  %v2458_v58 = vmul.f32 %v2179_v27, %v2179_v27  ;;  %v2181_v20 = vpop.f32.mrb[23].mxu1 }
 0x30d   : > { %v2515_v32 = vadd.f32 %v2514_v28, %v2513_v5  ;;  %v2414_v4 = vadd.f32 %v2413_v14, %v2412_v31 }
 0x30e   : > { %2355 = vst.msk [vmem:[%s4298_s23 + $0x6c] sm:$0xf] %vm2327_vm11, %v2737_v50  ;;  %v2516_v29 = vsel %vm270_vm0, %v2458_v58, 0.0 }
 0x30f   : > { %v2517_v24 = vadd.f32 %v2516_v29, %v2515_v32 }
 0x326   : > { %v2184_v21 = vpop.f32.mrb[24].mxu1 }
 0x327   : > { %v2738_v34 = vpack.c.bf16 %v2184_v21, %v2184_v21  ;;  %v2415_v12 = vsel %vm270_vm0, %v2184_v21, 0.0  ;;  %v2459_v10 = vmul.f32 %v2184_v21, %v2184_v21  ;;  %v2186_v48 = vpop.f32.mrb[25].mxu1 }
 0x328   : > { %v2416_v0 = vadd.f32 %v2415_v12, %v2414_v4  ;;  %v2187_v7 = vpop.f32.mrb[26].mxu1 }
 0x329   : > { %2356 = vst.msk [vmem:[%s4298_s23 + $0x70] sm:$0xf] %vm2327_vm11, %v2738_v34  ;;  %v2518_v36 = vsel %vm270_vm0, %v2459_v10, 0.0  ;;  %v2739_v39 = vpack.c.bf16 %v2187_v7, %v2187_v7  ;;  %v2417_v61 = vsel %vm270_vm0, %v2187_v7, 0.0  ;;  %v2460_v44 = vmul.f32 %v2187_v7, %v2187_v7  ;;  %v2189_v15 = vpop.f32.mrb[27].mxu1 }
 0x32a   : > { %v2519_v56 = vadd.f32 %v2518_v36, %v2517_v24  ;;  %v2418_v37 = vadd.f32 %v2417_v61, %v2416_v0 }
 0x32b   : > { %2357 = vst.msk [vmem:[%s4298_s23 + $0x74] sm:$0xf] %vm2327_vm11, %v2739_v39  ;;  %v2520_v3 = vsel %vm270_vm0, %v2460_v44, 0.0 }
 0x32c   : > { %v2521_v53 = vadd.f32 %v2520_v3, %v2519_v56 }
 0x341   : > { %v2192_v13 = vpop.f32.mrb[28].mxu1 }
 0x342   : > { %v2740_v33 = vpack.c.bf16 %v2192_v13, %v2192_v13  ;;  %v2419_v22 = vsel %vm270_vm0, %v2192_v13, 0.0  ;;  %v2461_v55 = vmul.f32 %v2192_v13, %v2192_v13  ;;  %v2194_v62 = vpop.f32.mrb[29].mxu1 }
 0x343   : > { %v2420_v54 = vadd.f32 %v2419_v22, %v2418_v37  ;;  %v2195_v40 = vpop.f32.mrb[30].mxu1 }
 0x344   : > { %2358 = vst.msk [vmem:[%s4298_s23 + $0x78] sm:$0xf] %vm2327_vm11, %v2740_v33  ;;  %v2522_v47 = vsel %vm270_vm0, %v2461_v55, 0.0  ;;  %v2741_v30 = vpack.c.bf16 %v2195_v40, %v2195_v40  ;;  %v2421_v46 = vsel %vm270_vm0, %v2195_v40, 0.0  ;;  %v2462_v49 = vmul.f32 %v2195_v40, %v2195_v40  ;;  %v2197_v35 = vpop.f32.mrb[31].mxu1 }
 0x345   : > { %v2523_v51 = vadd.f32 %v2522_v47, %v2521_v53  ;;  %v2422_v63 = vadd.f32 %v2421_v46, %v2420_v54 }
 0x346   : > { %2359 = vst.msk [vmem:[%s4298_s23 + $0x7c] sm:$0xf] %vm2327_vm11, %v2741_v30  ;;  %v2524_v23 = vsel %vm270_vm0, %v2462_v49, 0.0 }
 0x347   : > { %v2423_v42 = vrot.slane %v2422_v63, 4  ;;  %v2525_v2 = vadd.f32 %v2524_v23, %v2523_v51 }
 0x349   : > { %v2424_v57 = vadd.f32 %v2423_v42, %v2422_v63  ;;  %v2526_v1 = vrot.slane %v2525_v2, 4 }
 0x34b   : > { %v2425_v60 = vrot.slane %v2424_v57, 2  ;;  %v2527_v59 = vadd.f32 %v2526_v1, %v2525_v2 }
 0x34d   : > { %v2426_v16 = vadd.f32 %v2425_v60, %v2424_v57  ;;  %v2528_v9 = vrot.slane %v2527_v59, 2 }
 0x34f   : > { %v2427_v41 = vrot.slane %v2426_v16, 1  ;;  %v2529_v17 = vadd.f32 %v2528_v9, %v2527_v59 }
 0x351   : > { %v2428_v6 = vadd.f32 %v2427_v41, %v2426_v16  ;;  %v2530_v45 = vrot.slane %v2529_v17, 1 }
 0x353   : > { %2430 = vst.msk [vmem:[%s265_s17] sm:$0x1] %vm2429_vm12, %v2428_v6  ;;  %v2531_v43 = vadd.f32 %v2530_v45, %v2529_v17 }
 0x355   : > { %2532 = vst.msk [vmem:[%s268_s26] sm:$0x1] %vm2429_vm12, %v2531_v43 }
 0x356 PF: > { %s17_s21 = sadd.s32 1, %s2873_s21  }
 0x357   : > { %p14_p4 = scmp.ge.s32.totalorder %s17_s21, 4  }
 0x359   :  { %16 = sbr.rel (!%p14_p4) target bundleno = 1 (0x1), region = 91 }

</bundles_post_ra>
